<compile_context>
chip_gen: v6e
topology: v6e:2x2x1
jax: 0.10.0
libtpu: 0.0.40
codegen_flags: <defaults>
</compile_context>

<pallas_src>
import functools

import jax
import jax.numpy as jnp
from jax import lax
from jax.experimental import pallas as pl
from jax.experimental.pallas import tpu as pltpu


def _round_up(x, m):
    return (x + m - 1) // m * m


def _stem_kernel(x_ref, w1_ref, b1_ref, w2_ref, b2_ref, o_ref,
                 pad1_ref, col1_ref, pad2_ref, col2_ref, *,
                 K, stride, padding, H, W, H1, W1, H2, W2, C_in, S1, S2):
    """Fused BranchSeparablesStem forward for one batch element.

    x_ref:    (H, W, C_in)                 NHWC input tile (f32)
    w1_ref:   (K*K*S1, S2)   bf16          packed dw1*pw1*bn1_scale (zero-padded)
    b1_ref:   (1, S2)        f32           bn1 folded bias (zero-padded)
    w2_ref:   (K*K*S2, S2)   bf16          packed dw2*pw2*bn2_scale (zero-padded)
    b2_ref:   (1, S2)        f32           bn2 folded bias (zero-padded)
    o_ref:    (H2*W2, S2)                  lane-dense output slab
    pad1_ref: (H+2p, W+2p, C_in)    bf16   zero-bordered relu(x)
    col1_ref: (H1*W1, K*K*S1)       bf16   stage-1 im2col slab (128-lane slots)
    pad2_ref: (H1+2p, W1+2p, S2)    bf16   zero-bordered relu(stage-1), lane-padded
    col2_ref: (H2*W2, K*K*S2)       bf16   stage-2 im2col slab
    """
    p = padding

    # One-time init of the persistent zero regions (pad-buffer borders and the
    # per-slot lane padding of col1).  Scratch persists across grid steps and
    # the live interior is fully overwritten every step, so this never reruns.
    @pl.when(pl.program_id(0) == 0)
    def _init():
        pad1_ref[...] = jnp.zeros_like(pad1_ref)
        col1_ref[...] = jnp.zeros_like(col1_ref)
        pad2_ref[...] = jnp.zeros_like(pad2_ref)
        col2_ref[...] = jnp.zeros_like(col2_ref)

    # -------- stage 1: ReLU -> separable_1 (dw+pw) -> BN1 (folded) --------
    # ReLU hoisted out of the tap loop; the border stays zero (relu(0)==0).
    pad1_ref[p:p + H, p:p + W, :] = jnp.maximum(
        x_ref[...], 0.0).astype(pad1_ref.dtype)

    # Build the im2col slab: tap t occupies lanes [t*S1, t*S1+C_in) (the rest
    # of each 128-lane slot stays zero from the one-time init).
    for kh in range(K):
        for kw in range(K):
            t = kh * K + kw
            if stride == 1:
                patch = pad1_ref[kh:kh + H1, kw:kw + W1, :]
            else:
                # TODO(synk): untested; phase-decompose once per tile instead.
                patch = pad1_ref[pl.ds(kh, H1, stride=stride),
                                 pl.ds(kw, W1, stride=stride), :]
            col1_ref[:, t * S1:t * S1 + C_in] = patch.reshape(H1 * W1, C_in)

    # Single large-contraction MXU matmul (K-dim = K*K*S1), f32 accumulation.
    y1 = jnp.dot(col1_ref[...], w1_ref[...],
                 preferred_element_type=jnp.float32) + b1_ref[...]

    # -------- stage 2: ReLU -> separable_2 (dw+pw) -> BN2 (folded) --------
    # Stage-1 output stays in VMEM (no HBM round trip); its channel axis is
    # already a full 128-lane slab so all stage-2 copies/stores are dense.
    pad2_ref[p:p + H1, p:p + W1, :] = jnp.maximum(y1, 0.0).reshape(
        H1, W1, S2).astype(pad2_ref.dtype)

    for kh in range(K):
        for kw in range(K):
            t = kh * K + kw
            patch = pad2_ref[kh:kh + H2, kw:kw + W2, :]
            col2_ref[:, t * S2:(t + 1) * S2] = patch.reshape(H2 * W2, S2)

    acc2 = jnp.dot(col2_ref[...], w2_ref[...],
                   preferred_element_type=jnp.float32) + b2_ref[...]
    # Lane-dense (H2*W2, 128) store: full-width unmasked vst.
    o_ref[...] = acc2.astype(o_ref.dtype)


def branch_separables_stem(x_nchw, params, *, K, stride, padding, eps=1e-3):
    """Pallas implementation of BranchSeparablesStem.forward (NCHW in/out)."""
    N, C_in, H, W = x_nchw.shape
    C_mid = params["pw1"].shape[1]                 # out_channels
    S1 = _round_up(C_in, 128)                      # per-tap slot width, stage 1
    S2 = _round_up(C_mid, 128)                     # per-tap slot width / out pad
    H1 = (H + 2 * padding - K) // stride + 1
    W1 = (W + 2 * padding - K) // stride + 1
    H2 = H1 + 2 * padding - K + 1                  # stage-2 stride == 1
    W2 = W1 + 2 * padding - K + 1

    # Fold BatchNorm (eval mode) into scale/bias.
    s1 = params["bn1_gamma"] / jnp.sqrt(params["bn1_var"] + eps)
    c1 = params["bn1_beta"] - params["bn1_mean"] * s1
    s2 = params["bn2_gamma"] / jnp.sqrt(params["bn2_var"] + eps)
    c2 = params["bn2_beta"] - params["bn2_mean"] * s2

    # Packed per-tap weights: row [t*S + c] = dw[t,c] * pw[c,d] * bn_scale[d],
    # zero in the lane-padding rows/cols.  bf16 operands, f32 bias.
    w1_taps = (params["dw1"].reshape(K * K, C_in)[:, :, None]
               * params["pw1"][None, :, :] * s1[None, None, :])
    w1_packed = jnp.zeros((K * K, S1, S2), jnp.float32)
    w1_packed = w1_packed.at[:, :C_in, :C_mid].set(w1_taps)
    w1_packed = w1_packed.reshape(K * K * S1, S2).astype(jnp.bfloat16)

    w2_taps = (params["dw2"].reshape(K * K, C_mid)[:, :, None]
               * params["pw2"][None, :, :] * s2[None, None, :])
    w2_packed = jnp.zeros((K * K, S2, S2), jnp.float32)
    w2_packed = w2_packed.at[:, :C_mid, :C_mid].set(w2_taps)
    w2_packed = w2_packed.reshape(K * K * S2, S2).astype(jnp.bfloat16)

    b1 = jnp.zeros((1, S2), jnp.float32).at[0, :C_mid].set(c1)
    b2 = jnp.zeros((1, S2), jnp.float32).at[0, :C_mid].set(c2)

    x_nhwc = jnp.transpose(x_nchw, (0, 2, 3, 1))   # NCHW -> NHWC (outside kernel)

    kernel = functools.partial(
        _stem_kernel, K=K, stride=stride, padding=padding,
        H=H, W=W, H1=H1, W1=W1, H2=H2, W2=W2, C_in=C_in, S1=S1, S2=S2)

    out = pl.pallas_call(
        kernel,
        out_shape=jax.ShapeDtypeStruct((N, H2 * W2, S2), x_nchw.dtype),
        grid=(N,),
        in_specs=[
            pl.BlockSpec((None, H, W, C_in), lambda n: (n, 0, 0, 0)),
            pl.BlockSpec((K * K * S1, S2), lambda n: (0, 0)),
            pl.BlockSpec((1, S2), lambda n: (0, 0)),
            pl.BlockSpec((K * K * S2, S2), lambda n: (0, 0)),
            pl.BlockSpec((1, S2), lambda n: (0, 0)),
        ],
        out_specs=pl.BlockSpec((None, H2 * W2, S2), lambda n: (n, 0, 0)),
        scratch_shapes=[
            pltpu.VMEM((H + 2 * padding, W + 2 * padding, C_in), jnp.bfloat16),
            pltpu.VMEM((H1 * W1, K * K * S1), jnp.bfloat16),
            pltpu.VMEM((H1 + 2 * padding, W1 + 2 * padding, S2), jnp.bfloat16),
            pltpu.VMEM((H2 * W2, K * K * S2), jnp.bfloat16),
        ],
        compiler_params=pltpu.CompilerParams(
            # "arbitrary": the one-time scratch init (pl.when step==0) needs the
            # grid to run sequentially on a single core.  See v7x TODO above.
            dimension_semantics=("arbitrary",),
            vmem_limit_bytes=48 * 1024 * 1024,
        ),
    )(x_nhwc, w1_packed, b1, w2_packed, b2)

    out = out[:, :, :C_mid].reshape(N, H2, W2, C_mid)
    return jnp.transpose(out, (0, 3, 1, 2))        # NHWC -> NCHW


# ----------------------- pure-JAX reference (for checking) -----------------------
def _ref_stage(x_nhwc, w_dw, w_pw, gamma, beta, rm, rv, *, K, stride, padding,
               eps=1e-3):
    x = jnp.maximum(x_nhwc, 0.0)
    C = x.shape[-1]
    y = lax.conv_general_dilated(
        x, w_dw.reshape(K, K, 1, C),
        window_strides=(stride, stride),
        padding=[(padding, padding), (padding, padding)],
        dimension_numbers=("NHWC", "HWIO", "NHWC"),
        feature_group_count=C)
    y = jnp.einsum("nhwc,cd->nhwd", y, w_pw)
    y = (y - rm) / jnp.sqrt(rv + eps) * gamma + beta
    return y


def reference_forward(x_nchw, params, *, K, stride, padding):
    x = jnp.transpose(x_nchw, (0, 2, 3, 1))
    y = _ref_stage(x, params["dw1"], params["pw1"], params["bn1_gamma"],
                   params["bn1_beta"], params["bn1_mean"], params["bn1_var"],
                   K=K, stride=stride, padding=padding)
    y = _ref_stage(y, params["dw2"], params["pw2"], params["bn2_gamma"],
                   params["bn2_beta"], params["bn2_mean"], params["bn2_var"],
                   K=K, stride=1, padding=padding)
    return jnp.transpose(y, (0, 3, 1, 2))


# ----------------------------------- main -----------------------------------
if __name__ == "__main__":
    key = jax.random.PRNGKey(0)
    N, C_in, H, W = 2, 4, 16, 16
    C_out, K, stride, padding = 8, 3, 1, 1

    ks = jax.random.split(key, 13)
    x = jax.random.normal(ks[0], (N, C_in, H, W), dtype=jnp.float32)

    params = {
        # SeparableConv2d #1: depthwise (C_in,1,K,K) -> (K,K,C_in); pointwise
        # (C_out,C_in,1,1) -> (C_in,C_out)
        "dw1": 0.2 * jax.random.normal(ks[1], (K, K, C_in), dtype=jnp.float32),
        "pw1": 0.2 * jax.random.normal(ks[2], (C_in, C_out), dtype=jnp.float32),
        "bn1_gamma": 1.0 + 0.1 * jax.random.normal(ks[3], (C_out,), jnp.float32),
        "bn1_beta": 0.1 * jax.random.normal(ks[4], (C_out,), jnp.float32),
        "bn1_mean": 0.1 * jax.random.normal(ks[5], (C_out,), jnp.float32),
        "bn1_var": jax.random.uniform(ks[6], (C_out,), jnp.float32, 0.5, 1.5),
        # SeparableConv2d #2
        "dw2": 0.2 * jax.random.normal(ks[7], (K, K, C_out), dtype=jnp.float32),
        "pw2": 0.2 * jax.random.normal(ks[8], (C_out, C_out), dtype=jnp.float32),
        "bn2_gamma": 1.0 + 0.1 * jax.random.normal(ks[9], (C_out,), jnp.float32),
        "bn2_beta": 0.1 * jax.random.normal(ks[10], (C_out,), jnp.float32),
        "bn2_mean": 0.1 * jax.random.normal(ks[11], (C_out,), jnp.float32),
        "bn2_var": jax.random.uniform(ks[12], (C_out,), jnp.float32, 0.5, 1.5),
    }

    out = branch_separables_stem(x, params, K=K, stride=stride, padding=padding)
    out = jax.block_until_ready(out)

    ref = jax.block_until_ready(
        reference_forward(x, params, K=K, stride=stride, padding=padding))

    assert out.shape == ref.shape, (out.shape, ref.shape)
    max_err = float(jnp.max(jnp.abs(out - ref)))
    # bf16 MXU operands (f32 accumulation) vs f32 reference -> loosen tolerance.
    assert jnp.allclose(out, ref, rtol=1e-2, atol=1e-2), max_err
    print("KERNEL_OK")
</pallas_src>

<mosaic_0001>
module attributes {stable_mosaic.version = 11 : i64} {
  func.func @_stem_kernel(%arg0: i32, %arg1: memref<1x16x16x4xf32, #tpu.memory_space<vmem>>, %arg2: memref<1152x128xbf16, #tpu.memory_space<vmem>>, %arg3: memref<1x128xf32, #tpu.memory_space<vmem>>, %arg4: memref<1152x128xbf16, #tpu.memory_space<vmem>>, %arg5: memref<1x128xf32, #tpu.memory_space<vmem>>, %arg6: memref<1x256x128xf32, #tpu.memory_space<vmem>>, %arg7: memref<18x18x4xbf16, #tpu.memory_space<vmem>>, %arg8: memref<256x1152xbf16, #tpu.memory_space<vmem>>, %arg9: memref<18x18x128xbf16, #tpu.memory_space<vmem>>, %arg10: memref<256x1152xbf16, #tpu.memory_space<vmem>>) attributes {dimension_semantics = [#tpu.dimension_semantics<arbitrary>], iteration_bounds = array<i64: 2>, scalar_prefetch = 0 : i64, scratch_operands = 4 : i64, tpu.core_type = #tpu.core_type<tc>, window_params = [{transform_indices = @transform_0, window_bounds = array<i64: 1, 16, 16, 4>}, {pipeline_mode = #tpu.pipeline_mode<synchronous>, transform_indices = @transform_1, window_bounds = array<i64: 1152, 128>}, {pipeline_mode = #tpu.pipeline_mode<synchronous>, transform_indices = @transform_2, window_bounds = array<i64: 1, 128>}, {pipeline_mode = #tpu.pipeline_mode<synchronous>, transform_indices = @transform_3, window_bounds = array<i64: 1152, 128>}, {pipeline_mode = #tpu.pipeline_mode<synchronous>, transform_indices = @transform_4, window_bounds = array<i64: 1, 128>}, {transform_indices = @transform_5, window_bounds = array<i64: 1, 256, 128>}]} {
    %c0_i32 = arith.constant 0 : i32
    %0 = arith.cmpi eq, %arg0, %c0_i32 : i32
    %1 = arith.extui %0 : i1 to i32
    %c0_i32_0 = arith.constant 0 : i32
    %2 = arith.cmpi ne, %1, %c0_i32_0 : i32
    scf.if %2 {
      %cst_108 = arith.constant 0.000000e+00 : bf16
      %83 = vector.broadcast %cst_108 : bf16 to vector<18x18x4xbf16>
      %c0_109 = arith.constant 0 : index
      %c0_110 = arith.constant 0 : index
      %c0_111 = arith.constant 0 : index
      %84 = vector.load %arg7[%c0_109, %c0_110, %c0_111] : memref<18x18x4xbf16, #tpu.memory_space<vmem>>, vector<18x18x4xbf16>
      tpu.vector_store %arg7[%c0_109, %c0_110, %c0_111], %83 {strides = array<i32>} : memref<18x18x4xbf16, #tpu.memory_space<vmem>>, vector<18x18x4xbf16>,
      %cst_112 = arith.constant 0.000000e+00 : bf16
      %85 = vector.broadcast %cst_112 : bf16 to vector<256x1152xbf16>
      %c0_113 = arith.constant 0 : index
      %c0_114 = arith.constant 0 : index
      %86 = vector.load %arg8[%c0_113, %c0_114] : memref<256x1152xbf16, #tpu.memory_space<vmem>>, vector<256x1152xbf16>
      tpu.vector_store %arg8[%c0_113, %c0_114], %85 {strides = array<i32>} : memref<256x1152xbf16, #tpu.memory_space<vmem>>, vector<256x1152xbf16>,
      %cst_115 = arith.constant 0.000000e+00 : bf16
      %87 = vector.broadcast %cst_115 : bf16 to vector<18x18x128xbf16>
      %c0_116 = arith.constant 0 : index
      %c0_117 = arith.constant 0 : index
      %c0_118 = arith.constant 0 : index
      %88 = vector.load %arg9[%c0_116, %c0_117, %c0_118] : memref<18x18x128xbf16, #tpu.memory_space<vmem>>, vector<18x18x128xbf16>
      tpu.vector_store %arg9[%c0_116, %c0_117, %c0_118], %87 {strides = array<i32>} : memref<18x18x128xbf16, #tpu.memory_space<vmem>>, vector<18x18x128xbf16>,
      %cst_119 = arith.constant 0.000000e+00 : bf16
      %89 = vector.broadcast %cst_119 : bf16 to vector<256x1152xbf16>
      %c0_120 = arith.constant 0 : index
      %c0_121 = arith.constant 0 : index
      %90 = vector.load %arg10[%c0_120, %c0_121] : memref<256x1152xbf16, #tpu.memory_space<vmem>>, vector<256x1152xbf16>
      tpu.vector_store %arg10[%c0_120, %c0_121], %89 {strides = array<i32>} : memref<256x1152xbf16, #tpu.memory_space<vmem>>, vector<256x1152xbf16>,
    } else {
    }
    %c0 = arith.constant 0 : index
    %c0_1 = arith.constant 0 : index
    %c0_2 = arith.constant 0 : index
    %c0_3 = arith.constant 0 : index
    %3 = vector.load %arg1[%c0, %c0_1, %c0_2, %c0_3] : memref<1x16x16x4xf32, #tpu.memory_space<vmem>>, vector<1x16x16x4xf32>
    %4 = vector.shape_cast %3 : vector<1x16x16x4xf32> to vector<16x16x4xf32>
    %cst = arith.constant 0.000000e+00 : f32
    %5 = vector.broadcast %cst : f32 to vector<16x16x4xf32>
    %6 = arith.maximumf %4, %5 : vector<16x16x4xf32>
    %7 = arith.truncf %6 : vector<16x16x4xf32> to vector<16x16x4xbf16>
    %c1 = arith.constant 1 : index
    %c1_4 = arith.constant 1 : index
    %c0_5 = arith.constant 0 : index
    %8 = vector.load %arg7[%c1, %c1_4, %c0_5] : memref<18x18x4xbf16, #tpu.memory_space<vmem>>, vector<16x16x4xbf16>
    tpu.vector_store %arg7[%c1, %c1_4, %c0_5], %7 {strides = array<i32>} : memref<18x18x4xbf16, #tpu.memory_space<vmem>>, vector<16x16x4xbf16>,
    %c0_6 = arith.constant 0 : index
    %c0_7 = arith.constant 0 : index
    %c0_8 = arith.constant 0 : index
    %9 = vector.load %arg7[%c0_6, %c0_7, %c0_8] : memref<18x18x4xbf16, #tpu.memory_space<vmem>>, vector<16x16x4xbf16>
    %10 = vector.shape_cast %9 : vector<16x16x4xbf16> to vector<256x4xbf16>
    %c0_9 = arith.constant 0 : index
    %c0_10 = arith.constant 0 : index
    %11 = vector.load %arg8[%c0_9, %c0_10] : memref<256x1152xbf16, #tpu.memory_space<vmem>>, vector<256x4xbf16>
    tpu.vector_store %arg8[%c0_9, %c0_10], %10 {strides = array<i32>} : memref<256x1152xbf16, #tpu.memory_space<vmem>>, vector<256x4xbf16>,
    %c0_11 = arith.constant 0 : index
    %c1_12 = arith.constant 1 : index
    %c0_13 = arith.constant 0 : index
    %12 = vector.load %arg7[%c0_11, %c1_12, %c0_13] : memref<18x18x4xbf16, #tpu.memory_space<vmem>>, vector<16x16x4xbf16>
    %13 = vector.shape_cast %12 : vector<16x16x4xbf16> to vector<256x4xbf16>
    %c0_14 = arith.constant 0 : index
    %c128 = arith.constant 128 : index
    %14 = vector.load %arg8[%c0_14, %c128] : memref<256x1152xbf16, #tpu.memory_space<vmem>>, vector<256x4xbf16>
    tpu.vector_store %arg8[%c0_14, %c128], %13 {strides = array<i32>} : memref<256x1152xbf16, #tpu.memory_space<vmem>>, vector<256x4xbf16>,
    %c0_15 = arith.constant 0 : index
    %c2 = arith.constant 2 : index
    %c0_16 = arith.constant 0 : index
    %15 = vector.load %arg7[%c0_15, %c2, %c0_16] : memref<18x18x4xbf16, #tpu.memory_space<vmem>>, vector<16x16x4xbf16>
    %16 = vector.shape_cast %15 : vector<16x16x4xbf16> to vector<256x4xbf16>
    %c0_17 = arith.constant 0 : index
    %c256 = arith.constant 256 : index
    %17 = vector.load %arg8[%c0_17, %c256] : memref<256x1152xbf16, #tpu.memory_space<vmem>>, vector<256x4xbf16>
    tpu.vector_store %arg8[%c0_17, %c256], %16 {strides = array<i32>} : memref<256x1152xbf16, #tpu.memory_space<vmem>>, vector<256x4xbf16>,
    %c1_18 = arith.constant 1 : index
    %c0_19 = arith.constant 0 : index
    %c0_20 = arith.constant 0 : index
    %18 = vector.load %arg7[%c1_18, %c0_19, %c0_20] : memref<18x18x4xbf16, #tpu.memory_space<vmem>>, vector<16x16x4xbf16>
    %19 = vector.shape_cast %18 : vector<16x16x4xbf16> to vector<256x4xbf16>
    %c0_21 = arith.constant 0 : index
    %c384 = arith.constant 384 : index
    %20 = vector.load %arg8[%c0_21, %c384] : memref<256x1152xbf16, #tpu.memory_space<vmem>>, vector<256x4xbf16>
    tpu.vector_store %arg8[%c0_21, %c384], %19 {strides = array<i32>} : memref<256x1152xbf16, #tpu.memory_space<vmem>>, vector<256x4xbf16>,
    %c1_22 = arith.constant 1 : index
    %c1_23 = arith.constant 1 : index
    %c0_24 = arith.constant 0 : index
    %21 = vector.load %arg7[%c1_22, %c1_23, %c0_24] : memref<18x18x4xbf16, #tpu.memory_space<vmem>>, vector<16x16x4xbf16>
    %22 = vector.shape_cast %21 : vector<16x16x4xbf16> to vector<256x4xbf16>
    %c0_25 = arith.constant 0 : index
    %c512 = arith.constant 512 : index
    %23 = vector.load %arg8[%c0_25, %c512] : memref<256x1152xbf16, #tpu.memory_space<vmem>>, vector<256x4xbf16>
    tpu.vector_store %arg8[%c0_25, %c512], %22 {strides = array<i32>} : memref<256x1152xbf16, #tpu.memory_space<vmem>>, vector<256x4xbf16>,
    %c1_26 = arith.constant 1 : index
    %c2_27 = arith.constant 2 : index
    %c0_28 = arith.constant 0 : index
    %24 = vector.load %arg7[%c1_26, %c2_27, %c0_28] : memref<18x18x4xbf16, #tpu.memory_space<vmem>>, vector<16x16x4xbf16>
    %25 = vector.shape_cast %24 : vector<16x16x4xbf16> to vector<256x4xbf16>
    %c0_29 = arith.constant 0 : index
    %c640 = arith.constant 640 : index
    %26 = vector.load %arg8[%c0_29, %c640] : memref<256x1152xbf16, #tpu.memory_space<vmem>>, vector<256x4xbf16>
    tpu.vector_store %arg8[%c0_29, %c640], %25 {strides = array<i32>} : memref<256x1152xbf16, #tpu.memory_space<vmem>>, vector<256x4xbf16>,
    %c2_30 = arith.constant 2 : index
    %c0_31 = arith.constant 0 : index
    %c0_32 = arith.constant 0 : index
    %27 = vector.load %arg7[%c2_30, %c0_31, %c0_32] : memref<18x18x4xbf16, #tpu.memory_space<vmem>>, vector<16x16x4xbf16>
    %28 = vector.shape_cast %27 : vector<16x16x4xbf16> to vector<256x4xbf16>
    %c0_33 = arith.constant 0 : index
    %c768 = arith.constant 768 : index
    %29 = vector.load %arg8[%c0_33, %c768] : memref<256x1152xbf16, #tpu.memory_space<vmem>>, vector<256x4xbf16>
    tpu.vector_store %arg8[%c0_33, %c768], %28 {strides = array<i32>} : memref<256x1152xbf16, #tpu.memory_space<vmem>>, vector<256x4xbf16>,
    %c2_34 = arith.constant 2 : index
    %c1_35 = arith.constant 1 : index
    %c0_36 = arith.constant 0 : index
    %30 = vector.load %arg7[%c2_34, %c1_35, %c0_36] : memref<18x18x4xbf16, #tpu.memory_space<vmem>>, vector<16x16x4xbf16>
    %31 = vector.shape_cast %30 : vector<16x16x4xbf16> to vector<256x4xbf16>
    %c0_37 = arith.constant 0 : index
    %c896 = arith.constant 896 : index
    %32 = vector.load %arg8[%c0_37, %c896] : memref<256x1152xbf16, #tpu.memory_space<vmem>>, vector<256x4xbf16>
    tpu.vector_store %arg8[%c0_37, %c896], %31 {strides = array<i32>} : memref<256x1152xbf16, #tpu.memory_space<vmem>>, vector<256x4xbf16>,
    %c2_38 = arith.constant 2 : index
    %c2_39 = arith.constant 2 : index
    %c0_40 = arith.constant 0 : index
    %33 = vector.load %arg7[%c2_38, %c2_39, %c0_40] : memref<18x18x4xbf16, #tpu.memory_space<vmem>>, vector<16x16x4xbf16>
    %34 = vector.shape_cast %33 : vector<16x16x4xbf16> to vector<256x4xbf16>
    %c0_41 = arith.constant 0 : index
    %c1024 = arith.constant 1024 : index
    %35 = vector.load %arg8[%c0_41, %c1024] : memref<256x1152xbf16, #tpu.memory_space<vmem>>, vector<256x4xbf16>
    tpu.vector_store %arg8[%c0_41, %c1024], %34 {strides = array<i32>} : memref<256x1152xbf16, #tpu.memory_space<vmem>>, vector<256x4xbf16>,
    %c0_42 = arith.constant 0 : index
    %c0_43 = arith.constant 0 : index
    %36 = vector.load %arg8[%c0_42, %c0_43] : memref<256x1152xbf16, #tpu.memory_space<vmem>>, vector<256x1152xbf16>
    %c0_44 = arith.constant 0 : index
    %c0_45 = arith.constant 0 : index
    %37 = vector.load %arg2[%c0_44, %c0_45] : memref<1152x128xbf16, #tpu.memory_space<vmem>>, vector<1152x128xbf16>
    %cst_46 = arith.constant dense<0.000000e+00> : vector<256x128xf32>
    %38 = tpu.matmul %36, %37, %cst_46 {dimension_numbers = #tpu.dot_dimension_numbers<[1], [0], [0], [1], [0, 0, 1, 1], [], []>} : vector<256x1152xbf16>, vector<1152x128xbf16>, vector<256x128xf32> -> vector<256x128xf32>
    %c0_47 = arith.constant 0 : index
    %c0_48 = arith.constant 0 : index
    %39 = vector.load %arg3[%c0_47, %c0_48] : memref<1x128xf32, #tpu.memory_space<vmem>>, vector<1x128xf32>
    %40 = vector.broadcast %39 : vector<1x128xf32> to vector<256x128xf32>
    %41 = arith.addf %38, %40 : vector<256x128xf32>
    %cst_49 = arith.constant 0.000000e+00 : f32
    %42 = vector.broadcast %cst_49 : f32 to vector<256x128xf32>
    %43 = arith.maximumf %41, %42 : vector<256x128xf32>
    %44 = vector.shape_cast %43 : vector<256x128xf32> to vector<16x16x128xf32>
    %45 = arith.truncf %44 : vector<16x16x128xf32> to vector<16x16x128xbf16>
    %c1_50 = arith.constant 1 : index
    %c1_51 = arith.constant 1 : index
    %c0_52 = arith.constant 0 : index
    %46 = vector.load %arg9[%c1_50, %c1_51, %c0_52] : memref<18x18x128xbf16, #tpu.memory_space<vmem>>, vector<16x16x128xbf16>
    tpu.vector_store %arg9[%c1_50, %c1_51, %c0_52], %45 {strides = array<i32>} : memref<18x18x128xbf16, #tpu.memory_space<vmem>>, vector<16x16x128xbf16>,
    %c0_53 = arith.constant 0 : index
    %c0_54 = arith.constant 0 : index
    %c0_55 = arith.constant 0 : index
    %47 = vector.load %arg9[%c0_53, %c0_54, %c0_55] : memref<18x18x128xbf16, #tpu.memory_space<vmem>>, vector<16x16x128xbf16>
    %48 = vector.shape_cast %47 : vector<16x16x128xbf16> to vector<256x128xbf16>
    %c0_56 = arith.constant 0 : index
    %c0_57 = arith.constant 0 : index
    %49 = vector.load %arg10[%c0_56, %c0_57] : memref<256x1152xbf16, #tpu.memory_space<vmem>>, vector<256x128xbf16>
    tpu.vector_store %arg10[%c0_56, %c0_57], %48 {strides = array<i32>} : memref<256x1152xbf16, #tpu.memory_space<vmem>>, vector<256x128xbf16>,
    %c0_58 = arith.constant 0 : index
    %c1_59 = arith.constant 1 : index
    %c0_60 = arith.constant 0 : index
    %50 = vector.load %arg9[%c0_58, %c1_59, %c0_60] : memref<18x18x128xbf16, #tpu.memory_space<vmem>>, vector<16x16x128xbf16>
    %51 = vector.shape_cast %50 : vector<16x16x128xbf16> to vector<256x128xbf16>
    %c0_61 = arith.constant 0 : index
    %c128_62 = arith.constant 128 : index
    %52 = vector.load %arg10[%c0_61, %c128_62] : memref<256x1152xbf16, #tpu.memory_space<vmem>>, vector<256x128xbf16>
    tpu.vector_store %arg10[%c0_61, %c128_62], %51 {strides = array<i32>} : memref<256x1152xbf16, #tpu.memory_space<vmem>>, vector<256x128xbf16>,
    %c0_63 = arith.constant 0 : index
    %c2_64 = arith.constant 2 : index
    %c0_65 = arith.constant 0 : index
    %53 = vector.load %arg9[%c0_63, %c2_64, %c0_65] : memref<18x18x128xbf16, #tpu.memory_space<vmem>>, vector<16x16x128xbf16>
    %54 = vector.shape_cast %53 : vector<16x16x128xbf16> to vector<256x128xbf16>
    %c0_66 = arith.constant 0 : index
    %c256_67 = arith.constant 256 : index
    %55 = vector.load %arg10[%c0_66, %c256_67] : memref<256x1152xbf16, #tpu.memory_space<vmem>>, vector<256x128xbf16>
    tpu.vector_store %arg10[%c0_66, %c256_67], %54 {strides = array<i32>} : memref<256x1152xbf16, #tpu.memory_space<vmem>>, vector<256x128xbf16>,
    %c1_68 = arith.constant 1 : index
    %c0_69 = arith.constant 0 : index
    %c0_70 = arith.constant 0 : index
    %56 = vector.load %arg9[%c1_68, %c0_69, %c0_70] : memref<18x18x128xbf16, #tpu.memory_space<vmem>>, vector<16x16x128xbf16>
    %57 = vector.shape_cast %56 : vector<16x16x128xbf16> to vector<256x128xbf16>
    %c0_71 = arith.constant 0 : index
    %c384_72 = arith.constant 384 : index
    %58 = vector.load %arg10[%c0_71, %c384_72] : memref<256x1152xbf16, #tpu.memory_space<vmem>>, vector<256x128xbf16>
    tpu.vector_store %arg10[%c0_71, %c384_72], %57 {strides = array<i32>} : memref<256x1152xbf16, #tpu.memory_space<vmem>>, vector<256x128xbf16>,
    %c1_73 = arith.constant 1 : index
    %c1_74 = arith.constant 1 : index
    %c0_75 = arith.constant 0 : index
    %59 = vector.load %arg9[%c1_73, %c1_74, %c0_75] : memref<18x18x128xbf16, #tpu.memory_space<vmem>>, vector<16x16x128xbf16>
    %60 = vector.shape_cast %59 : vector<16x16x128xbf16> to vector<256x128xbf16>
    %c0_76 = arith.constant 0 : index
    %c512_77 = arith.constant 512 : index
    %61 = vector.load %arg10[%c0_76, %c512_77] : memref<256x1152xbf16, #tpu.memory_space<vmem>>, vector<256x128xbf16>
    tpu.vector_store %arg10[%c0_76, %c512_77], %60 {strides = array<i32>} : memref<256x1152xbf16, #tpu.memory_space<vmem>>, vector<256x128xbf16>,
    %c1_78 = arith.constant 1 : index
    %c2_79 = arith.constant 2 : index
    %c0_80 = arith.constant 0 : index
    %62 = vector.load %arg9[%c1_78, %c2_79, %c0_80] : memref<18x18x128xbf16, #tpu.memory_space<vmem>>, vector<16x16x128xbf16>
    %63 = vector.shape_cast %62 : vector<16x16x128xbf16> to vector<256x128xbf16>
    %c0_81 = arith.constant 0 : index
    %c640_82 = arith.constant 640 : index
    %64 = vector.load %arg10[%c0_81, %c640_82] : memref<256x1152xbf16, #tpu.memory_space<vmem>>, vector<256x128xbf16>
    tpu.vector_store %arg10[%c0_81, %c640_82], %63 {strides = array<i32>} : memref<256x1152xbf16, #tpu.memory_space<vmem>>, vector<256x128xbf16>,
    %c2_83 = arith.constant 2 : index
    %c0_84 = arith.constant 0 : index
    %c0_85 = arith.constant 0 : index
    %65 = vector.load %arg9[%c2_83, %c0_84, %c0_85] : memref<18x18x128xbf16, #tpu.memory_space<vmem>>, vector<16x16x128xbf16>
    %66 = vector.shape_cast %65 : vector<16x16x128xbf16> to vector<256x128xbf16>
    %c0_86 = arith.constant 0 : index
    %c768_87 = arith.constant 768 : index
    %67 = vector.load %arg10[%c0_86, %c768_87] : memref<256x1152xbf16, #tpu.memory_space<vmem>>, vector<256x128xbf16>
    tpu.vector_store %arg10[%c0_86, %c768_87], %66 {strides = array<i32>} : memref<256x1152xbf16, #tpu.memory_space<vmem>>, vector<256x128xbf16>,
    %c2_88 = arith.constant 2 : index
    %c1_89 = arith.constant 1 : index
    %c0_90 = arith.constant 0 : index
    %68 = vector.load %arg9[%c2_88, %c1_89, %c0_90] : memref<18x18x128xbf16, #tpu.memory_space<vmem>>, vector<16x16x128xbf16>
    %69 = vector.shape_cast %68 : vector<16x16x128xbf16> to vector<256x128xbf16>
    %c0_91 = arith.constant 0 : index
    %c896_92 = arith.constant 896 : index
    %70 = vector.load %arg10[%c0_91, %c896_92] : memref<256x1152xbf16, #tpu.memory_space<vmem>>, vector<256x128xbf16>
    tpu.vector_store %arg10[%c0_91, %c896_92], %69 {strides = array<i32>} : memref<256x1152xbf16, #tpu.memory_space<vmem>>, vector<256x128xbf16>,
    %c2_93 = arith.constant 2 : index
    %c2_94 = arith.constant 2 : index
    %c0_95 = arith.constant 0 : index
    %71 = vector.load %arg9[%c2_93, %c2_94, %c0_95] : memref<18x18x128xbf16, #tpu.memory_space<vmem>>, vector<16x16x128xbf16>
    %72 = vector.shape_cast %71 : vector<16x16x128xbf16> to vector<256x128xbf16>
    %c0_96 = arith.constant 0 : index
    %c1024_97 = arith.constant 1024 : index
    %73 = vector.load %arg10[%c0_96, %c1024_97] : memref<256x1152xbf16, #tpu.memory_space<vmem>>, vector<256x128xbf16>
    tpu.vector_store %arg10[%c0_96, %c1024_97], %72 {strides = array<i32>} : memref<256x1152xbf16, #tpu.memory_space<vmem>>, vector<256x128xbf16>,
    %c0_98 = arith.constant 0 : index
    %c0_99 = arith.constant 0 : index
    %74 = vector.load %arg10[%c0_98, %c0_99] : memref<256x1152xbf16, #tpu.memory_space<vmem>>, vector<256x1152xbf16>
    %c0_100 = arith.constant 0 : index
    %c0_101 = arith.constant 0 : index
    %75 = vector.load %arg4[%c0_100, %c0_101] : memref<1152x128xbf16, #tpu.memory_space<vmem>>, vector<1152x128xbf16>
    %cst_102 = arith.constant dense<0.000000e+00> : vector<256x128xf32>
    %76 = tpu.matmul %74, %75, %cst_102 {dimension_numbers = #tpu.dot_dimension_numbers<[1], [0], [0], [1], [0, 0, 1, 1], [], []>} : vector<256x1152xbf16>, vector<1152x128xbf16>, vector<256x128xf32> -> vector<256x128xf32>
    %c0_103 = arith.constant 0 : index
    %c0_104 = arith.constant 0 : index
    %77 = vector.load %arg5[%c0_103, %c0_104] : memref<1x128xf32, #tpu.memory_space<vmem>>, vector<1x128xf32>
    %78 = vector.broadcast %77 : vector<1x128xf32> to vector<256x128xf32>
    %79 = arith.addf %76, %78 : vector<256x128xf32>
    %c0_105 = arith.constant 0 : index
    %c0_106 = arith.constant 0 : index
    %c0_107 = arith.constant 0 : index
    %80 = vector.load %arg6[%c0_105, %c0_106, %c0_107] : memref<1x256x128xf32, #tpu.memory_space<vmem>>, vector<1x256x128xf32>
    %81 = vector.shape_cast %80 : vector<1x256x128xf32> to vector<256x128xf32>
    %82 = vector.shape_cast %79 : vector<256x128xf32> to vector<1x256x128xf32>
    tpu.vector_store %arg6[%c0_105, %c0_106, %c0_107], %82 {strides = array<i32>} : memref<1x256x128xf32, #tpu.memory_space<vmem>>, vector<1x256x128xf32>,
    return
  }
  func.func @transform_0(%arg0: i32) -> (i32, i32, i32, i32) {
    %c0_i32 = arith.constant 0 : i32
    %c0_i32_0 = arith.constant 0 : i32
    %c0_i32_1 = arith.constant 0 : i32
    %c0_i32_2 = arith.constant 0 : i32
    return %arg0, %c0_i32, %c0_i32_0, %c0_i32_1 : i32, i32, i32, i32
  }
  func.func @transform_1(%arg0: i32) -> (i32, i32) {
    %c0_i32 = arith.constant 0 : i32
    %c0_i32_0 = arith.constant 0 : i32
    %c0_i32_1 = arith.constant 0 : i32
    return %c0_i32, %c0_i32_0 : i32, i32
  }
  func.func @transform_2(%arg0: i32) -> (i32, i32) {
    %c0_i32 = arith.constant 0 : i32
    %c0_i32_0 = arith.constant 0 : i32
    %c0_i32_1 = arith.constant 0 : i32
    return %c0_i32, %c0_i32_0 : i32, i32
  }
  func.func @transform_3(%arg0: i32) -> (i32, i32) {
    %c0_i32 = arith.constant 0 : i32
    %c0_i32_0 = arith.constant 0 : i32
    %c0_i32_1 = arith.constant 0 : i32
    return %c0_i32, %c0_i32_0 : i32, i32
  }
  func.func @transform_4(%arg0: i32) -> (i32, i32) {
    %c0_i32 = arith.constant 0 : i32
    %c0_i32_0 = arith.constant 0 : i32
    %c0_i32_1 = arith.constant 0 : i32
    return %c0_i32, %c0_i32_0 : i32, i32
  }
  func.func @transform_5(%arg0: i32) -> (i32, i32, i32) {
    %c0_i32 = arith.constant 0 : i32
    %c0_i32_0 = arith.constant 0 : i32
    %c0_i32_1 = arith.constant 0 : i32
    return %arg0, %c0_i32, %c0_i32_0 : i32, i32, i32
  }
}

</mosaic_0001>

<bundles_post_ra>
// kernel: tpu_custom_call.1
= control target key start
LH: loop header
LB: loop body
LE: loop exit
PB: predicated region body
PF: predicated region fallthrough
CT: control target
= control target key end

     0   :  { %10 = vsyncpa [#allocation7], 0  ;;  %s18379_s0 = inlined_call_operand.vmem [shape: f32[2,16,16,4], index: 0, kind: input, shape index: {}]   ;;  %s18380_s1 = inlined_call_operand.vmem [shape: bf16[1152,128], index: 1, kind: input, shape index: {}]   ;;  %s18381_s2 = inlined_call_operand.vmem [shape: f32[1,128], index: 2, kind: input, shape index: {}]   ;;  %s18382_s3 = inlined_call_operand.hbm [shape: bf16[1152,128], index: 3, kind: input, shape index: {}]   ;;  %s18383_s4 = inlined_call_operand.vmem [shape: f32[1,128], index: 4, kind: input, shape index: {}]   ;;  %s18384_s5 = inlined_call_operand.hbm [shape: f32[2,256,128], index: 5, kind: output, shape index: {}]  }
   0x1   :  { %11 = vsyncpa [#allocation8], 0 }
   0x2   :  { %13 = vsyncpa [#allocation8 + $0x1], 0  ;;  %s14008_s18 = smov 0   ;;  %s14010_s19 = smov 0  }
   0x3   :  { %s14012_s20 = smov 0   ;;  %s14014_s21 = smov 0  }
   0x4 LB: > { %s14029_s22 = sadd.s32 4294967295, %s13969_s21   ;;  %s11528_s23 = sadd.s32 4294967294, %s13969_s21   ;;  %s13969_s21 = sphi %s14014_s21, %s18789_s21   ;;  %s13965_s20 = sphi %s14012_s20, %s18788_s20   ;;  %s13961_s19 = sphi %s14010_s19, %s18787_s19   ;;  %s13957_s18 = sphi %s14008_s18, %s18786_s18  }
   0x5   : > { %s14033_s24 = sadd.s32 1, %s13969_s21   ;;  %s136_s25 = sadd.s32 1, %s13965_s20 }
   0x6   : > { %s133_s26 = ssub.s32 %s13969_s21, %s14033_s24  ;;  %p146_p0 = scmp.ne.s32.totalorder %s13965_s20, %s13961_s19 }
   0x7   : > { %p134_p1 = scmp.eq.s32.totalorder %s133_s26, 0  ;;  %p147_p2 = scmp.eq.s32.totalorder %s14029_s22, 1 }
   0x8   : > { %p152_p3 = scmp.ne.s32.totalorder %s13961_s19, %s13957_s18  ;;  %p153_p4 = scmp.eq.s32.totalorder %s11528_s23, 1 }
   0x9   : > { %s14044_s27 = scalar_select %p134_p1, %s13965_s20, %s136_s25  }
   0xa   : > { %p14046_p5 = por %p147_p2, %p146_p0  ;;  %p14050_p6 = por %p153_p4, %p152_p3 }
   0xb   : > { %p11529_p7 = scmp.ge.s32.totalorder %s13969_s21, 1  ;;  %p160_p8 = scmp.lt.s32.totalorder %s13969_s21, 3 }
   0xc   : > { %s18437_s29 = scalar_select %p14050_p6, 1, 0 }
   0xd   : > { %p13257_p10 = scmp.eq.s32.totalorder %s14029_s22, 0  ;;  %p14058_p11 = pnand %p11529_p7, %p160_p8 }
   0xe   : > { %s13971_s6 = smov [#allocation6]  }
   0xf   : > { %s178_s7 = sshll.u32 %s13971_s6, 4  ;;  %p13249_p12 = pneg %p14058_p11  ;;  %s179_s7 = int_to_ptr.vmem [resolvable:$true] %s178_s7 }
  0x10   : > { %s13890_s8 = scalar_lea.vmem %s179_s7, 9216  ;;  %p13898_p4 = scmp.lt.s32.totalorder %s179_s7, %s179_s7 }
  0x11   : > { %p13250_p13 = pnand %p13257_p10, %p13249_p12  ;;  %p13891_p1 = scmp.ne.s32.totalorder %s179_s7, %s13890_s8 }
  0x12   : > { %p13899_p9 = scmp.lt.s32.totalorder %s13890_s8, %s13890_s8 }
  0x13   : > { %p13881_p0 = pneg %p13250_p13 }
  0x14   : > { %p13900_p6 = por %p13899_p9, %p13898_p4 }
  0x15   : > { %p13893_p2 = pnand %p13891_p1, %p13881_p0 }
  0x17   : > { %p13894_p3 = pneg %p13893_p2 }
  0x19   : > { %p13901_p7 = pnand %p13900_p6, %p13894_p3 }
  0x1b   : > { %13904 = shalt.err (!%p13901_p7)
}
  0x1c   : > { %s13972_s9 = smov 64   ;;  %s13973_s10 = smov 4  }
  0x1d   : > { %13252 = dma.hbm_to_vmem [thread:$0]  (!%p13250_p13), %s18382_s3, 9216, %s179_s7, [#allocation7], %s13972_s9, %s13972_s9, %s13973_s10  }
  0x1e   : > { %205 = sbr.rel (%p14058_p11) target bundleno = 1679 (0x68f), region = 40 }
  0x23   : > { %13948 = dma.done.wait (%p13257_p10), [#allocation7], 9216  }
  0x24   : > { %13950 = vsyncadd (%p13257_p10), [#allocation7], 4294958080  ;;  %s230_s13 = sand.u32 1, %s13961_s19   ;;  %p233_p6 = scmp.lt.s32.totalorder %s14029_s22, 1 }
  0x25   : > { %s11534_s14 = sshll.u32 %s230_s13, 8  ;;  %p18439_p8 = scmp.ne.s32.totalorder %s14029_s22, 0 }
  0x26   : > { %s234_s15 = scalar_select %p233_p6, %s14029_s22, 1 }
  0x27   : > { %s14085_s26 = scalar_lea.vmem [#allocation9], %s11534_s14  ;;  %242 = sbr.rel (%p18439_p8) target bundleno = 259 (0x103), region = 48 }
  0x28   : > { %s12137_s16 = sshll.u32 %s234_s15, 8 }
  0x29   : > { %s14083_s25 = scalar_lea.vmem %s18379_s0, %s12137_s16 }
  0x2c   : > { %vm243_vm0 = vcmask 27648   ;;  %vm246_vm1 = vcmask 24576   ;;  %v13974_v0 = vmov 0  }
  0x2d   : > { %244 = vst.msk [vmem:[#allocation2] sm:$0xf] %vm243_vm0, %v13974_v0  ;;  %245 = vst.msk [vmem:[#allocation2 + $0x4] sm:$0xf] %vm243_vm0, %v13974_v0 }
  0x2e   : > { %248 = vst.msk [vmem:[#allocation2 + $0xc] sm:$0xf] %vm243_vm0, %v13974_v0  ;;  %249 = vst.msk [vmem:[#allocation2 + $0x10] sm:$0xf] %vm243_vm0, %v13974_v0 }
  0x2f   : > { %251 = vst.msk [vmem:[#allocation2 + $0x18] sm:$0xf] %vm243_vm0, %v13974_v0  ;;  %252 = vst.msk [vmem:[#allocation2 + $0x1c] sm:$0xf] %vm243_vm0, %v13974_v0 }
  0x30   : > { %254 = vst.msk [vmem:[#allocation2 + $0x24] sm:$0xf] %vm243_vm0, %v13974_v0  ;;  %255 = vst.msk [vmem:[#allocation2 + $0x28] sm:$0xf] %vm243_vm0, %v13974_v0 }
  0x31   : > { %257 = vst.msk [vmem:[#allocation2 + $0x30] sm:$0xf] %vm243_vm0, %v13974_v0  ;;  %258 = vst.msk [vmem:[#allocation2 + $0x34] sm:$0xf] %vm243_vm0, %v13974_v0 }
  0x32   : > { %260 = vst.msk [vmem:[#allocation2 + $0x3c] sm:$0xf] %vm243_vm0, %v13974_v0  ;;  %261 = vst.msk [vmem:[#allocation2 + $0x40] sm:$0xf] %vm243_vm0, %v13974_v0 }
  0x33   : > { %263 = vst.msk [vmem:[#allocation2 + $0x48] sm:$0xf] %vm243_vm0, %v13974_v0  ;;  %264 = vst.msk [vmem:[#allocation2 + $0x4c] sm:$0xf] %vm243_vm0, %v13974_v0 }
  0x34   : > { %266 = vst.msk [vmem:[#allocation2 + $0x54] sm:$0xf] %vm243_vm0, %v13974_v0  ;;  %267 = vst.msk [vmem:[#allocation2 + $0x58] sm:$0xf] %vm243_vm0, %v13974_v0 }
  0x35   : > { %269 = vst.msk [vmem:[#allocation2 + $0x60] sm:$0xf] %vm243_vm0, %v13974_v0  ;;  %270 = vst.msk [vmem:[#allocation2 + $0x64] sm:$0xf] %vm243_vm0, %v13974_v0 }
  0x36   : > { %272 = vst.msk [vmem:[#allocation2 + $0x6c] sm:$0xf] %vm243_vm0, %v13974_v0  ;;  %273 = vst.msk [vmem:[#allocation2 + $0x70] sm:$0xf] %vm243_vm0, %v13974_v0 }
  0x37   : > { %275 = vst.msk [vmem:[#allocation2 + $0x78] sm:$0xf] %vm243_vm0, %v13974_v0  ;;  %276 = vst.msk [vmem:[#allocation2 + $0x7c] sm:$0xf] %vm243_vm0, %v13974_v0 }
  0x38   : > { %278 = vst.msk [vmem:[#allocation2 + $0x84] sm:$0xf] %vm243_vm0, %v13974_v0  ;;  %279 = vst.msk [vmem:[#allocation2 + $0x88] sm:$0xf] %vm243_vm0, %v13974_v0 }
  0x39   : > { %281 = vst.msk [vmem:[#allocation2 + $0x90] sm:$0xf] %vm243_vm0, %v13974_v0  ;;  %282 = vst.msk [vmem:[#allocation2 + $0x94] sm:$0xf] %vm243_vm0, %v13974_v0 }
  0x3a   : > { %284 = vst.msk [vmem:[#allocation2 + $0x9c] sm:$0xf] %vm243_vm0, %v13974_v0  ;;  %285 = vst.msk [vmem:[#allocation2 + $0xa0] sm:$0xf] %vm243_vm0, %v13974_v0 }
  0x3b   : > { %287 = vst.msk [vmem:[#allocation2 + $0xa8] sm:$0xf] %vm243_vm0, %v13974_v0  ;;  %288 = vst.msk [vmem:[#allocation2 + $0xac] sm:$0xf] %vm243_vm0, %v13974_v0 }
  0x3c   : > { %290 = vst.msk [vmem:[#allocation2 + $0xb4] sm:$0xf] %vm243_vm0, %v13974_v0  ;;  %291 = vst.msk [vmem:[#allocation2 + $0xb8] sm:$0xf] %vm243_vm0, %v13974_v0 }
  0x3d   : > { %293 = vst.msk [vmem:[#allocation2 + $0xc0] sm:$0xf] %vm243_vm0, %v13974_v0  ;;  %294 = vst.msk [vmem:[#allocation2 + $0xc4] sm:$0xf] %vm243_vm0, %v13974_v0 }
  0x3e   : > { %296 = vst.msk [vmem:[#allocation2 + $0xcc] sm:$0xf] %vm243_vm0, %v13974_v0  ;;  %297 = vst.msk [vmem:[#allocation2 + $0xd0] sm:$0xf] %vm243_vm0, %v13974_v0 }
  0x3f   : > { %299 = vst [vmem:[#allocation3] sm:$0xff] %v13974_v0  ;;  %300 = vst [vmem:[#allocation3 + $0x8] sm:$0xff] %v13974_v0 }
  0x40   : > { %301 = vst [vmem:[#allocation3 + $0x10] sm:$0xff] %v13974_v0  ;;  %302 = vst [vmem:[#allocation3 + $0x18] sm:$0xff] %v13974_v0 }
  0x41   : > { %303 = vst [vmem:[#allocation3 + $0x20] sm:$0xf] %v13974_v0  ;;  %304 = vst [vmem:[#allocation3 + $0x24] sm:$0xff] %v13974_v0 }
  0x42   : > { %305 = vst [vmem:[#allocation3 + $0x2c] sm:$0xff] %v13974_v0  ;;  %306 = vst [vmem:[#allocation3 + $0x34] sm:$0xff] %v13974_v0 }
  0x43   : > { %307 = vst [vmem:[#allocation3 + $0x3c] sm:$0xff] %v13974_v0  ;;  %308 = vst [vmem:[#allocation3 + $0x44] sm:$0xf] %v13974_v0 }
  0x44   : > { %309 = vst [vmem:[#allocation3 + $0x48] sm:$0xff] %v13974_v0  ;;  %310 = vst [vmem:[#allocation3 + $0x50] sm:$0xff] %v13974_v0 }
  0x45   : > { %311 = vst [vmem:[#allocation3 + $0x58] sm:$0xff] %v13974_v0  ;;  %312 = vst [vmem:[#allocation3 + $0x60] sm:$0xff] %v13974_v0 }
  0x46   : > { %313 = vst [vmem:[#allocation3 + $0x68] sm:$0xf] %v13974_v0  ;;  %314 = vst [vmem:[#allocation3 + $0x6c] sm:$0xff] %v13974_v0 }
  0x47   : > { %315 = vst [vmem:[#allocation3 + $0x74] sm:$0xff] %v13974_v0  ;;  %316 = vst [vmem:[#allocation3 + $0x7c] sm:$0xff] %v13974_v0 }
  0x48   : > { %317 = vst [vmem:[#allocation3 + $0x84] sm:$0xff] %v13974_v0  ;;  %318 = vst [vmem:[#allocation3 + $0x8c] sm:$0xf] %v13974_v0 }
  0x49   : > { %319 = vst [vmem:[#allocation3 + $0x90] sm:$0xff] %v13974_v0  ;;  %320 = vst [vmem:[#allocation3 + $0x98] sm:$0xff] %v13974_v0 }
  0x4a   : > { %321 = vst [vmem:[#allocation3 + $0xa0] sm:$0xff] %v13974_v0  ;;  %322 = vst [vmem:[#allocation3 + $0xa8] sm:$0xff] %v13974_v0 }
  0x4b   : > { %323 = vst [vmem:[#allocation3 + $0xb0] sm:$0xf] %v13974_v0  ;;  %324 = vst [vmem:[#allocation3 + $0xb4] sm:$0xff] %v13974_v0 }
  0x4c   : > { %325 = vst [vmem:[#allocation3 + $0xbc] sm:$0xff] %v13974_v0  ;;  %326 = vst [vmem:[#allocation3 + $0xc4] sm:$0xff] %v13974_v0 }
  0x4d   : > { %327 = vst [vmem:[#allocation3 + $0xcc] sm:$0xff] %v13974_v0  ;;  %328 = vst [vmem:[#allocation3 + $0xd4] sm:$0xf] %v13974_v0 }
  0x4e   : > { %329 = vst [vmem:[#allocation3 + $0xd8] sm:$0xff] %v13974_v0  ;;  %330 = vst [vmem:[#allocation3 + $0xe0] sm:$0xff] %v13974_v0 }
  0x4f   : > { %331 = vst [vmem:[#allocation3 + $0xe8] sm:$0xff] %v13974_v0  ;;  %332 = vst [vmem:[#allocation3 + $0xf0] sm:$0xff] %v13974_v0 }
  0x50   : > { %333 = vst [vmem:[#allocation3 + $0xf8] sm:$0xf] %v13974_v0  ;;  %334 = vst [vmem:[#allocation3 + $0xfc] sm:$0xff] %v13974_v0 }
  0x51   : > { %335 = vst [vmem:[#allocation3 + $0x104] sm:$0xff] %v13974_v0  ;;  %336 = vst [vmem:[#allocation3 + $0x10c] sm:$0xff] %v13974_v0 }
  0x52   : > { %337 = vst [vmem:[#allocation3 + $0x114] sm:$0xff] %v13974_v0  ;;  %338 = vst [vmem:[#allocation3 + $0x11c] sm:$0xf] %v13974_v0 }
  0x53   : > { %339 = vst [vmem:[#allocation3 + $0x120] sm:$0xff] %v13974_v0  ;;  %340 = vst [vmem:[#allocation3 + $0x128] sm:$0xff] %v13974_v0 }
  0x54   : > { %341 = vst [vmem:[#allocation3 + $0x130] sm:$0xff] %v13974_v0  ;;  %342 = vst [vmem:[#allocation3 + $0x138] sm:$0xff] %v13974_v0 }
  0x55   : > { %343 = vst [vmem:[#allocation3 + $0x140] sm:$0xf] %v13974_v0  ;;  %344 = vst [vmem:[#allocation3 + $0x144] sm:$0xff] %v13974_v0 }
  0x56   : > { %345 = vst [vmem:[#allocation3 + $0x14c] sm:$0xff] %v13974_v0  ;;  %346 = vst [vmem:[#allocation3 + $0x154] sm:$0xff] %v13974_v0 }
  0x57   : > { %347 = vst [vmem:[#allocation3 + $0x15c] sm:$0xff] %v13974_v0  ;;  %348 = vst [vmem:[#allocation3 + $0x164] sm:$0xf] %v13974_v0 }
  0x58   : > { %349 = vst [vmem:[#allocation3 + $0x168] sm:$0xff] %v13974_v0  ;;  %350 = vst [vmem:[#allocation3 + $0x170] sm:$0xff] %v13974_v0 }
  0x59   : > { %351 = vst [vmem:[#allocation3 + $0x178] sm:$0xff] %v13974_v0  ;;  %352 = vst [vmem:[#allocation3 + $0x180] sm:$0xff] %v13974_v0 }
  0x5a   : > { %353 = vst [vmem:[#allocation3 + $0x188] sm:$0xf] %v13974_v0  ;;  %354 = vst [vmem:[#allocation3 + $0x18c] sm:$0xff] %v13974_v0 }
  0x5b   : > { %355 = vst [vmem:[#allocation3 + $0x194] sm:$0xff] %v13974_v0  ;;  %356 = vst [vmem:[#allocation3 + $0x19c] sm:$0xff] %v13974_v0 }
  0x5c   : > { %357 = vst [vmem:[#allocation3 + $0x1a4] sm:$0xff] %v13974_v0  ;;  %358 = vst [vmem:[#allocation3 + $0x1ac] sm:$0xf] %v13974_v0 }
  0x5d   : > { %359 = vst [vmem:[#allocation3 + $0x1b0] sm:$0xff] %v13974_v0  ;;  %360 = vst [vmem:[#allocation3 + $0x1b8] sm:$0xff] %v13974_v0 }
  0x5e   : > { %361 = vst [vmem:[#allocation3 + $0x1c0] sm:$0xff] %v13974_v0  ;;  %362 = vst [vmem:[#allocation3 + $0x1c8] sm:$0xff] %v13974_v0 }
  0x5f   : > { %363 = vst [vmem:[#allocation3 + $0x1d0] sm:$0xf] %v13974_v0  ;;  %364 = vst [vmem:[#allocation3 + $0x1d4] sm:$0xff] %v13974_v0 }
  0x60   : > { %365 = vst [vmem:[#allocation3 + $0x1dc] sm:$0xff] %v13974_v0  ;;  %366 = vst [vmem:[#allocation3 + $0x1e4] sm:$0xff] %v13974_v0 }
  0x61   : > { %367 = vst [vmem:[#allocation3 + $0x1ec] sm:$0xff] %v13974_v0  ;;  %368 = vst [vmem:[#allocation3 + $0x1f4] sm:$0xf] %v13974_v0 }
  0x62   : > { %369 = vst [vmem:[#allocation3 + $0x1f8] sm:$0xff] %v13974_v0  ;;  %370 = vst [vmem:[#allocation3 + $0x200] sm:$0xff] %v13974_v0 }
  0x63   : > { %371 = vst [vmem:[#allocation3 + $0x208] sm:$0xff] %v13974_v0  ;;  %372 = vst [vmem:[#allocation3 + $0x210] sm:$0xff] %v13974_v0 }
  0x64   : > { %373 = vst [vmem:[#allocation3 + $0x218] sm:$0xf] %v13974_v0  ;;  %374 = vst [vmem:[#allocation3 + $0x21c] sm:$0xff] %v13974_v0 }
  0x65   : > { %375 = vst [vmem:[#allocation3 + $0x224] sm:$0xff] %v13974_v0  ;;  %376 = vst [vmem:[#allocation3 + $0x22c] sm:$0xff] %v13974_v0 }
  0x66   : > { %377 = vst [vmem:[#allocation3 + $0x234] sm:$0xff] %v13974_v0  ;;  %378 = vst [vmem:[#allocation3 + $0x23c] sm:$0xf] %v13974_v0 }
  0x67   : > { %379 = vst [vmem:[#allocation3 + $0x240] sm:$0xff] %v13974_v0  ;;  %380 = vst [vmem:[#allocation3 + $0x248] sm:$0xff] %v13974_v0 }
  0x68   : > { %381 = vst [vmem:[#allocation3 + $0x250] sm:$0xff] %v13974_v0  ;;  %382 = vst [vmem:[#allocation3 + $0x258] sm:$0xff] %v13974_v0 }
  0x69   : > { %383 = vst [vmem:[#allocation3 + $0x260] sm:$0xf] %v13974_v0  ;;  %384 = vst [vmem:[#allocation3 + $0x264] sm:$0xff] %v13974_v0 }
  0x6a   : > { %385 = vst [vmem:[#allocation3 + $0x26c] sm:$0xff] %v13974_v0  ;;  %386 = vst [vmem:[#allocation3 + $0x274] sm:$0xff] %v13974_v0 }
  0x6b   : > { %387 = vst [vmem:[#allocation3 + $0x27c] sm:$0xff] %v13974_v0  ;;  %388 = vst [vmem:[#allocation3 + $0x284] sm:$0xf] %v13974_v0 }
  0x6c   : > { %389 = vst [vmem:[#allocation3 + $0x288] sm:$0xff] %v13974_v0  ;;  %390 = vst [vmem:[#allocation3 + $0x290] sm:$0xff] %v13974_v0 }
  0x6d   : > { %391 = vst [vmem:[#allocation3 + $0x298] sm:$0xff] %v13974_v0  ;;  %392 = vst [vmem:[#allocation3 + $0x2a0] sm:$0xff] %v13974_v0 }
  0x6e   : > { %393 = vst [vmem:[#allocation3 + $0x2a8] sm:$0xf] %v13974_v0  ;;  %394 = vst [vmem:[#allocation3 + $0x2ac] sm:$0xff] %v13974_v0 }
  0x6f   : > { %395 = vst [vmem:[#allocation3 + $0x2b4] sm:$0xff] %v13974_v0  ;;  %396 = vst [vmem:[#allocation3 + $0x2bc] sm:$0xff] %v13974_v0 }
  0x70   : > { %397 = vst [vmem:[#allocation3 + $0x2c4] sm:$0xff] %v13974_v0  ;;  %398 = vst [vmem:[#allocation3 + $0x2cc] sm:$0xf] %v13974_v0 }
  0x71   : > { %399 = vst [vmem:[#allocation3 + $0x2d0] sm:$0xff] %v13974_v0  ;;  %400 = vst [vmem:[#allocation3 + $0x2d8] sm:$0xff] %v13974_v0 }
  0x72   : > { %401 = vst [vmem:[#allocation3 + $0x2e0] sm:$0xff] %v13974_v0  ;;  %402 = vst [vmem:[#allocation3 + $0x2e8] sm:$0xff] %v13974_v0 }
  0x73   : > { %403 = vst [vmem:[#allocation3 + $0x2f0] sm:$0xf] %v13974_v0  ;;  %404 = vst [vmem:[#allocation3 + $0x2f4] sm:$0xff] %v13974_v0 }
  0x74   : > { %405 = vst [vmem:[#allocation3 + $0x2fc] sm:$0xff] %v13974_v0  ;;  %406 = vst [vmem:[#allocation3 + $0x304] sm:$0xff] %v13974_v0 }
  0x75   : > { %407 = vst [vmem:[#allocation3 + $0x30c] sm:$0xff] %v13974_v0  ;;  %408 = vst [vmem:[#allocation3 + $0x314] sm:$0xf] %v13974_v0 }
  0x76   : > { %409 = vst [vmem:[#allocation3 + $0x318] sm:$0xff] %v13974_v0  ;;  %410 = vst [vmem:[#allocation3 + $0x320] sm:$0xff] %v13974_v0 }
  0x77   : > { %411 = vst [vmem:[#allocation3 + $0x328] sm:$0xff] %v13974_v0  ;;  %412 = vst [vmem:[#allocation3 + $0x330] sm:$0xff] %v13974_v0 }
  0x78   : > { %413 = vst [vmem:[#allocation3 + $0x338] sm:$0xf] %v13974_v0  ;;  %414 = vst [vmem:[#allocation3 + $0x33c] sm:$0xff] %v13974_v0 }
  0x79   : > { %415 = vst [vmem:[#allocation3 + $0x344] sm:$0xff] %v13974_v0  ;;  %416 = vst [vmem:[#allocation3 + $0x34c] sm:$0xff] %v13974_v0 }
  0x7a   : > { %417 = vst [vmem:[#allocation3 + $0x354] sm:$0xff] %v13974_v0  ;;  %418 = vst [vmem:[#allocation3 + $0x35c] sm:$0xf] %v13974_v0 }
  0x7b   : > { %419 = vst [vmem:[#allocation3 + $0x360] sm:$0xff] %v13974_v0  ;;  %420 = vst [vmem:[#allocation3 + $0x368] sm:$0xff] %v13974_v0 }
  0x7c   : > { %421 = vst [vmem:[#allocation3 + $0x370] sm:$0xff] %v13974_v0  ;;  %422 = vst [vmem:[#allocation3 + $0x378] sm:$0xff] %v13974_v0 }
  0x7d   : > { %423 = vst [vmem:[#allocation3 + $0x380] sm:$0xf] %v13974_v0  ;;  %424 = vst [vmem:[#allocation3 + $0x384] sm:$0xff] %v13974_v0 }
  0x7e   : > { %425 = vst [vmem:[#allocation3 + $0x38c] sm:$0xff] %v13974_v0  ;;  %426 = vst [vmem:[#allocation3 + $0x394] sm:$0xff] %v13974_v0 }
  0x7f   : > { %427 = vst [vmem:[#allocation3 + $0x39c] sm:$0xff] %v13974_v0  ;;  %428 = vst [vmem:[#allocation3 + $0x3a4] sm:$0xf] %v13974_v0 }
  0x80   : > { %429 = vst [vmem:[#allocation3 + $0x3a8] sm:$0xff] %v13974_v0  ;;  %430 = vst [vmem:[#allocation3 + $0x3b0] sm:$0xff] %v13974_v0 }
  0x81   : > { %431 = vst [vmem:[#allocation3 + $0x3b8] sm:$0xff] %v13974_v0  ;;  %432 = vst [vmem:[#allocation3 + $0x3c0] sm:$0xff] %v13974_v0 }
  0x82   : > { %433 = vst [vmem:[#allocation3 + $0x3c8] sm:$0xf] %v13974_v0  ;;  %434 = vst [vmem:[#allocation3 + $0x3cc] sm:$0xff] %v13974_v0 }
  0x83   : > { %435 = vst [vmem:[#allocation3 + $0x3d4] sm:$0xff] %v13974_v0  ;;  %436 = vst [vmem:[#allocation3 + $0x3dc] sm:$0xff] %v13974_v0 }
  0x84   : > { %437 = vst [vmem:[#allocation3 + $0x3e4] sm:$0xff] %v13974_v0  ;;  %438 = vst [vmem:[#allocation3 + $0x3ec] sm:$0xf] %v13974_v0 }
  0x85   : > { %439 = vst [vmem:[#allocation3 + $0x3f0] sm:$0xff] %v13974_v0  ;;  %440 = vst [vmem:[#allocation3 + $0x3f8] sm:$0xff] %v13974_v0 }
  0x86   : > { %441 = vst [vmem:[#allocation3 + $0x400] sm:$0xff] %v13974_v0  ;;  %442 = vst [vmem:[#allocation3 + $0x408] sm:$0xff] %v13974_v0 }
  0x87   : > { %443 = vst [vmem:[#allocation3 + $0x410] sm:$0xf] %v13974_v0  ;;  %444 = vst [vmem:[#allocation3 + $0x414] sm:$0xff] %v13974_v0 }
  0x88   : > { %445 = vst [vmem:[#allocation3 + $0x41c] sm:$0xff] %v13974_v0  ;;  %446 = vst [vmem:[#allocation3 + $0x424] sm:$0xff] %v13974_v0 }
  0x89   : > { %447 = vst [vmem:[#allocation3 + $0x42c] sm:$0xff] %v13974_v0  ;;  %448 = vst [vmem:[#allocation3 + $0x434] sm:$0xf] %v13974_v0 }
  0x8a   : > { %449 = vst [vmem:[#allocation3 + $0x438] sm:$0xff] %v13974_v0  ;;  %450 = vst [vmem:[#allocation3 + $0x440] sm:$0xff] %v13974_v0 }
  0x8b   : > { %451 = vst [vmem:[#allocation3 + $0x448] sm:$0xff] %v13974_v0  ;;  %452 = vst [vmem:[#allocation3 + $0x450] sm:$0xff] %v13974_v0 }
  0x8c   : > { %453 = vst [vmem:[#allocation3 + $0x458] sm:$0xf] %v13974_v0  ;;  %454 = vst [vmem:[#allocation3 + $0x45c] sm:$0xff] %v13974_v0 }
  0x8d   : > { %455 = vst [vmem:[#allocation3 + $0x464] sm:$0xff] %v13974_v0  ;;  %456 = vst [vmem:[#allocation3 + $0x46c] sm:$0xff] %v13974_v0 }
  0x8e   : > { %457 = vst [vmem:[#allocation3 + $0x474] sm:$0xff] %v13974_v0  ;;  %458 = vst [vmem:[#allocation3 + $0x47c] sm:$0xf] %v13974_v0 }
  0x8f   : > { %459 = vst [vmem:[#allocation4] sm:$0xf] %v13974_v0  ;;  %460 = vst [vmem:[#allocation4 + $0x4] sm:$0xf] %v13974_v0 }
  0x90   : > { %461 = vst [vmem:[#allocation4 + $0x8] sm:$0x1] %v13974_v0  ;;  %462 = vst [vmem:[#allocation4 + $0xc] sm:$0xf] %v13974_v0 }
  0x91   : > { %463 = vst [vmem:[#allocation4 + $0x10] sm:$0xf] %v13974_v0  ;;  %464 = vst [vmem:[#allocation4 + $0x14] sm:$0x1] %v13974_v0 }
  0x92   : > { %465 = vst [vmem:[#allocation4 + $0x18] sm:$0xf] %v13974_v0  ;;  %466 = vst [vmem:[#allocation4 + $0x1c] sm:$0xf] %v13974_v0 }
  0x93   : > { %467 = vst [vmem:[#allocation4 + $0x20] sm:$0x1] %v13974_v0  ;;  %468 = vst [vmem:[#allocation4 + $0x24] sm:$0xf] %v13974_v0 }
  0x94   : > { %469 = vst [vmem:[#allocation4 + $0x28] sm:$0xf] %v13974_v0  ;;  %470 = vst [vmem:[#allocation4 + $0x2c] sm:$0x1] %v13974_v0 }
  0x95   : > { %471 = vst [vmem:[#allocation4 + $0x30] sm:$0xf] %v13974_v0  ;;  %472 = vst [vmem:[#allocation4 + $0x34] sm:$0xf] %v13974_v0 }
  0x96   : > { %473 = vst [vmem:[#allocation4 + $0x38] sm:$0x1] %v13974_v0  ;;  %474 = vst [vmem:[#allocation4 + $0x3c] sm:$0xf] %v13974_v0 }
  0x97   : > { %475 = vst [vmem:[#allocation4 + $0x40] sm:$0xf] %v13974_v0  ;;  %476 = vst [vmem:[#allocation4 + $0x44] sm:$0x1] %v13974_v0 }
  0x98   : > { %477 = vst [vmem:[#allocation4 + $0x48] sm:$0xf] %v13974_v0  ;;  %478 = vst [vmem:[#allocation4 + $0x4c] sm:$0xf] %v13974_v0 }
  0x99   : > { %479 = vst [vmem:[#allocation4 + $0x50] sm:$0x1] %v13974_v0  ;;  %480 = vst [vmem:[#allocation4 + $0x54] sm:$0xf] %v13974_v0 }
  0x9a   : > { %481 = vst [vmem:[#allocation4 + $0x58] sm:$0xf] %v13974_v0  ;;  %482 = vst [vmem:[#allocation4 + $0x5c] sm:$0x1] %v13974_v0 }
  0x9b   : > { %483 = vst [vmem:[#allocation4 + $0x60] sm:$0xf] %v13974_v0  ;;  %484 = vst [vmem:[#allocation4 + $0x64] sm:$0xf] %v13974_v0 }
  0x9c   : > { %485 = vst [vmem:[#allocation4 + $0x68] sm:$0x1] %v13974_v0  ;;  %486 = vst [vmem:[#allocation4 + $0x6c] sm:$0xf] %v13974_v0 }
  0x9d   : > { %487 = vst [vmem:[#allocation4 + $0x70] sm:$0xf] %v13974_v0  ;;  %488 = vst [vmem:[#allocation4 + $0x74] sm:$0x1] %v13974_v0 }
  0x9e   : > { %489 = vst [vmem:[#allocation4 + $0x78] sm:$0xf] %v13974_v0  ;;  %490 = vst [vmem:[#allocation4 + $0x7c] sm:$0xf] %v13974_v0 }
  0x9f   : > { %491 = vst [vmem:[#allocation4 + $0x80] sm:$0x1] %v13974_v0  ;;  %492 = vst [vmem:[#allocation4 + $0x84] sm:$0xf] %v13974_v0 }
  0xa0   : > { %493 = vst [vmem:[#allocation4 + $0x88] sm:$0xf] %v13974_v0  ;;  %494 = vst [vmem:[#allocation4 + $0x8c] sm:$0x1] %v13974_v0 }
  0xa1   : > { %495 = vst [vmem:[#allocation4 + $0x90] sm:$0xf] %v13974_v0  ;;  %496 = vst [vmem:[#allocation4 + $0x94] sm:$0xf] %v13974_v0 }
  0xa2   : > { %497 = vst [vmem:[#allocation4 + $0x98] sm:$0x1] %v13974_v0  ;;  %498 = vst [vmem:[#allocation4 + $0x9c] sm:$0xf] %v13974_v0 }
  0xa3   : > { %499 = vst [vmem:[#allocation4 + $0xa0] sm:$0xf] %v13974_v0  ;;  %500 = vst [vmem:[#allocation4 + $0xa4] sm:$0x1] %v13974_v0 }
  0xa4   : > { %501 = vst [vmem:[#allocation4 + $0xa8] sm:$0xf] %v13974_v0  ;;  %502 = vst [vmem:[#allocation4 + $0xac] sm:$0xf] %v13974_v0 }
  0xa5   : > { %503 = vst [vmem:[#allocation4 + $0xb0] sm:$0x1] %v13974_v0  ;;  %504 = vst [vmem:[#allocation4 + $0xb4] sm:$0xf] %v13974_v0 }
  0xa6   : > { %505 = vst [vmem:[#allocation4 + $0xb8] sm:$0xf] %v13974_v0  ;;  %506 = vst [vmem:[#allocation4 + $0xbc] sm:$0x1] %v13974_v0 }
  0xa7   : > { %507 = vst [vmem:[#allocation4 + $0xc0] sm:$0xf] %v13974_v0  ;;  %508 = vst [vmem:[#allocation4 + $0xc4] sm:$0xf] %v13974_v0 }
  0xa8   : > { %509 = vst [vmem:[#allocation4 + $0xc8] sm:$0x1] %v13974_v0  ;;  %510 = vst [vmem:[#allocation4 + $0xcc] sm:$0xf] %v13974_v0 }
  0xa9   : > { %511 = vst [vmem:[#allocation4 + $0xd0] sm:$0xf] %v13974_v0  ;;  %512 = vst [vmem:[#allocation4 + $0xd4] sm:$0x1] %v13974_v0 }
  0xaa   : > { %513 = vst [vmem:[#allocation5] sm:$0xff] %v13974_v0  ;;  %514 = vst [vmem:[#allocation5 + $0x8] sm:$0xff] %v13974_v0 }
  0xab   : > { %515 = vst [vmem:[#allocation5 + $0x10] sm:$0xff] %v13974_v0  ;;  %516 = vst [vmem:[#allocation5 + $0x18] sm:$0xff] %v13974_v0 }
  0xac   : > { %517 = vst [vmem:[#allocation5 + $0x20] sm:$0xf] %v13974_v0  ;;  %518 = vst [vmem:[#allocation5 + $0x24] sm:$0xff] %v13974_v0 }
  0xad   : > { %519 = vst [vmem:[#allocation5 + $0x2c] sm:$0xff] %v13974_v0  ;;  %520 = vst [vmem:[#allocation5 + $0x34] sm:$0xff] %v13974_v0 }
  0xae   : > { %521 = vst [vmem:[#allocation5 + $0x3c] sm:$0xff] %v13974_v0  ;;  %522 = vst [vmem:[#allocation5 + $0x44] sm:$0xf] %v13974_v0 }
  0xaf   : > { %523 = vst [vmem:[#allocation5 + $0x48] sm:$0xff] %v13974_v0  ;;  %524 = vst [vmem:[#allocation5 + $0x50] sm:$0xff] %v13974_v0 }
  0xb0   : > { %525 = vst [vmem:[#allocation5 + $0x58] sm:$0xff] %v13974_v0  ;;  %526 = vst [vmem:[#allocation5 + $0x60] sm:$0xff] %v13974_v0 }
  0xb1   : > { %527 = vst [vmem:[#allocation5 + $0x68] sm:$0xf] %v13974_v0  ;;  %528 = vst [vmem:[#allocation5 + $0x6c] sm:$0xff] %v13974_v0 }
  0xb2   : > { %529 = vst [vmem:[#allocation5 + $0x74] sm:$0xff] %v13974_v0  ;;  %530 = vst [vmem:[#allocation5 + $0x7c] sm:$0xff] %v13974_v0 }
  0xb3   : > { %531 = vst [vmem:[#allocation5 + $0x84] sm:$0xff] %v13974_v0  ;;  %532 = vst [vmem:[#allocation5 + $0x8c] sm:$0xf] %v13974_v0 }
  0xb4   : > { %533 = vst [vmem:[#allocation5 + $0x90] sm:$0xff] %v13974_v0  ;;  %534 = vst [vmem:[#allocation5 + $0x98] sm:$0xff] %v13974_v0 }
  0xb5   : > { %535 = vst [vmem:[#allocation5 + $0xa0] sm:$0xff] %v13974_v0  ;;  %536 = vst [vmem:[#allocation5 + $0xa8] sm:$0xff] %v13974_v0 }
  0xb6   : > { %537 = vst [vmem:[#allocation5 + $0xb0] sm:$0xf] %v13974_v0  ;;  %538 = vst [vmem:[#allocation5 + $0xb4] sm:$0xff] %v13974_v0 }
  0xb7   : > { %539 = vst [vmem:[#allocation5 + $0xbc] sm:$0xff] %v13974_v0  ;;  %540 = vst [vmem:[#allocation5 + $0xc4] sm:$0xff] %v13974_v0 }
  0xb8   : > { %541 = vst [vmem:[#allocation5 + $0xcc] sm:$0xff] %v13974_v0  ;;  %542 = vst [vmem:[#allocation5 + $0xd4] sm:$0xf] %v13974_v0 }
  0xb9   : > { %543 = vst [vmem:[#allocation5 + $0xd8] sm:$0xff] %v13974_v0  ;;  %544 = vst [vmem:[#allocation5 + $0xe0] sm:$0xff] %v13974_v0 }
  0xba   : > { %545 = vst [vmem:[#allocation5 + $0xe8] sm:$0xff] %v13974_v0  ;;  %546 = vst [vmem:[#allocation5 + $0xf0] sm:$0xff] %v13974_v0 }
  0xbb   : > { %547 = vst [vmem:[#allocation5 + $0xf8] sm:$0xf] %v13974_v0  ;;  %548 = vst [vmem:[#allocation5 + $0xfc] sm:$0xff] %v13974_v0 }
  0xbc   : > { %549 = vst [vmem:[#allocation5 + $0x104] sm:$0xff] %v13974_v0  ;;  %550 = vst [vmem:[#allocation5 + $0x10c] sm:$0xff] %v13974_v0 }
  0xbd   : > { %551 = vst [vmem:[#allocation5 + $0x114] sm:$0xff] %v13974_v0  ;;  %552 = vst [vmem:[#allocation5 + $0x11c] sm:$0xf] %v13974_v0 }
  0xbe   : > { %553 = vst [vmem:[#allocation5 + $0x120] sm:$0xff] %v13974_v0  ;;  %554 = vst [vmem:[#allocation5 + $0x128] sm:$0xff] %v13974_v0 }
  0xbf   : > { %555 = vst [vmem:[#allocation5 + $0x130] sm:$0xff] %v13974_v0  ;;  %556 = vst [vmem:[#allocation5 + $0x138] sm:$0xff] %v13974_v0 }
  0xc0   : > { %557 = vst [vmem:[#allocation5 + $0x140] sm:$0xf] %v13974_v0  ;;  %558 = vst [vmem:[#allocation5 + $0x144] sm:$0xff] %v13974_v0 }
  0xc1   : > { %559 = vst [vmem:[#allocation5 + $0x14c] sm:$0xff] %v13974_v0  ;;  %560 = vst [vmem:[#allocation5 + $0x154] sm:$0xff] %v13974_v0 }
  0xc2   : > { %561 = vst [vmem:[#allocation5 + $0x15c] sm:$0xff] %v13974_v0  ;;  %562 = vst [vmem:[#allocation5 + $0x164] sm:$0xf] %v13974_v0 }
  0xc3   : > { %563 = vst [vmem:[#allocation5 + $0x168] sm:$0xff] %v13974_v0  ;;  %564 = vst [vmem:[#allocation5 + $0x170] sm:$0xff] %v13974_v0 }
  0xc4   : > { %565 = vst [vmem:[#allocation5 + $0x178] sm:$0xff] %v13974_v0  ;;  %566 = vst [vmem:[#allocation5 + $0x180] sm:$0xff] %v13974_v0 }
  0xc5   : > { %567 = vst [vmem:[#allocation5 + $0x188] sm:$0xf] %v13974_v0  ;;  %568 = vst [vmem:[#allocation5 + $0x18c] sm:$0xff] %v13974_v0 }
  0xc6   : > { %569 = vst [vmem:[#allocation5 + $0x194] sm:$0xff] %v13974_v0  ;;  %570 = vst [vmem:[#allocation5 + $0x19c] sm:$0xff] %v13974_v0 }
  0xc7   : > { %571 = vst [vmem:[#allocation5 + $0x1a4] sm:$0xff] %v13974_v0  ;;  %572 = vst [vmem:[#allocation5 + $0x1ac] sm:$0xf] %v13974_v0 }
  0xc8   : > { %573 = vst [vmem:[#allocation5 + $0x1b0] sm:$0xff] %v13974_v0  ;;  %574 = vst [vmem:[#allocation5 + $0x1b8] sm:$0xff] %v13974_v0 }
  0xc9   : > { %575 = vst [vmem:[#allocation5 + $0x1c0] sm:$0xff] %v13974_v0  ;;  %576 = vst [vmem:[#allocation5 + $0x1c8] sm:$0xff] %v13974_v0 }
  0xca   : > { %577 = vst [vmem:[#allocation5 + $0x1d0] sm:$0xf] %v13974_v0  ;;  %578 = vst [vmem:[#allocation5 + $0x1d4] sm:$0xff] %v13974_v0 }
  0xcb   : > { %579 = vst [vmem:[#allocation5 + $0x1dc] sm:$0xff] %v13974_v0  ;;  %580 = vst [vmem:[#allocation5 + $0x1e4] sm:$0xff] %v13974_v0 }
  0xcc   : > { %581 = vst [vmem:[#allocation5 + $0x1ec] sm:$0xff] %v13974_v0  ;;  %582 = vst [vmem:[#allocation5 + $0x1f4] sm:$0xf] %v13974_v0 }
  0xcd   : > { %583 = vst [vmem:[#allocation5 + $0x1f8] sm:$0xff] %v13974_v0  ;;  %584 = vst [vmem:[#allocation5 + $0x200] sm:$0xff] %v13974_v0 }
  0xce   : > { %585 = vst [vmem:[#allocation5 + $0x208] sm:$0xff] %v13974_v0  ;;  %586 = vst [vmem:[#allocation5 + $0x210] sm:$0xff] %v13974_v0 }
  0xcf   : > { %587 = vst [vmem:[#allocation5 + $0x218] sm:$0xf] %v13974_v0  ;;  %588 = vst [vmem:[#allocation5 + $0x21c] sm:$0xff] %v13974_v0 }
  0xd0   : > { %589 = vst [vmem:[#allocation5 + $0x224] sm:$0xff] %v13974_v0  ;;  %590 = vst [vmem:[#allocation5 + $0x22c] sm:$0xff] %v13974_v0 }
  0xd1   : > { %591 = vst [vmem:[#allocation5 + $0x234] sm:$0xff] %v13974_v0  ;;  %592 = vst [vmem:[#allocation5 + $0x23c] sm:$0xf] %v13974_v0 }
  0xd2   : > { %593 = vst [vmem:[#allocation5 + $0x240] sm:$0xff] %v13974_v0  ;;  %594 = vst [vmem:[#allocation5 + $0x248] sm:$0xff] %v13974_v0 }
  0xd3   : > { %595 = vst [vmem:[#allocation5 + $0x250] sm:$0xff] %v13974_v0  ;;  %596 = vst [vmem:[#allocation5 + $0x258] sm:$0xff] %v13974_v0 }
  0xd4   : > { %597 = vst [vmem:[#allocation5 + $0x260] sm:$0xf] %v13974_v0  ;;  %598 = vst [vmem:[#allocation5 + $0x264] sm:$0xff] %v13974_v0 }
  0xd5   : > { %599 = vst [vmem:[#allocation5 + $0x26c] sm:$0xff] %v13974_v0  ;;  %600 = vst [vmem:[#allocation5 + $0x274] sm:$0xff] %v13974_v0 }
  0xd6   : > { %601 = vst [vmem:[#allocation5 + $0x27c] sm:$0xff] %v13974_v0  ;;  %602 = vst [vmem:[#allocation5 + $0x284] sm:$0xf] %v13974_v0 }
  0xd7   : > { %603 = vst [vmem:[#allocation5 + $0x288] sm:$0xff] %v13974_v0  ;;  %604 = vst [vmem:[#allocation5 + $0x290] sm:$0xff] %v13974_v0 }
  0xd8   : > { %605 = vst [vmem:[#allocation5 + $0x298] sm:$0xff] %v13974_v0  ;;  %606 = vst [vmem:[#allocation5 + $0x2a0] sm:$0xff] %v13974_v0 }
  0xd9   : > { %607 = vst [vmem:[#allocation5 + $0x2a8] sm:$0xf] %v13974_v0  ;;  %608 = vst [vmem:[#allocation5 + $0x2ac] sm:$0xff] %v13974_v0 }
  0xda   : > { %609 = vst [vmem:[#allocation5 + $0x2b4] sm:$0xff] %v13974_v0  ;;  %610 = vst [vmem:[#allocation5 + $0x2bc] sm:$0xff] %v13974_v0 }
  0xdb   : > { %611 = vst [vmem:[#allocation5 + $0x2c4] sm:$0xff] %v13974_v0  ;;  %612 = vst [vmem:[#allocation5 + $0x2cc] sm:$0xf] %v13974_v0 }
  0xdc   : > { %613 = vst [vmem:[#allocation5 + $0x2d0] sm:$0xff] %v13974_v0  ;;  %614 = vst [vmem:[#allocation5 + $0x2d8] sm:$0xff] %v13974_v0 }
  0xdd   : > { %615 = vst [vmem:[#allocation5 + $0x2e0] sm:$0xff] %v13974_v0  ;;  %616 = vst [vmem:[#allocation5 + $0x2e8] sm:$0xff] %v13974_v0 }
  0xde   : > { %617 = vst [vmem:[#allocation5 + $0x2f0] sm:$0xf] %v13974_v0  ;;  %618 = vst [vmem:[#allocation5 + $0x2f4] sm:$0xff] %v13974_v0 }
  0xdf   : > { %619 = vst [vmem:[#allocation5 + $0x2fc] sm:$0xff] %v13974_v0  ;;  %620 = vst [vmem:[#allocation5 + $0x304] sm:$0xff] %v13974_v0 }
  0xe0   : > { %621 = vst [vmem:[#allocation5 + $0x30c] sm:$0xff] %v13974_v0  ;;  %622 = vst [vmem:[#allocation5 + $0x314] sm:$0xf] %v13974_v0 }
  0xe1   : > { %623 = vst [vmem:[#allocation5 + $0x318] sm:$0xff] %v13974_v0  ;;  %624 = vst [vmem:[#allocation5 + $0x320] sm:$0xff] %v13974_v0 }
  0xe2   : > { %625 = vst [vmem:[#allocation5 + $0x328] sm:$0xff] %v13974_v0  ;;  %626 = vst [vmem:[#allocation5 + $0x330] sm:$0xff] %v13974_v0 }
  0xe3   : > { %627 = vst [vmem:[#allocation5 + $0x338] sm:$0xf] %v13974_v0  ;;  %628 = vst [vmem:[#allocation5 + $0x33c] sm:$0xff] %v13974_v0 }
  0xe4   : > { %629 = vst [vmem:[#allocation5 + $0x344] sm:$0xff] %v13974_v0  ;;  %630 = vst [vmem:[#allocation5 + $0x34c] sm:$0xff] %v13974_v0 }
  0xe5   : > { %631 = vst [vmem:[#allocation5 + $0x354] sm:$0xff] %v13974_v0  ;;  %632 = vst [vmem:[#allocation5 + $0x35c] sm:$0xf] %v13974_v0 }
  0xe6   : > { %633 = vst [vmem:[#allocation5 + $0x360] sm:$0xff] %v13974_v0  ;;  %634 = vst [vmem:[#allocation5 + $0x368] sm:$0xff] %v13974_v0 }
  0xe7   : > { %635 = vst [vmem:[#allocation5 + $0x370] sm:$0xff] %v13974_v0  ;;  %636 = vst [vmem:[#allocation5 + $0x378] sm:$0xff] %v13974_v0 }
  0xe8   : > { %637 = vst [vmem:[#allocation5 + $0x380] sm:$0xf] %v13974_v0  ;;  %638 = vst [vmem:[#allocation5 + $0x384] sm:$0xff] %v13974_v0 }
  0xe9   : > { %639 = vst [vmem:[#allocation5 + $0x38c] sm:$0xff] %v13974_v0  ;;  %640 = vst [vmem:[#allocation5 + $0x394] sm:$0xff] %v13974_v0 }
  0xea   : > { %641 = vst [vmem:[#allocation5 + $0x39c] sm:$0xff] %v13974_v0  ;;  %642 = vst [vmem:[#allocation5 + $0x3a4] sm:$0xf] %v13974_v0 }
  0xeb   : > { %643 = vst [vmem:[#allocation5 + $0x3a8] sm:$0xff] %v13974_v0  ;;  %644 = vst [vmem:[#allocation5 + $0x3b0] sm:$0xff] %v13974_v0 }
  0xec   : > { %645 = vst [vmem:[#allocation5 + $0x3b8] sm:$0xff] %v13974_v0  ;;  %646 = vst [vmem:[#allocation5 + $0x3c0] sm:$0xff] %v13974_v0 }
  0xed   : > { %647 = vst [vmem:[#allocation5 + $0x3c8] sm:$0xf] %v13974_v0  ;;  %648 = vst [vmem:[#allocation5 + $0x3cc] sm:$0xff] %v13974_v0 }
  0xee   : > { %649 = vst [vmem:[#allocation5 + $0x3d4] sm:$0xff] %v13974_v0  ;;  %650 = vst [vmem:[#allocation5 + $0x3dc] sm:$0xff] %v13974_v0 }
  0xef   : > { %651 = vst [vmem:[#allocation5 + $0x3e4] sm:$0xff] %v13974_v0  ;;  %652 = vst [vmem:[#allocation5 + $0x3ec] sm:$0xf] %v13974_v0 }
  0xf0   : > { %653 = vst [vmem:[#allocation5 + $0x3f0] sm:$0xff] %v13974_v0  ;;  %654 = vst [vmem:[#allocation5 + $0x3f8] sm:$0xff] %v13974_v0 }
  0xf1   : > { %655 = vst [vmem:[#allocation5 + $0x400] sm:$0xff] %v13974_v0  ;;  %656 = vst [vmem:[#allocation5 + $0x408] sm:$0xff] %v13974_v0 }
  0xf2   : > { %657 = vst [vmem:[#allocation5 + $0x410] sm:$0xf] %v13974_v0  ;;  %658 = vst [vmem:[#allocation5 + $0x414] sm:$0xff] %v13974_v0 }
  0xf3   : > { %659 = vst [vmem:[#allocation5 + $0x41c] sm:$0xff] %v13974_v0  ;;  %660 = vst [vmem:[#allocation5 + $0x424] sm:$0xff] %v13974_v0 }
  0xf4   : > { %661 = vst [vmem:[#allocation5 + $0x42c] sm:$0xff] %v13974_v0  ;;  %662 = vst [vmem:[#allocation5 + $0x434] sm:$0xf] %v13974_v0 }
  0xf5   : > { %663 = vst [vmem:[#allocation5 + $0x438] sm:$0xff] %v13974_v0  ;;  %664 = vst [vmem:[#allocation5 + $0x440] sm:$0xff] %v13974_v0 }
  0xf6   : > { %665 = vst [vmem:[#allocation5 + $0x448] sm:$0xff] %v13974_v0  ;;  %666 = vst [vmem:[#allocation5 + $0x450] sm:$0xff] %v13974_v0 }
  0xf7   : > { %667 = vst [vmem:[#allocation5 + $0x458] sm:$0xf] %v13974_v0  ;;  %668 = vst [vmem:[#allocation5 + $0x45c] sm:$0xff] %v13974_v0 }
  0xf8   : > { %669 = vst [vmem:[#allocation5 + $0x464] sm:$0xff] %v13974_v0  ;;  %670 = vst [vmem:[#allocation5 + $0x46c] sm:$0xff] %v13974_v0 }
  0xf9   : > { %671 = vst [vmem:[#allocation5 + $0x474] sm:$0xff] %v13974_v0  ;;  %672 = vst [vmem:[#allocation5 + $0x47c] sm:$0xf] %v13974_v0 }
  0xfa   : > { %247 = vst.msk [vmem:[#allocation2 + $0x8] sm:$0x1] %vm246_vm1, %v13974_v0  ;;  %250 = vst.msk [vmem:[#allocation2 + $0x14] sm:$0x1] %vm246_vm1, %v13974_v0 }
  0xfb   : > { %253 = vst.msk [vmem:[#allocation2 + $0x20] sm:$0x1] %vm246_vm1, %v13974_v0  ;;  %256 = vst.msk [vmem:[#allocation2 + $0x2c] sm:$0x1] %vm246_vm1, %v13974_v0 }
  0xfc   : > { %259 = vst.msk [vmem:[#allocation2 + $0x38] sm:$0x1] %vm246_vm1, %v13974_v0  ;;  %262 = vst.msk [vmem:[#allocation2 + $0x44] sm:$0x1] %vm246_vm1, %v13974_v0 }
  0xfd   : > { %265 = vst.msk [vmem:[#allocation2 + $0x50] sm:$0x1] %vm246_vm1, %v13974_v0  ;;  %268 = vst.msk [vmem:[#allocation2 + $0x5c] sm:$0x1] %vm246_vm1, %v13974_v0 }
  0xfe   : > { %271 = vst.msk [vmem:[#allocation2 + $0x68] sm:$0x1] %vm246_vm1, %v13974_v0  ;;  %274 = vst.msk [vmem:[#allocation2 + $0x74] sm:$0x1] %vm246_vm1, %v13974_v0 }
  0xff   : > { %277 = vst.msk [vmem:[#allocation2 + $0x80] sm:$0x1] %vm246_vm1, %v13974_v0  ;;  %280 = vst.msk [vmem:[#allocation2 + $0x8c] sm:$0x1] %vm246_vm1, %v13974_v0 }
 0x100   : > { %283 = vst.msk [vmem:[#allocation2 + $0x98] sm:$0x1] %vm246_vm1, %v13974_v0  ;;  %286 = vst.msk [vmem:[#allocation2 + $0xa4] sm:$0x1] %vm246_vm1, %v13974_v0 }
 0x101   : > { %289 = vst.msk [vmem:[#allocation2 + $0xb0] sm:$0x1] %vm246_vm1, %v13974_v0  ;;  %292 = vst.msk [vmem:[#allocation2 + $0xbc] sm:$0x1] %vm246_vm1, %v13974_v0 }
 0x102   : > { %295 = vst.msk [vmem:[#allocation2 + $0xc8] sm:$0x1] %vm246_vm1, %v13974_v0  ;;  %298 = vst.msk [vmem:[#allocation2 + $0xd4] sm:$0x1] %vm246_vm1, %v13974_v0 }
 0x103 PF: > { %v13298_v1 = vld [vmem:[%s18380_s1 + $0x78] sm:$0xff]   ;;  %v13302_v5 = vld [vmem:[%s18380_s1 + $0x70] sm:$0xff]   ;;  %v13306_v9 = vld [vmem:[%s18380_s1 + $0x68] sm:$0xff]   ;;  %vm1157_vm2 = vcmask 27648   ;;  %vm1934_vm3 = vcmask 1042432   ;;  %vm1935_vm4 = vcmask 1046532  }
 0x104   : > { %v13299_v2 = vld [vmem:[%s18380_s1 + $0x38] sm:$0xff]   ;;  %12203 = vmatprep.subr.bf16.mxu0 %v13298_v1  ;;  %v13303_v6 = vld [vmem:[%s18380_s1 + $0x30] sm:$0xff]   ;;  %v13307_v10 = vld [vmem:[%s18380_s1 + $0x28] sm:$0xff]   ;;  %vm1165_vm5 = vcmask 24576   ;;  %vm1387_vm6 = vsmask.f32 3328 }
 0x105   : > { %v13300_v3 = vld [vmem:[%s18380_s1 + $0xf8] sm:$0xff]   ;;  %12204 = vmatpush3.bf16.msra.mxu0 %v13299_v2  ;;  %v13304_v7 = vld [vmem:[%s18380_s1 + $0xf0] sm:$0xff]   ;;  %v13308_v11 = vld [vmem:[%s18380_s1 + $0xe8] sm:$0xff]   ;;  %vm1388_vm7 = vsmask.f32 7440  ;;  %v18440_v54 = vmov 0 }
 0x106   : > { %v13301_v4 = vld [vmem:[%s18380_s1 + $0xb8] sm:$0xff]   ;;  %12315 = vmatprep.subr.bf16.mxu1 %v13300_v3  ;;  %12205 = vmatprep.subr.bf16.mxu0 %v13302_v5  ;;  %v13305_v8 = vld [vmem:[%s18380_s1 + $0xb0] sm:$0xff]   ;;  %v13309_v12 = vld [vmem:[%s18380_s1 + $0xa8] sm:$0xff]   ;;  %vm833_vm8 = vsmask.f32 256  ;;  %v18443_v62 = vmov 0 }
 0x107   : > { %12316 = vmatpush3.bf16.msra.mxu1 %v13301_v4  ;;  %v13310_v13 = vld [vmem:[%s18380_s1 + $0x60] sm:$0xff]   ;;  %v13314_v17 = vld [vmem:[%s18380_s1 + $0x58] sm:$0xff]   ;;  %v13318_v21 = vld [vmem:[%s18380_s1 + $0x50] sm:$0xff]   ;;  %vm834_vm10 = vsmask.f32 4368  ;;  %vm6511_vm0 = vcmask 1043456  }
 0x108   : > { %12317 = vmatprep.subr.bf16.mxu1 %v13304_v7  ;;  %v13311_v14 = vld [vmem:[%s18380_s1 + $0x20] sm:$0xff]   ;;  %v13315_v18 = vld [vmem:[%s18380_s1 + $0x18] sm:$0xff]   ;;  %v13319_v22 = vld [vmem:[%s18380_s1 + $0x10] sm:$0xff]   ;;  %vm1158_vm11 = vsmask.f32 7938  ;;  %s12202_s11 = sshll.u32 %s14029_s22, 12 }
 0x109   : > { %12206 = vmatpush3.bf16.msra.mxu0 %v13303_v6  ;;  %v13312_v15 = vld [vmem:[%s18380_s1 + $0xe0] sm:$0xff]   ;;  %v13316_v19 = vld [vmem:[%s18380_s1 + $0xd8] sm:$0xff]   ;;  %v13320_v23 = vld [vmem:[%s18380_s1 + $0xd0] sm:$0xff]   ;;  %s11454_s12 = sshll.u32 %s14085_s26, 4  ;;  %s18331_s16 = scalar_lea.hbm %s18384_s5, %s12202_s11  ;;  %s18333_s12 = int_to_ptr.vmem [resolvable:$true] %s11454_s12 }
 0x10a   : > { %12207 = vmatprep.subr.bf16.mxu0 %v13306_v9  ;;  %v13313_v16 = vld [vmem:[%s18380_s1 + $0xa0] sm:$0xff]   ;;  %v13317_v20 = vld [vmem:[%s18380_s1 + $0x98] sm:$0xff]   ;;  %v13321_v24 = vld [vmem:[%s18380_s1 + $0x90] sm:$0xff]   ;;  %s18339_s22 = scalar_lea.sflag [#allocation8], %s230_s13  ;;  %s13905_s17 = scalar_lea.vmem %s18333_s12, 4096 }
 0x10b   : > { %12318 = vmatpush3.bf16.msra.mxu1 %v13305_v8  ;;  %v13322_v25 = vld [vmem:[%s18380_s1 + $0x48] sm:$0xff]   ;;  %v13326_v29 = vld [vmem:[%s18380_s1 + $0x40] sm:$0xff]   ;;  %v13333_v46 = vld [vmem:[%s18380_s1 + $0x178] sm:$0xff]   ;;  %p13906_p9 = scmp.ne.s32.totalorder %s18333_s12, %s13905_s17  ;;  %s13975_s23 = smov [#allocation9]  }
 0x10c   : > { %12319 = vmatprep.subr.bf16.mxu1 %v13308_v11  ;;  %v13323_v26 = vld [vmem:[%s18380_s1 + $0x8] sm:$0xff]   ;;  %v13327_v30 = vld [vmem:[%s18380_s1] sm:$0xff]   ;;  %vm14676_vm9 = vmor %vm1387_vm6, %vm1388_vm7  ;;  %s13909_s30 = sshll.u32 %s13975_s23, 4  ;;  %s13910_s30 = int_to_ptr.vmem [resolvable:$false] %s13909_s30 }
 0x10d   : > { %12208 = vmatpush3.bf16.msra.mxu0 %v13307_v10  ;;  %v13324_v27 = vld [vmem:[%s18380_s1 + $0xc8] sm:$0xff]   ;;  %v13328_v31 = vld [vmem:[%s18380_s1 + $0xc0] sm:$0xff]   ;;  %v18441_v54 = vsel %vm14676_vm9, 4294967295, %v18440_v54  ;;  %vm14682_vm12 = vmor %vm1934_vm3, %vm1935_vm4  ;;  %v18448_v10 = vmov 0  ;;  %p13907_p10 = pnand %p13906_p9, %p14046_p5  ;;  %s13911_s6 = scalar_lea.vmem %s13910_s30, 8192 }
 0x10e   : > { %12209 = vmatprep.subr.bf16.mxu0 %v13310_v13  ;;  %v13325_v28 = vld [vmem:[%s18380_s1 + $0x88] sm:$0xff]   ;;  %v1275_v32 = vld [vmem:[#allocation2] sm:$0xf]  ;;  %v1276_v33 = vld [vmem:[#allocation2 + $0x4] sm:$0xf]  ;;  %18442 = vst [vmem:[#allocation12_spill] sm:$0xff] %v18441_v54  ;;  %p13912_p12 = scmp.lt.s32.totalorder %s18333_s12, %s13910_s30  ;;  %p13913_p13 = scmp.lt.s32.totalorder %s13911_s6, %s13905_s17 }
 0x10f   : > { %12320 = vmatpush3.bf16.msra.mxu1 %v13309_v12  ;;  %v1339_v34 = vld [vmem:[#allocation2] sm:$0xf]  ;;  %1307 = vst.msk [vmem:[#allocation3] sm:$0xf] %vm1157_vm2, %v1275_v32  ;;  %1308 = vst.msk [vmem:[#allocation3 + $0x24] sm:$0xf] %vm1157_vm2, %v1276_v33  ;;  %p13908_p11 = pneg %p13907_p10 }
 0x110   : > { %12321 = vmatprep.subr.bf16.mxu1 %v13312_v15  ;;  %v1340_v35 = vld [vmem:[#allocation2 + $0x4] sm:$0xf]  ;;  %v1341_v36 = vld [vmem:[#allocation2 + $0x8] sm:$0x1]  ;;  %v1391_v37 = vshrl.u32 %v1339_v34, 16  ;;  %v1394_v38 = vshll.u32 %v1339_v34, 16  ;;  %vm14690_vm13 = vmand %vm1165_vm5, %vm833_vm8  ;;  %p13914_p0 = por %p13913_p13, %p13912_p12 }
 0x111   : > { %12210 = vmatpush3.bf16.msra.mxu0 %v13311_v14  ;;  %v1400_v39 = vshll.u32 %v1340_v35, 16  ;;  %v13332_v40 = vld [vmem:[%s18380_s1 + $0x80] sm:$0xff]   ;;  %v1404_v41 = vshrl.u32 %v1340_v35, 16  ;;  %v1410_v42 = vshll.u32 %v1341_v36, 16  ;;  %v674_v50 = vld [vmem:[%s14083_s25 + $0x8] sm:$0xff]  ;;  %v18444_v62 = vsel %vm14682_vm12, 4294967295, %v18443_v62  ;;  %vm14700_vm14 = vmor %vm833_vm8, %vm834_vm10 }
 0x112   : > { %12211 = vmatprep.subr.bf16.mxu0 %v13314_v17  ;;  %v1393_v43 = vrot.slane %v1391_v37, 4  ;;  %v1396_v44 = vrot.slane %v1394_v38, 5  ;;  %v673_v49 = vld [vmem:[%s14083_s25] sm:$0xff]  ;;  %v706_v53 = vmax.f32 %v674_v50, 0.0  ;;  %v1840_v61 = vld [vmem:[#allocation2 + $0x8] sm:$0x1]  ;;  %vm14710_vm15 = vmand %vm1157_vm2, %vm1158_vm11  ;;  %p13915_p1 = pnand %p13914_p0, %p13908_p11 }
 0x113   : > { %12322 = vmatpush3.bf16.msra.mxu1 %v13313_v16  ;;  %v1402_v45 = vrot.slane %v1400_v39, 5  ;;  %v1406_v47 = vrot.slane %v1404_v41, 4  ;;  %v1412_v48 = vrot.slane %v1410_v42, 5  ;;  %v705_v52 = vmax.f32 %v673_v49, 0.0  ;;  %v1838_v56 = vld [vmem:[#allocation2] sm:$0xe]  ;;  %vm16439_vm1 = vmand %vm6511_vm0, %vm1158_vm11 }
 0x114   : > { %12323 = vmatprep.subr.bf16.mxu1 %v13316_v19  ;;  %v1397_v51 = vor.u32 %v1396_v44, %v1393_v43  ;;  %v12139_v59 = vpack.c.bf16 %v706_v53, %v706_v53  ;;  %v1839_v60 = vld [vmem:[#allocation2 + $0x4] sm:$0xf]  ;;  %18445 = vst [vmem:[#allocation13_spill] sm:$0xff] %v18444_v62  ;;  %v11570_v63 = vrot.slane %v1838_v56, 9  ;;  %v1942_v2 = vrot.slane %v1840_v61, 5  ;;  %v675_v8 = vld [vmem:[%s14083_s25 + $0x10] sm:$0xff] }
 0x115   : > { %12212 = vmatpush3.bf16.msra.mxu0 %v13315_v18  ;;  %v1407_v55 = vor.u32 %v1406_v47, %v1402_v45  ;;  %v12138_v58 = vpack.c.bf16 %v705_v52, %v705_v52  ;;  %v1939_v1 = vrot.slane %v1839_v60, 5  ;;  %v18449_v10 = vsel %vm14700_vm14, 4294967295, %v18448_v10  ;;  %v676_v14 = vld [vmem:[%s14083_s25 + $0x18] sm:$0xff]  ;;  %v1160_v18 = vld [vmem:[#allocation2 + $0xc] sm:$0xf]  ;;  %v679_v36 = vld [vmem:[%s14083_s25 + $0x30] sm:$0xff] }
 0x116   : > { %12213 = vmatprep.subr.bf16.mxu0 %v13318_v21  ;;  %v1398_v57 = vrot.slane %v1397_v51, 4  ;;  %v845_v6 = vshrl.u32 %v12139_v59, 16  ;;  %18450 = vst [vmem:[#allocation14_spill] sm:$0xff] %v18449_v10  ;;  %v848_v11 = vshll.u32 %v12139_v59, 16  ;;  %v707_v19 = vmax.f32 %v675_v8, 0.0  ;;  %v13337_v37 = vld [vmem:[%s18380_s1 + $0x138] sm:$0xff]  }
 0x117   : > { %12324 = vmatpush3.bf16.msra.mxu1 %v13317_v20  ;;  %v1408_v0 = vrot.slane %v1407_v55, 4  ;;  %v837_v4 = vshrl.u32 %v12138_v58, 16  ;;  %v840_v5 = vshll.u32 %v12138_v58, 16  ;;  %v1940_v12 = vsel %vm14682_vm12, %v11570_v63, %v1939_v1  ;;  %v14732_v42 = vld [vmem:[%s14083_s25 + $0x38] sm:$0xff]  ;;  %v13347_v44 = vld [vmem:[%s18380_s1 + $0x170] sm:$0xff]  }
 0x118   : > { %12325 = vmatprep.subr.bf16.mxu1 %v13320_v23  ;;  %v1403_v3 = vsel %vm14676_vm9, %v1398_v57, %v1402_v45  ;;  %v1941_v13 = vrot.slane %v1939_v1, 4  ;;  %v847_v16 = vrot.slane %v845_v6, 7  ;;  %2081 = vst.msk [vmem:[#allocation3 + $0x8] sm:$0xf] %vm1157_vm2, %v1940_v12  ;;  %v708_v20 = vmax.f32 %v676_v14, 0.0 }
 0x119   : > { %12214 = vmatpush3.bf16.msra.mxu0 %v13319_v22  ;;  %v1413_v9 = vsel %vm14676_vm9, %v1408_v0, %v1412_v48  ;;  %1806 = vst.msk [vmem:[#allocation3 + $0x4] sm:$0xf] %vm1157_vm2, %v1403_v3  ;;  %v839_v15 = vrot.slane %v837_v4, 7  ;;  %v1167_v22 = vld [vmem:[#allocation2 + $0x14] sm:$0x1]  ;;  %v711_v47 = vmax.f32 %v679_v36, 0.0 }
 0x11a   : > { %12215 = vmatprep.subr.bf16.mxu0 %v13322_v25  ;;  %1807 = vst.msk [vmem:[#allocation3 + $0x28] sm:$0xf] %vm1157_vm2, %v1413_v9  ;;  %v1943_v21 = vsel %vm14682_vm12, %v1941_v13, %v1942_v2  ;;  %v850_v25 = vor.u32 %v848_v11, %v847_v16  ;;  %v1170_v43 = vld [vmem:[#allocation2 + $0x18] sm:$0xf]  ;;  %v712_v48 = vmax.f32 %v14732_v42, 0.0  ;;  %v13350_v4 = vld [vmem:[%s18380_s1 + $0x130] sm:$0xff]  }
 0x11b   : > { %12326 = vmatpush3.bf16.msra.mxu1 %v13321_v24  ;;  %v842_v23 = vor.u32 %v840_v5, %v839_v15  ;;  %v843_v24 = vrot.slane %v839_v15, 4  ;;  %2082 = vst.msk [vmem:[#allocation3 + $0x2c] sm:$0xf] %vm1157_vm2, %v1943_v21  ;;  %v13329_v49 = vld [vmem:[#allocation3] ss:$36 sps:$4 sm:$0xff]   ;;  %v14738_v61 = vpack.c.bf16 %v711_v47, %v711_v47  ;;  %v13361_v5 = vld [vmem:[%s18380_s1 + $0x168] sm:$0xff]  }
 0x11c   : > { %12327 = vmatprep.subr.bf16.mxu1 %v13324_v27  ;;  %v677_v27 = vld [vmem:[%s14083_s25 + $0x20] sm:$0xff] }
 0x11d   : > { %12216 = vmatpush3.bf16.msra.mxu0 %v13323_v26  ;;  %v852_v26 = vrot.slane %v847_v16, 4  ;;  %v851_v33 = vsel %vm14700_vm14, %v843_v24, %v850_v25  ;;  %v1161_v34 = vsel %vm14710_vm15, %v842_v23, %v1160_v18  ;;  %v1174_v53 = vld [vmem:[#allocation2 + $0x20] sm:$0x1]  ;;  %v1177_v3 = vld [vmem:[#allocation2 + $0x24] sm:$0xf]  ;;  %v888_v8 = vshrl.u32 %v14738_v61, 16 }
 0x11e   : > { %12217 = vmatprep.subr.bf16.mxu0 %v13326_v29  ;;  %v12140_v29 = vpack.c.bf16 %v707_v19, %v707_v19  ;;  %1162 = vst [vmem:[#allocation2 + $0xc] sm:$0xf] %v1161_v34  ;;  %1164 = vst.msk [vmem:[#allocation2 + $0x10] sm:$0xf] %vm1157_vm2, %v851_v33  ;;  %v891_v9 = vshll.u32 %v14738_v61, 16  ;;  %v14795_v61 = vpack.c.bf16 %v712_v48, %v712_v48 }
 0x11f   : > { %12328 = vmatpush3.bf16.msra.mxu1 %v13325_v28  ;;  %v678_v28 = vld [vmem:[%s14083_s25 + $0x28] sm:$0xff]  ;;  %v1168_v35 = vsel %vm14690_vm13, %v852_v26, %v1167_v22 }
 0x120   : > { %12329 = vmatprep.subr.bf16.mxu1 %v13328_v31  ;;  %v709_v31 = vmax.f32 %v677_v27, 0.0  ;;  %v710_v32 = vmax.f32 %v678_v28, 0.0  ;;  %1169 = vst [vmem:[#allocation2 + $0x14] sm:$0x1] %v1168_v35  ;;  %v854_v38 = vshrl.u32 %v12140_v29, 16  ;;  %v857_v39 = vshll.u32 %v12140_v29, 16 }
 0x121   : > { %12218 = vmatpush3.bf16.msra.mxu0 %v13327_v30  ;;  %v12141_v30 = vpack.c.bf16 %v708_v20, %v708_v20  ;;  %v13331_v50 = vld [vmem:[#allocation3 + $0x4] ss:$36 sps:$4 sm:$0xff]  }
 0x122   : > { %12427 = vmatprep.subr.bf16.mxu0 %v13333_v46  ;;  %v12142_v45 = vpack.c.bf16 %v709_v31, %v709_v31  ;;  %v12143_v46 = vpack.c.bf16 %v710_v32, %v710_v32  ;;  %v856_v51 = vrot.slane %v854_v38, 7  ;;  %5289 = vmatprep.mubr.bf16.mxu0 %v13331_v50  ;;  %v1181_v32 = vld [vmem:[#allocation2 + $0x2c] sm:$0x1] }
 0x123   : > { %12330 = vmatpush3.bf16.msra.mxu1 %v13332_v40  ;;  %v862_v40 = vshrl.u32 %v12141_v30, 16  ;;  %v865_v41 = vshll.u32 %v12141_v30, 16 }
 0x124   : > { %v871_v55 = vshrl.u32 %v12142_v45, 16  ;;  %v874_v56 = vshll.u32 %v12142_v45, 16  ;;  %v879_v57 = vshrl.u32 %v12143_v46, 16  ;;  %v859_v58 = vor.u32 %v857_v39, %v856_v51  ;;  %5290 = vmatmul.mubr.bf16.vlgmr.msra.gmra.mxu0 %v13329_v49 }
 0x125   : > { %v864_v52 = vrot.slane %v862_v40, 7  ;;  %v860_v59 = vrot.slane %v856_v51, 4  ;;  %v882_v60 = vshll.u32 %v12143_v46, 16  ;;  %12428 = vmatpush3.bf16.msra.mxu0 %v13337_v37  ;;  %v2113_v11 = vld [vmem:[#allocation2 + $0xc] sm:$0xf] }
 0x126   : > { %v873_v1 = vrot.slane %v871_v55, 7  ;;  %v14740_v2 = vrot.slane %v879_v57, 7  ;;  %v1171_v6 = vsel %vm14710_vm15, %v859_v58, %v1170_v43  ;;  %v2114_v12 = vld [vmem:[#allocation2 + $0x10] sm:$0xf]  ;;  %v1277_v13 = vld [vmem:[#allocation2 + $0xc] sm:$0xf]  ;;  %12429 = vmatprep.subr.bf16.mxu0 %v13347_v44 }
 0x127   : > { %v867_v63 = vor.u32 %v865_v41, %v864_v52  ;;  %v869_v0 = vrot.slane %v864_v52, 4  ;;  %1172 = vst [vmem:[#allocation2 + $0x18] sm:$0xf] %v1171_v6  ;;  %2145 = vst.msk [vmem:[#allocation3 + $0xc] sm:$0xf] %vm1157_vm2, %v2113_v11  ;;  %v13364_v43 = vld [vmem:[%s18380_s1 + $0x128] sm:$0xff]  }
 0x128   : > { %v876_v16 = vor.u32 %v874_v56, %v873_v1  ;;  %2146 = vst.msk [vmem:[#allocation3 + $0x30] sm:$0xf] %vm1157_vm2, %v2114_v12  ;;  %v1278_v18 = vld [vmem:[#allocation2 + $0x10] sm:$0xf]  ;;  %1309 = vst.msk [vmem:[#allocation3 + $0x48] sm:$0xf] %vm1157_vm2, %v1277_v13  ;;  %v884_v21 = vor.u32 %v882_v60, %v14740_v2 }
 0x129   : > { %v868_v14 = vsel %vm14700_vm14, %v860_v59, %v867_v63  ;;  %v1175_v15 = vsel %vm14690_vm13, %v869_v0, %v1174_v53  ;;  %v1342_v19 = vld [vmem:[#allocation2 + $0xc] sm:$0xf]  ;;  %v1343_v20 = vld [vmem:[#allocation2 + $0x10] sm:$0xf]  ;;  %1310 = vst.msk [vmem:[#allocation3 + $0x6c] sm:$0xf] %vm1157_vm2, %v1278_v18  ;;  %12430 = vmatpush3.bf16.msra.mxu0 %v13350_v4 }
 0x12a   : > { %1173 = vst.msk [vmem:[#allocation2 + $0x1c] sm:$0xf] %vm1157_vm2, %v868_v14  ;;  %1176 = vst [vmem:[#allocation2 + $0x20] sm:$0x1] %v1175_v15  ;;  %v1344_v22 = vld [vmem:[#allocation2 + $0x14] sm:$0x1]  ;;  %v1178_v31 = vsel %vm14710_vm15, %v876_v16, %v1177_v3  ;;  %12431 = vmatprep.subr.bf16.mxu0 %v13361_v5 }
 0x12b   : > { %v1415_v23 = vshrl.u32 %v1342_v19, 16  ;;  %v1418_v24 = vshll.u32 %v1342_v19, 16  ;;  %v1424_v25 = vshll.u32 %v1343_v20, 16  ;;  %v1428_v26 = vshrl.u32 %v1343_v20, 16  ;;  %v1841_v28 = vld [vmem:[#allocation2 + $0xc] sm:$0xe] }
 0x12c   : > { %v1434_v27 = vshll.u32 %v1344_v22, 16  ;;  %v1842_v29 = vld [vmem:[#allocation2 + $0x10] sm:$0xf]  ;;  %v877_v30 = vrot.slane %v873_v1, 4  ;;  %v1843_v37 = vld [vmem:[#allocation2 + $0x14] sm:$0x1] }
 0x12d   : > { %v1417_v33 = vrot.slane %v1415_v23, 4  ;;  %v1420_v34 = vrot.slane %v1418_v24, 5  ;;  %v1426_v35 = vrot.slane %v1424_v25, 5  ;;  %v1430_v36 = vrot.slane %v1428_v26, 4  ;;  %1179 = vst [vmem:[#allocation2 + $0x24] sm:$0xf] %v1178_v31  ;;  %12432 = vmatpush3.bf16.msra.mxu0 %v13364_v43 }
 0x12e   : > { %v1436_v38 = vrot.slane %v1434_v27, 5  ;;  %v11571_v39 = vrot.slane %v1841_v28, 9  ;;  %v1946_v40 = vrot.slane %v1842_v29, 5  ;;  %v1949_v41 = vrot.slane %v1843_v37, 5  ;;  %v2115_v51 = vld [vmem:[#allocation2 + $0x18] sm:$0xf] }
 0x12f   : > { %v1421_v44 = vor.u32 %v1420_v34, %v1417_v33  ;;  %v1431_v45 = vor.u32 %v1430_v36, %v1426_v35  ;;  %v885_v46 = vsel %vm14700_vm14, %v877_v30, %v884_v21  ;;  %v886_v47 = vrot.slane %v14740_v2, 4  ;;  %v1279_v52 = vld [vmem:[#allocation2 + $0x18] sm:$0xf]  ;;  %v1184_v55 = vld [vmem:[#allocation2 + $0x30] sm:$0xf]  ;;  %v14812_v43 = vld [vmem:[%s14083_s25 + $0x40] sm:$0xff] }
 0x130   : > { %v1947_v49 = vsel %vm14682_vm12, %v11571_v39, %v1946_v40  ;;  %v1948_v50 = vrot.slane %v1946_v40, 4  ;;  %1180 = vst.msk [vmem:[#allocation2 + $0x28] sm:$0xf] %vm1157_vm2, %v885_v46  ;;  %v14773_v53 = vrot.slane %v888_v8, 7  ;;  %v13334_v56 = vld [vmem:[#allocation3 + $0x8] ss:$36 sps:$4 sm:$0xff]  }
 0x131   : > { %v1422_v57 = vrot.slane %v1421_v44, 4  ;;  %v1432_v58 = vrot.slane %v1431_v45, 4  ;;  %2083 = vst.msk [vmem:[#allocation3 + $0x50] sm:$0xf] %vm1157_vm2, %v1947_v49  ;;  %2147 = vst.msk [vmem:[#allocation3 + $0x54] sm:$0xf] %vm1157_vm2, %v2115_v51  ;;  %v1182_v59 = vsel %vm14690_vm13, %v886_v47, %v1181_v32 }
 0x132   : > { %1311 = vst.msk [vmem:[#allocation3 + $0x90] sm:$0xf] %vm1157_vm2, %v1279_v52  ;;  %v13336_v60 = vld [vmem:[#allocation3 + $0xc] ss:$36 sps:$4 sm:$0xff]   ;;  %v1950_v63 = vsel %vm14682_vm12, %v1948_v50, %v1949_v41  ;;  %v2116_v0 = vld [vmem:[#allocation2 + $0x1c] sm:$0xf]  ;;  %v893_v2 = vor.u32 %v891_v9, %v14773_v53 }
 0x133   : > { %v1280_v1 = vld [vmem:[#allocation2 + $0x1c] sm:$0xf]  ;;  %1183 = vst [vmem:[#allocation2 + $0x2c] sm:$0x1] %v1182_v59  ;;  %v1427_v3 = vsel %vm14676_vm9, %v1422_v57, %v1426_v35  ;;  %v1437_v4 = vsel %vm14676_vm9, %v1432_v58, %v1436_v38  ;;  %2084 = vst.msk [vmem:[#allocation3 + $0x74] sm:$0xf] %vm1157_vm2, %v1950_v63  ;;  %5450 = vmatprep.mubr.bf16.mxu1 %v13336_v60 }
 0x134   : > { %2148 = vst.msk [vmem:[#allocation3 + $0x78] sm:$0xf] %vm1157_vm2, %v2116_v0  ;;  %1312 = vst.msk [vmem:[#allocation3 + $0xb4] sm:$0xf] %vm1157_vm2, %v1280_v1  ;;  %v1345_v5 = vld [vmem:[#allocation2 + $0x18] sm:$0xf]  ;;  %5451 = vmatmul.mubr.bf16.vlgmr.msra.gmra.mxu1 %v13334_v56  ;;  %v1185_v42 = vsel %vm14710_vm15, %v893_v2, %v1184_v55 }
 0x135   : > { %v1346_v6 = vld [vmem:[#allocation2 + $0x1c] sm:$0xf]  ;;  %v1347_v8 = vld [vmem:[#allocation2 + $0x20] sm:$0x1]  ;;  %1808 = vst.msk [vmem:[#allocation3 + $0x4c] sm:$0xf] %vm1157_vm2, %v1427_v3 }
 0x136   : > { %1809 = vst.msk [vmem:[#allocation3 + $0x70] sm:$0xf] %vm1157_vm2, %v1437_v4  ;;  %v1439_v9 = vshrl.u32 %v1345_v5, 16  ;;  %v1442_v11 = vshll.u32 %v1345_v5, 16  ;;  %v1448_v12 = vshll.u32 %v1346_v6, 16  ;;  %v1452_v13 = vshrl.u32 %v1346_v6, 16 }
 0x137   : > { %v1844_v14 = vld [vmem:[#allocation2 + $0x18] sm:$0xe]  ;;  %v1458_v15 = vshll.u32 %v1347_v8, 16  ;;  %v1845_v16 = vld [vmem:[#allocation2 + $0x1c] sm:$0xf]  ;;  %v894_v28 = vrot.slane %v14773_v53, 4 }
 0x138   : > { %v1846_v18 = vld [vmem:[#allocation2 + $0x20] sm:$0x1]  ;;  %v11572_v19 = vrot.slane %v1844_v14, 9  ;;  %v1441_v48 = vrot.slane %v1439_v9, 4  ;;  %v1444_v20 = vrot.slane %v1442_v11, 5  ;;  %v1450_v21 = vrot.slane %v1448_v12, 5 }
 0x139   : > { %v1454_v22 = vrot.slane %v1452_v13, 4  ;;  %v2117_v23 = vld [vmem:[#allocation2 + $0x24] sm:$0xf]  ;;  %1186 = vst [vmem:[#allocation2 + $0x30] sm:$0xf] %v1185_v42  ;;  %v1460_v24 = vrot.slane %v1458_v15, 5 }
 0x13a   : > { %v1953_v25 = vrot.slane %v1845_v16, 5  ;;  %v1956_v26 = vrot.slane %v1846_v18, 5  ;;  %v2118_v27 = vld [vmem:[#allocation2 + $0x28] sm:$0xf]  ;;  %2149 = vst.msk [vmem:[#allocation3 + $0x9c] sm:$0xf] %vm1157_vm2, %v2117_v23  ;;  %v1445_v29 = vor.u32 %v1444_v20, %v1441_v48 }
 0x13b   : > { %v1455_v30 = vor.u32 %v1454_v22, %v1450_v21  ;;  %2150 = vst.msk [vmem:[#allocation3 + $0xc0] sm:$0xf] %vm1157_vm2, %v2118_v27  ;;  %v1281_v31 = vld [vmem:[#allocation2 + $0x24] sm:$0xf]  ;;  %v1282_v32 = vld [vmem:[#allocation2 + $0x28] sm:$0xf] }
 0x13c   : > { %v896_v33 = vshrl.u32 %v14795_v61, 16  ;;  %v1954_v34 = vsel %vm14682_vm12, %v11572_v19, %v1953_v25  ;;  %v1955_v35 = vrot.slane %v1953_v25, 4  ;;  %1313 = vst.msk [vmem:[#allocation3 + $0xd8] sm:$0xf] %vm1157_vm2, %v1281_v31  ;;  %1314 = vst.msk [vmem:[#allocation3 + $0xfc] sm:$0xf] %vm1157_vm2, %v1282_v32 }
 0x13d   : > { %v1348_v36 = vld [vmem:[#allocation2 + $0x24] sm:$0xf]  ;;  %v1349_v37 = vld [vmem:[#allocation2 + $0x28] sm:$0xf]  ;;  %v899_v38 = vshll.u32 %v14795_v61, 16  ;;  %v1446_v41 = vrot.slane %v1445_v29, 4 }
 0x13e   : > { %v13341_v39 = vld [vmem:[#allocation3 + $0x54] ss:$36 sps:$4 sm:$0xff]   ;;  %2085 = vst.msk [vmem:[#allocation3 + $0x98] sm:$0xf] %vm1157_vm2, %v1954_v34  ;;  %v13338_v44 = vld [vmem:[#allocation3 + $0x4c] ss:$36 sps:$4 sm:$0xff]   ;;  %v1957_v46 = vsel %vm14682_vm12, %v1955_v35, %v1956_v26 }
 0x13f   : > { %v13343_v40 = vld [vmem:[#allocation3 + $0x50] ss:$36 sps:$4 sm:$0xff]   ;;  %v1456_v45 = vrot.slane %v1455_v30, 4  ;;  %v1463_v47 = vshrl.u32 %v1348_v36, 16  ;;  %v13340_v49 = vld [vmem:[#allocation3 + $0x48] ss:$36 sps:$4 sm:$0xff]   ;;  %5458 = vmatprep.mubr.bf16.mxu1 %v13341_v39  ;;  %v1451_v50 = vsel %vm14676_vm9, %v1446_v41, %v1450_v21  ;;  %5297 = vmatprep.mubr.bf16.mxu0 %v13338_v44 }
 0x140   : > { %2086 = vst.msk [vmem:[#allocation3 + $0xbc] sm:$0xf] %vm1157_vm2, %v1957_v46  ;;  %v1350_v51 = vld [vmem:[#allocation2 + $0x2c] sm:$0x1]  ;;  %v1466_v52 = vshll.u32 %v1348_v36, 16  ;;  %v1472_v55 = vshll.u32 %v1349_v37, 16  ;;  %5459 = vmatmul.mubr.bf16.gmra.mxu1 %v13343_v40  ;;  %5298 = vmatmul.mubr.bf16.gmra.mxu0 %v13340_v49 }
 0x141   : > { %v682_v56 = vld [vmem:[%s14083_s25 + $0x48] sm:$0xff]  ;;  %v1461_v57 = vsel %vm14676_vm9, %v1456_v45, %v1460_v24  ;;  %1810 = vst.msk [vmem:[#allocation3 + $0x94] sm:$0xf] %vm1157_vm2, %v1451_v50  ;;  %v1465_v58 = vrot.slane %v1463_v47, 4  ;;  %v1476_v59 = vshrl.u32 %v1349_v37, 16  ;;  %v1482_v60 = vshll.u32 %v1350_v51, 16 }
 0x142   : > { %v1847_v63 = vld [vmem:[#allocation2 + $0x24] sm:$0xe]  ;;  %v1188_v0 = vld [vmem:[#allocation2 + $0x38] sm:$0x1]  ;;  %1811 = vst.msk [vmem:[#allocation3 + $0xb8] sm:$0xf] %vm1157_vm2, %v1461_v57 }
 0x143   : > { %v13375_v1 = vld [vmem:[%s18380_s1 + $0x160] sm:$0xff]   ;;  %v1468_v2 = vrot.slane %v1466_v52, 5  ;;  %v1474_v3 = vrot.slane %v1472_v55, 5  ;;  %v898_v4 = vrot.slane %v896_v33, 7  ;;  %v1848_v5 = vld [vmem:[#allocation2 + $0x28] sm:$0xf] }
 0x144   : > { %v11573_v6 = vrot.slane %v1847_v63, 9  ;;  %v1478_v8 = vrot.slane %v1476_v59, 4  ;;  %v1484_v61 = vrot.slane %v1482_v60, 5  ;;  %v1849_v9 = vld [vmem:[#allocation2 + $0x2c] sm:$0x1]  ;;  %v1960_v11 = vrot.slane %v1848_v5, 5  ;;  %12433 = vmatprep.subr.bf16.mxu0 %v13375_v1 }
 0x145   : > { %v713_v12 = vmax.f32 %v14812_v43, 0.0  ;;  %v1469_v13 = vor.u32 %v1468_v2, %v1465_v58  ;;  %v901_v14 = vor.u32 %v899_v38, %v898_v4  ;;  %v903_v15 = vrot.slane %v898_v4, 4  ;;  %v2119_v18 = vld [vmem:[#allocation2 + $0x30] sm:$0xf]  ;;  %v684_v29 = vld [vmem:[%s14083_s25 + $0x58] sm:$0xff]  ;;  %v685_v38 = vld [vmem:[%s14083_s25 + $0x60] sm:$0xff] }
 0x146   : > { %v1963_v16 = vrot.slane %v1849_v9, 5  ;;  %v1283_v19 = vld [vmem:[#allocation2 + $0x30] sm:$0xf]  ;;  %v1479_v42 = vor.u32 %v1478_v8, %v1474_v3  ;;  %v1961_v48 = vsel %vm14682_vm12, %v11573_v6, %v1960_v11  ;;  %v1962_v20 = vrot.slane %v1960_v11, 4  ;;  %2151 = vst.msk [vmem:[#allocation3 + $0xe4] sm:$0xf] %vm1157_vm2, %v2119_v18 }
 0x147   : > { %1315 = vst.msk [vmem:[#allocation3 + $0x120] sm:$0xf] %vm1157_vm2, %v1283_v19  ;;  %v1351_v21 = vld [vmem:[#allocation2 + $0x30] sm:$0xf]  ;;  %v714_v22 = vmax.f32 %v682_v56, 0.0  ;;  %v1470_v23 = vrot.slane %v1469_v13, 4  ;;  %v902_v24 = vsel %vm14700_vm14, %v894_v28, %v901_v14  ;;  %v1189_v25 = vsel %vm14690_vm13, %v903_v15, %v1188_v0 }
 0x148   : > { %2087 = vst.msk [vmem:[#allocation3 + $0xe0] sm:$0xf] %vm1157_vm2, %v1961_v48  ;;  %v1487_v26 = vshrl.u32 %v1351_v21, 16  ;;  %v683_v27 = vld [vmem:[%s14083_s25 + $0x50] sm:$0xff]  ;;  %v1480_v32 = vrot.slane %v1479_v42, 4  ;;  %v1964_v53 = vsel %vm14682_vm12, %v1962_v20, %v1963_v16  ;;  %v12146_v33 = vpack.c.bf16 %v713_v12, %v713_v12  ;;  %v14855_v55 = vld [vmem:[%s14083_s25 + $0x68] sm:$0xff] }
 0x149   : > { %v13348_v30 = vld [vmem:[#allocation3 + $0x9c] ss:$36 sps:$4 sm:$0xff]   ;;  %1187 = vst.msk [vmem:[#allocation2 + $0x34] sm:$0xf] %vm1157_vm2, %v902_v24  ;;  %1190 = vst [vmem:[#allocation2 + $0x38] sm:$0x1] %v1189_v25  ;;  %v12147_v28 = vpack.c.bf16 %v714_v22, %v714_v22  ;;  %v1475_v35 = vsel %vm14676_vm9, %v1470_v23, %v1474_v3 }
 0x14a   : > { %v13351_v31 = vld [vmem:[#allocation3 + $0x98] ss:$36 sps:$4 sm:$0xff]   ;;  %2088 = vst.msk [vmem:[#allocation3 + $0x104] sm:$0xf] %vm1157_vm2, %v1964_v53  ;;  %v1489_v36 = vrot.slane %v1487_v26, 4  ;;  %v1490_v37 = vshll.u32 %v1351_v21, 16  ;;  %5466 = vmatprep.mubr.bf16.mxu1 %v13348_v30  ;;  %v1485_v41 = vsel %vm14676_vm9, %v1480_v32, %v1484_v61 }
 0x14b   : > { %v14844_v34 = vld [vmem:[#allocation2 + $0x30] sm:$0xe]  ;;  %v13346_v40 = vld [vmem:[#allocation3 + $0x90] ss:$36 sps:$4 sm:$0xff]   ;;  %1812 = vst.msk [vmem:[#allocation3 + $0xdc] sm:$0xf] %vm1157_vm2, %v1475_v35  ;;  %5467 = vmatmul.mubr.bf16.gmra.mxu1 %v13351_v31 }
 0x14c   : > { %v13344_v39 = vld [vmem:[#allocation3 + $0x94] ss:$36 sps:$4 sm:$0xff]   ;;  %v905_v43 = vshrl.u32 %v12146_v33, 16  ;;  %1813 = vst.msk [vmem:[#allocation3 + $0x100] sm:$0xf] %vm1157_vm2, %v1485_v41  ;;  %v1492_v44 = vrot.slane %v1490_v37, 5 }
 0x14d   : > { %v908_v45 = vshll.u32 %v12146_v33, 16  ;;  %v913_v46 = vshrl.u32 %v12147_v28, 16  ;;  %v916_v47 = vshll.u32 %v12147_v28, 16  ;;  %5305 = vmatprep.mubr.bf16.mxu0 %v13344_v39  ;;  %v1191_v50 = vld [vmem:[#allocation2 + $0x3c] sm:$0xf]  ;;  %v715_v51 = vmax.f32 %v683_v27, 0.0 }
 0x14e   : > { %v907_v49 = vrot.slane %v905_v43, 7  ;;  %v716_v52 = vmax.f32 %v684_v29, 0.0  ;;  %v13378_v56 = vld [vmem:[%s18380_s1 + $0x120] sm:$0xff]   ;;  %5306 = vmatmul.mubr.bf16.gmra.mxu0 %v13346_v40  ;;  %v1493_v57 = vor.u32 %v1492_v44, %v1489_v36  ;;  %v11574_v59 = vrot.slane %v14844_v34, 9  ;;  %v13354_v20 = vld [vmem:[#allocation3 + $0xd8] ss:$36 sps:$4 sm:$0xff]  }
 0x14f   : > { %v915_v58 = vrot.slane %v913_v46, 7  ;;  %v1195_v60 = vld [vmem:[#allocation2 + $0x44] sm:$0x1]  ;;  %v717_v1 = vmax.f32 %v685_v38, 0.0  ;;  %v718_v2 = vmax.f32 %v14855_v55, 0.0  ;;  %12434 = vmatpush3.bf16.msra.mxu0 %v13378_v56  ;;  %v12148_v8 = vpack.c.bf16 %v715_v51, %v715_v51  ;;  %v13389_v53 = vld [vmem:[%s18380_s1 + $0x158] sm:$0xff]  }
 0x150   : > { %v910_v63 = vor.u32 %v908_v45, %v907_v49  ;;  %v911_v0 = vrot.slane %v907_v49, 4  ;;  %v2120_v3 = vld [vmem:[#allocation2 + $0x34] sm:$0xf]  ;;  %v12149_v61 = vpack.c.bf16 %v716_v52, %v716_v52  ;;  %v1353_v9 = vld [vmem:[#allocation2 + $0x38] sm:$0x1]  ;;  %v1494_v11 = vrot.slane %v1493_v57, 4  ;;  %12435 = vmatprep.subr.bf16.mxu0 %v13389_v53 }
 0x151   : > { %v1284_v4 = vld [vmem:[#allocation2 + $0x34] sm:$0xf]  ;;  %v918_v6 = vor.u32 %v916_v47, %v915_v58  ;;  %2152 = vst.msk [vmem:[#allocation3 + $0x108] sm:$0xf] %vm1157_vm2, %v2120_v3  ;;  %v920_v14 = vrot.slane %v915_v58, 4  ;;  %v1506_v15 = vshll.u32 %v1353_v9, 16  ;;  %v14871_v23 = vpack.c.bf16 %v717_v1, %v717_v1 }
 0x152   : > { %v1352_v5 = vld [vmem:[#allocation2 + $0x34] sm:$0xf]  ;;  %1316 = vst.msk [vmem:[#allocation3 + $0x144] sm:$0xf] %vm1157_vm2, %v1284_v4  ;;  %v1192_v18 = vsel %vm14710_vm15, %v910_v63, %v1191_v50  ;;  %v1852_v42 = vld [vmem:[#allocation2 + $0x38] sm:$0x1]  ;;  %v14902_v4 = vpack.c.bf16 %v718_v2, %v718_v2 }
 0x153   : > { %v1496_v12 = vshll.u32 %v1352_v5, 16  ;;  %v1500_v13 = vshrl.u32 %v1352_v5, 16  ;;  %v919_v16 = vsel %vm14700_vm14, %v911_v0, %v918_v6  ;;  %v1851_v19 = vld [vmem:[#allocation2 + $0x34] sm:$0xf]  ;;  %1193 = vst [vmem:[#allocation2 + $0x3c] sm:$0xf] %v1192_v18  ;;  %v1196_v22 = vsel %vm14690_vm13, %v920_v14, %v1195_v60 }
 0x154   : > { %v13352_v48 = vld [vmem:[#allocation3 + $0xdc] ss:$36 sps:$4 sm:$0xff]   ;;  %1194 = vst.msk [vmem:[#allocation2 + $0x40] sm:$0xf] %vm1157_vm2, %v919_v16  ;;  %v1508_v25 = vrot.slane %v1506_v15, 5  ;;  %v1967_v26 = vrot.slane %v1851_v19, 5 }
 0x155   : > { %v1498_v21 = vrot.slane %v1496_v12, 5  ;;  %v1502_v24 = vrot.slane %v1500_v13, 4  ;;  %v1970_v27 = vrot.slane %v1852_v42, 5  ;;  %1197 = vst [vmem:[#allocation2 + $0x44] sm:$0x1] %v1196_v22  ;;  %5313 = vmatprep.mubr.bf16.mxu0 %v13352_v48  ;;  %v922_v30 = vshrl.u32 %v12148_v8, 16 }
 0x156   : > { %v925_v31 = vshll.u32 %v12148_v8, 16  ;;  %v930_v32 = vshrl.u32 %v12149_v61, 16  ;;  %5314 = vmatmul.mubr.bf16.gmra.mxu0 %v13354_v20  ;;  %v1968_v28 = vsel %vm14682_vm12, %v11574_v59, %v1967_v26  ;;  %v1969_v34 = vrot.slane %v1967_v26, 4  ;;  %v1198_v36 = vld [vmem:[#allocation2 + $0x48] sm:$0xf]  ;;  %v13392_v26 = vld [vmem:[%s18380_s1 + $0x118] sm:$0xff]  }
 0x157   : > { %v1499_v29 = vsel %vm14676_vm9, %v1494_v11, %v1498_v21  ;;  %v1503_v33 = vor.u32 %v1502_v24, %v1498_v21  ;;  %v933_v35 = vshll.u32 %v12149_v61, 16  ;;  %v1202_v37 = vld [vmem:[#allocation2 + $0x50] sm:$0x1]  ;;  %2089 = vst.msk [vmem:[#allocation3 + $0x128] sm:$0xf] %vm1157_vm2, %v1968_v28  ;;  %v924_v38 = vrot.slane %v922_v30, 7  ;;  %12436 = vmatpush3.bf16.msra.mxu0 %v13392_v26 }
 0x158   : > { %1814 = vst.msk [vmem:[#allocation3 + $0x124] sm:$0xf] %vm1157_vm2, %v1499_v29  ;;  %v932_v39 = vrot.slane %v930_v32, 7  ;;  %v939_v40 = vshrl.u32 %v14871_v23, 16  ;;  %v942_v41 = vshll.u32 %v14871_v23, 16  ;;  %v1971_v46 = vsel %vm14682_vm12, %v1969_v34, %v1970_v27  ;;  %v14907_v11 = vld [vmem:[%s14083_s25 + $0x70] sm:$0xff] }
 0x159   : > { %v13355_v43 = vld [vmem:[#allocation3 + $0xe4] ss:$36 sps:$4 sm:$0xff]   ;;  %v1504_v45 = vrot.slane %v1503_v33, 4  ;;  %2090 = vst.msk [vmem:[#allocation3 + $0x14c] sm:$0xf] %vm1157_vm2, %v1971_v46  ;;  %v927_v47 = vor.u32 %v925_v31, %v924_v38  ;;  %v928_v49 = vrot.slane %v924_v38, 4 }
 0x15a   : > { %v13357_v44 = vld [vmem:[#allocation3 + $0xe0] ss:$36 sps:$4 sm:$0xff]   ;;  %v935_v50 = vor.u32 %v933_v35, %v932_v39  ;;  %v937_v51 = vrot.slane %v932_v39, 4  ;;  %5474 = vmatprep.mubr.bf16.mxu1 %v13355_v43  ;;  %v14909_v24 = vrot.slane %v939_v40, 7  ;;  %v950_v30 = vshll.u32 %v14902_v4, 16 }
 0x15b   : > { %v1509_v52 = vsel %vm14676_vm9, %v1504_v45, %v1508_v25  ;;  %v2121_v56 = vld [vmem:[#allocation2 + $0x3c] sm:$0xf]  ;;  %v2122_v57 = vld [vmem:[#allocation2 + $0x40] sm:$0xf]  ;;  %5475 = vmatmul.mubr.bf16.gmra.mxu1 %v13357_v44  ;;  %v1199_v1 = vsel %vm14710_vm15, %v927_v47, %v1198_v36  ;;  %v947_v25 = vshrl.u32 %v14902_v4, 16  ;;  %v719_v32 = vmax.f32 %v14907_v11, 0.0 }
 0x15c   : > { %v1285_v58 = vld [vmem:[#allocation2 + $0x3c] sm:$0xf]  ;;  %1815 = vst.msk [vmem:[#allocation3 + $0x148] sm:$0xf] %vm1157_vm2, %v1509_v52  ;;  %2153 = vst.msk [vmem:[#allocation3 + $0x12c] sm:$0xf] %vm1157_vm2, %v2121_v56  ;;  %v936_v0 = vsel %vm14700_vm14, %v928_v49, %v935_v50  ;;  %v1203_v3 = vsel %vm14690_vm13, %v937_v51, %v1202_v37  ;;  %v944_v34 = vor.u32 %v942_v41, %v14909_v24 }
 0x15d   : > { %2154 = vst.msk [vmem:[#allocation3 + $0x150] sm:$0xf] %vm1157_vm2, %v2122_v57  ;;  %v1286_v59 = vld [vmem:[#allocation2 + $0x40] sm:$0xf]  ;;  %1317 = vst.msk [vmem:[#allocation3 + $0x168] sm:$0xf] %vm1157_vm2, %v1285_v58 }
 0x15e   : > { %v1354_v60 = vld [vmem:[#allocation2 + $0x3c] sm:$0xf]  ;;  %v1355_v63 = vld [vmem:[#allocation2 + $0x40] sm:$0xf]  ;;  %1318 = vst.msk [vmem:[#allocation3 + $0x18c] sm:$0xf] %vm1157_vm2, %v1286_v59 }
 0x15f   : > { %v1356_v5 = vld [vmem:[#allocation2 + $0x44] sm:$0x1]  ;;  %v1511_v6 = vshrl.u32 %v1354_v60, 16  ;;  %v1514_v8 = vshll.u32 %v1354_v60, 16  ;;  %v1520_v61 = vshll.u32 %v1355_v63, 16  ;;  %v1524_v9 = vshrl.u32 %v1355_v63, 16 }
 0x160   : > { %1200 = vst [vmem:[#allocation2 + $0x48] sm:$0xf] %v1199_v1  ;;  %1201 = vst.msk [vmem:[#allocation2 + $0x4c] sm:$0xf] %vm1157_vm2, %v936_v0  ;;  %v1530_v12 = vshll.u32 %v1356_v5, 16  ;;  %v945_v38 = vrot.slane %v14909_v24, 4  ;;  %v14940_v5 = vpack.c.bf16 %v719_v32, %v719_v32 }
 0x161   : > { %1204 = vst [vmem:[#allocation2 + $0x50] sm:$0x1] %v1203_v3  ;;  %v1853_v13 = vld [vmem:[#allocation2 + $0x3c] sm:$0xe]  ;;  %v1854_v14 = vld [vmem:[#allocation2 + $0x40] sm:$0xf] }
 0x162   : > { %v1513_v55 = vrot.slane %v1511_v6, 4  ;;  %v1516_v15 = vrot.slane %v1514_v8, 5  ;;  %v1522_v2 = vrot.slane %v1520_v61, 5  ;;  %v1526_v16 = vrot.slane %v1524_v9, 4  ;;  %v1855_v18 = vld [vmem:[#allocation2 + $0x44] sm:$0x1] }
 0x163   : > { %v1532_v19 = vrot.slane %v1530_v12, 5  ;;  %v11575_v42 = vrot.slane %v1853_v13, 9  ;;  %v1974_v48 = vrot.slane %v1854_v14, 5  ;;  %v1977_v20 = vrot.slane %v1855_v18, 5  ;;  %v1205_v31 = vld [vmem:[#allocation2 + $0x54] sm:$0xf] }
 0x164   : > { %v1517_v21 = vor.u32 %v1516_v15, %v1513_v55  ;;  %v1527_v22 = vor.u32 %v1526_v16, %v1522_v2  ;;  %v13358_v53 = vld [vmem:[#allocation3 + $0x124] ss:$36 sps:$4 sm:$0xff]   ;;  %v13362_v35 = vld [vmem:[#allocation3 + $0x12c] ss:$36 sps:$4 sm:$0xff]   ;;  %v1206_v23 = vsel %vm14710_vm15, %v944_v34, %v1205_v31  ;;  %v949_v60 = vrot.slane %v947_v25, 7  ;;  %v13403_v12 = vld [vmem:[%s18380_s1 + $0x150] sm:$0xff]  }
 0x165   : > { %v1975_v27 = vsel %vm14682_vm12, %v11575_v42, %v1974_v48  ;;  %v1976_v29 = vrot.slane %v1974_v48, 4  ;;  %v13360_v33 = vld [vmem:[#allocation3 + $0x120] ss:$36 sps:$4 sm:$0xff]   ;;  %5321 = vmatprep.mubr.bf16.mxu0 %v13358_v53  ;;  %v13365_v39 = vld [vmem:[#allocation3 + $0x128] ss:$36 sps:$4 sm:$0xff]   ;;  %5482 = vmatprep.mubr.bf16.mxu1 %v13362_v35  ;;  %v690_v24 = vld [vmem:[%s14083_s25 + $0x88] sm:$0xff] }
 0x166   : > { %v1518_v28 = vrot.slane %v1517_v21, 4  ;;  %2091 = vst.msk [vmem:[#allocation3 + $0x170] sm:$0xf] %vm1157_vm2, %v1975_v27  ;;  %v1528_v36 = vrot.slane %v1527_v22, 4  ;;  %5322 = vmatmul.mubr.bf16.gmra.mxu0 %v13360_v33  ;;  %1207 = vst [vmem:[#allocation2 + $0x54] sm:$0xf] %v1206_v23  ;;  %5483 = vmatmul.mubr.bf16.gmra.mxu1 %v13365_v39  ;;  %v952_v9 = vor.u32 %v950_v30, %v949_v60 }
 0x167   : > { %v1978_v37 = vsel %vm14682_vm12, %v1976_v29, %v1977_v20  ;;  %v2123_v43 = vld [vmem:[#allocation2 + $0x48] sm:$0xf]  ;;  %v2124_v44 = vld [vmem:[#allocation2 + $0x4c] sm:$0xf]  ;;  %v688_v56 = vld [vmem:[%s14083_s25 + $0x78] sm:$0xff]  ;;  %v954_v14 = vrot.slane %v949_v60, 4  ;;  %12437 = vmatprep.subr.bf16.mxu0 %v13403_v12 }
 0x168   : > { %v1523_v40 = vsel %vm14676_vm9, %v1518_v28, %v1522_v2  ;;  %2092 = vst.msk [vmem:[#allocation3 + $0x194] sm:$0xf] %vm1157_vm2, %v1978_v37  ;;  %v1533_v41 = vsel %vm14676_vm9, %v1528_v36, %v1532_v19  ;;  %2155 = vst.msk [vmem:[#allocation3 + $0x174] sm:$0xf] %vm1157_vm2, %v2123_v43  ;;  %v1287_v45 = vld [vmem:[#allocation2 + $0x48] sm:$0xf]  ;;  %v953_v16 = vsel %vm14700_vm14, %v945_v38, %v952_v9 }
 0x169   : > { %1816 = vst.msk [vmem:[#allocation3 + $0x16c] sm:$0xf] %vm1157_vm2, %v1523_v40  ;;  %2156 = vst.msk [vmem:[#allocation3 + $0x198] sm:$0xf] %vm1157_vm2, %v2124_v44  ;;  %v1288_v46 = vld [vmem:[#allocation2 + $0x4c] sm:$0xf] }
 0x16a   : > { %v1357_v47 = vld [vmem:[#allocation2 + $0x48] sm:$0xf]  ;;  %1817 = vst.msk [vmem:[#allocation3 + $0x190] sm:$0xf] %vm1157_vm2, %v1533_v41  ;;  %1319 = vst.msk [vmem:[#allocation3 + $0x1b0] sm:$0xf] %vm1157_vm2, %v1287_v45 }
 0x16b   : > { %1320 = vst.msk [vmem:[#allocation3 + $0x1d4] sm:$0xf] %vm1157_vm2, %v1288_v46  ;;  %v1358_v49 = vld [vmem:[#allocation2 + $0x4c] sm:$0xf]  ;;  %v1359_v50 = vld [vmem:[#allocation2 + $0x50] sm:$0x1] }
 0x16c   : > { %v1535_v51 = vshrl.u32 %v1357_v47, 16  ;;  %v1538_v52 = vshll.u32 %v1357_v47, 16  ;;  %v1544_v57 = vshll.u32 %v1358_v49, 16  ;;  %v1548_v58 = vshrl.u32 %v1358_v49, 16  ;;  %v1856_v63 = vld [vmem:[#allocation2 + $0x48] sm:$0xe] }
 0x16d   : > { %v1554_v59 = vshll.u32 %v1359_v50, 16  ;;  %v1857_v3 = vld [vmem:[#allocation2 + $0x4c] sm:$0xf]  ;;  %v1858_v4 = vld [vmem:[#allocation2 + $0x50] sm:$0x1]  ;;  %v11576_v55 = vrot.slane %v1856_v63, 9 }
 0x16e   : > { %v1537_v0 = vrot.slane %v1535_v51, 4  ;;  %v1540_v1 = vrot.slane %v1538_v52, 5  ;;  %v1546_v6 = vrot.slane %v1544_v57, 5  ;;  %v1550_v8 = vrot.slane %v1548_v58, 4  ;;  %v1209_v11 = vld [vmem:[#allocation2 + $0x5c] sm:$0x1] }
 0x16f   : > { %v1556_v61 = vrot.slane %v1554_v59, 5  ;;  %v1981_v15 = vrot.slane %v1857_v3, 5  ;;  %v1984_v18 = vrot.slane %v1858_v4, 5  ;;  %v720_v19 = vmax.f32 %v688_v56, 0.0  ;;  %1208 = vst.msk [vmem:[#allocation2 + $0x58] sm:$0xf] %vm1157_vm2, %v953_v16 }
 0x170   : > { %v1541_v13 = vor.u32 %v1540_v1, %v1537_v0  ;;  %v1551_v2 = vor.u32 %v1550_v8, %v1546_v6  ;;  %v1210_v21 = vsel %vm14690_vm13, %v954_v14, %v1209_v11  ;;  %v689_v22 = vld [vmem:[%s14083_s25 + $0x80] sm:$0xff]  ;;  %v14956_v30 = vld [vmem:[%s14083_s25 + $0x90] sm:$0xff]  ;;  %v13371_v32 = vld [vmem:[#allocation3 + $0x170] ss:$36 sps:$4 sm:$0xff]   ;;  %v956_v37 = vshrl.u32 %v14940_v5, 16 }
 0x171   : > { %v1982_v48 = vsel %vm14682_vm12, %v11576_v55, %v1981_v15  ;;  %v1983_v20 = vrot.slane %v1981_v15, 4  ;;  %v13366_v25 = vld [vmem:[#allocation3 + $0x16c] ss:$36 sps:$4 sm:$0xff]   ;;  %1211 = vst [vmem:[#allocation2 + $0x5c] sm:$0x1] %v1210_v21  ;;  %v12153_v29 = vpack.c.bf16 %v720_v19, %v720_v19  ;;  %v959_v38 = vshll.u32 %v14940_v5, 16 }
 0x172   : > { %v1542_v42 = vrot.slane %v1541_v13, 4  ;;  %v13368_v26 = vld [vmem:[#allocation3 + $0x168] ss:$36 sps:$4 sm:$0xff]   ;;  %v1552_v27 = vrot.slane %v1551_v2, 4  ;;  %2093 = vst.msk [vmem:[#allocation3 + $0x1b8] sm:$0xf] %vm1157_vm2, %v1982_v48  ;;  %5329 = vmatprep.mubr.bf16.mxu0 %v13366_v25 }
 0x173   : > { %v13369_v31 = vld [vmem:[#allocation3 + $0x174] ss:$36 sps:$4 sm:$0xff]   ;;  %v1985_v33 = vsel %vm14682_vm12, %v1983_v20, %v1984_v18  ;;  %v2125_v28 = vld [vmem:[#allocation2 + $0x54] sm:$0xf]  ;;  %5330 = vmatmul.mubr.bf16.gmra.mxu0 %v13368_v26  ;;  %v964_v43 = vshrl.u32 %v12153_v29, 16  ;;  %v967_v44 = vshll.u32 %v12153_v29, 16 }
 0x174   : > { %v1547_v53 = vsel %vm14676_vm9, %v1542_v42, %v1546_v6  ;;  %v1557_v34 = vsel %vm14676_vm9, %v1552_v27, %v1556_v61  ;;  %2094 = vst.msk [vmem:[#allocation3 + $0x1dc] sm:$0xf] %vm1157_vm2, %v1985_v33  ;;  %2157 = vst.msk [vmem:[#allocation3 + $0x1bc] sm:$0xf] %vm1157_vm2, %v2125_v28  ;;  %v1289_v35 = vld [vmem:[#allocation2 + $0x54] sm:$0xf]  ;;  %5490 = vmatprep.mubr.bf16.mxu1 %v13369_v31 }
 0x175   : > { %1818 = vst.msk [vmem:[#allocation3 + $0x1b4] sm:$0xf] %vm1157_vm2, %v1547_v53  ;;  %v1360_v36 = vld [vmem:[#allocation2 + $0x54] sm:$0xf]  ;;  %1819 = vst.msk [vmem:[#allocation3 + $0x1d8] sm:$0xf] %vm1157_vm2, %v1557_v34  ;;  %5491 = vmatmul.mubr.bf16.gmra.mxu1 %v13371_v32 }
 0x176   : > { %1321 = vst.msk [vmem:[#allocation3 + $0x1f8] sm:$0xf] %vm1157_vm2, %v1289_v35  ;;  %v1559_v39 = vshrl.u32 %v1360_v36, 16  ;;  %v1562_v40 = vshll.u32 %v1360_v36, 16  ;;  %v1212_v23 = vld [vmem:[#allocation2 + $0x60] sm:$0xf] }
 0x177   : > { %v1859_v41 = vld [vmem:[#allocation2 + $0x54] sm:$0xe]  ;;  %v958_v45 = vrot.slane %v956_v37, 7  ;;  %v721_v47 = vmax.f32 %v689_v22, 0.0  ;;  %v722_v49 = vmax.f32 %v690_v24, 0.0  ;;  %v966_v56 = vrot.slane %v964_v43, 7 }
 0x178   : > { %v11577_v46 = vrot.slane %v1859_v41, 9  ;;  %v13406_v50 = vld [vmem:[%s18380_s1 + $0x110] sm:$0xff]   ;;  %v1561_v51 = vrot.slane %v1559_v39, 4  ;;  %v1564_v52 = vrot.slane %v1562_v40, 5  ;;  %v1216_v57 = vld [vmem:[#allocation2 + $0x68] sm:$0x1] }
 0x179   : > { %v723_v58 = vmax.f32 %v14956_v30, 0.0  ;;  %v2126_v59 = vld [vmem:[#allocation2 + $0x58] sm:$0xf]  ;;  %v961_v0 = vor.u32 %v959_v38, %v958_v45  ;;  %v12154_v1 = vpack.c.bf16 %v721_v47, %v721_v47  ;;  %v14975_v3 = vpack.c.bf16 %v722_v49, %v722_v49  ;;  %12438 = vmatpush3.bf16.msra.mxu0 %v13406_v50  ;;  %v1362_v4 = vld [vmem:[#allocation2 + $0x5c] sm:$0x1] }
 0x17a   : > { %v1290_v60 = vld [vmem:[#allocation2 + $0x58] sm:$0xf]  ;;  %2158 = vst.msk [vmem:[#allocation3 + $0x1e0] sm:$0xf] %vm1157_vm2, %v2126_v59  ;;  %v1565_v5 = vor.u32 %v1564_v52, %v1561_v51  ;;  %v962_v61 = vrot.slane %v958_v45, 4  ;;  %v1578_v9 = vshll.u32 %v1362_v4, 16  ;;  %v969_v11 = vor.u32 %v967_v44, %v966_v56 }
 0x17b   : > { %v1361_v63 = vld [vmem:[#allocation2 + $0x58] sm:$0xf]  ;;  %1322 = vst.msk [vmem:[#allocation3 + $0x21c] sm:$0xf] %vm1157_vm2, %v1290_v60  ;;  %v971_v12 = vrot.slane %v966_v56, 4  ;;  %v1213_v13 = vsel %vm14710_vm15, %v961_v0, %v1212_v23  ;;  %v14986_v24 = vpack.c.bf16 %v723_v58, %v723_v58  ;;  %v973_v31 = vshrl.u32 %v12154_v1, 16 }
 0x17c   : > { %v1568_v6 = vshll.u32 %v1361_v63, 16  ;;  %v1572_v8 = vshrl.u32 %v1361_v63, 16  ;;  %v1860_v14 = vld [vmem:[#allocation2 + $0x58] sm:$0xf]  ;;  %v1861_v55 = vld [vmem:[#allocation2 + $0x5c] sm:$0x1]  ;;  %v970_v21 = vsel %vm14700_vm14, %v962_v61, %v969_v11 }
 0x17d   : > { %v692_v15 = vld [vmem:[%s14083_s25 + $0x98] sm:$0xff]  ;;  %v1566_v2 = vrot.slane %v1565_v5, 4  ;;  %1214 = vst [vmem:[#allocation2 + $0x60] sm:$0xf] %v1213_v13  ;;  %v1988_v19 = vrot.slane %v1860_v14, 5  ;;  %v1580_v20 = vrot.slane %v1578_v9, 5  ;;  %v1217_v22 = vsel %vm14690_vm13, %v971_v12, %v1216_v57 }
 0x17e   : > { %v1570_v16 = vrot.slane %v1568_v6, 5  ;;  %v1574_v18 = vrot.slane %v1572_v8, 4  ;;  %v13372_v42 = vld [vmem:[#allocation3 + $0x1b4] ss:$36 sps:$4 sm:$0xff]   ;;  %1215 = vst.msk [vmem:[#allocation2 + $0x64] sm:$0xf] %vm1157_vm2, %v970_v21 }
 0x17f   : > { %v13374_v48 = vld [vmem:[#allocation3 + $0x1b0] ss:$36 sps:$4 sm:$0xff]   ;;  %v1989_v27 = vsel %vm14682_vm12, %v11577_v46, %v1988_v19  ;;  %v1990_v29 = vrot.slane %v1988_v19, 4  ;;  %1218 = vst [vmem:[#allocation2 + $0x68] sm:$0x1] %v1217_v22  ;;  %5337 = vmatprep.mubr.bf16.mxu0 %v13372_v42  ;;  %v1991_v30 = vrot.slane %v1861_v55, 5 }
 0x180   : > { %v1571_v25 = vsel %vm14676_vm9, %v1566_v2, %v1570_v16  ;;  %v1575_v26 = vor.u32 %v1574_v18, %v1570_v16  ;;  %2095 = vst.msk [vmem:[#allocation3 + $0x200] sm:$0xf] %vm1157_vm2, %v1989_v27  ;;  %v976_v32 = vshll.u32 %v12154_v1, 16  ;;  %v981_v53 = vshrl.u32 %v14975_v3, 16  ;;  %5338 = vmatmul.mubr.bf16.gmra.mxu0 %v13374_v48  ;;  %v13379_v37 = vld [vmem:[#allocation3 + $0x1b8] ss:$36 sps:$4 sm:$0xff]  }
 0x181   : > { %1820 = vst.msk [vmem:[#allocation3 + $0x1fc] sm:$0xf] %vm1157_vm2, %v1571_v25  ;;  %v984_v28 = vshll.u32 %v14975_v3, 16  ;;  %v724_v34 = vmax.f32 %v692_v15, 0.0  ;;  %v990_v35 = vshrl.u32 %v14986_v24, 16  ;;  %v1992_v38 = vsel %vm14682_vm12, %v1990_v29, %v1991_v30  ;;  %v13417_v58 = vld [vmem:[%s18380_s1 + $0x148] sm:$0xff]  }
 0x182   : > { %v1576_v33 = vrot.slane %v1575_v26, 4  ;;  %v13376_v36 = vld [vmem:[#allocation3 + $0x1bc] ss:$36 sps:$4 sm:$0xff]   ;;  %v975_v39 = vrot.slane %v973_v31, 7  ;;  %2096 = vst.msk [vmem:[#allocation3 + $0x224] sm:$0xf] %vm1157_vm2, %v1992_v38  ;;  %12439 = vmatprep.subr.bf16.mxu0 %v13417_v58 }
 0x183   : > { %v983_v43 = vrot.slane %v981_v53, 7  ;;  %v1219_v44 = vld [vmem:[#allocation2 + $0x6c] sm:$0xf]  ;;  %v15003_v23 = vrot.slane %v990_v35, 7  ;;  %5498 = vmatprep.mubr.bf16.mxu1 %v13376_v36  ;;  %v1223_v57 = vld [vmem:[#allocation2 + $0x74] sm:$0x1]  ;;  %v15013_v1 = vpack.c.bf16 %v724_v34, %v724_v34 }
 0x184   : > { %v1581_v40 = vsel %vm14676_vm9, %v1576_v33, %v1580_v20  ;;  %v2127_v41 = vld [vmem:[#allocation2 + $0x60] sm:$0xf]  ;;  %v978_v47 = vor.u32 %v976_v32, %v975_v39  ;;  %5499 = vmatmul.mubr.bf16.gmra.mxu1 %v13379_v37  ;;  %v979_v51 = vrot.slane %v975_v39, 4  ;;  %v1226_v14 = vld [vmem:[#allocation2 + $0x78] sm:$0xf]  ;;  %v993_v18 = vshll.u32 %v14986_v24, 16 }
 0x185   : > { %1821 = vst.msk [vmem:[#allocation3 + $0x220] sm:$0xf] %vm1157_vm2, %v1581_v40  ;;  %v1291_v45 = vld [vmem:[#allocation2 + $0x60] sm:$0xf]  ;;  %2159 = vst.msk [vmem:[#allocation3 + $0x204] sm:$0xf] %vm1157_vm2, %v2127_v41  ;;  %v986_v52 = vor.u32 %v984_v28, %v983_v43 }
 0x186   : > { %v1363_v46 = vld [vmem:[#allocation2 + $0x60] sm:$0xf]  ;;  %1323 = vst.msk [vmem:[#allocation3 + $0x240] sm:$0xf] %vm1157_vm2, %v1291_v45  ;;  %v2128_v59 = vld [vmem:[#allocation2 + $0x64] sm:$0xf]  ;;  %v1220_v0 = vsel %vm14710_vm15, %v978_v47, %v1219_v44  ;;  %v995_v29 = vor.u32 %v993_v18, %v15003_v23 }
 0x187   : > { %v1583_v49 = vshrl.u32 %v1363_v46, 16  ;;  %v1586_v50 = vshll.u32 %v1363_v46, 16  ;;  %v1862_v56 = vld [vmem:[#allocation2 + $0x60] sm:$0xe]  ;;  %v1292_v60 = vld [vmem:[#allocation2 + $0x64] sm:$0xf]  ;;  %v987_v8 = vsel %vm14700_vm14, %v979_v51, %v986_v52 }
 0x188   : > { %v1364_v63 = vld [vmem:[#allocation2 + $0x64] sm:$0xf]  ;;  %2160 = vst.msk [vmem:[#allocation3 + $0x228] sm:$0xf] %vm1157_vm2, %v2128_v59  ;;  %1324 = vst.msk [vmem:[#allocation3 + $0x264] sm:$0xf] %vm1157_vm2, %v1292_v60  ;;  %v1227_v28 = vsel %vm14710_vm15, %v995_v29, %v1226_v14 }
 0x189   : > { %v1365_v3 = vld [vmem:[#allocation2 + $0x68] sm:$0x1]  ;;  %v1585_v4 = vrot.slane %v1583_v49, 4  ;;  %v1588_v5 = vrot.slane %v1586_v50, 5  ;;  %v1592_v6 = vshll.u32 %v1364_v63, 16  ;;  %v1596_v61 = vshrl.u32 %v1364_v63, 16 }
 0x18a   : > { %1221 = vst [vmem:[#allocation2 + $0x6c] sm:$0xf] %v1220_v0  ;;  %v1602_v9 = vshll.u32 %v1365_v3, 16  ;;  %v988_v11 = vrot.slane %v983_v43, 4  ;;  %1222 = vst.msk [vmem:[#allocation2 + $0x70] sm:$0xf] %vm1157_vm2, %v987_v8 }
 0x18b   : > { %v1863_v12 = vld [vmem:[#allocation2 + $0x64] sm:$0xf]  ;;  %v11578_v13 = vrot.slane %v1862_v56, 9  ;;  %v1589_v55 = vor.u32 %v1588_v5, %v1585_v4  ;;  %v1594_v15 = vrot.slane %v1592_v6, 5  ;;  %v1864_v2 = vld [vmem:[#allocation2 + $0x68] sm:$0x1] }
 0x18c   : > { %v1995_v16 = vrot.slane %v1863_v12, 5  ;;  %v1598_v19 = vrot.slane %v1596_v61, 4  ;;  %v1604_v42 = vrot.slane %v1602_v9, 5  ;;  %v1998_v48 = vrot.slane %v1864_v2, 5  ;;  %v15024_v21 = vld [vmem:[%s14083_s25 + $0xa0] sm:$0xff]  ;;  %v694_v61 = vld [vmem:[%s14083_s25 + $0xa8] sm:$0xff] }
 0x18d   : > { %v1224_v20 = vsel %vm14690_vm13, %v988_v11, %v1223_v57  ;;  %v13380_v22 = vld [vmem:[#allocation3 + $0x1fc] ss:$36 sps:$4 sm:$0xff]   ;;  %v1590_v26 = vrot.slane %v1589_v55, 4  ;;  %v996_v24 = vrot.slane %v15003_v23, 4  ;;  %v998_v32 = vshrl.u32 %v15013_v1, 16  ;;  %v13420_v9 = vld [vmem:[%s18380_s1 + $0x108] sm:$0xff]  }
 0x18e   : > { %v13382_v25 = vld [vmem:[#allocation3 + $0x1f8] ss:$36 sps:$4 sm:$0xff]   ;;  %v1996_v27 = vsel %vm14682_vm12, %v11578_v13, %v1995_v16  ;;  %1225 = vst [vmem:[#allocation2 + $0x74] sm:$0x1] %v1224_v20  ;;  %v1599_v30 = vor.u32 %v1598_v19, %v1594_v15  ;;  %v1997_v31 = vrot.slane %v1995_v16, 4  ;;  %5345 = vmatprep.mubr.bf16.mxu0 %v13380_v22  ;;  %v1001_v33 = vshll.u32 %v15013_v1, 16  ;;  %12440 = vmatpush3.bf16.msra.mxu0 %v13420_v9 }
 0x18f   : > { %2097 = vst.msk [vmem:[#allocation3 + $0x248] sm:$0xf] %vm1157_vm2, %v1996_v27  ;;  %v1595_v53 = vsel %vm14676_vm9, %v1590_v26, %v1594_v15  ;;  %v725_v34 = vmax.f32 %v15024_v21, 0.0  ;;  %5346 = vmatmul.mubr.bf16.gmra.mxu0 %v13382_v25  ;;  %v13383_v35 = vld [vmem:[#allocation3 + $0x204] ss:$36 sps:$4 sm:$0xff]   ;;  %v1000_v56 = vrot.slane %v998_v32, 7 }
 0x190   : > { %v13385_v36 = vld [vmem:[#allocation3 + $0x200] ss:$36 sps:$4 sm:$0xff]   ;;  %v1600_v37 = vrot.slane %v1599_v30, 4  ;;  %1822 = vst.msk [vmem:[#allocation3 + $0x244] sm:$0xf] %vm1157_vm2, %v1595_v53  ;;  %v1999_v38 = vsel %vm14682_vm12, %v1997_v31, %v1998_v48  ;;  %5506 = vmatprep.mubr.bf16.mxu1 %v13383_v35  ;;  %v695_v20 = vld [vmem:[%s14083_s25 + $0xb0] sm:$0xff] }
 0x191   : > { %1228 = vst [vmem:[#allocation2 + $0x78] sm:$0xf] %v1227_v28  ;;  %2098 = vst.msk [vmem:[#allocation3 + $0x26c] sm:$0xf] %vm1157_vm2, %v1999_v38  ;;  %v2129_v39 = vld [vmem:[#allocation2 + $0x6c] sm:$0xf]  ;;  %5507 = vmatmul.mubr.bf16.gmra.mxu1 %v13385_v36  ;;  %v1003_v5 = vor.u32 %v1001_v33, %v1000_v56  ;;  %v12158_v15 = vpack.c.bf16 %v725_v34, %v725_v34 }
 0x192   : > { %v2130_v40 = vld [vmem:[#allocation2 + $0x70] sm:$0xf]  ;;  %v1293_v43 = vld [vmem:[#allocation2 + $0x6c] sm:$0xf]  ;;  %v1605_v44 = vsel %vm14676_vm9, %v1600_v37, %v1604_v42  ;;  %2161 = vst.msk [vmem:[#allocation3 + $0x24c] sm:$0xf] %vm1157_vm2, %v2129_v39 }
 0x193   : > { %2162 = vst.msk [vmem:[#allocation3 + $0x270] sm:$0xf] %vm1157_vm2, %v2130_v40  ;;  %v1294_v23 = vld [vmem:[#allocation2 + $0x70] sm:$0xf]  ;;  %1325 = vst.msk [vmem:[#allocation3 + $0x288] sm:$0xf] %vm1157_vm2, %v1293_v43  ;;  %v1004_v16 = vsel %vm14700_vm14, %v996_v24, %v1003_v5 }
 0x194   : > { %v1366_v41 = vld [vmem:[#allocation2 + $0x6c] sm:$0xf]  ;;  %v1367_v45 = vld [vmem:[#allocation2 + $0x70] sm:$0xf]  ;;  %1823 = vst.msk [vmem:[#allocation3 + $0x268] sm:$0xf] %vm1157_vm2, %v1605_v44 }
 0x195   : > { %1326 = vst.msk [vmem:[#allocation3 + $0x2ac] sm:$0xf] %vm1157_vm2, %v1294_v23  ;;  %v1607_v46 = vshrl.u32 %v1366_v41, 16  ;;  %v1610_v47 = vshll.u32 %v1366_v41, 16  ;;  %v1616_v49 = vshll.u32 %v1367_v45, 16  ;;  %v1620_v50 = vshrl.u32 %v1367_v45, 16 }
 0x196   : > { %v1865_v51 = vld [vmem:[#allocation2 + $0x6c] sm:$0xe]  ;;  %v1368_v52 = vld [vmem:[#allocation2 + $0x74] sm:$0x1]  ;;  %v1866_v57 = vld [vmem:[#allocation2 + $0x70] sm:$0xf] }
 0x197   : > { %v11579_v58 = vrot.slane %v1865_v51, 9  ;;  %v1230_v59 = vld [vmem:[#allocation2 + $0x80] sm:$0x1]  ;;  %v1609_v60 = vrot.slane %v1607_v46, 4  ;;  %v1612_v63 = vrot.slane %v1610_v47, 5  ;;  %v1618_v0 = vrot.slane %v1616_v49, 5 }
 0x198   : > { %v1622_v1 = vrot.slane %v1620_v50, 4  ;;  %v1867_v3 = vld [vmem:[#allocation2 + $0x74] sm:$0x1]  ;;  %v1626_v4 = vshll.u32 %v1368_v52, 16  ;;  %v1005_v6 = vrot.slane %v1000_v56, 4  ;;  %v2002_v8 = vrot.slane %v1866_v57, 5 }
 0x199   : > { %v1613_v11 = vor.u32 %v1612_v63, %v1609_v60  ;;  %v2005_v13 = vrot.slane %v1867_v3, 5  ;;  %v2131_v14 = vld [vmem:[#allocation2 + $0x78] sm:$0xf]  ;;  %1229 = vst.msk [vmem:[#allocation2 + $0x7c] sm:$0xf] %vm1157_vm2, %v1004_v16  ;;  %v15068_v29 = vld [vmem:[%s14083_s25 + $0xc0] sm:$0xff] }
 0x19a   : > { %v1623_v12 = vor.u32 %v1622_v1, %v1618_v0  ;;  %v1295_v55 = vld [vmem:[#allocation2 + $0x78] sm:$0xf]  ;;  %v1628_v2 = vrot.slane %v1626_v4, 5  ;;  %v2003_v18 = vsel %vm14682_vm12, %v11579_v58, %v2002_v8  ;;  %v2004_v19 = vrot.slane %v2002_v8, 4  ;;  %2163 = vst.msk [vmem:[#allocation3 + $0x294] sm:$0xf] %vm1157_vm2, %v2131_v14 }
 0x19b   : > { %1327 = vst.msk [vmem:[#allocation3 + $0x2d0] sm:$0xf] %vm1157_vm2, %v1295_v55  ;;  %v1369_v42 = vld [vmem:[#allocation2 + $0x78] sm:$0xf]  ;;  %v13390_v22 = vld [vmem:[#allocation3 + $0x24c] ss:$36 sps:$4 sm:$0xff]   ;;  %v1231_v27 = vsel %vm14690_vm13, %v1005_v6, %v1230_v59 }
 0x19c   : > { %v15059_v48 = vld [vmem:[#allocation2 + $0x78] sm:$0xe]  ;;  %v1614_v25 = vrot.slane %v1613_v11, 4  ;;  %v1624_v26 = vrot.slane %v1623_v12, 4  ;;  %2099 = vst.msk [vmem:[#allocation3 + $0x290] sm:$0xf] %vm1157_vm2, %v2003_v18  ;;  %v2006_v32 = vsel %vm14682_vm12, %v2004_v19, %v2005_v13  ;;  %5514 = vmatprep.mubr.bf16.mxu1 %v13390_v22 }
 0x19d   : > { %v696_v21 = vld [vmem:[%s14083_s25 + $0xb8] sm:$0xff]  ;;  %v15071_v30 = vld [vmem:[%s14083_s25 + $0xc8] sm:$0xff]  ;;  %1232 = vst [vmem:[#allocation2 + $0x80] sm:$0x1] %v1231_v27  ;;  %v1631_v53 = vshrl.u32 %v1369_v42, 16  ;;  %v1634_v35 = vshll.u32 %v1369_v42, 16 }
 0x19e   : > { %v13386_v31 = vld [vmem:[#allocation3 + $0x244] ss:$36 sps:$4 sm:$0xff]   ;;  %v1619_v28 = vsel %vm14676_vm9, %v1614_v25, %v1618_v0  ;;  %v1629_v34 = vsel %vm14676_vm9, %v1624_v26, %v1628_v2  ;;  %2100 = vst.msk [vmem:[#allocation3 + $0x2b4] sm:$0xf] %vm1157_vm2, %v2006_v32  ;;  %v726_v36 = vmax.f32 %v694_v61, 0.0  ;;  %v1007_v38 = vshrl.u32 %v12158_v15, 16 }
 0x19f   : > { %v13388_v24 = vld [vmem:[#allocation3 + $0x240] ss:$36 sps:$4 sm:$0xff]   ;;  %v13393_v33 = vld [vmem:[#allocation3 + $0x248] ss:$36 sps:$4 sm:$0xff]   ;;  %5353 = vmatprep.mubr.bf16.mxu0 %v13386_v31  ;;  %1824 = vst.msk [vmem:[#allocation3 + $0x28c] sm:$0xf] %vm1157_vm2, %v1619_v28 }
 0x1a0   : > { %1825 = vst.msk [vmem:[#allocation3 + $0x2b0] sm:$0xf] %vm1157_vm2, %v1629_v34  ;;  %v1633_v37 = vrot.slane %v1631_v53, 4  ;;  %v1010_v39 = vshll.u32 %v12158_v15, 16  ;;  %v11580_v40 = vrot.slane %v15059_v48, 9  ;;  %v13422_v43 = vld [vmem:[%s18380_s1 + $0x1f8] sm:$0xff]   ;;  %5354 = vmatmul.mubr.bf16.gmra.mxu0 %v13388_v24  ;;  %5515 = vmatmul.mubr.bf16.gmra.mxu1 %v13393_v33  ;;  %v12159_v41 = vpack.c.bf16 %v726_v36, %v726_v36 }
 0x1a1   : > { %v13423_v44 = vld [vmem:[%s18380_s1 + $0x1b8] sm:$0xff]   ;;  %v1636_v23 = vrot.slane %v1634_v35, 5  ;;  %v1233_v45 = vld [vmem:[#allocation2 + $0x84] sm:$0xf]  ;;  %v727_v46 = vmax.f32 %v695_v20, 0.0  ;;  %v728_v47 = vmax.f32 %v696_v21, 0.0  ;;  %12539 = vmatprep.subr.bf16.mxu1 %v13422_v43 }
 0x1a2   : > { %v13424_v49 = vld [vmem:[%s18380_s1 + $0x1f0] sm:$0xff]   ;;  %v1009_v50 = vrot.slane %v1007_v38, 7  ;;  %v729_v51 = vmax.f32 %v15068_v29, 0.0  ;;  %v730_v52 = vmax.f32 %v15071_v30, 0.0  ;;  %v1015_v58 = vshrl.u32 %v12159_v41, 16  ;;  %12540 = vmatpush3.bf16.msra.mxu1 %v13423_v44 }
 0x1a3   : > { %v13427_v56 = vld [vmem:[%s18380_s1 + $0x1b0] sm:$0xff]   ;;  %v1637_v57 = vor.u32 %v1636_v23, %v1633_v37  ;;  %v1018_v59 = vshll.u32 %v12159_v41, 16  ;;  %v2132_v60 = vld [vmem:[#allocation2 + $0x7c] sm:$0xf]  ;;  %v1237_v3 = vld [vmem:[#allocation2 + $0x8c] sm:$0x1]  ;;  %v12160_v4 = vpack.c.bf16 %v727_v46, %v727_v46  ;;  %12541 = vmatprep.subr.bf16.mxu1 %v13424_v49  ;;  %v12161_v9 = vpack.c.bf16 %v728_v47, %v728_v47 }
 0x1a4   : > { %v1296_v63 = vld [vmem:[#allocation2 + $0x7c] sm:$0xf]  ;;  %v1012_v0 = vor.u32 %v1010_v39, %v1009_v50  ;;  %v1013_v1 = vrot.slane %v1009_v50, 4  ;;  %2164 = vst.msk [vmem:[#allocation3 + $0x2b8] sm:$0xf] %vm1157_vm2, %v2132_v60  ;;  %v1017_v61 = vrot.slane %v1015_v58, 7  ;;  %v15101_v19 = vpack.c.bf16 %v729_v51, %v729_v51 }
 0x1a5   : > { %1328 = vst.msk [vmem:[#allocation3 + $0x2f4] sm:$0xf] %vm1157_vm2, %v1296_v63  ;;  %v1370_v5 = vld [vmem:[#allocation2 + $0x7c] sm:$0xf]  ;;  %v1371_v6 = vld [vmem:[#allocation2 + $0x80] sm:$0x1] }
 0x1a6   : > { %v1638_v8 = vrot.slane %v1637_v57, 4  ;;  %v1640_v11 = vshll.u32 %v1370_v5, 16  ;;  %v1644_v12 = vshrl.u32 %v1370_v5, 16  ;;  %v1650_v13 = vshll.u32 %v1371_v6, 16  ;;  %v1869_v55 = vld [vmem:[#allocation2 + $0x7c] sm:$0xf]  ;;  %12542 = vmatpush3.bf16.msra.mxu1 %v13427_v56 }
 0x1a7   : > { %v1234_v14 = vsel %vm14710_vm15, %v1012_v0, %v1233_v45  ;;  %v13394_v15 = vld [vmem:[#allocation3 + $0x28c] ss:$36 sps:$4 sm:$0xff]   ;;  %v1020_v2 = vor.u32 %v1018_v59, %v1017_v61  ;;  %v1022_v16 = vrot.slane %v1017_v61, 4  ;;  %v2009_v18 = vrot.slane %v1869_v55, 5  ;;  %v1870_v26 = vld [vmem:[#allocation2 + $0x80] sm:$0x1] }
 0x1a8   : > { %1235 = vst [vmem:[#allocation2 + $0x84] sm:$0xf] %v1234_v14  ;;  %v13396_v42 = vld [vmem:[#allocation3 + $0x288] ss:$36 sps:$4 sm:$0xff]   ;;  %v1642_v48 = vrot.slane %v1640_v11, 5  ;;  %v1646_v20 = vrot.slane %v1644_v12, 4  ;;  %5361 = vmatprep.mubr.bf16.mxu0 %v13394_v15 }
 0x1a9   : > { %v1652_v21 = vrot.slane %v1650_v13, 5  ;;  %v1024_v22 = vshrl.u32 %v12160_v4, 16  ;;  %v1021_v25 = vsel %vm14700_vm14, %v1013_v1, %v1020_v2  ;;  %v2010_v27 = vsel %vm14682_vm12, %v11580_v40, %v2009_v18  ;;  %5362 = vmatmul.mubr.bf16.gmra.mxu0 %v13396_v42  ;;  %v1240_v36 = vld [vmem:[#allocation2 + $0x90] sm:$0xf]  ;;  %v13399_v39 = vld [vmem:[#allocation3 + $0x290] ss:$36 sps:$4 sm:$0xff]  }
 0x1aa   : > { %v2011_v29 = vrot.slane %v2009_v18, 4  ;;  %v1238_v31 = vsel %vm14690_vm13, %v1022_v16, %v1237_v3  ;;  %v1643_v24 = vsel %vm14676_vm9, %v1638_v8, %v1642_v48  ;;  %v1647_v32 = vor.u32 %v1646_v20, %v1642_v48  ;;  %1236 = vst.msk [vmem:[#allocation2 + $0x88] sm:$0xf] %vm1157_vm2, %v1021_v25  ;;  %2101 = vst.msk [vmem:[#allocation3 + $0x2d8] sm:$0xf] %vm1157_vm2, %v2010_v27  ;;  %v13432_v47 = vld [vmem:[%s18380_s1 + $0x1e8] sm:$0xff]  }
 0x1ab   : > { %v2012_v53 = vrot.slane %v1870_v26, 5  ;;  %1239 = vst [vmem:[#allocation2 + $0x8c] sm:$0x1] %v1238_v31  ;;  %v1026_v33 = vrot.slane %v1024_v22, 7  ;;  %1826 = vst.msk [vmem:[#allocation3 + $0x2d4] sm:$0xf] %vm1157_vm2, %v1643_v24  ;;  %12543 = vmatprep.subr.bf16.mxu1 %v13432_v47  ;;  %v12163_v13 = vpack.c.bf16 %v730_v52, %v730_v52 }
 0x1ac   : > { %v1027_v28 = vshll.u32 %v12160_v4, 16  ;;  %v1032_v34 = vshrl.u32 %v12161_v9, 16  ;;  %v1035_v35 = vshll.u32 %v12161_v9, 16  ;;  %v1041_v37 = vshrl.u32 %v15101_v19, 16  ;;  %v13397_v38 = vld [vmem:[#allocation3 + $0x294] ss:$36 sps:$4 sm:$0xff]  }
 0x1ad   : > { %v1648_v40 = vrot.slane %v1647_v32, 4  ;;  %v2013_v43 = vsel %vm14682_vm12, %v2011_v29, %v2012_v53  ;;  %v1244_v44 = vld [vmem:[#allocation2 + $0x98] sm:$0x1]  ;;  %v1030_v41 = vrot.slane %v1026_v33, 4  ;;  %5522 = vmatprep.mubr.bf16.mxu1 %v13397_v38  ;;  %v13433_v0 = vld [vmem:[%s18380_s1 + $0x1a8] sm:$0xff]   ;;  %v1044_v4 = vshll.u32 %v15101_v19, 16 }
 0x1ae   : > { %2102 = vst.msk [vmem:[#allocation3 + $0x2fc] sm:$0xf] %vm1157_vm2, %v2013_v43  ;;  %v1029_v23 = vor.u32 %v1027_v28, %v1026_v33  ;;  %v1034_v45 = vrot.slane %v1032_v34, 7  ;;  %v15118_v46 = vrot.slane %v1041_v37, 7  ;;  %5523 = vmatmul.mubr.bf16.gmra.mxu1 %v13399_v39  ;;  %v13434_v6 = vld [vmem:[%s18380_s1 + $0x1e0] sm:$0xff]   ;;  %v699_v19 = vld [vmem:[%s14083_s25 + $0xd0] sm:$0xff] }
 0x1af   : > { %v1653_v49 = vsel %vm14676_vm9, %v1648_v40, %v1652_v21  ;;  %v2133_v50 = vld [vmem:[#allocation2 + $0x84] sm:$0xf]  ;;  %v1247_v14 = vld [vmem:[#allocation2 + $0x9c] sm:$0xf]  ;;  %12544 = vmatpush3.bf16.msra.mxu1 %v13433_v0  ;;  %v1049_v31 = vshrl.u32 %v12163_v13, 16  ;;  %v1052_v24 = vshll.u32 %v12163_v13, 16 }
 0x1b0   : > { %v1297_v51 = vld [vmem:[#allocation2 + $0x84] sm:$0xf]  ;;  %1827 = vst.msk [vmem:[#allocation3 + $0x2f8] sm:$0xf] %vm1157_vm2, %v1653_v49  ;;  %2165 = vst.msk [vmem:[#allocation3 + $0x2dc] sm:$0xf] %vm1157_vm2, %v2133_v50  ;;  %v1037_v59 = vor.u32 %v1035_v35, %v1034_v45  ;;  %v1241_v1 = vsel %vm14710_vm15, %v1029_v23, %v1240_v36  ;;  %v1046_v18 = vor.u32 %v1044_v4, %v15118_v46  ;;  %12545 = vmatprep.subr.bf16.mxu1 %v13434_v6 }
 0x1b1   : > { %v1372_v56 = vld [vmem:[#allocation2 + $0x84] sm:$0xf]  ;;  %1329 = vst.msk [vmem:[#allocation3 + $0x318] sm:$0xf] %vm1157_vm2, %v1297_v51  ;;  %v1039_v60 = vrot.slane %v1034_v45, 4  ;;  %v1047_v5 = vrot.slane %v15118_v46, 4 }
 0x1b2   : > { %v1655_v57 = vshrl.u32 %v1372_v56, 16  ;;  %v1658_v58 = vshll.u32 %v1372_v56, 16  ;;  %v1871_v63 = vld [vmem:[#allocation2 + $0x84] sm:$0xe]  ;;  %v2134_v8 = vld [vmem:[#allocation2 + $0x88] sm:$0xf]  ;;  %v1038_v11 = vsel %vm14700_vm14, %v1030_v41, %v1037_v59  ;;  %v1248_v34 = vsel %vm14710_vm15, %v1046_v18, %v1247_v14 }
 0x1b3   : > { %v11581_v3 = vrot.slane %v1871_v63, 9  ;;  %v1298_v61 = vld [vmem:[#allocation2 + $0x88] sm:$0xf]  ;;  %1242 = vst [vmem:[#allocation2 + $0x90] sm:$0xf] %v1241_v1  ;;  %v1245_v12 = vsel %vm14690_vm13, %v1039_v60, %v1244_v44  ;;  %v13437_v26 = vld [vmem:[%s18380_s1 + $0x1a0] sm:$0xff]  }
 0x1b4   : > { %v1373_v9 = vld [vmem:[#allocation2 + $0x88] sm:$0xf]  ;;  %2166 = vst.msk [vmem:[#allocation3 + $0x300] sm:$0xf] %vm1157_vm2, %v2134_v8  ;;  %1330 = vst.msk [vmem:[#allocation3 + $0x33c] sm:$0xf] %vm1157_vm2, %v1298_v61  ;;  %12546 = vmatpush3.bf16.msra.mxu1 %v13437_v26 }
 0x1b5   : > { %v1374_v55 = vld [vmem:[#allocation2 + $0x8c] sm:$0x1]  ;;  %v1657_v15 = vrot.slane %v1655_v57, 4  ;;  %v1660_v2 = vrot.slane %v1658_v58, 5  ;;  %v1664_v16 = vshll.u32 %v1373_v9, 16  ;;  %v1668_v30 = vshrl.u32 %v1373_v9, 16 }
 0x1b6   : > { %1243 = vst.msk [vmem:[#allocation2 + $0x94] sm:$0xf] %vm1157_vm2, %v1038_v11  ;;  %1246 = vst [vmem:[#allocation2 + $0x98] sm:$0x1] %v1245_v12  ;;  %v1674_v42 = vshll.u32 %v1374_v55, 16  ;;  %v1051_v37 = vrot.slane %v1049_v31, 7 }
 0x1b7   : > { %v1872_v52 = vld [vmem:[#allocation2 + $0x88] sm:$0xf]  ;;  %v1873_v48 = vld [vmem:[#allocation2 + $0x8c] sm:$0x1]  ;;  %v1661_v20 = vor.u32 %v1660_v2, %v1657_v15  ;;  %v1666_v21 = vrot.slane %v1664_v16, 5  ;;  %v1670_v27 = vrot.slane %v1668_v30, 4 }
 0x1b8   : > { %v2016_v22 = vrot.slane %v1872_v52, 5  ;;  %v2019_v25 = vrot.slane %v1873_v48, 5  ;;  %v1676_v29 = vrot.slane %v1674_v42, 5  ;;  %v13400_v32 = vld [vmem:[#allocation3 + $0x2d4] ss:$36 sps:$4 sm:$0xff]   ;;  %v731_v38 = vmax.f32 %v699_v19, 0.0 }
 0x1b9   : > { %v13402_v53 = vld [vmem:[#allocation3 + $0x2d0] ss:$36 sps:$4 sm:$0xff]   ;;  %v1662_v33 = vrot.slane %v1661_v20, 4  ;;  %v1671_v35 = vor.u32 %v1670_v27, %v1666_v21  ;;  %1249 = vst [vmem:[#allocation2 + $0x9c] sm:$0xf] %v1248_v34  ;;  %5369 = vmatprep.mubr.bf16.mxu0 %v13400_v32  ;;  %v1054_v49 = vor.u32 %v1052_v24, %v1051_v37  ;;  %v1056_v61 = vrot.slane %v1051_v37, 4 }
 0x1ba   : > { %v2017_v28 = vsel %vm14682_vm12, %v11581_v3, %v2016_v22  ;;  %v2018_v36 = vrot.slane %v2016_v22, 4  ;;  %v2135_v40 = vld [vmem:[#allocation2 + $0x90] sm:$0xf]  ;;  %5370 = vmatmul.mubr.bf16.gmra.mxu0 %v13402_v53  ;;  %v1251_v50 = vld [vmem:[#allocation2 + $0xa4] sm:$0x1]  ;;  %v15166_v58 = vpack.c.bf16 %v731_v38, %v731_v38  ;;  %v700_v11 = vld [vmem:[%s14083_s25 + $0xd8] sm:$0xff] }
 0x1bb   : > { %2103 = vst.msk [vmem:[#allocation3 + $0x320] sm:$0xf] %vm1157_vm2, %v2017_v28  ;;  %v1667_v39 = vsel %vm14676_vm9, %v1662_v33, %v1666_v21  ;;  %v1299_v43 = vld [vmem:[#allocation2 + $0x90] sm:$0xf]  ;;  %v13404_v23 = vld [vmem:[#allocation3 + $0x2dc] ss:$36 sps:$4 sm:$0xff]   ;;  %v1055_v8 = vsel %vm14700_vm14, %v1047_v5, %v1054_v49  ;;  %v1252_v46 = vsel %vm14690_vm13, %v1056_v61, %v1251_v50 }
 0x1bc   : > { %v1375_v44 = vld [vmem:[#allocation2 + $0x90] sm:$0xf]  ;;  %v1672_v45 = vrot.slane %v1671_v35, 4  ;;  %1828 = vst.msk [vmem:[#allocation3 + $0x31c] sm:$0xf] %vm1157_vm2, %v1667_v39  ;;  %v2020_v47 = vsel %vm14682_vm12, %v2018_v36, %v2019_v25  ;;  %5530 = vmatprep.mubr.bf16.mxu1 %v13404_v23  ;;  %v13439_v3 = vld [vmem:[%s18380_s1 + $0x140] sm:$0xff]  }
 0x1bd   : > { %v13407_v41 = vld [vmem:[#allocation3 + $0x2d8] ss:$36 sps:$4 sm:$0xff]   ;;  %2167 = vst.msk [vmem:[#allocation3 + $0x324] sm:$0xf] %vm1157_vm2, %v2135_v40  ;;  %1331 = vst.msk [vmem:[#allocation3 + $0x360] sm:$0xf] %vm1157_vm2, %v1299_v43  ;;  %12441 = vmatprep.subr.bf16.mxu0 %v13439_v3 }
 0x1be   : > { %2104 = vst.msk [vmem:[#allocation3 + $0x344] sm:$0xf] %vm1157_vm2, %v2020_v47  ;;  %v2136_v51 = vld [vmem:[#allocation2 + $0x94] sm:$0xf]  ;;  %v1677_v59 = vsel %vm14676_vm9, %v1672_v45, %v1676_v29  ;;  %v1377_v60 = vld [vmem:[#allocation2 + $0x98] sm:$0x1]  ;;  %5531 = vmatmul.mubr.bf16.gmra.mxu1 %v13407_v41 }
 0x1bf   : > { %v1300_v56 = vld [vmem:[#allocation2 + $0x94] sm:$0xf]  ;;  %2168 = vst.msk [vmem:[#allocation3 + $0x348] sm:$0xf] %vm1157_vm2, %v2136_v51  ;;  %v1679_v63 = vshrl.u32 %v1375_v44, 16  ;;  %v1682_v0 = vshll.u32 %v1375_v44, 16 }
 0x1c0   : > { %v1376_v57 = vld [vmem:[#allocation2 + $0x94] sm:$0xf]  ;;  %1332 = vst.msk [vmem:[#allocation3 + $0x384] sm:$0xf] %vm1157_vm2, %v1300_v56  ;;  %1829 = vst.msk [vmem:[#allocation3 + $0x340] sm:$0xf] %vm1157_vm2, %v1677_v59 }
 0x1c1   : > { %v1688_v1 = vshll.u32 %v1376_v57, 16  ;;  %v1692_v4 = vshrl.u32 %v1376_v57, 16  ;;  %v1698_v6 = vshll.u32 %v1377_v60, 16  ;;  %v1874_v9 = vld [vmem:[#allocation2 + $0x90] sm:$0xe]  ;;  %v1681_v12 = vrot.slane %v1679_v63, 4 }
 0x1c2   : > { %v1684_v13 = vrot.slane %v1682_v0, 5  ;;  %1250 = vst.msk [vmem:[#allocation2 + $0xa0] sm:$0xf] %vm1157_vm2, %v1055_v8  ;;  %v1875_v55 = vld [vmem:[#allocation2 + $0x94] sm:$0xf]  ;;  %v11582_v15 = vrot.slane %v1874_v9, 9 }
 0x1c3   : > { %v1690_v14 = vrot.slane %v1688_v1, 5  ;;  %v1694_v2 = vrot.slane %v1692_v4, 4  ;;  %v1700_v16 = vrot.slane %v1698_v6, 5  ;;  %v1876_v18 = vld [vmem:[#allocation2 + $0x98] sm:$0x1]  ;;  %v2023_v19 = vrot.slane %v1875_v55, 5 }
 0x1c4   : > { %v1685_v30 = vor.u32 %v1684_v13, %v1681_v12  ;;  %v2026_v5 = vrot.slane %v1876_v18, 5  ;;  %v2137_v42 = vld [vmem:[#allocation2 + $0x9c] sm:$0xf]  ;;  %1253 = vst [vmem:[#allocation2 + $0xa4] sm:$0x1] %v1252_v46  ;;  %v732_v48 = vmax.f32 %v700_v11, 0.0 }
 0x1c5   : > { %v1301_v52 = vld [vmem:[#allocation2 + $0x9c] sm:$0xf]  ;;  %v1695_v20 = vor.u32 %v1694_v2, %v1690_v14  ;;  %v2024_v21 = vsel %vm14682_vm12, %v11582_v15, %v2023_v19  ;;  %v2025_v22 = vrot.slane %v2023_v19, 4  ;;  %2169 = vst.msk [vmem:[#allocation3 + $0x36c] sm:$0xf] %vm1157_vm2, %v2137_v42  ;;  %v1058_v26 = vshrl.u32 %v15166_v58, 16 }
 0x1c6   : > { %1333 = vst.msk [vmem:[#allocation3 + $0x3a8] sm:$0xf] %vm1157_vm2, %v1301_v52  ;;  %v1378_v25 = vld [vmem:[#allocation2 + $0x9c] sm:$0xf]  ;;  %v1686_v27 = vrot.slane %v1685_v30, 4  ;;  %v13442_v32 = vld [vmem:[%s18380_s1 + $0x100] sm:$0xff]   ;;  %v12165_v35 = vpack.c.bf16 %v732_v48, %v732_v48 }
 0x1c7   : > { %2105 = vst.msk [vmem:[#allocation3 + $0x368] sm:$0xf] %vm1157_vm2, %v2024_v21  ;;  %v1703_v29 = vshrl.u32 %v1378_v25, 16  ;;  %v1706_v31 = vshll.u32 %v1378_v25, 16  ;;  %v1877_v24 = vld [vmem:[#allocation2 + $0x9c] sm:$0xe]  ;;  %v2027_v34 = vsel %vm14682_vm12, %v2025_v22, %v2026_v5  ;;  %12442 = vmatpush3.bf16.msra.mxu0 %v13442_v32 }
 0x1c8   : > { %v13411_v53 = vld [vmem:[#allocation3 + $0x324] ss:$36 sps:$4 sm:$0xff]   ;;  %v1696_v28 = vrot.slane %v1695_v20, 4  ;;  %v13408_v36 = vld [vmem:[#allocation3 + $0x31c] ss:$36 sps:$4 sm:$0xff]   ;;  %v1691_v38 = vsel %vm14676_vm9, %v1686_v27, %v1690_v14  ;;  %v1060_v49 = vrot.slane %v1058_v26, 7 }
 0x1c9   : > { %v13413_v33 = vld [vmem:[#allocation3 + $0x320] ss:$36 sps:$4 sm:$0xff]   ;;  %v13410_v37 = vld [vmem:[#allocation3 + $0x318] ss:$36 sps:$4 sm:$0xff]   ;;  %2106 = vst.msk [vmem:[#allocation3 + $0x38c] sm:$0xf] %vm1157_vm2, %v2027_v34  ;;  %5538 = vmatprep.mubr.bf16.mxu1 %v13411_v53  ;;  %5377 = vmatprep.mubr.bf16.mxu0 %v13408_v36 }
 0x1ca   : > { %v1705_v39 = vrot.slane %v1703_v29, 4  ;;  %v1701_v40 = vsel %vm14676_vm9, %v1696_v28, %v1700_v16  ;;  %1830 = vst.msk [vmem:[#allocation3 + $0x364] sm:$0xf] %vm1157_vm2, %v1691_v38  ;;  %v2138_v43 = vld [vmem:[#allocation2 + $0xa0] sm:$0xf]  ;;  %5539 = vmatmul.mubr.bf16.gmra.mxu1 %v13413_v33  ;;  %v1708_v41 = vrot.slane %v1706_v31, 5  ;;  %5378 = vmatmul.mubr.bf16.gmra.mxu0 %v13410_v37 }
 0x1cb   : > { %v1302_v44 = vld [vmem:[#allocation2 + $0xa0] sm:$0xf]  ;;  %1831 = vst.msk [vmem:[#allocation3 + $0x388] sm:$0xf] %vm1157_vm2, %v1701_v40  ;;  %2170 = vst.msk [vmem:[#allocation3 + $0x390] sm:$0xf] %vm1157_vm2, %v2138_v43 }
 0x1cc   : > { %v1379_v23 = vld [vmem:[#allocation2 + $0xa0] sm:$0xf]  ;;  %1334 = vst.msk [vmem:[#allocation3 + $0x3cc] sm:$0xf] %vm1157_vm2, %v1302_v44  ;;  %v1254_v50 = vld [vmem:[#allocation2 + $0xa8] sm:$0xf]  ;;  %v1709_v1 = vor.u32 %v1708_v41, %v1705_v39 }
 0x1cd   : > { %v1712_v45 = vshll.u32 %v1379_v23, 16  ;;  %v1716_v47 = vshrl.u32 %v1379_v23, 16  ;;  %v1878_v51 = vld [vmem:[#allocation2 + $0xa0] sm:$0xf]  ;;  %v1380_v56 = vld [vmem:[#allocation2 + $0xa4] sm:$0x1] }
 0x1ce   : > { %v1061_v57 = vshll.u32 %v15166_v58, 16  ;;  %v1066_v59 = vshrl.u32 %v12165_v35, 16  ;;  %v1069_v60 = vshll.u32 %v12165_v35, 16  ;;  %v11583_v63 = vrot.slane %v1877_v24, 9  ;;  %v701_v0 = vld [vmem:[%s14083_s25 + $0xe0] sm:$0xff]  ;;  %v702_v61 = vld [vmem:[%s14083_s25 + $0xe8] sm:$0xff] }
 0x1cf   : > { %v1714_v3 = vrot.slane %v1712_v45, 5  ;;  %v1718_v4 = vrot.slane %v1716_v47, 4  ;;  %v1722_v6 = vshll.u32 %v1380_v56, 16  ;;  %v1879_v8 = vld [vmem:[#allocation2 + $0xa4] sm:$0x1]  ;;  %v13444_v9 = vld [vmem:[%s18380_s1 + $0x1d8] sm:$0xff]  }
 0x1d0   : > { %v1063_v11 = vor.u32 %v1061_v57, %v1060_v49  ;;  %v1064_v12 = vrot.slane %v1060_v49, 4  ;;  %v1068_v13 = vrot.slane %v1066_v59, 7  ;;  %v2030_v14 = vrot.slane %v1878_v51, 5  ;;  %v1258_v16 = vld [vmem:[#allocation2 + $0xb0] sm:$0x1]  ;;  %12547 = vmatprep.subr.bf16.mxu1 %v13444_v9  ;;  %v13445_v18 = vld [vmem:[%s18380_s1 + $0x198] sm:$0xff]  }
 0x1d1   : > { %v1710_v55 = vrot.slane %v1709_v1, 4  ;;  %v1719_v58 = vor.u32 %v1718_v4, %v1714_v3  ;;  %v1724_v15 = vrot.slane %v1722_v6, 5  ;;  %v2033_v2 = vrot.slane %v1879_v8, 5  ;;  %v13446_v42 = vld [vmem:[%s18380_s1 + $0x1d0] sm:$0xff]   ;;  %12548 = vmatpush3.bf16.msra.mxu1 %v13445_v18  ;;  %v13416_v25 = vld [vmem:[#allocation3 + $0x360] ss:$36 sps:$4 sm:$0xff]  }
 0x1d2   : > { %v1071_v19 = vor.u32 %v1069_v60, %v1068_v13  ;;  %v1073_v46 = vrot.slane %v1068_v13, 4  ;;  %v1255_v30 = vsel %vm14710_vm15, %v1063_v11, %v1254_v50  ;;  %v2031_v5 = vsel %vm14682_vm12, %v11583_v63, %v2030_v14  ;;  %v13414_v22 = vld [vmem:[#allocation3 + $0x364] ss:$36 sps:$4 sm:$0xff]   ;;  %12549 = vmatprep.subr.bf16.mxu1 %v13446_v42  ;;  %v13418_v31 = vld [vmem:[#allocation3 + $0x36c] ss:$36 sps:$4 sm:$0xff]   ;;  %v13449_v40 = vld [vmem:[%s18380_s1 + $0x190] sm:$0xff]  }
 0x1d3   : > { %v1715_v52 = vsel %vm14676_vm9, %v1710_v55, %v1714_v3  ;;  %v1720_v48 = vrot.slane %v1719_v58, 4  ;;  %1256 = vst [vmem:[#allocation2 + $0xa8] sm:$0xf] %v1255_v30  ;;  %v2032_v20 = vrot.slane %v2030_v14, 4  ;;  %2107 = vst.msk [vmem:[#allocation3 + $0x3b0] sm:$0xf] %vm1157_vm2, %v2031_v5  ;;  %5385 = vmatprep.mubr.bf16.mxu0 %v13414_v22  ;;  %5546 = vmatprep.mubr.bf16.mxu1 %v13418_v31 }
 0x1d4   : > { %v733_v21 = vmax.f32 %v701_v0, 0.0  ;;  %1832 = vst.msk [vmem:[#allocation3 + $0x3ac] sm:$0xf] %vm1157_vm2, %v1715_v52  ;;  %v1072_v26 = vsel %vm14700_vm14, %v1064_v12, %v1071_v19  ;;  %v1259_v27 = vsel %vm14690_vm13, %v1073_v46, %v1258_v16  ;;  %v734_v29 = vmax.f32 %v702_v61, 0.0  ;;  %v13421_v24 = vld [vmem:[#allocation3 + $0x368] ss:$36 sps:$4 sm:$0xff]   ;;  %5386 = vmatmul.mubr.bf16.gmra.mxu0 %v13416_v25 }
 0x1d5   : > { %v1725_v32 = vsel %vm14676_vm9, %v1720_v48, %v1724_v15  ;;  %1257 = vst.msk [vmem:[#allocation2 + $0xac] sm:$0xf] %vm1157_vm2, %v1072_v26  ;;  %v2034_v53 = vsel %vm14682_vm12, %v2032_v20, %v2033_v2  ;;  %1260 = vst [vmem:[#allocation2 + $0xb0] sm:$0x1] %v1259_v27  ;;  %5547 = vmatmul.mubr.bf16.gmra.mxu1 %v13421_v24  ;;  %v1261_v38 = vld [vmem:[#allocation2 + $0xb4] sm:$0xf] }
 0x1d6   : > { %v12166_v33 = vpack.c.bf16 %v733_v21, %v733_v21  ;;  %1833 = vst.msk [vmem:[#allocation3 + $0x3d0] sm:$0xf] %vm1157_vm2, %v1725_v32  ;;  %2108 = vst.msk [vmem:[#allocation3 + $0x3d4] sm:$0xf] %vm1157_vm2, %v2034_v53  ;;  %v12167_v28 = vpack.c.bf16 %v734_v29, %v734_v29  ;;  %12550 = vmatpush3.bf16.msra.mxu1 %v13449_v40  ;;  %v13428_v60 = vld [vmem:[#allocation3 + $0x3a8] ss:$36 sps:$4 sm:$0xff]  }
 0x1d7   : > { %v1265_v15 = vld [vmem:[#allocation2 + $0xbc] sm:$0x1]  ;;  %v703_v42 = vld [vmem:[%s14083_s25 + $0xf0] sm:$0xff]  ;;  %v13454_v25 = vld [vmem:[%s18380_s1 + $0x1c8] sm:$0xff]  }
 0x1d8   : > { %v1075_v34 = vshrl.u32 %v12166_v33, 16  ;;  %v1078_v35 = vshll.u32 %v12166_v33, 16  ;;  %v1083_v36 = vshrl.u32 %v12167_v28, 16  ;;  %v1086_v37 = vshll.u32 %v12167_v28, 16  ;;  %v704_v21 = vld [vmem:[%s14083_s25 + $0xf8] sm:$0xff]  ;;  %12551 = vmatprep.subr.bf16.mxu1 %v13454_v25 }
 0x1d9   : > { %v735_v22 = vmax.f32 %v703_v42, 0.0  ;;  %v2178_v42 = vld [vmem:[#allocation2 + $0x10] sm:$0xf] }
 0x1da   : > { %v1077_v39 = vrot.slane %v1075_v34, 7  ;;  %v2139_v43 = vld [vmem:[#allocation2 + $0xa8] sm:$0xf]  ;;  %v1085_v8 = vrot.slane %v1083_v36, 7 }
 0x1db   : > { %v1303_v44 = vld [vmem:[#allocation2 + $0xa8] sm:$0xf]  ;;  %2171 = vst.msk [vmem:[#allocation3 + $0x3b4] sm:$0xf] %vm1157_vm2, %v2139_v43  ;;  %v12168_v28 = vpack.c.bf16 %v735_v22, %v735_v22  ;;  %v2673_v22 = vld [vmem:[#allocation2 + $0xc] sm:$0xe] }
 0x1dc   : > { %v1381_v23 = vld [vmem:[#allocation2 + $0xa8] sm:$0xf]  ;;  %1335 = vst.msk [vmem:[#allocation3 + $0x3f0] sm:$0xf] %vm1157_vm2, %v1303_v44  ;;  %v1080_v47 = vor.u32 %v1078_v35, %v1077_v39  ;;  %v1081_v49 = vrot.slane %v1077_v39, 4  ;;  %v1088_v58 = vor.u32 %v1086_v37, %v1085_v8  ;;  %v1090_v2 = vrot.slane %v1085_v8, 4 }
 0x1dd   : > { %v1727_v41 = vshrl.u32 %v1381_v23, 16  ;;  %v1730_v45 = vshll.u32 %v1381_v23, 16  ;;  %v1880_v50 = vld [vmem:[#allocation2 + $0xa8] sm:$0xe]  ;;  %v2140_v51 = vld [vmem:[#allocation2 + $0xac] sm:$0xf] }
 0x1de   : > { %v1304_v56 = vld [vmem:[#allocation2 + $0xac] sm:$0xf]  ;;  %v13425_v59 = vld [vmem:[#allocation3 + $0x3ac] ss:$36 sps:$4 sm:$0xff]   ;;  %2172 = vst.msk [vmem:[#allocation3 + $0x3d8] sm:$0xf] %vm1157_vm2, %v2140_v51  ;;  %v1262_v0 = vsel %vm14710_vm15, %v1080_v47, %v1261_v38  ;;  %v1089_v5 = vsel %vm14700_vm14, %v1081_v49, %v1088_v58  ;;  %v1266_v20 = vsel %vm14690_vm13, %v1090_v2, %v1265_v15 }
 0x1df   : > { %v1382_v57 = vld [vmem:[#allocation2 + $0xac] sm:$0xf]  ;;  %1336 = vst.msk [vmem:[#allocation3 + $0x414] sm:$0xf] %vm1157_vm2, %v1304_v56  ;;  %v1729_v63 = vrot.slane %v1727_v41, 4  ;;  %v1732_v3 = vrot.slane %v1730_v45, 5  ;;  %5393 = vmatprep.mubr.bf16.mxu0 %v13425_v59 }
 0x1e0   : > { %v1383_v1 = vld [vmem:[#allocation2 + $0xb0] sm:$0x1]  ;;  %v1736_v4 = vshll.u32 %v1382_v57, 16  ;;  %v1740_v6 = vshrl.u32 %v1382_v57, 16  ;;  %1263 = vst [vmem:[#allocation2 + $0xb4] sm:$0xf] %v1262_v0  ;;  %5394 = vmatmul.mubr.bf16.gmra.mxu0 %v13428_v60 }
 0x1e1   : > { %v1746_v61 = vshll.u32 %v1383_v1, 16  ;;  %v1881_v9 = vld [vmem:[#allocation2 + $0xac] sm:$0xf]  ;;  %v1882_v11 = vld [vmem:[#allocation2 + $0xb0] sm:$0x1]  ;;  %v11584_v12 = vrot.slane %v1880_v50, 9  ;;  %v1733_v13 = vor.u32 %v1732_v3, %v1729_v63 }
 0x1e2   : > { %v1738_v14 = vrot.slane %v1736_v4, 5  ;;  %v1742_v55 = vrot.slane %v1740_v6, 4  ;;  %v2037_v16 = vrot.slane %v1881_v9, 5  ;;  %v2040_v18 = vrot.slane %v1882_v11, 5  ;;  %1264 = vst.msk [vmem:[#allocation2 + $0xb8] sm:$0xf] %vm1157_vm2, %v1089_v5 }
 0x1e3   : > { %v1734_v19 = vrot.slane %v1733_v13, 4  ;;  %v1748_v30 = vrot.slane %v1746_v61, 5  ;;  %v13431_v27 = vld [vmem:[#allocation3 + $0x3b0] ss:$36 sps:$4 sm:$0xff]   ;;  %1267 = vst [vmem:[#allocation2 + $0xbc] sm:$0x1] %v1266_v20 }
 0x1e4   : > { %v1743_v46 = vor.u32 %v1742_v55, %v1738_v14  ;;  %v2038_v52 = vsel %vm14682_vm12, %v11584_v12, %v2037_v16  ;;  %v2039_v48 = vrot.slane %v2037_v16, 4  ;;  %v736_v37 = vmax.f32 %v704_v21, 0.0  ;;  %v13455_v39 = vld [vmem:[%s18380_s1 + $0x188] sm:$0xff]   ;;  %v13456_v44 = vld [vmem:[%s18380_s1 + $0x1c0] sm:$0xff]   ;;  %v15282_v4 = vld [vmem:[%s18380_s1 + $0x238] sm:$0xff]  }
 0x1e5   : > { %v13429_v26 = vld [vmem:[#allocation3 + $0x3b4] ss:$36 sps:$4 sm:$0xff]   ;;  %v1739_v29 = vsel %vm14676_vm9, %v1734_v19, %v1738_v14  ;;  %2109 = vst.msk [vmem:[#allocation3 + $0x3f8] sm:$0xf] %vm1157_vm2, %v2038_v52  ;;  %v1092_v40 = vshrl.u32 %v12168_v28, 16  ;;  %v1095_v43 = vshll.u32 %v12168_v28, 16  ;;  %12552 = vmatpush3.bf16.msra.mxu1 %v13455_v39  ;;  %13147 = vmatprep.subr.bf16.mxu0 %v15282_v4 }
 0x1e6   : > { %v1744_v31 = vrot.slane %v1743_v46, 4  ;;  %1834 = vst.msk [vmem:[#allocation3 + $0x3f4] sm:$0xf] %vm1157_vm2, %v1739_v29  ;;  %v2041_v24 = vsel %vm14682_vm12, %v2039_v48, %v2040_v18  ;;  %5554 = vmatprep.mubr.bf16.mxu1 %v13429_v26  ;;  %v12169_v45 = vpack.c.bf16 %v736_v37, %v736_v37  ;;  %v1268_v47 = vld [vmem:[#allocation2 + $0xc0] sm:$0xf]  ;;  %12553 = vmatprep.subr.bf16.mxu1 %v13456_v44 }
 0x1e7   : > { %v2141_v32 = vld [vmem:[#allocation2 + $0xb4] sm:$0xf]  ;;  %2110 = vst.msk [vmem:[#allocation3 + $0x41c] sm:$0xf] %vm1157_vm2, %v2041_v24  ;;  %5555 = vmatmul.mubr.bf16.gmra.mxu1 %v13431_v27  ;;  %v1094_v49 = vrot.slane %v1092_v40, 7  ;;  %v13460_v50 = vld [vmem:[%s18380_s1 + $0x180] sm:$0xff]  }
 0x1e8   : > { %v1305_v53 = vld [vmem:[#allocation2 + $0xb4] sm:$0xf]  ;;  %v1749_v34 = vsel %vm14676_vm9, %v1744_v31, %v1748_v30  ;;  %2173 = vst.msk [vmem:[#allocation3 + $0x3fc] sm:$0xf] %vm1157_vm2, %v2141_v32  ;;  %v1100_v9 = vshrl.u32 %v12169_v45, 16  ;;  %v1103_v13 = vshll.u32 %v12169_v45, 16 }
 0x1e9   : > { %v1384_v33 = vld [vmem:[#allocation2 + $0xb4] sm:$0xf]  ;;  %1337 = vst.msk [vmem:[#allocation3 + $0x438] sm:$0xf] %vm1157_vm2, %v1305_v53  ;;  %1835 = vst.msk [vmem:[#allocation3 + $0x418] sm:$0xf] %vm1157_vm2, %v1749_v34  ;;  %v1097_v1 = vor.u32 %v1095_v43, %v1094_v49  ;;  %12554 = vmatpush3.bf16.msra.mxu1 %v13460_v50 }
 0x1ea   : > { %v1751_v35 = vshrl.u32 %v1384_v33, 16  ;;  %v1754_v36 = vshll.u32 %v1384_v33, 16  ;;  %v1883_v38 = vld [vmem:[#allocation2 + $0xb4] sm:$0xe]  ;;  %v2142_v51 = vld [vmem:[#allocation2 + $0xb8] sm:$0xf] }
 0x1eb   : > { %v1306_v56 = vld [vmem:[#allocation2 + $0xb8] sm:$0xf]  ;;  %2174 = vst.msk [vmem:[#allocation3 + $0x420] sm:$0xf] %vm1157_vm2, %v2142_v51  ;;  %v1386_v60 = vld [vmem:[#allocation2 + $0xbc] sm:$0x1]  ;;  %v1269_v14 = vsel %vm14710_vm15, %v1097_v1, %v1268_v47 }
 0x1ec   : > { %v1753_v23 = vrot.slane %v1751_v35, 4  ;;  %v1756_v41 = vrot.slane %v1754_v36, 5  ;;  %v1385_v57 = vld [vmem:[#allocation2 + $0xb8] sm:$0xf]  ;;  %1338 = vst.msk [vmem:[#allocation3 + $0x45c] sm:$0xf] %vm1157_vm2, %v1306_v56 }
 0x1ed   : > { %v1760_v63 = vshll.u32 %v1385_v57, 16  ;;  %v1764_v0 = vshrl.u32 %v1385_v57, 16  ;;  %v11585_v3 = vrot.slane %v1883_v38, 9  ;;  %v1770_v8 = vshll.u32 %v1386_v60, 16  ;;  %v1884_v55 = vld [vmem:[#allocation2 + $0xb8] sm:$0xf] }
 0x1ee   : > { %v1757_v59 = vor.u32 %v1756_v41, %v1753_v23  ;;  %v1098_v61 = vrot.slane %v1094_v49, 4  ;;  %v13438_v15 = vld [vmem:[#allocation3 + $0x3f0] ss:$36 sps:$4 sm:$0xff]   ;;  %1270 = vst [vmem:[#allocation2 + $0xc0] sm:$0xf] %v1269_v14  ;;  %v15289_v19 = vrot.slane %v1100_v9, 7 }
 0x1ef   : > { %v1762_v11 = vrot.slane %v1760_v63, 5  ;;  %v1766_v12 = vrot.slane %v1764_v0, 4  ;;  %v1772_v2 = vrot.slane %v1770_v8, 5  ;;  %v1885_v46 = vld [vmem:[#allocation2 + $0xbc] sm:$0x1]  ;;  %v2044_v30 = vrot.slane %v1884_v55, 5 }
 0x1f0   : > { %v1758_v6 = vrot.slane %v1757_v59, 4  ;;  %v13435_v58 = vld [vmem:[#allocation3 + $0x3f4] ss:$36 sps:$4 sm:$0xff]   ;;  %v2047_v17 = vrot.slane %v1885_v46, 5  ;;  %v1105_v48 = vor.u32 %v1103_v13, %v15289_v19  ;;  %v2179_v21 = vld [vmem:[#allocation2 + $0x14] sm:$0x1] }
 0x1f1   : > { %v1767_v18 = vor.u32 %v1766_v12, %v1762_v11  ;;  %5401 = vmatprep.mubr.bf16.mxu0 %v13435_v58  ;;  %v2177_v5 = vld [vmem:[#allocation2 + $0xc] sm:$0xf]  ;;  %v2045_v20 = vsel %vm14682_vm12, %v11585_v3, %v2044_v30  ;;  %v13443_v26 = vld [vmem:[#allocation3 + $0x3f8] ss:$36 sps:$4 sm:$0xff]   ;;  %v2046_v27 = vrot.slane %v2044_v30, 4  ;;  %v2235_v34 = vshll.u32 %v2178_v42, 16 }
 0x1f2   : > { %v1763_v16 = vsel %vm14676_vm9, %v1758_v6, %v1762_v11  ;;  %5402 = vmatmul.mubr.bf16.gmra.mxu0 %v13438_v15  ;;  %v13440_v25 = vld [vmem:[#allocation3 + $0x3fc] ss:$36 sps:$4 sm:$0xff]   ;;  %2111 = vst.msk [vmem:[#allocation3 + $0x440] sm:$0xf] %vm1157_vm2, %v2045_v20  ;;  %v1106_v31 = vsel %vm14700_vm14, %v1098_v61, %v1105_v48  ;;  %v2226_v24 = vshrl.u32 %v2177_v5, 16  ;;  %v2229_v32 = vshll.u32 %v2177_v5, 16 }
 0x1f3   : > { %1836 = vst.msk [vmem:[#allocation3 + $0x43c] sm:$0xf] %vm1157_vm2, %v1763_v16  ;;  %v1768_v52 = vrot.slane %v1767_v18, 4  ;;  %v2674_v53 = vld [vmem:[#allocation2 + $0x10] sm:$0xf]  ;;  %5562 = vmatprep.mubr.bf16.mxu1 %v13440_v25  ;;  %v2048_v28 = vsel %vm14682_vm12, %v2046_v27, %v2047_v17  ;;  %v2239_v35 = vshrl.u32 %v2178_v42, 16 }
 0x1f4   : > { %v2675_v33 = vld [vmem:[#allocation2 + $0x14] sm:$0x1]  ;;  %1271 = vst.msk [vmem:[#allocation2 + $0xc4] sm:$0xf] %vm1157_vm2, %v1106_v31  ;;  %v2245_v36 = vshll.u32 %v2179_v21, 16  ;;  %5563 = vmatmul.mubr.bf16.gmra.mxu1 %v13443_v26  ;;  %v2228_v38 = vrot.slane %v2226_v24, 4 }
 0x1f5   : > { %v1773_v29 = vsel %vm14676_vm9, %v1768_v52, %v1772_v2  ;;  %2112 = vst.msk [vmem:[#allocation3 + $0x464] sm:$0xf] %vm1157_vm2, %v2048_v28  ;;  %v2143_v37 = vld [vmem:[#allocation2 + $0xc0] sm:$0xf]  ;;  %v2231_v39 = vrot.slane %v2229_v32, 5  ;;  %v11586_v40 = vrot.slane %v2673_v22, 9 }
 0x1f6   : > { %1837 = vst.msk [vmem:[#allocation3 + $0x460] sm:$0xf] %vm1157_vm2, %v1773_v29  ;;  %v2771_v43 = vrot.slane %v2674_v53, 5  ;;  %2175 = vst.msk [vmem:[#allocation3 + $0x444] sm:$0xf] %vm1157_vm2, %v2143_v37  ;;  %v2237_v44 = vrot.slane %v2235_v34, 5 }
 0x1f7   : > { %v2241_v23 = vrot.slane %v2239_v35, 4  ;;  %v2247_v41 = vrot.slane %v2245_v36, 5  ;;  %v2774_v45 = vrot.slane %v2675_v33, 5  ;;  %v2232_v47 = vor.u32 %v2231_v39, %v2228_v38  ;;  %v2946_v56 = vld [vmem:[#allocation2 + $0x18] sm:$0xf] }
 0x1f8   : > { %v2772_v49 = vsel %vm14682_vm12, %v11586_v40, %v2771_v43  ;;  %v2773_v50 = vrot.slane %v2771_v43, 4  ;;  %v2947_v57 = vld [vmem:[#allocation2 + $0x1c] sm:$0xf]  ;;  %v3010_v59 = vld [vmem:[#allocation2 + $0x18] sm:$0xf] }
 0x1f9   : > { %v2242_v51 = vor.u32 %v2241_v23, %v2237_v44  ;;  %2913 = vst.msk [vmem:[#allocation3 + $0x14] sm:$0xf] %vm1157_vm2, %v2772_v49  ;;  %v2233_v60 = vrot.slane %v2232_v47, 4  ;;  %2978 = vst.msk [vmem:[#allocation3 + $0x18] sm:$0xf] %vm1157_vm2, %v2946_v56  ;;  %v3059_v3 = vshrl.u32 %v3010_v59, 16 }
 0x1fa   : > { %v2775_v63 = vsel %vm14682_vm12, %v2773_v50, %v2774_v45  ;;  %2979 = vst.msk [vmem:[#allocation3 + $0x3c] sm:$0xf] %vm1157_vm2, %v2947_v57  ;;  %v3011_v0 = vld [vmem:[#allocation2 + $0x1c] sm:$0xf]  ;;  %v3012_v1 = vld [vmem:[#allocation2 + $0x20] sm:$0x1] }
 0x1fb   : > { %v2243_v6 = vrot.slane %v2242_v51, 4  ;;  %2914 = vst.msk [vmem:[#allocation3 + $0x38] sm:$0xf] %vm1157_vm2, %v2775_v63  ;;  %v3062_v8 = vshll.u32 %v3010_v59, 16  ;;  %v3068_v61 = vshll.u32 %v3011_v0, 16  ;;  %v3072_v9 = vshrl.u32 %v3011_v0, 16 }
 0x1fc   : > { %v2180_v11 = vld [vmem:[#allocation2 + $0x18] sm:$0xf]  ;;  %v13450_v13 = vld [vmem:[#allocation3 + $0x438] ss:$36 sps:$4 sm:$0xff]   ;;  %v2238_v14 = vsel %vm14676_vm9, %v2233_v60, %v2237_v44  ;;  %v3061_v55 = vrot.slane %v3059_v3, 4  ;;  %v3078_v46 = vshll.u32 %v3012_v1, 16 }
 0x1fd   : > { %v13447_v12 = vld [vmem:[#allocation3 + $0x43c] ss:$36 sps:$4 sm:$0xff]   ;;  %v2144_v58 = vld [vmem:[#allocation2 + $0xc4] sm:$0xf]  ;;  %v2248_v15 = vsel %vm14676_vm9, %v2243_v6, %v2247_v41  ;;  %2641 = vst.msk [vmem:[#allocation3 + $0x10] sm:$0xf] %vm1157_vm2, %v2238_v14  ;;  %v12219_v41 = vpop.f32.mrf.mxu0 }
 0x1fe   : > { %v3064_v2 = vrot.slane %v3062_v8, 5  ;;  %v3070_v16 = vrot.slane %v3068_v61, 5  ;;  %v3074_v18 = vrot.slane %v3072_v9, 4  ;;  %5409 = vmatprep.mubr.bf16.mxu0 %v13447_v12  ;;  %2176 = vst.msk [vmem:[#allocation3 + $0x468] sm:$0xf] %vm1157_vm2, %v2144_v58  ;;  %v2250_v52 = vshrl.u32 %v2180_v11, 16 }
 0x1ff   : > { %2642 = vst.msk [vmem:[#allocation3 + $0x34] sm:$0xf] %vm1157_vm2, %v2248_v15  ;;  %v2181_v30 = vld [vmem:[#allocation2 + $0x1c] sm:$0xf]  ;;  %v2182_v17 = vld [vmem:[#allocation2 + $0x20] sm:$0x1]  ;;  %5410 = vmatmul.mubr.bf16.gmra.mxu0 %v13450_v13  ;;  %v12220_v63 = vpop.f32.mrf.mxu0 }
 0x200   : > { %v3065_v5 = vor.u32 %v3064_v2, %v3061_v55  ;;  %v3075_v42 = vor.u32 %v3074_v18, %v3070_v16  ;;  %v2253_v48 = vshll.u32 %v2180_v11, 16  ;;  %v2676_v20 = vld [vmem:[#allocation2 + $0x18] sm:$0xe]  ;;  %v2677_v21 = vld [vmem:[#allocation2 + $0x1c] sm:$0xf]  ;;  %v3080_v22 = vrot.slane %v3078_v46, 5 }
 0x201   : > { %v2259_v25 = vshll.u32 %v2181_v30, 16  ;;  %v2263_v26 = vshrl.u32 %v2181_v30, 16  ;;  %v2269_v27 = vshll.u32 %v2182_v17, 16  ;;  %v2678_v29 = vld [vmem:[#allocation2 + $0x20] sm:$0x1]  ;;  %v2252_v32 = vrot.slane %v2250_v52, 4 }
 0x202   : > { %v3066_v31 = vrot.slane %v3065_v5, 4  ;;  %v3076_v24 = vrot.slane %v3075_v42, 4  ;;  %v2255_v53 = vrot.slane %v2253_v48, 5  ;;  %v2948_v33 = vld [vmem:[#allocation2 + $0x24] sm:$0xf]  ;;  %v11587_v36 = vrot.slane %v2676_v20, 9 }
 0x203   : > { %v2261_v28 = vrot.slane %v2259_v25, 5  ;;  %v2265_v34 = vrot.slane %v2263_v26, 4  ;;  %v2271_v35 = vrot.slane %v2269_v27, 5  ;;  %v2949_v37 = vld [vmem:[#allocation2 + $0x28] sm:$0xf]  ;;  %v2778_v43 = vrot.slane %v2677_v21, 5 }
 0x204   : > { %2980 = vst.msk [vmem:[#allocation3 + $0x60] sm:$0xf] %vm1157_vm2, %v2948_v33  ;;  %v3071_v38 = vsel %vm14676_vm9, %v3066_v31, %v3070_v16  ;;  %v3081_v39 = vsel %vm14676_vm9, %v3076_v24, %v3080_v22  ;;  %v2256_v40 = vor.u32 %v2255_v53, %v2252_v32  ;;  %2981 = vst.msk [vmem:[#allocation3 + $0x84] sm:$0xf] %vm1157_vm2, %v2949_v37  ;;  %v3013_v44 = vld [vmem:[#allocation2 + $0x24] sm:$0xf] }
 0x205   : > { %v3014_v23 = vld [vmem:[#allocation2 + $0x28] sm:$0xf]  ;;  %3474 = vst.msk [vmem:[#allocation3 + $0x1c] sm:$0xf] %vm1157_vm2, %v3071_v38  ;;  %3475 = vst.msk [vmem:[#allocation3 + $0x40] sm:$0xf] %vm1157_vm2, %v3081_v39  ;;  %v2266_v45 = vor.u32 %v2265_v34, %v2261_v28  ;;  %v2779_v60 = vsel %vm14682_vm12, %v11587_v36, %v2778_v43  ;;  %v15332_v6 = vadd.f32 %v12220_v63, %v12219_v41 }
 0x206   : > { %v2781_v47 = vrot.slane %v2678_v29, 5  ;;  %v3015_v49 = vld [vmem:[#allocation2 + $0x2c] sm:$0x1]  ;;  %v3083_v50 = vshrl.u32 %v3013_v44, 16  ;;  %v3086_v51 = vshll.u32 %v3013_v44, 16  ;;  %v2257_v59 = vrot.slane %v2256_v40, 4 }
 0x207   : > { %v13451_v56 = vld [vmem:[#allocation3 + $0x444] ss:$36 sps:$4 sm:$0xff]   ;;  %v13457_v0 = vld [vmem:[#allocation3 + $0x10] ss:$36 sps:$4 sm:$0xff]   ;;  %v2267_v3 = vrot.slane %v2266_v45, 4  ;;  %v2780_v61 = vrot.slane %v2778_v43, 4 }
 0x208   : > { %v13453_v57 = vld [vmem:[#allocation3 + $0x440] ss:$36 sps:$4 sm:$0xff]   ;;  %v13459_v1 = vld [vmem:[#allocation3 + $0x14] ss:$36 sps:$4 sm:$0xff]   ;;  %2915 = vst.msk [vmem:[#allocation3 + $0x5c] sm:$0xf] %vm1157_vm2, %v2779_v60  ;;  %5570 = vmatprep.mubr.bf16.mxu1 %v13451_v56  ;;  %v2262_v8 = vsel %vm14676_vm9, %v2257_v59, %v2261_v28  ;;  %v12331_v59 = vpop.f32.mrf.mxu1 }
 0x209   : > { %v3085_v9 = vrot.slane %v3083_v50, 4  ;;  %v3088_v11 = vrot.slane %v3086_v51, 5  ;;  %v2183_v12 = vld [vmem:[#allocation2 + $0x24] sm:$0xf]  ;;  %v13474_v13 = vld [vmem:[%s18380_s1 + $0x230] sm:$0xff]   ;;  %5571 = vmatmul.mubr.bf16.gmra.mxu1 %v13453_v57  ;;  %5611 = vmatprep.mubr.bf16.mxu0 %v13459_v1  ;;  %v2272_v14 = vsel %vm14676_vm9, %v2267_v3, %v2271_v35  ;;  %v3092_v55 = vshll.u32 %v3014_v23, 16 }
 0x20a   : > { %2643 = vst.msk [vmem:[#allocation3 + $0x58] sm:$0xf] %vm1157_vm2, %v2262_v8  ;;  %v3096_v58 = vshrl.u32 %v3014_v23, 16  ;;  %v3102_v15 = vshll.u32 %v3015_v49, 16  ;;  %v2184_v2 = vld [vmem:[#allocation2 + $0x28] sm:$0xf]  ;;  %5612 = vmatmul.mubr.bf16.vlgmr.msra.gmra.mxu0 %v13457_v0  ;;  %v2782_v16 = vsel %vm14682_vm12, %v2780_v61, %v2781_v47  ;;  %v15372_v8 = vpop.f32.mrf.mxu0 }
 0x20b   : > { %2644 = vst.msk [vmem:[#allocation3 + $0x7c] sm:$0xf] %vm1157_vm2, %v2272_v14  ;;  %v3089_v18 = vor.u32 %v3088_v11, %v3085_v9  ;;  %v2185_v46 = vld [vmem:[#allocation2 + $0x2c] sm:$0x1]  ;;  %v2274_v30 = vshrl.u32 %v2183_v12, 16  ;;  %v2277_v17 = vshll.u32 %v2183_v12, 16  ;;  %13148 = vmatpush3.bf16.msra.mxu0 %v15282_v4  ;;  %v12332_v14 = vpop.f32.mrf.mxu1 }
 0x20c   : > { %v2679_v5 = vld [vmem:[#allocation2 + $0x24] sm:$0xe]  ;;  %v13487_v42 = vld [vmem:[%s18380_s1 + $0x228] sm:$0xff]   ;;  %2916 = vst.msk [vmem:[#allocation3 + $0x80] sm:$0xf] %vm1157_vm2, %v2782_v16  ;;  %v3094_v52 = vrot.slane %v3092_v55, 5  ;;  %13149 = vmatprep.subr.bf16.mxu0 %v13474_v13  ;;  %v15377_v16 = vadd.f32 %v12332_v14, %v12331_v59 }
 0x20d   : > { %v3098_v48 = vrot.slane %v3096_v58, 4  ;;  %v3104_v20 = vrot.slane %v3102_v15, 5  ;;  %v2283_v21 = vshll.u32 %v2184_v2, 16  ;;  %v2680_v22 = vld [vmem:[#allocation2 + $0x28] sm:$0xf]  ;;  %v3090_v26 = vrot.slane %v3089_v18, 4 }
 0x20e   : > { %v13462_v25 = vld [vmem:[#allocation3 + $0x18] ss:$36 sps:$4 sm:$0xff]   ;;  %v2276_v27 = vrot.slane %v2274_v30, 4  ;;  %v2279_v24 = vrot.slane %v2277_v17, 5  ;;  %v2287_v53 = vshrl.u32 %v2184_v2, 16  ;;  %v2293_v4 = vshll.u32 %v2185_v46, 16 }
 0x20f   : > { %v13464_v29 = vld [vmem:[#allocation3 + $0x1c] ss:$36 sps:$4 sm:$0xff]   ;;  %v3099_v31 = vor.u32 %v3098_v48, %v3094_v52  ;;  %v2285_v32 = vrot.slane %v2283_v21, 5  ;;  %v3095_v33 = vsel %vm14676_vm9, %v3090_v26, %v3094_v52  ;;  %v2681_v28 = vld [vmem:[#allocation2 + $0x2c] sm:$0x1]  ;;  %v11588_v34 = vrot.slane %v2679_v5, 9  ;;  %13150 = vmatpush3.bf16.msra.mxu0 %v13474_v13  ;;  %v15380_v5 = vpop.f32.mrf.mxu1 }
 0x210   : > { %v2785_v35 = vrot.slane %v2680_v22, 5  ;;  %5772 = vmatprep.mubr.bf16.mxu1 %v13464_v29  ;;  %3476 = vst.msk [vmem:[#allocation3 + $0x64] sm:$0xf] %vm1157_vm2, %v3095_v33  ;;  %v2280_v37 = vor.u32 %v2279_v24, %v2276_v27  ;;  %v2289_v38 = vrot.slane %v2287_v53, 4  ;;  %v2788_v39 = vrot.slane %v2681_v28, 5  ;;  %13151 = vmatprep.subr.bf16.mxu0 %v13487_v42  ;;  %v13500_v44 = vld [vmem:[%s18380_s1 + $0x220] sm:$0xff]  }
 0x211   : > { %v3100_v36 = vrot.slane %v3099_v31, 4  ;;  %5773 = vmatmul.mubr.bf16.vlgmr.msra.gmra.mxu1 %v13462_v25  ;;  %v2295_v47 = vrot.slane %v2293_v4, 5  ;;  %v2950_v49 = vld [vmem:[#allocation2 + $0x30] sm:$0xf]  ;;  %v2951_v50 = vld [vmem:[#allocation2 + $0x34] sm:$0xf]  ;;  %v15387_v25 = vpop.f32.mrf.mxu0  ;;  %v15389_v53 = vpop.f32.mrf.mxu1 }
 0x212   : > { %v2786_v40 = vsel %vm14682_vm12, %v11588_v34, %v2785_v35  ;;  %v2787_v43 = vrot.slane %v2785_v35, 4  ;;  %v2281_v41 = vrot.slane %v2280_v37, 4  ;;  %v2290_v45 = vor.u32 %v2289_v38, %v2285_v32  ;;  %v13467_v56 = vld [vmem:[#allocation3 + $0x58] ss:$36 sps:$4 sm:$0xff]   ;;  %2982 = vst.msk [vmem:[#allocation3 + $0xa8] sm:$0xf] %vm1157_vm2, %v2950_v49 }
 0x213   : > { %v3105_v23 = vsel %vm14676_vm9, %v3100_v36, %v3104_v20  ;;  %2917 = vst.msk [vmem:[#allocation3 + $0xa4] sm:$0xf] %vm1157_vm2, %v2786_v40  ;;  %v13465_v51 = vld [vmem:[#allocation3 + $0x5c] ss:$36 sps:$4 sm:$0xff]   ;;  %2983 = vst.msk [vmem:[#allocation3 + $0xcc] sm:$0xf] %vm1157_vm2, %v2951_v50  ;;  %13152 = vmatpush3.bf16.msra.mxu0 %v13487_v42 }
 0x214   : > { %3477 = vst.msk [vmem:[#allocation3 + $0x88] sm:$0xf] %vm1157_vm2, %v3105_v23  ;;  %v2789_v57 = vsel %vm14682_vm12, %v2787_v43, %v2788_v39  ;;  %v2286_v60 = vsel %vm14676_vm9, %v2281_v41, %v2285_v32  ;;  %v2291_v63 = vrot.slane %v2290_v45, 4  ;;  %v3016_v0 = vld [vmem:[#allocation2 + $0x30] sm:$0xf]  ;;  %v13513_v3 = vld [vmem:[%s18380_s1 + $0x218] sm:$0xff]   ;;  %5619 = vmatprep.mubr.bf16.mxu0 %v13465_v51  ;;  %13153 = vmatprep.subr.bf16.mxu0 %v13500_v44  ;;  %v12337_v39 = vpop.f32.mrf.mxu1  ;;  %v12225_v41 = vpop.f32.mrf.mxu0 }
 0x215   : > { %2918 = vst.msk [vmem:[#allocation3 + $0xc8] sm:$0xf] %vm1157_vm2, %v2789_v57  ;;  %v3017_v1 = vld [vmem:[#allocation2 + $0x34] sm:$0xf]  ;;  %2645 = vst.msk [vmem:[#allocation3 + $0xa0] sm:$0xf] %vm1157_vm2, %v2286_v60  ;;  %5620 = vmatmul.mubr.bf16.gmra.mxu0 %v13467_v56 }
 0x216   : > { %v3018_v61 = vld [vmem:[#allocation2 + $0x38] sm:$0x1]  ;;  %v3107_v9 = vshrl.u32 %v3016_v0, 16  ;;  %v3110_v11 = vshll.u32 %v3016_v0, 16  ;;  %v3116_v12 = vshll.u32 %v3017_v1, 16  ;;  %v3120_v13 = vshrl.u32 %v3017_v1, 16  ;;  %v12338_v57 = vpop.f32.mrf.mxu1 }
 0x217   : > { %v2296_v55 = vsel %vm14676_vm9, %v2291_v63, %v2295_v47  ;;  %v3126_v58 = vshll.u32 %v3018_v61, 16  ;;  %v2186_v15 = vld [vmem:[#allocation2 + $0x30] sm:$0xf]  ;;  %v2187_v2 = vld [vmem:[#allocation2 + $0x34] sm:$0xf]  ;;  %13154 = vmatpush3.bf16.msra.mxu0 %v13500_v44  ;;  %v13539_v59 = vld [vmem:[%s18380_s1 + $0x208] sm:$0xff]   ;;  %v12226_v61 = vpop.f32.mrf.mxu0 }
 0x218   : > { %2646 = vst.msk [vmem:[#allocation3 + $0xc4] sm:$0xf] %vm1157_vm2, %v2296_v55  ;;  %v3109_v18 = vrot.slane %v3107_v9, 4  ;;  %v3112_v46 = vrot.slane %v3110_v11, 5  ;;  %v3118_v30 = vrot.slane %v3116_v12, 5  ;;  %v3122_v17 = vrot.slane %v3120_v13, 4  ;;  %13155 = vmatprep.subr.bf16.mxu0 %v13513_v3  ;;  %v15410_v55 = vpop.f32.mrf.mxu1 }
 0x219   : > { %v15385_v42 = vld [vmem:[%s18380_s1 + $0x210] sm:$0xff]   ;;  %v3128_v52 = vrot.slane %v3126_v58, 5  ;;  %v2188_v48 = vld [vmem:[#allocation2 + $0x38] sm:$0x1]  ;;  %v2298_v20 = vshrl.u32 %v2186_v15, 16  ;;  %v2301_v21 = vshll.u32 %v2186_v15, 16  ;;  %v15405_v9 = vadd.f32 %v12338_v57, %v12337_v39 }
 0x21a   : > { %v2307_v22 = vshll.u32 %v2187_v2, 16  ;;  %v3113_v26 = vor.u32 %v3112_v46, %v3109_v18  ;;  %v3123_v27 = vor.u32 %v3122_v17, %v3118_v30  ;;  %v2311_v29 = vshrl.u32 %v2187_v2, 16  ;;  %v2682_v24 = vld [vmem:[#allocation2 + $0x30] sm:$0xe]  ;;  %v2683_v32 = vld [vmem:[#allocation2 + $0x34] sm:$0xf] }
 0x21b   : > { %v2317_v31 = vshll.u32 %v2188_v48, 16  ;;  %v13468_v33 = vld [vmem:[#allocation3 + $0x64] ss:$36 sps:$4 sm:$0xff]   ;;  %v2300_v28 = vrot.slane %v2298_v20, 4  ;;  %v2303_v36 = vrot.slane %v2301_v21, 5  ;;  %v11589_v44 = vrot.slane %v2682_v24, 9  ;;  %13156 = vmatpush3.bf16.msra.mxu0 %v13513_v3 }
 0x21c   : > { %v13470_v4 = vld [vmem:[#allocation3 + $0x60] ss:$36 sps:$4 sm:$0xff]   ;;  %v3114_v34 = vrot.slane %v3113_v26, 4  ;;  %v3124_v35 = vrot.slane %v3123_v27, 4  ;;  %v2309_v37 = vrot.slane %v2307_v22, 5  ;;  %5780 = vmatprep.mubr.bf16.mxu1 %v13468_v33  ;;  %v2313_v40 = vrot.slane %v2311_v29, 4  ;;  %13157 = vmatprep.subr.bf16.mxu0 %v15385_v42  ;;  %v15420_v22 = vpop.f32.mrf.mxu1 }
 0x21d   : > { %v2684_v38 = vld [vmem:[#allocation2 + $0x38] sm:$0x1]  ;;  %v2319_v43 = vrot.slane %v2317_v31, 5  ;;  %v2792_v23 = vrot.slane %v2683_v32, 5  ;;  %5781 = vmatmul.mubr.bf16.gmra.mxu1 %v13470_v4  ;;  %v2304_v49 = vor.u32 %v2303_v36, %v2300_v28  ;;  %v2952_v51 = vld [vmem:[#allocation2 + $0x3c] sm:$0xf]  ;;  %v15408_v14 = vadd.f32 %v12226_v61, %v12225_v41 }
 0x21e   : > { %v3119_v45 = vsel %vm14676_vm9, %v3114_v34, %v3118_v30  ;;  %v3129_v47 = vsel %vm14676_vm9, %v3124_v35, %v3128_v52  ;;  %v2795_v50 = vrot.slane %v2684_v38, 5  ;;  %v2953_v56 = vld [vmem:[#allocation2 + $0x40] sm:$0xf]  ;;  %v2314_v0 = vor.u32 %v2313_v40, %v2309_v37  ;;  %2984 = vst.msk [vmem:[#allocation3 + $0xf0] sm:$0xf] %vm1157_vm2, %v2952_v51  ;;  %v15414_v30 = vpop.f32.mrf.mxu0  ;;  %v12343_v40 = vpop.f32.mrf.mxu1 }
 0x21f   : > { %v13471_v60 = vld [vmem:[#allocation3 + $0xa4] ss:$36 sps:$4 sm:$0xff]   ;;  %3478 = vst.msk [vmem:[#allocation3 + $0xac] sm:$0xf] %vm1157_vm2, %v3119_v45  ;;  %3479 = vst.msk [vmem:[#allocation3 + $0xd0] sm:$0xf] %vm1157_vm2, %v3129_v47  ;;  %v2793_v1 = vsel %vm14682_vm12, %v11589_v44, %v2792_v23  ;;  %13158 = vmatpush3.bf16.msra.mxu0 %v15385_v42 }
 0x220   : > { %v13473_v63 = vld [vmem:[#allocation3 + $0xa0] ss:$36 sps:$4 sm:$0xff]   ;;  %v2794_v3 = vrot.slane %v2792_v23, 4  ;;  %2985 = vst.msk [vmem:[#allocation3 + $0x114] sm:$0xf] %vm1157_vm2, %v2953_v56  ;;  %v2305_v11 = vrot.slane %v2304_v49, 4  ;;  %5627 = vmatprep.mubr.bf16.mxu0 %v13471_v60  ;;  %13159 = vmatprep.subr.bf16.mxu0 %v13539_v59  ;;  %v15425_v24 = vpop.f32.mrf.mxu0 }
 0x221   : > { %2919 = vst.msk [vmem:[#allocation3 + $0xec] sm:$0xf] %vm1157_vm2, %v2793_v1  ;;  %v3019_v12 = vld [vmem:[#allocation2 + $0x3c] sm:$0xf]  ;;  %v3020_v13 = vld [vmem:[#allocation2 + $0x40] sm:$0xf]  ;;  %5628 = vmatmul.mubr.bf16.gmra.mxu0 %v13473_v63 }
 0x222   : > { %v2315_v58 = vrot.slane %v2314_v0, 4  ;;  %v2796_v15 = vsel %vm14682_vm12, %v2794_v3, %v2795_v50  ;;  %v3021_v2 = vld [vmem:[#allocation2 + $0x44] sm:$0x1]  ;;  %v3131_v18 = vshrl.u32 %v3019_v12, 16  ;;  %v3134_v46 = vshll.u32 %v3019_v12, 16  ;;  %v12231_v56 = vpop.f32.mrf.mxu0  ;;  %v12344_v3 = vpop.f32.mrf.mxu1 }
 0x223   : > { %v2310_v17 = vsel %vm14676_vm9, %v2305_v11, %v2309_v37  ;;  %2920 = vst.msk [vmem:[#allocation3 + $0x110] sm:$0xf] %vm1157_vm2, %v2796_v15  ;;  %v3140_v52 = vshll.u32 %v3020_v13, 16  ;;  %v3144_v48 = vshrl.u32 %v3020_v13, 16  ;;  %v3150_v20 = vshll.u32 %v3021_v2, 16  ;;  %13160 = vmatpush3.bf16.msra.mxu0 %v13539_v59 }
 0x224   : > { %v2189_v21 = vld [vmem:[#allocation2 + $0x3c] sm:$0xf]  ;;  %v2320_v26 = vsel %vm14676_vm9, %v2315_v58, %v2319_v43  ;;  %2647 = vst.msk [vmem:[#allocation3 + $0xe8] sm:$0xf] %vm1157_vm2, %v2310_v17  ;;  %v3133_v27 = vrot.slane %v3131_v18, 4  ;;  %v3136_v42 = vrot.slane %v3134_v46, 5  ;;  %v12232_v13 = vpop.f32.mrf.mxu0 }
 0x225   : > { %v2190_v29 = vld [vmem:[#allocation2 + $0x40] sm:$0xf]  ;;  %v2191_v31 = vld [vmem:[#allocation2 + $0x44] sm:$0x1]  ;;  %2648 = vst.msk [vmem:[#allocation3 + $0x10c] sm:$0xf] %vm1157_vm2, %v2320_v26  ;;  %v15435_v17 = vadd.f32 %v12232_v13, %v12231_v56  ;;  %v15443_v26 = vadd.f32 %v12344_v3, %v12343_v40 }
 0x226   : > { %v3142_v32 = vrot.slane %v3140_v52, 5  ;;  %v3146_v33 = vrot.slane %v3144_v48, 4  ;;  %v3152_v4 = vrot.slane %v3150_v20, 5  ;;  %v2322_v28 = vshrl.u32 %v2189_v21, 16  ;;  %v2685_v34 = vld [vmem:[#allocation2 + $0x3c] sm:$0xe] }
 0x227   : > { %v3137_v35 = vor.u32 %v3136_v42, %v3133_v27  ;;  %v2325_v36 = vshll.u32 %v2189_v21, 16  ;;  %v2331_v37 = vshll.u32 %v2190_v29, 16  ;;  %v2335_v38 = vshrl.u32 %v2190_v29, 16  ;;  %v2686_v39 = vld [vmem:[#allocation2 + $0x40] sm:$0xf]  ;;  %v15441_v21 = vpop.f32.mrf.mxu0 }
 0x228   : > { %v13475_v43 = vld [vmem:[#allocation3 + $0xac] ss:$36 sps:$4 sm:$0xff]   ;;  %v3147_v44 = vor.u32 %v3146_v33, %v3142_v32  ;;  %v2324_v23 = vrot.slane %v2322_v28, 4  ;;  %v2341_v41 = vshll.u32 %v2191_v31, 16  ;;  %v11590_v0 = vrot.slane %v2685_v34, 9 }
 0x229   : > { %v13477_v45 = vld [vmem:[#allocation3 + $0xa8] ss:$36 sps:$4 sm:$0xff]   ;;  %v3138_v47 = vrot.slane %v3137_v35, 4  ;;  %v2327_v49 = vrot.slane %v2325_v36, 5  ;;  %v2333_v50 = vrot.slane %v2331_v37, 5  ;;  %v2337_v51 = vrot.slane %v2335_v38, 4  ;;  %5788 = vmatprep.mubr.bf16.mxu1 %v13475_v43  ;;  %v15455_v37 = vpop.f32.mrf.mxu0 }
 0x22a   : > { %v3148_v57 = vrot.slane %v3147_v44, 4  ;;  %v2343_v60 = vrot.slane %v2341_v41, 5  ;;  %v2687_v63 = vld [vmem:[#allocation2 + $0x44] sm:$0x1]  ;;  %v2799_v1 = vrot.slane %v2686_v39, 5  ;;  %5789 = vmatmul.mubr.bf16.gmra.mxu1 %v13477_v45 }
 0x22b   : > { %v3143_v59 = vsel %vm14676_vm9, %v3138_v47, %v3142_v32  ;;  %v2328_v61 = vor.u32 %v2327_v49, %v2324_v23  ;;  %v2338_v11 = vor.u32 %v2337_v51, %v2333_v50  ;;  %v2802_v12 = vrot.slane %v2687_v63, 5  ;;  %v2954_v18 = vld [vmem:[#allocation2 + $0x48] sm:$0xf]  ;;  %v2955_v46 = vld [vmem:[#allocation2 + $0x4c] sm:$0xf]  ;;  %v15447_v32 = vpop.f32.mrf.mxu1  ;;  %v13552_v33 = vld [vmem:[%s18380_s1 + $0x200] sm:$0xff]  }
 0x22c   : > { %v3153_v58 = vsel %vm14676_vm9, %v3148_v57, %v3152_v4  ;;  %3480 = vst.msk [vmem:[#allocation3 + $0xf4] sm:$0xf] %vm1157_vm2, %v3143_v59  ;;  %v2800_v15 = vsel %vm14682_vm12, %v11590_v0, %v2799_v1  ;;  %v2801_v2 = vrot.slane %v2799_v1, 4  ;;  %v13478_v52 = vld [vmem:[#allocation3 + $0xec] ss:$36 sps:$4 sm:$0xff]   ;;  %13161 = vmatprep.subr.bf16.mxu0 %v13552_v33 }
 0x22d   : > { %v13480_v48 = vld [vmem:[#allocation3 + $0xe8] ss:$36 sps:$4 sm:$0xff]   ;;  %3481 = vst.msk [vmem:[#allocation3 + $0x118] sm:$0xf] %vm1157_vm2, %v3153_v58  ;;  %v2329_v20 = vrot.slane %v2328_v61, 4  ;;  %v2339_v27 = vrot.slane %v2338_v11, 4  ;;  %5635 = vmatprep.mubr.bf16.mxu0 %v13478_v52  ;;  %13162 = vmatpush3.bf16.msra.mxu0 %v13552_v33  ;;  %v15461_v0 = vpop.f32.mrf.mxu1 }
 0x22e   : > { %2921 = vst.msk [vmem:[#allocation3 + $0x134] sm:$0xf] %vm1157_vm2, %v2800_v15  ;;  %2986 = vst.msk [vmem:[#allocation3 + $0x138] sm:$0xf] %vm1157_vm2, %v2954_v18  ;;  %v2803_v42 = vsel %vm14682_vm12, %v2801_v2, %v2802_v12  ;;  %v3022_v29 = vld [vmem:[#allocation2 + $0x48] sm:$0xf]  ;;  %5636 = vmatmul.mubr.bf16.gmra.mxu0 %v13480_v48 }
 0x22f   : > { %2987 = vst.msk [vmem:[#allocation3 + $0x15c] sm:$0xf] %vm1157_vm2, %v2955_v46  ;;  %v3023_v31 = vld [vmem:[#allocation2 + $0x4c] sm:$0xf]  ;;  %v2334_v4 = vsel %vm14676_vm9, %v2329_v20, %v2333_v50  ;;  %2922 = vst.msk [vmem:[#allocation3 + $0x158] sm:$0xf] %vm1157_vm2, %v2803_v42  ;;  %v2344_v38 = vsel %vm14676_vm9, %v2339_v27, %v2343_v60  ;;  %v12237_v50 = vpop.f32.mrf.mxu0 }
 0x230   : > { %v3024_v28 = vld [vmem:[#allocation2 + $0x50] sm:$0x1]  ;;  %v3155_v34 = vshrl.u32 %v3022_v29, 16  ;;  %v3158_v35 = vshll.u32 %v3022_v29, 16  ;;  %v3164_v36 = vshll.u32 %v3023_v31, 16  ;;  %v3168_v39 = vshrl.u32 %v3023_v31, 16 }
 0x231   : > { %2649 = vst.msk [vmem:[#allocation3 + $0x130] sm:$0xf] %vm1157_vm2, %v2334_v4  ;;  %v3174_v40 = vshll.u32 %v3024_v28, 16  ;;  %v2192_v43 = vld [vmem:[#allocation2 + $0x48] sm:$0xf]  ;;  %v12238_v12 = vpop.f32.mrf.mxu0  ;;  %v12349_v28 = vpop.f32.mrf.mxu1 }
 0x232   : > { %v2193_v44 = vld [vmem:[#allocation2 + $0x4c] sm:$0xf]  ;;  %2650 = vst.msk [vmem:[#allocation3 + $0x154] sm:$0xf] %vm1157_vm2, %v2344_v38  ;;  %v3157_v23 = vrot.slane %v3155_v34, 4  ;;  %v3160_v41 = vrot.slane %v3158_v35, 5  ;;  %v15463_v18 = vadd.f32 %v12238_v12, %v12237_v50 }
 0x233   : > { %v3166_v45 = vrot.slane %v3164_v36, 5  ;;  %v2194_v47 = vld [vmem:[#allocation2 + $0x50] sm:$0x1]  ;;  %v2346_v49 = vshrl.u32 %v2192_v43, 16  ;;  %v3170_v51 = vrot.slane %v3168_v39, 4  ;;  %v3176_v56 = vrot.slane %v3174_v40, 5 }
 0x234   : > { %v2349_v57 = vshll.u32 %v2192_v43, 16  ;;  %v2355_v60 = vshll.u32 %v2193_v44, 16  ;;  %v2688_v63 = vld [vmem:[#allocation2 + $0x48] sm:$0xe]  ;;  %v3161_v1 = vor.u32 %v3160_v41, %v3157_v23  ;;  %v2359_v59 = vshrl.u32 %v2193_v44, 16 }
 0x235   : > { %v2348_v3 = vrot.slane %v2346_v49, 4  ;;  %v2365_v61 = vshll.u32 %v2194_v47, 16  ;;  %v2689_v11 = vld [vmem:[#allocation2 + $0x4c] sm:$0xf]  ;;  %v3171_v15 = vor.u32 %v3170_v51, %v3166_v45  ;;  %v2690_v27 = vld [vmem:[#allocation2 + $0x50] sm:$0x1]  ;;  %v12350_v47 = vpop.f32.mrf.mxu1 }
 0x236   : > { %v13481_v13 = vld [vmem:[#allocation3 + $0xf4] ss:$36 sps:$4 sm:$0xff]   ;;  %v2351_v2 = vrot.slane %v2349_v57, 5  ;;  %v3162_v46 = vrot.slane %v3161_v1, 4  ;;  %v2357_v52 = vrot.slane %v2355_v60, 5  ;;  %v2361_v48 = vrot.slane %v2359_v59, 4 }
 0x237   : > { %v13483_v58 = vld [vmem:[#allocation3 + $0xf0] ss:$36 sps:$4 sm:$0xff]   ;;  %v2367_v20 = vrot.slane %v2365_v61, 5  ;;  %5796 = vmatprep.mubr.bf16.mxu1 %v13481_v13  ;;  %v3172_v42 = vrot.slane %v3171_v15, 4  ;;  %v11591_v31 = vrot.slane %v2688_v63, 9  ;;  %v2806_v33 = vrot.slane %v2689_v11, 5  ;;  %v15482_v61 = vpop.f32.mrf.mxu1 }
 0x238   : > { %v2352_v29 = vor.u32 %v2351_v2, %v2348_v3  ;;  %v2956_v4 = vld [vmem:[#allocation2 + $0x54] sm:$0xf]  ;;  %5797 = vmatmul.mubr.bf16.gmra.mxu1 %v13483_v58  ;;  %v3167_v34 = vsel %vm14676_vm9, %v3162_v46, %v3166_v45  ;;  %v2362_v35 = vor.u32 %v2361_v48, %v2357_v52  ;;  %v2809_v36 = vrot.slane %v2690_v27, 5  ;;  %v2957_v38 = vld [vmem:[#allocation2 + $0x58] sm:$0xf]  ;;  %v15474_v45 = vpop.f32.mrf.mxu0 }
 0x239   : > { %2988 = vst.msk [vmem:[#allocation3 + $0x180] sm:$0xf] %vm1157_vm2, %v2956_v4  ;;  %v3025_v39 = vld [vmem:[#allocation2 + $0x54] sm:$0xf]  ;;  %v13484_v40 = vld [vmem:[#allocation3 + $0x134] ss:$36 sps:$4 sm:$0xff]   ;;  %v3177_v44 = vsel %vm14676_vm9, %v3172_v42, %v3176_v56  ;;  %v2807_v41 = vsel %vm14682_vm12, %v11591_v31, %v2806_v33  ;;  %v15478_v56 = vadd.f32 %v12350_v47, %v12349_v28 }
 0x23a   : > { %v13486_v43 = vld [vmem:[#allocation3 + $0x130] ss:$36 sps:$4 sm:$0xff]   ;;  %3482 = vst.msk [vmem:[#allocation3 + $0x13c] sm:$0xf] %vm1157_vm2, %v3167_v34  ;;  %v2353_v23 = vrot.slane %v2352_v29, 4  ;;  %v2363_v49 = vrot.slane %v2362_v35, 4  ;;  %5643 = vmatprep.mubr.bf16.mxu0 %v13484_v40  ;;  %v15491_v29 = vpop.f32.mrf.mxu0  ;;  %v15493_v34 = vpop.f32.mrf.mxu1 }
 0x23b   : > { %2989 = vst.msk [vmem:[#allocation3 + $0x1a4] sm:$0xf] %vm1157_vm2, %v2957_v38  ;;  %3483 = vst.msk [vmem:[#allocation3 + $0x160] sm:$0xf] %vm1157_vm2, %v3177_v44  ;;  %v2808_v50 = vrot.slane %v2806_v33, 4  ;;  %v3179_v63 = vshrl.u32 %v3025_v39, 16  ;;  %5644 = vmatmul.mubr.bf16.gmra.mxu0 %v13486_v43 }
 0x23c   : > { %2923 = vst.msk [vmem:[#allocation3 + $0x17c] sm:$0xf] %vm1157_vm2, %v2807_v41  ;;  %v3026_v51 = vld [vmem:[#allocation2 + $0x58] sm:$0xf]  ;;  %v3027_v57 = vld [vmem:[#allocation2 + $0x5c] sm:$0x1]  ;;  %v2358_v60 = vsel %vm14676_vm9, %v2353_v23, %v2357_v52  ;;  %v2368_v11 = vsel %vm14676_vm9, %v2363_v49, %v2367_v20 }
 0x23d   : > { %v3182_v1 = vshll.u32 %v3025_v39, 16  ;;  %v3188_v3 = vshll.u32 %v3026_v51, 16  ;;  %v2195_v59 = vld [vmem:[#allocation2 + $0x54] sm:$0xf]  ;;  %2651 = vst.msk [vmem:[#allocation3 + $0x178] sm:$0xf] %vm1157_vm2, %v2358_v60  ;;  %v2810_v12 = vsel %vm14682_vm12, %v2808_v50, %v2809_v36 }
 0x23e   : > { %v3192_v13 = vshrl.u32 %v3026_v51, 16  ;;  %v3198_v58 = vshll.u32 %v3027_v57, 16  ;;  %v2196_v15 = vld [vmem:[#allocation2 + $0x58] sm:$0xf]  ;;  %v2197_v2 = vld [vmem:[#allocation2 + $0x5c] sm:$0x1]  ;;  %v12243_v51 = vpop.f32.mrf.mxu0 }
 0x23f   : > { %2652 = vst.msk [vmem:[#allocation3 + $0x19c] sm:$0xf] %vm1157_vm2, %v2368_v11  ;;  %2924 = vst.msk [vmem:[#allocation3 + $0x1a0] sm:$0xf] %vm1157_vm2, %v2810_v12  ;;  %v3181_v46 = vrot.slane %v3179_v63, 4  ;;  %v3184_v52 = vrot.slane %v3182_v1, 5  ;;  %v12355_v1 = vpop.f32.mrf.mxu1 }
 0x240   : > { %v3190_v48 = vrot.slane %v3188_v3, 5  ;;  %v2370_v27 = vshrl.u32 %v2195_v59, 16  ;;  %v2691_v42 = vld [vmem:[#allocation2 + $0x54] sm:$0xe]  ;;  %v3194_v20 = vrot.slane %v3192_v13, 4  ;;  %v3200_v31 = vrot.slane %v3198_v58, 5  ;;  %v12244_v58 = vpop.f32.mrf.mxu0 }
 0x241   : > { %v2373_v33 = vshll.u32 %v2195_v59, 16  ;;  %v2379_v4 = vshll.u32 %v2196_v15, 16  ;;  %v2692_v28 = vld [vmem:[#allocation2 + $0x58] sm:$0xf]  ;;  %v3185_v35 = vor.u32 %v3184_v52, %v3181_v46  ;;  %v2383_v38 = vshrl.u32 %v2196_v15, 16 }
 0x242   : > { %v2372_v36 = vrot.slane %v2370_v27, 4  ;;  %v2389_v39 = vshll.u32 %v2197_v2, 16  ;;  %v2693_v40 = vld [vmem:[#allocation2 + $0x5c] sm:$0x1]  ;;  %v3195_v43 = vor.u32 %v3194_v20, %v3190_v48  ;;  %v11592_v41 = vrot.slane %v2691_v42, 9 }
 0x243   : > { %v2375_v44 = vrot.slane %v2373_v33, 5  ;;  %v2381_v23 = vrot.slane %v2379_v4, 5  ;;  %v13488_v47 = vld [vmem:[#allocation3 + $0x13c] ss:$36 sps:$4 sm:$0xff]   ;;  %v3186_v50 = vrot.slane %v3185_v35, 4  ;;  %v2385_v63 = vrot.slane %v2383_v38, 4 }
 0x244   : > { %v13490_v49 = vld [vmem:[#allocation3 + $0x138] ss:$36 sps:$4 sm:$0xff]   ;;  %v3196_v57 = vrot.slane %v3195_v43, 4  ;;  %5804 = vmatprep.mubr.bf16.mxu1 %v13488_v47  ;;  %v2391_v59 = vrot.slane %v2389_v39, 5  ;;  %v2813_v11 = vrot.slane %v2692_v28, 5  ;;  %v2816_v12 = vrot.slane %v2693_v40, 5 }
 0x245   : > { %v2376_v60 = vor.u32 %v2375_v44, %v2372_v36  ;;  %v3191_v3 = vsel %vm14676_vm9, %v3186_v50, %v3190_v48  ;;  %v2958_v13 = vld [vmem:[#allocation2 + $0x60] sm:$0xf]  ;;  %5805 = vmatmul.mubr.bf16.gmra.mxu1 %v13490_v49  ;;  %v2386_v27 = vor.u32 %v2385_v63, %v2381_v23  ;;  %v15501_v42 = vadd.f32 %v12244_v58, %v12243_v51  ;;  %v12356_v48 = vpop.f32.mrf.mxu1  ;;  %v2959_v28 = vld [vmem:[#allocation2 + $0x64] sm:$0xf]  ;;  %v3030_v43 = vld [vmem:[#allocation2 + $0x68] sm:$0x1] }
 0x246   : > { %v13491_v15 = vld [vmem:[#allocation3 + $0x17c] ss:$36 sps:$4 sm:$0xff]   ;;  %v3201_v46 = vsel %vm14676_vm9, %v3196_v57, %v3200_v31  ;;  %3484 = vst.msk [vmem:[#allocation3 + $0x184] sm:$0xf] %vm1157_vm2, %v3191_v3  ;;  %2990 = vst.msk [vmem:[#allocation3 + $0x1c8] sm:$0xf] %vm1157_vm2, %v2958_v13  ;;  %v2814_v33 = vsel %vm14682_vm12, %v11592_v41, %v2813_v11  ;;  %v15507_v31 = vpop.f32.mrf.mxu0  ;;  %v15509_v36 = vadd.f32 %v12356_v48, %v12355_v1 }
 0x247   : > { %v13493_v2 = vld [vmem:[#allocation3 + $0x178] ss:$36 sps:$4 sm:$0xff]   ;;  %v2377_v52 = vrot.slane %v2376_v60, 4  ;;  %3485 = vst.msk [vmem:[#allocation3 + $0x1a8] sm:$0xf] %vm1157_vm2, %v3201_v46  ;;  %v2815_v4 = vrot.slane %v2813_v11, 4  ;;  %5651 = vmatprep.mubr.bf16.mxu0 %v13491_v15  ;;  %v15517_v41 = vadd.f32 %v15387_v25, %v15372_v8  ;;  %v15519_v47 = vpop.f32.mrf.mxu1  ;;  %v15529_v3 = vadd.f32 %v15389_v53, %v15380_v5 }
 0x248   : > { %v3028_v35 = vld [vmem:[#allocation2 + $0x60] sm:$0xf]  ;;  %v2387_v39 = vrot.slane %v2386_v27, 4  ;;  %2925 = vst.msk [vmem:[#allocation3 + $0x1c4] sm:$0xf] %vm1157_vm2, %v2814_v33  ;;  %5652 = vmatmul.mubr.bf16.gmra.mxu0 %v13493_v2  ;;  %v3222_v8 = vshll.u32 %v3030_v43, 16  ;;  %v15531_v11 = vpop.f32.mrf.mxu0  ;;  %v15538_v43 = vadd.f32 %v15425_v24, %v15414_v30 }
 0x249   : > { %v2382_v38 = vsel %vm14676_vm9, %v2377_v52, %v2381_v23  ;;  %2991 = vst.msk [vmem:[#allocation3 + $0x1ec] sm:$0xf] %vm1157_vm2, %v2959_v28  ;;  %v3029_v40 = vld [vmem:[#allocation2 + $0x64] sm:$0xf]  ;;  %v3203_v44 = vshrl.u32 %v3028_v35, 16  ;;  %v2817_v23 = vsel %vm14682_vm12, %v2815_v4, %v2816_v12  ;;  %v3206_v49 = vshll.u32 %v3028_v35, 16 }
 0x24a   : > { %2653 = vst.msk [vmem:[#allocation3 + $0x1c0] sm:$0xf] %vm1157_vm2, %v2382_v38  ;;  %v3212_v50 = vshll.u32 %v3029_v40, 16  ;;  %v3216_v51 = vshrl.u32 %v3029_v40, 16  ;;  %v2198_v57 = vld [vmem:[#allocation2 + $0x60] sm:$0xf]  ;;  %v2392_v60 = vsel %vm14676_vm9, %v2387_v39, %v2391_v59  ;;  %v15534_v59 = vpop.f32.mrf.mxu1 }
 0x24b   : > { %2926 = vst.msk [vmem:[#allocation3 + $0x1e8] sm:$0xf] %vm1157_vm2, %v2817_v23  ;;  %v3205_v63 = vrot.slane %v3203_v44, 4  ;;  %v2199_v25 = vld [vmem:[#allocation2 + $0x64] sm:$0xf]  ;;  %v3208_v12 = vrot.slane %v3206_v49, 5  ;;  %v15542_v44 = vadd.f32 %v15420_v22, %v15410_v55  ;;  %v15546_v23 = vadd.f32 %v15461_v0, %v15447_v32  ;;  %v12249_v49 = vpop.f32.mrf.mxu0 }
 0x24c   : > { %v2200_v1 = vld [vmem:[#allocation2 + $0x68] sm:$0x1]  ;;  %2654 = vst.msk [vmem:[#allocation3 + $0x1e4] sm:$0xf] %vm1157_vm2, %v2392_v60  ;;  %v3214_v13 = vrot.slane %v3212_v50, 5  ;;  %v3218_v58 = vrot.slane %v3216_v51, 4 }
 0x24d   : > { %v2394_v15 = vshrl.u32 %v2198_v57, 16  ;;  %v2694_v2 = vld [vmem:[#allocation2 + $0x60] sm:$0xe]  ;;  %v3224_v46 = vrot.slane %v3222_v8, 5  ;;  %v2397_v52 = vshll.u32 %v2198_v57, 16  ;;  %v2403_v27 = vshll.u32 %v2199_v25, 16  ;;  %v12361_v8 = vpop.f32.mrf.mxu1  ;;  %v12250_v55 = vpop.f32.mrf.mxu0 }
 0x24e   : > { %v2407_v48 = vshrl.u32 %v2199_v25, 16  ;;  %v2695_v33 = vld [vmem:[#allocation2 + $0x64] sm:$0xf]  ;;  %v3209_v4 = vor.u32 %v3208_v12, %v3205_v63  ;;  %v3219_v28 = vor.u32 %v3218_v58, %v3214_v13  ;;  %v2413_v53 = vshll.u32 %v2200_v1, 16  ;;  %v2696_v35 = vld [vmem:[#allocation2 + $0x68] sm:$0x1] }
 0x24f   : > { %v2396_v5 = vrot.slane %v2394_v15, 4  ;;  %v13494_v38 = vld [vmem:[#allocation3 + $0x184] ss:$36 sps:$4 sm:$0xff]   ;;  %v2399_v40 = vrot.slane %v2397_v52, 5  ;;  %v2405_v57 = vrot.slane %v2403_v27, 5  ;;  %v11593_v30 = vrot.slane %v2694_v2, 9  ;;  %v12362_v27 = vpop.f32.mrf.mxu1 }
 0x250   : > { %v13496_v39 = vld [vmem:[#allocation3 + $0x180] ss:$36 sps:$4 sm:$0xff]   ;;  %v3210_v50 = vrot.slane %v3209_v4, 4  ;;  %v3220_v51 = vrot.slane %v3219_v28, 4  ;;  %v2409_v60 = vrot.slane %v2407_v48, 4  ;;  %5812 = vmatprep.mubr.bf16.mxu1 %v13494_v38  ;;  %v2415_v1 = vrot.slane %v2413_v53, 5 }
 0x251   : > { %v2960_v63 = vld [vmem:[#allocation2 + $0x6c] sm:$0xf]  ;;  %v2400_v25 = vor.u32 %v2399_v40, %v2396_v5  ;;  %v2820_v24 = vrot.slane %v2695_v33, 5  ;;  %v2961_v12 = vld [vmem:[#allocation2 + $0x70] sm:$0xf]  ;;  %5813 = vmatmul.mubr.bf16.gmra.mxu1 %v13496_v39  ;;  %v2823_v58 = vrot.slane %v2696_v35, 5  ;;  %v15558_v4 = vadd.f32 %v12250_v55, %v12249_v49 }
 0x252   : > { %2992 = vst.msk [vmem:[#allocation3 + $0x210] sm:$0xf] %vm1157_vm2, %v2960_v63  ;;  %v3215_v22 = vsel %vm14676_vm9, %v3210_v50, %v3214_v13  ;;  %v3225_v32 = vsel %vm14676_vm9, %v3220_v51, %v3224_v46  ;;  %v2410_v0 = vor.u32 %v2409_v60, %v2405_v57  ;;  %2993 = vst.msk [vmem:[#allocation3 + $0x234] sm:$0xf] %vm1157_vm2, %v2961_v12  ;;  %v3031_v15 = vld [vmem:[#allocation2 + $0x6c] sm:$0xf]  ;;  %v15560_v46 = vpop.f32.mrf.mxu0 }
 0x253   : > { %v3032_v52 = vld [vmem:[#allocation2 + $0x70] sm:$0xf]  ;;  %v13497_v2 = vld [vmem:[#allocation3 + $0x1c4] ss:$36 sps:$4 sm:$0xff]   ;;  %3486 = vst.msk [vmem:[#allocation3 + $0x1cc] sm:$0xf] %vm1157_vm2, %v3215_v22  ;;  %v2821_v13 = vsel %vm14682_vm12, %v11593_v30, %v2820_v24  ;;  %v15562_v28 = vadd.f32 %v12362_v27, %v12361_v8 }
 0x254   : > { %v13499_v48 = vld [vmem:[#allocation3 + $0x1c0] ss:$36 sps:$4 sm:$0xff]   ;;  %3487 = vst.msk [vmem:[#allocation3 + $0x1f0] sm:$0xf] %vm1157_vm2, %v3225_v32  ;;  %v2401_v33 = vrot.slane %v2400_v25, 4  ;;  %v2411_v5 = vrot.slane %v2410_v0, 4  ;;  %5659 = vmatprep.mubr.bf16.mxu0 %v13497_v2  ;;  %v15567_v63 = vpop.f32.mrf.mxu0  ;;  %v15569_v25 = vpop.f32.mrf.mxu1 }
 0x255   : > { %v2822_v53 = vrot.slane %v2820_v24, 4  ;;  %2927 = vst.msk [vmem:[#allocation3 + $0x20c] sm:$0xf] %vm1157_vm2, %v2821_v13  ;;  %v3033_v35 = vld [vmem:[#allocation2 + $0x74] sm:$0x1]  ;;  %v3227_v38 = vshrl.u32 %v3031_v15, 16  ;;  %5660 = vmatmul.mubr.bf16.gmra.mxu0 %v13499_v48 }
 0x256   : > { %v3230_v39 = vshll.u32 %v3031_v15, 16  ;;  %v2406_v40 = vsel %vm14676_vm9, %v2401_v33, %v2405_v57  ;;  %v3236_v50 = vshll.u32 %v3032_v52, 16  ;;  %v3240_v51 = vshrl.u32 %v3032_v52, 16  ;;  %v2201_v49 = vld [vmem:[#allocation2 + $0x6c] sm:$0xf] }
 0x257   : > { %v3246_v60 = vshll.u32 %v3033_v35, 16  ;;  %v2416_v8 = vsel %vm14676_vm9, %v2411_v5, %v2415_v1  ;;  %2655 = vst.msk [vmem:[#allocation3 + $0x208] sm:$0xf] %vm1157_vm2, %v2406_v40  ;;  %v2824_v30 = vsel %vm14682_vm12, %v2822_v53, %v2823_v58  ;;  %v3229_v24 = vrot.slane %v3227_v38, 4  ;;  %v2202_v57 = vld [vmem:[#allocation2 + $0x70] sm:$0xf]  ;;  %v12255_v38 = vpop.f32.mrf.mxu0 }
 0x258   : > { %v3232_v12 = vrot.slane %v3230_v39, 5  ;;  %v2203_v55 = vld [vmem:[#allocation2 + $0x74] sm:$0x1]  ;;  %2656 = vst.msk [vmem:[#allocation3 + $0x22c] sm:$0xf] %vm1157_vm2, %v2416_v8  ;;  %v3238_v22 = vrot.slane %v3236_v50, 5  ;;  %v12365_v39 = vpop.f32.mrf.mxu1  ;;  %v15580_v50 = vadd.f32 %v15455_v37, %v15441_v21 }
 0x259   : > { %2928 = vst.msk [vmem:[#allocation3 + $0x230] sm:$0xf] %vm1157_vm2, %v2824_v30  ;;  %v3242_v32 = vrot.slane %v3240_v51, 4  ;;  %v3248_v0 = vrot.slane %v3246_v60, 5  ;;  %v2418_v15 = vshrl.u32 %v2201_v49, 16  ;;  %v2421_v1 = vshll.u32 %v2201_v49, 16 }
 0x25a   : > { %v2697_v52 = vld [vmem:[#allocation2 + $0x6c] sm:$0xe]  ;;  %v3233_v27 = vor.u32 %v3232_v12, %v3229_v24  ;;  %v2427_v2 = vshll.u32 %v2202_v57, 16  ;;  %v2431_v48 = vshrl.u32 %v2202_v57, 16  ;;  %v2698_v33 = vld [vmem:[#allocation2 + $0x70] sm:$0xf]  ;;  %v15584_v51 = vadd.f32 %v15491_v29, %v15474_v45 }
 0x25b   : > { %v3243_v13 = vor.u32 %v3242_v32, %v3238_v22  ;;  %v2420_v58 = vrot.slane %v2418_v15, 4  ;;  %v2437_v5 = vshll.u32 %v2203_v55, 16  ;;  %v2699_v53 = vld [vmem:[#allocation2 + $0x74] sm:$0x1]  ;;  %v11594_v35 = vrot.slane %v2697_v52, 9  ;;  %v12256_v55 = vpop.f32.mrf.mxu0 }
 0x25c   : > { %v13501_v40 = vld [vmem:[#allocation3 + $0x1cc] ss:$36 sps:$4 sm:$0xff]   ;;  %v3234_v8 = vrot.slane %v3233_v27, 4  ;;  %v2423_v30 = vrot.slane %v2421_v1, 5  ;;  %v2429_v24 = vrot.slane %v2427_v2, 5  ;;  %v2433_v12 = vrot.slane %v2431_v48, 4 }
 0x25d   : > { %v13503_v60 = vld [vmem:[#allocation3 + $0x1c8] ss:$36 sps:$4 sm:$0xff]   ;;  %v3244_v49 = vrot.slane %v3243_v13, 4  ;;  %v15588_v57 = vadd.f32 %v15493_v34, %v15482_v61  ;;  %5820 = vmatprep.mubr.bf16.mxu1 %v13501_v40  ;;  %v2439_v21 = vrot.slane %v2437_v5, 5  ;;  %v2827_v37 = vrot.slane %v2698_v33, 5  ;;  %v15597_v34 = vpop.f32.mrf.mxu1 }
 0x25e   : > { %v3239_v32 = vsel %vm14676_vm9, %v3234_v8, %v3238_v22  ;;  %v2424_v15 = vor.u32 %v2423_v30, %v2420_v58  ;;  %5821 = vmatmul.mubr.bf16.gmra.mxu1 %v13503_v60  ;;  %v2434_v29 = vor.u32 %v2433_v12, %v2429_v24  ;;  %v2830_v52 = vrot.slane %v2699_v53, 5  ;;  %v2962_v27 = vld [vmem:[#allocation2 + $0x78] sm:$0xf]  ;;  %v2963_v1 = vld [vmem:[#allocation2 + $0x7c] sm:$0xf]  ;;  %v15612_v58 = vpop.f32.mrf.mxu0 }
 0x25f   : > { %v3249_v45 = vsel %vm14676_vm9, %v3244_v49, %v3248_v0  ;;  %3488 = vst.msk [vmem:[#allocation3 + $0x214] sm:$0xf] %vm1157_vm2, %v3239_v32  ;;  %v15595_v61 = vadd.f32 %v12256_v55, %v12255_v38  ;;  %v13506_v48 = vld [vmem:[#allocation3 + $0x208] ss:$36 sps:$4 sm:$0xff]   ;;  %v2828_v33 = vsel %vm14682_vm12, %v11594_v35, %v2827_v37  ;;  %2994 = vst.msk [vmem:[#allocation3 + $0x258] sm:$0xf] %vm1157_vm2, %v2962_v27 }
 0x260   : > { %v13504_v2 = vld [vmem:[#allocation3 + $0x20c] ss:$36 sps:$4 sm:$0xff]   ;;  %3489 = vst.msk [vmem:[#allocation3 + $0x238] sm:$0xf] %vm1157_vm2, %v3249_v45  ;;  %v2425_v22 = vrot.slane %v2424_v15, 4  ;;  %v15606_v0 = vadd.f32 %v15531_v11, %v15507_v31  ;;  %v15610_v13 = vadd.f32 %v15534_v59, %v15519_v47  ;;  %v2435_v5 = vrot.slane %v2434_v29, 4  ;;  %v15622_v31 = vpop.f32.mrf.mxu1  ;;  %v15642_v45 = vpop.f32.mrf.mxu0 }
 0x261   : > { %2995 = vst.msk [vmem:[#allocation3 + $0x27c] sm:$0xf] %vm1157_vm2, %v2963_v1  ;;  %v2829_v53 = vrot.slane %v2827_v37, 4  ;;  %2929 = vst.msk [vmem:[#allocation3 + $0x254] sm:$0xf] %vm1157_vm2, %v2828_v33  ;;  %v15617_v40 = vadd.f32 %v15567_v63, %v15560_v46  ;;  %v15620_v8 = vadd.f32 %v12365_v39, %v15569_v25  ;;  %5667 = vmatprep.mubr.bf16.mxu0 %v13504_v2 }
 0x262   : > { %v3034_v38 = vld [vmem:[#allocation2 + $0x78] sm:$0xf]  ;;  %v3035_v35 = vld [vmem:[#allocation2 + $0x7c] sm:$0xf]  ;;  %v2430_v47 = vsel %vm14676_vm9, %v2425_v22, %v2429_v24  ;;  %v3036_v11 = vld [vmem:[#allocation2 + $0x80] sm:$0x1]  ;;  %5668 = vmatmul.mubr.bf16.gmra.mxu0 %v13506_v48  ;;  %v2440_v49 = vsel %vm14676_vm9, %v2435_v5, %v2439_v21  ;;  %v15636_v12 = vpop.f32.mrf.mxu1 }
 0x263   : > { %v3251_v59 = vshrl.u32 %v3034_v38, 16  ;;  %v3254_v30 = vshll.u32 %v3034_v38, 16  ;;  %v3260_v60 = vshll.u32 %v3035_v35, 16  ;;  %2657 = vst.msk [vmem:[#allocation3 + $0x250] sm:$0xf] %vm1157_vm2, %v2430_v47  ;;  %v2831_v46 = vsel %vm14682_vm12, %v2829_v53, %v2830_v52 }
 0x264   : > { %v3264_v63 = vshrl.u32 %v3035_v35, 16  ;;  %v3270_v25 = vshll.u32 %v3036_v11, 16  ;;  %v15634_v39 = vld [vmem:[%s18381_s2] ss:$0 sm:$0xff]  ;;  %v2204_v24 = vld [vmem:[#allocation2 + $0x78] sm:$0xf] }
 0x265   : > { %2658 = vst.msk [vmem:[#allocation3 + $0x274] sm:$0xf] %vm1157_vm2, %v2440_v49  ;;  %2930 = vst.msk [vmem:[#allocation3 + $0x278] sm:$0xf] %vm1157_vm2, %v2831_v46  ;;  %v3253_v55 = vrot.slane %v3251_v59, 4  ;;  %v3256_v32 = vrot.slane %v3254_v30, 5  ;;  %v5292_v21 = vadd.f32 %v15332_v6, %v15634_v39  ;;  %v5295_v27 = vadd.f32 %v15517_v41, %v15634_v39  ;;  %v15654_v41 = vpop.f32.mrf.mxu1 }
 0x266   : > { %v3262_v15 = vrot.slane %v3260_v60, 5  ;;  %v2205_v37 = vld [vmem:[#allocation2 + $0x7c] sm:$0xf]  ;;  %v3266_v29 = vrot.slane %v3264_v63, 4  ;;  %v3272_v52 = vrot.slane %v3270_v25, 5  ;;  %v2442_v2 = vshrl.u32 %v2204_v24, 16  ;;  %v15656_v63 = vpop.f32.mrf.mxu0 }
 0x267   : > { %v2206_v1 = vld [vmem:[#allocation2 + $0x80] sm:$0x1]  ;;  %v3257_v48 = vor.u32 %v3256_v32, %v3253_v55  ;;  %v15647_v22 = vadd.f32 %v15377_v16, %v5292_v21  ;;  %v2445_v33 = vshll.u32 %v2204_v24, 16  ;;  %v2451_v5 = vshll.u32 %v2205_v37, 16  ;;  %v2700_v53 = vld [vmem:[#allocation2 + $0x78] sm:$0xe] }
 0x268   : > { %v13507_v38 = vld [vmem:[#allocation3 + $0x214] ss:$36 sps:$4 sm:$0xff]   ;;  %v3267_v6 = vor.u32 %v3266_v29, %v3262_v15  ;;  %v2444_v47 = vrot.slane %v2442_v2, 4  ;;  %v15650_v11 = vadd.f32 %v15529_v3, %v5295_v27  ;;  %v5300_v59 = vadd.f32 %v15408_v14, %v15634_v39  ;;  %v2701_v46 = vld [vmem:[#allocation2 + $0x7c] sm:$0xf] }
 0x269   : > { %18453 = vst [vmem:[#allocation15_spill] sm:$0xff] %v15647_v22  ;;  %v13509_v35 = vld [vmem:[#allocation3 + $0x210] ss:$36 sps:$4 sm:$0xff]   ;;  %v3258_v30 = vrot.slane %v3257_v48, 4  ;;  %v2447_v60 = vrot.slane %v2445_v33, 5  ;;  %v2453_v49 = vrot.slane %v2451_v5, 5  ;;  %5828 = vmatprep.mubr.bf16.mxu1 %v13507_v38  ;;  %v15660_v48 = vpop.f32.mrf.mxu0  ;;  %v15671_v38 = vpop.f32.mrf.mxu1 }
 0x26a   : > { %18454 = vst [vmem:[#allocation16_spill] sm:$0xff] %v15650_v11  ;;  %v2455_v16 = vshrl.u32 %v2205_v37, 16  ;;  %v3268_v25 = vrot.slane %v3267_v6, 4  ;;  %v2461_v24 = vshll.u32 %v2206_v1, 16  ;;  %v2702_v55 = vld [vmem:[#allocation2 + $0x80] sm:$0x1]  ;;  %5829 = vmatmul.mubr.bf16.gmra.mxu1 %v13509_v35 }
 0x26b   : > { %v11595_v32 = vrot.slane %v2700_v53, 9  ;;  %v2834_v21 = vrot.slane %v2701_v46, 5  ;;  %v3263_v3 = vsel %vm14676_vm9, %v3258_v30, %v3262_v15  ;;  %v2448_v14 = vor.u32 %v2447_v60, %v2444_v47  ;;  %v2964_v2 = vld [vmem:[#allocation2 + $0x84] sm:$0xf]  ;;  %v2705_v22 = vld [vmem:[#allocation2 + $0x8c] sm:$0x1] }
 0x26c   : > { %v2457_v29 = vrot.slane %v2455_v16, 4  ;;  %v2837_v27 = vrot.slane %v2702_v55, 5  ;;  %v13510_v37 = vld [vmem:[#allocation3 + $0x254] ss:$36 sps:$4 sm:$0xff]   ;;  %v3273_v5 = vsel %vm14676_vm9, %v3268_v25, %v3272_v52  ;;  %3490 = vst.msk [vmem:[#allocation3 + $0x25c] sm:$0xf] %vm1157_vm2, %v3263_v3  ;;  %v15669_v15 = vadd.f32 %v15405_v9, %v5300_v59  ;;  %v15682_v55 = vpop.f32.mrf.mxu0 }
 0x26d   : > { %v13512_v33 = vld [vmem:[#allocation3 + $0x250] ss:$36 sps:$4 sm:$0xff]   ;;  %v2463_v1 = vrot.slane %v2461_v24, 5  ;;  %v2835_v53 = vsel %vm14682_vm12, %v11595_v32, %v2834_v21  ;;  %2996 = vst.msk [vmem:[#allocation3 + $0x2a0] sm:$0xf] %vm1157_vm2, %v2964_v2  ;;  %v2449_v35 = vrot.slane %v2448_v14, 4  ;;  %v5303_v60 = vadd.f32 %v15538_v43, %v15634_v39  ;;  %5675 = vmatprep.mubr.bf16.mxu0 %v13510_v37  ;;  %v15684_v32 = vpop.f32.mrf.mxu1 }
 0x26e   : > { %18455 = vst [vmem:[#allocation17_spill] sm:$0xff] %v15669_v15  ;;  %3491 = vst.msk [vmem:[#allocation3 + $0x280] sm:$0xf] %vm1157_vm2, %v3273_v5  ;;  %v2458_v6 = vor.u32 %v2457_v29, %v2453_v49  ;;  %v2836_v47 = vrot.slane %v2834_v21, 4  ;;  %v2965_v52 = vld [vmem:[#allocation2 + $0x88] sm:$0xf]  ;;  %v5308_v25 = vadd.f32 %v15435_v17, %v15634_v39  ;;  %v5311_v24 = vadd.f32 %v15580_v50, %v15634_v39 }
 0x26f   : > { %2931 = vst.msk [vmem:[#allocation3 + $0x29c] sm:$0xf] %vm1157_vm2, %v2835_v53  ;;  %v3037_v30 = vld [vmem:[#allocation2 + $0x84] sm:$0xf]  ;;  %2997 = vst.msk [vmem:[#allocation3 + $0x2c4] sm:$0xf] %vm1157_vm2, %v2965_v52  ;;  %5676 = vmatmul.mubr.bf16.gmra.mxu0 %v13512_v33  ;;  %v2454_v43 = vsel %vm14676_vm9, %v2449_v35, %v2453_v49  ;;  %v15692_v33 = vpop.f32.mrf.mxu1  ;;  %v15702_v11 = vadd.f32 %v15542_v44, %v5303_v60 }
 0x270   : > { %v3038_v16 = vld [vmem:[#allocation2 + $0x88] sm:$0xf]  ;;  %v3039_v9 = vld [vmem:[#allocation2 + $0x8c] sm:$0x1]  ;;  %v3275_v59 = vshrl.u32 %v3037_v30, 16  ;;  %v3278_v46 = vshll.u32 %v3037_v30, 16  ;;  %v2838_v3 = vsel %vm14682_vm12, %v2836_v47, %v2837_v27 }
 0x271   : > { %v2459_v21 = vrot.slane %v2458_v6, 4  ;;  %v3284_v14 = vshll.u32 %v3038_v16, 16  ;;  %v2207_v29 = vld [vmem:[#allocation2 + $0x84] sm:$0xf]  ;;  %v2208_v2 = vld [vmem:[#allocation2 + $0x88] sm:$0xf] }
 0x272   : > { %2659 = vst.msk [vmem:[#allocation3 + $0x298] sm:$0xf] %vm1157_vm2, %v2454_v43  ;;  %2932 = vst.msk [vmem:[#allocation3 + $0x2c0] sm:$0xf] %vm1157_vm2, %v2838_v3  ;;  %v3277_v17 = vrot.slane %v3275_v59, 4  ;;  %v3280_v50 = vrot.slane %v3278_v46, 5  ;;  %v15697_v46 = vpop.f32.mrf.mxu0 }
 0x273   : > { %v3288_v37 = vshrl.u32 %v3038_v16, 16  ;;  %v3294_v5 = vshll.u32 %v3039_v9, 16  ;;  %v2209_v53 = vld [vmem:[#allocation2 + $0x8c] sm:$0x1]  ;;  %v2464_v49 = vsel %vm14676_vm9, %v2459_v21, %v2463_v1  ;;  %v3286_v35 = vrot.slane %v3284_v14, 5  ;;  %v15699_v16 = vpop.f32.mrf.mxu1 }
 0x274   : > { %v2466_v6 = vshrl.u32 %v2207_v29, 16  ;;  %v2469_v27 = vshll.u32 %v2207_v29, 16  ;;  %v2703_v47 = vld [vmem:[#allocation2 + $0x84] sm:$0xe]  ;;  %2660 = vst.msk [vmem:[#allocation3 + $0x2bc] sm:$0xf] %vm1157_vm2, %v2464_v49  ;;  %v3281_v52 = vor.u32 %v3280_v50, %v3277_v17  ;;  %v15705_v17 = vadd.f32 %v15443_v26, %v5308_v25 }
 0x275   : > { %v3290_v30 = vrot.slane %v3288_v37, 4  ;;  %v3296_v43 = vrot.slane %v3294_v5, 5  ;;  %v2475_v3 = vshll.u32 %v2208_v2, 16  ;;  %v2704_v59 = vld [vmem:[#allocation2 + $0x88] sm:$0xf]  ;;  %v2479_v10 = vshrl.u32 %v2208_v2, 16 }
 0x276   : > { %v2468_v9 = vrot.slane %v2466_v6, 4  ;;  %v2471_v20 = vrot.slane %v2469_v27, 5  ;;  %v2485_v15 = vshll.u32 %v2209_v53, 16  ;;  %v13514_v1 = vld [vmem:[#allocation3 + $0x25c] ss:$36 sps:$4 sm:$0xff]   ;;  %v3282_v14 = vrot.slane %v3281_v52, 4  ;;  %v15709_v52 = vpop.f32.mrf.mxu0 }
 0x277   : > { %v13516_v21 = vld [vmem:[#allocation3 + $0x258] ss:$36 sps:$4 sm:$0xff]   ;;  %v3291_v29 = vor.u32 %v3290_v30, %v3286_v35  ;;  %18456 = vst [vmem:[#allocation18_spill] sm:$0xff] %v15705_v17  ;;  %v2477_v37 = vrot.slane %v2475_v3, 5  ;;  %v2481_v5 = vrot.slane %v2479_v10, 4  ;;  %5836 = vmatprep.mubr.bf16.mxu1 %v13514_v1  ;;  %v11596_v6 = vrot.slane %v2703_v47, 9  ;;  %v15711_v30 = vpop.f32.mrf.mxu1 }
 0x278   : > { %v2472_v50 = vor.u32 %v2471_v20, %v2468_v9  ;;  %v2487_v49 = vrot.slane %v2485_v15, 5  ;;  %v3287_v2 = vsel %vm14676_vm9, %v3282_v14, %v3286_v35  ;;  %v2841_v27 = vrot.slane %v2704_v59, 5  ;;  %5837 = vmatmul.mubr.bf16.gmra.mxu1 %v13516_v21  ;;  %v2966_v35 = vld [vmem:[#allocation2 + $0x90] sm:$0xf]  ;;  %v2967_v47 = vld [vmem:[#allocation2 + $0x94] sm:$0xf]  ;;  %v15723_v59 = vpop.f32.mrf.mxu0 }
 0x279   : > { %v3292_v53 = vrot.slane %v3291_v29, 4  ;;  %3492 = vst.msk [vmem:[#allocation3 + $0x2a4] sm:$0xf] %vm1157_vm2, %v3287_v2  ;;  %v2482_v20 = vor.u32 %v2481_v5, %v2477_v37  ;;  %v2844_v44 = vrot.slane %v2705_v22, 5  ;;  %v15715_v10 = vadd.f32 %v15546_v23, %v5311_v24  ;;  %v15725_v9 = vpop.f32.mrf.mxu1  ;;  %v13517_v22 = vld [vmem:[#allocation3 + $0x29c] ss:$36 sps:$4 sm:$0xff]  }
 0x27a   : > { %v2473_v26 = vrot.slane %v2472_v50, 4  ;;  %v2842_v60 = vsel %vm14682_vm12, %v11596_v6, %v2841_v27  ;;  %v2843_v25 = vrot.slane %v2841_v27, 4  ;;  %v5316_v3 = vadd.f32 %v15463_v18, %v15634_v39  ;;  %2998 = vst.msk [vmem:[#allocation3 + $0x2e8] sm:$0xf] %vm1157_vm2, %v2966_v35  ;;  %2999 = vst.msk [vmem:[#allocation3 + $0x30c] sm:$0xf] %vm1157_vm2, %v2967_v47  ;;  %v15747_v2 = vpop.f32.mrf.mxu0  ;;  %5683 = vmatprep.mubr.bf16.mxu0 %v13517_v22 }
 0x27b   : > { %18457 = vst [vmem:[#allocation19_spill] sm:$0xff] %v15715_v10  ;;  %v3297_v15 = vsel %vm14676_vm9, %v3292_v53, %v3296_v43  ;;  %v13519_v1 = vld [vmem:[#allocation3 + $0x298] ss:$36 sps:$4 sm:$0xff]   ;;  %v2483_v24 = vrot.slane %v2482_v20, 4  ;;  %2933 = vst.msk [vmem:[#allocation3 + $0x2e4] sm:$0xf] %vm1157_vm2, %v2842_v60  ;;  %v5319_v18 = vadd.f32 %v15584_v51, %v15634_v39  ;;  %v5324_v43 = vadd.f32 %v15501_v42, %v15634_v39  ;;  %v15761_v60 = vpop.f32.mrf.mxu1 }
 0x27c   : > { %3493 = vst.msk [vmem:[#allocation3 + $0x2c8] sm:$0xf] %vm1157_vm2, %v3297_v15  ;;  %v2478_v23 = vsel %vm14676_vm9, %v2473_v26, %v2477_v37  ;;  %v2845_v21 = vsel %vm14682_vm12, %v2843_v25, %v2844_v44  ;;  %v3040_v14 = vld [vmem:[#allocation2 + $0x90] sm:$0xf]  ;;  %v3041_v29 = vld [vmem:[#allocation2 + $0x94] sm:$0xf]  ;;  %v15741_v37 = vadd.f32 %v15478_v56, %v5316_v3  ;;  %v5327_v5 = vadd.f32 %v15606_v0, %v15634_v39 }
 0x27d   : > { %2661 = vst.msk [vmem:[#allocation3 + $0x2e0] sm:$0xf] %vm1157_vm2, %v2478_v23  ;;  %v3042_v50 = vld [vmem:[#allocation2 + $0x98] sm:$0x1]  ;;  %v5332_v51 = vadd.f32 %v15558_v4, %v15634_v39  ;;  %v2488_v42 = vsel %vm14676_vm9, %v2483_v24, %v2487_v49  ;;  %2934 = vst.msk [vmem:[#allocation3 + $0x308] sm:$0xf] %vm1157_vm2, %v2845_v21  ;;  %5684 = vmatmul.mubr.bf16.gmra.mxu0 %v13519_v1  ;;  %v15754_v4 = vadd.f32 %v15588_v57, %v5319_v18  ;;  %v15759_v49 = vpop.f32.mrf.mxu0 }
 0x27e   : > { %18458 = vst [vmem:[#allocation20_spill] sm:$0xff] %v15741_v37  ;;  %v3299_v53 = vshrl.u32 %v3040_v14, 16  ;;  %v3302_v6 = vshll.u32 %v3040_v14, 16  ;;  %v3308_v27 = vshll.u32 %v3041_v29, 16  ;;  %v2210_v26 = vld [vmem:[#allocation2 + $0x90] sm:$0xf]  ;;  %v15757_v15 = vadd.f32 %v15509_v36, %v5324_v43 }
 0x27f   : > { %2662 = vst.msk [vmem:[#allocation3 + $0x304] sm:$0xf] %vm1157_vm2, %v2488_v42  ;;  %v3312_v56 = vshrl.u32 %v3041_v29, 16  ;;  %v3318_v0 = vshll.u32 %v3042_v50, 16  ;;  %v2211_v20 = vld [vmem:[#allocation2 + $0x94] sm:$0xf]  ;;  %v15763_v36 = vpop.f32.mrf.mxu0 }
 0x280   : > { %v2212_v44 = vld [vmem:[#allocation2 + $0x98] sm:$0x1]  ;;  %18459 = vst [vmem:[#allocation21_spill] sm:$0xff] %v15754_v4  ;;  %18460 = vst [vmem:[#allocation22_spill] sm:$0xff] %v15757_v15  ;;  %v3301_v25 = vrot.slane %v3299_v53, 4  ;;  %v3304_v35 = vrot.slane %v3302_v6, 5  ;;  %v15766_v53 = vadd.f32 %v15610_v13, %v5327_v5  ;;  %v15769_v6 = vadd.f32 %v15562_v28, %v5332_v51 }
 0x281   : > { %v3310_v47 = vrot.slane %v3308_v27, 5  ;;  %v2490_v3 = vshrl.u32 %v2210_v26, 16  ;;  %v2706_v22 = vld [vmem:[#allocation2 + $0x90] sm:$0xe]  ;;  %v3314_v1 = vrot.slane %v3312_v56, 4  ;;  %v3320_v23 = vrot.slane %v3318_v0, 5  ;;  %v15771_v27 = vpop.f32.mrf.mxu1 }
 0x282   : > { %v2493_v24 = vshll.u32 %v2210_v26, 16  ;;  %v2499_v21 = vshll.u32 %v2211_v20, 16  ;;  %v3305_v14 = vor.u32 %v3304_v35, %v3301_v25  ;;  %v2503_v57 = vshrl.u32 %v2211_v20, 16  ;;  %v2707_v50 = vld [vmem:[#allocation2 + $0x94] sm:$0xf]  ;;  %18461 = vst [vmem:[#allocation23_spill] sm:$0xff] %v15766_v53 }
 0x283   : > { %v2492_v29 = vrot.slane %v2490_v3, 4  ;;  %v2509_v18 = vshll.u32 %v2212_v44, 16  ;;  %v13520_v43 = vld [vmem:[#allocation3 + $0x2a4] ss:$36 sps:$4 sm:$0xff]   ;;  %v3315_v15 = vor.u32 %v3314_v1, %v3310_v47  ;;  %18462 = vst [vmem:[#allocation24_spill] sm:$0xff] %v15769_v6  ;;  %v11597_v3 = vrot.slane %v2706_v22, 9  ;;  %v15773_v1 = vpop.f32.mrf.mxu0 }
 0x284   : > { %v13522_v42 = vld [vmem:[#allocation3 + $0x2a0] ss:$36 sps:$4 sm:$0xff]   ;;  %v2495_v4 = vrot.slane %v2493_v24, 5  ;;  %v3306_v26 = vrot.slane %v3305_v14, 4  ;;  %v2501_v56 = vrot.slane %v2499_v21, 5  ;;  %v2505_v0 = vrot.slane %v2503_v57, 4  ;;  %5844 = vmatprep.mubr.bf16.mxu1 %v13520_v43 }
 0x285   : > { %v2511_v20 = vrot.slane %v2509_v18, 5  ;;  %v3316_v44 = vrot.slane %v3315_v15, 4  ;;  %v2708_v35 = vld [vmem:[#allocation2 + $0x98] sm:$0x1]  ;;  %v2848_v37 = vrot.slane %v2707_v50, 5  ;;  %5845 = vmatmul.mubr.bf16.gmra.mxu1 %v13522_v42  ;;  %v5335_v21 = vadd.f32 %v15617_v40, %v15634_v39  ;;  %v15784_v18 = vpop.f32.mrf.mxu1 }
 0x286   : > { %v2496_v25 = vor.u32 %v2495_v4, %v2492_v29  ;;  %v13523_v13 = vld [vmem:[#allocation3 + $0x2e4] ss:$36 sps:$4 sm:$0xff]   ;;  %v3311_v28 = vsel %vm14676_vm9, %v3306_v26, %v3310_v47  ;;  %v2506_v51 = vor.u32 %v2505_v0, %v2501_v56  ;;  %v2851_v24 = vrot.slane %v2708_v35, 5  ;;  %v3045_v0 = vld [vmem:[#allocation2 + $0xa4] sm:$0x1] }
 0x287   : > { %v13525_v5 = vld [vmem:[#allocation3 + $0x2e0] ss:$36 sps:$4 sm:$0xff]   ;;  %v3321_v15 = vsel %vm14676_vm9, %v3316_v44, %v3320_v23  ;;  %3494 = vst.msk [vmem:[#allocation3 + $0x2ec] sm:$0xf] %vm1157_vm2, %v3311_v28  ;;  %v2849_v22 = vsel %vm14682_vm12, %v11597_v3, %v2848_v37  ;;  %v2850_v14 = vrot.slane %v2848_v37, 4  ;;  %5691 = vmatprep.mubr.bf16.mxu0 %v13523_v13  ;;  %v15791_v50 = vadd.f32 %v15620_v8, %v5335_v21  ;;  %v15801_v3 = vpop.f32.mrf.mxu0  ;;  %v15803_v8 = vpop.f32.mrf.mxu1 }
 0x288   : > { %v2497_v4 = vrot.slane %v2496_v25, 4  ;;  %v2968_v29 = vld [vmem:[#allocation2 + $0x9c] sm:$0xf]  ;;  %v2969_v57 = vld [vmem:[#allocation2 + $0xa0] sm:$0xf]  ;;  %v2507_v47 = vrot.slane %v2506_v51, 4  ;;  %v5340_v37 = vadd.f32 %v15595_v61, %v15634_v39  ;;  %v12369_v43 = vadd.f32 %v15622_v31, %v15597_v34  ;;  %5692 = vmatmul.mubr.bf16.gmra.mxu0 %v13525_v5 }
 0x289   : > { %3495 = vst.msk [vmem:[#allocation3 + $0x310] sm:$0xf] %vm1157_vm2, %v3321_v15  ;;  %2935 = vst.msk [vmem:[#allocation3 + $0x32c] sm:$0xf] %vm1157_vm2, %v2849_v22  ;;  %v3043_v40 = vld [vmem:[#allocation2 + $0x9c] sm:$0xf]  ;;  %v2852_v26 = vsel %vm14682_vm12, %v2850_v14, %v2851_v24  ;;  %v12275_v7 = vadd.f32 %v15773_v1, %v15763_v36 }
 0x28a   : > { %3000 = vst.msk [vmem:[#allocation3 + $0x330] sm:$0xf] %vm1157_vm2, %v2968_v29  ;;  %3001 = vst.msk [vmem:[#allocation3 + $0x354] sm:$0xf] %vm1157_vm2, %v2969_v57  ;;  %v3044_v23 = vld [vmem:[#allocation2 + $0xa0] sm:$0xf]  ;;  %v2502_v42 = vsel %vm14676_vm9, %v2497_v4, %v2501_v56  ;;  %v2512_v61 = vsel %vm14676_vm9, %v2507_v47, %v2511_v20  ;;  %v15810_v29 = vpop.f32.mrf.mxu1  ;;  %v15814_v6 = vadd.f32 %v12369_v43, %v5340_v37 }
 0x28b   : > { %18463 = vst [vmem:[#allocation25_spill] sm:$0xff] %v15791_v50  ;;  %v3323_v44 = vshrl.u32 %v3043_v40, 16  ;;  %v3326_v25 = vshll.u32 %v3043_v40, 16  ;;  %v2213_v35 = vld [vmem:[#allocation2 + $0x9c] sm:$0xf]  ;;  %v3332_v34 = vshll.u32 %v3044_v23, 16 }
 0x28c   : > { %2663 = vst.msk [vmem:[#allocation3 + $0x328] sm:$0xf] %vm1157_vm2, %v2502_v42  ;;  %2936 = vst.msk [vmem:[#allocation3 + $0x350] sm:$0xf] %vm1157_vm2, %v2852_v26  ;;  %v3336_v31 = vshrl.u32 %v3044_v23, 16  ;;  %v3342_v56 = vshll.u32 %v3045_v0, 16  ;;  %v15812_v26 = vpop.f32.mrf.mxu0  ;;  %v15818_v53 = vpop.f32.mrf.mxu1 }
 0x28d   : > { %v2214_v13 = vld [vmem:[#allocation2 + $0xa0] sm:$0xf]  ;;  %2664 = vst.msk [vmem:[#allocation3 + $0x34c] sm:$0xf] %vm1157_vm2, %v2512_v61  ;;  %v3325_v5 = vrot.slane %v3323_v44, 4  ;;  %v3328_v28 = vrot.slane %v3326_v25, 5 }
 0x28e   : > { %v2215_v51 = vld [vmem:[#allocation2 + $0xa4] sm:$0x1]  ;;  %v2514_v24 = vshrl.u32 %v2213_v35, 16  ;;  %v2517_v21 = vshll.u32 %v2213_v35, 16  ;;  %v3334_v15 = vrot.slane %v3332_v34, 5  ;;  %v3338_v4 = vrot.slane %v3336_v31, 4 }
 0x28f   : > { %v3344_v22 = vrot.slane %v3342_v56, 5  ;;  %v2523_v14 = vshll.u32 %v2214_v13, 16  ;;  %v2709_v20 = vld [vmem:[#allocation2 + $0x9c] sm:$0xe]  ;;  %v3329_v57 = vor.u32 %v3328_v28, %v3325_v5  ;;  %v2527_v23 = vshrl.u32 %v2214_v13, 16  ;;  %18464 = vst [vmem:[#allocation26_spill] sm:$0xff] %v15814_v6 }
 0x290   : > { %v2516_v47 = vrot.slane %v2514_v24, 4  ;;  %v2519_v40 = vrot.slane %v2517_v21, 5  ;;  %v2710_v42 = vld [vmem:[#allocation2 + $0xa0] sm:$0xf]  ;;  %v3339_v0 = vor.u32 %v3338_v4, %v3334_v15  ;;  %v2533_v25 = vshll.u32 %v2215_v51, 16 }
 0x291   : > { %v2525_v44 = vrot.slane %v2523_v14, 5  ;;  %v2711_v61 = vld [vmem:[#allocation2 + $0xa4] sm:$0x1]  ;;  %v11598_v50 = vrot.slane %v2709_v20, 9  ;;  %v3330_v31 = vrot.slane %v3329_v57, 4  ;;  %v12260_v5 = vadd.f32 %v15642_v45, %v15612_v58  ;;  %v15823_v57 = vpop.f32.mrf.mxu0 }
 0x292   : > { %v13527_v35 = vld [vmem:[#allocation3 + $0x2ec] ss:$36 sps:$4 sm:$0xff]   ;;  %v2520_v56 = vor.u32 %v2519_v40, %v2516_v47  ;;  %v3340_v28 = vrot.slane %v3339_v0, 4  ;;  %v2529_v24 = vrot.slane %v2527_v23, 4  ;;  %v2535_v13 = vrot.slane %v2533_v25, 5 }
 0x293   : > { %v13529_v34 = vld [vmem:[#allocation3 + $0x2e8] ss:$36 sps:$4 sm:$0xff]   ;;  %v2855_v21 = vrot.slane %v2710_v42, 5  ;;  %5852 = vmatprep.mubr.bf16.mxu1 %v13527_v35  ;;  %v3335_v51 = vsel %vm14676_vm9, %v3330_v31, %v3334_v15  ;;  %v2858_v14 = vrot.slane %v2711_v61, 5  ;;  %v5343_v20 = vadd.f32 %v12260_v5, %v15634_v39  ;;  %v2970_v23 = vld [vmem:[#allocation2 + $0xa8] sm:$0xf]  ;;  %v15842_v61 = vpop.f32.mrf.mxu0 }
 0x294   : > { %v2521_v4 = vrot.slane %v2520_v56, 4  ;;  %5853 = vmatmul.mubr.bf16.gmra.mxu1 %v13529_v34  ;;  %v13530_v37 = vld [vmem:[#allocation3 + $0x32c] ss:$36 sps:$4 sm:$0xff]   ;;  %v3345_v58 = vsel %vm14676_vm9, %v3340_v28, %v3344_v22  ;;  %3496 = vst.msk [vmem:[#allocation3 + $0x334] sm:$0xf] %vm1157_vm2, %v3335_v51  ;;  %v2530_v45 = vor.u32 %v2529_v24, %v2525_v44  ;;  %v12372_v22 = vadd.f32 %v15654_v41, %v15636_v12 }
 0x295   : > { %v13532_v43 = vld [vmem:[#allocation3 + $0x328] ss:$36 sps:$4 sm:$0xff]   ;;  %v2856_v47 = vsel %vm14682_vm12, %v11598_v50, %v2855_v21  ;;  %v2857_v40 = vrot.slane %v2855_v21, 4  ;;  %3497 = vst.msk [vmem:[#allocation3 + $0x358] sm:$0xf] %vm1157_vm2, %v3345_v58  ;;  %v12263_v25 = vadd.f32 %v15660_v48, %v15656_v63  ;;  %v15840_v50 = vadd.f32 %v15684_v32, %v15671_v38  ;;  %5699 = vmatprep.mubr.bf16.mxu0 %v13530_v37  ;;  %v15851_v38 = vpop.f32.mrf.mxu1 }
 0x296   : > { %v2526_v15 = vsel %vm14676_vm9, %v2521_v4, %v2525_v44  ;;  %2937 = vst.msk [vmem:[#allocation3 + $0x374] sm:$0xf] %vm1157_vm2, %v2856_v47  ;;  %v2971_v42 = vld [vmem:[#allocation2 + $0xac] sm:$0xf]  ;;  %v3046_v0 = vld [vmem:[#allocation2 + $0xa8] sm:$0xf]  ;;  %v12266_v48 = vadd.f32 %v15697_v46, %v15682_v55  ;;  %5700 = vmatmul.mubr.bf16.gmra.mxu0 %v13532_v43  ;;  %v15858_v55 = vpop.f32.mrf.mxu0 }
 0x297   : > { %v2531_v35 = vrot.slane %v2530_v45, 4  ;;  %2665 = vst.msk [vmem:[#allocation3 + $0x370] sm:$0xf] %vm1157_vm2, %v2526_v15  ;;  %v2859_v44 = vsel %vm14682_vm12, %v2857_v40, %v2858_v14  ;;  %3002 = vst.msk [vmem:[#allocation3 + $0x378] sm:$0xf] %vm1157_vm2, %v2970_v23  ;;  %v3347_v63 = vshrl.u32 %v3046_v0, 16  ;;  %v15856_v14 = vadd.f32 %v12372_v22, %v5343_v20  ;;  %v15860_v46 = vpop.f32.mrf.mxu1 }
 0x298   : > { %3003 = vst.msk [vmem:[#allocation3 + $0x39c] sm:$0xf] %vm1157_vm2, %v2971_v42  ;;  %v3047_v12 = vld [vmem:[#allocation2 + $0xac] sm:$0xf]  ;;  %v3048_v41 = vld [vmem:[#allocation2 + $0xb0] sm:$0x1] }
 0x299   : > { %2938 = vst.msk [vmem:[#allocation3 + $0x398] sm:$0xf] %vm1157_vm2, %v2859_v44  ;;  %v3350_v32 = vshll.u32 %v3046_v0, 16  ;;  %v3356_v34 = vshll.u32 %v3047_v12, 16  ;;  %v3360_v31 = vshrl.u32 %v3047_v12, 16  ;;  %v3366_v56 = vshll.u32 %v3048_v41, 16  ;;  %v15863_v0 = vpop.f32.mrf.mxu1 }
 0x29a   : > { %v2216_v5 = vld [vmem:[#allocation2 + $0xa8] sm:$0xf]  ;;  %v2536_v28 = vsel %vm14676_vm9, %v2531_v35, %v2535_v13  ;;  %v3349_v24 = vrot.slane %v3347_v63, 4  ;;  %v2217_v21 = vld [vmem:[#allocation2 + $0xac] sm:$0xf]  ;;  %18465 = vst [vmem:[#allocation27_spill] sm:$0xff] %v15856_v14 }
 0x29b   : > { %v2218_v51 = vld [vmem:[#allocation2 + $0xb0] sm:$0x1]  ;;  %v2538_v4 = vshrl.u32 %v2216_v5, 16  ;;  %2666 = vst.msk [vmem:[#allocation3 + $0x394] sm:$0xf] %vm1157_vm2, %v2536_v28  ;;  %v3352_v37 = vrot.slane %v3350_v32, 5  ;;  %v15871_v28 = vpop.f32.mrf.mxu0 }
 0x29c   : > { %v3358_v43 = vrot.slane %v3356_v34, 5  ;;  %v3362_v58 = vrot.slane %v3360_v31, 4  ;;  %v3368_v45 = vrot.slane %v3366_v56, 5  ;;  %v2712_v47 = vld [vmem:[#allocation2 + $0xa8] sm:$0xe]  ;;  %v2541_v15 = vshll.u32 %v2216_v5, 16 }
 0x29d   : > { %v2540_v40 = vrot.slane %v2538_v4, 4  ;;  %v2547_v13 = vshll.u32 %v2217_v21, 16  ;;  %v2551_v23 = vshrl.u32 %v2217_v21, 16  ;;  %v2713_v42 = vld [vmem:[#allocation2 + $0xac] sm:$0xf]  ;;  %v3353_v20 = vor.u32 %v3352_v37, %v3349_v24  ;;  %v15873_v21 = vpop.f32.mrf.mxu1 }
 0x29e   : > { %v3363_v22 = vor.u32 %v3362_v58, %v3358_v43  ;;  %v2557_v35 = vshll.u32 %v2218_v51, 16  ;;  %v15865_v44 = vld [vmem:[#allocation2 + $0xb0] sm:$0x1]  ;;  %v11599_v12 = vrot.slane %v2712_v47, 9  ;;  %v13578_v41 = vld [vmem:[#allocation6 + $0x78] sm:$0xff]   ;;  %v2543_v34 = vrot.slane %v2541_v15, 5 }
 0x29f   : > { %v13533_v63 = vld [vmem:[#allocation3 + $0x334] ss:$36 sps:$4 sm:$0xff]   ;;  %v5348_v31 = vadd.f32 %v12263_v25, %v15634_v39  ;;  %v5351_v56 = vadd.f32 %v12266_v48, %v15634_v39  ;;  %v12378_v5 = vadd.f32 %v15699_v16, %v15692_v33  ;;  %v3354_v24 = vrot.slane %v3353_v20, 4  ;;  %12675 = vmatprep.subr.bf16.mxu1 %v13578_v41  ;;  %v2972_v48 = vld [vmem:[#allocation2 + $0xb4] sm:$0xf] }
 0x2a0   : > { %v13535_v32 = vld [vmem:[#allocation3 + $0x330] ss:$36 sps:$4 sm:$0xff]   ;;  %v3364_v51 = vrot.slane %v3363_v22, 4  ;;  %v2549_v4 = vrot.slane %v2547_v13, 5  ;;  %v2553_v37 = vrot.slane %v2551_v23, 4  ;;  %5860 = vmatprep.mubr.bf16.mxu1 %v13533_v63  ;;  %v2544_v47 = vor.u32 %v2543_v34, %v2540_v40  ;;  %v15895_v63 = vpop.f32.mrf.mxu0 }
 0x2a1   : > { %v13579_v58 = vld [vmem:[#allocation6 + $0x38] sm:$0xff]   ;;  %v2559_v15 = vrot.slane %v2557_v35, 5  ;;  %v2862_v14 = vrot.slane %v2713_v42, 5  ;;  %v2865_v25 = vrot.slane %v15865_v44, 5  ;;  %5861 = vmatmul.mubr.bf16.gmra.mxu1 %v13535_v32  ;;  %v3359_v33 = vsel %vm14676_vm9, %v3354_v24, %v3358_v43  ;;  %v2973_v22 = vld [vmem:[#allocation2 + $0xb8] sm:$0xf]  ;;  %v15884_v42 = vpop.f32.mrf.mxu1 }
 0x2a2   : > { %v3369_v16 = vsel %vm14676_vm9, %v3364_v51, %v3368_v45  ;;  %v2554_v20 = vor.u32 %v2553_v37, %v2549_v4  ;;  %3004 = vst.msk [vmem:[#allocation3 + $0x3c0] sm:$0xf] %vm1157_vm2, %v2972_v48  ;;  %v3049_v13 = vld [vmem:[#allocation2 + $0xb4] sm:$0xf]  ;;  %v3050_v23 = vld [vmem:[#allocation2 + $0xb8] sm:$0xf]  ;;  %v15882_v40 = vadd.f32 %v15840_v50, %v5348_v31  ;;  %v15891_v41 = vadd.f32 %v12378_v5, %v5351_v56 }
 0x2a3   : > { %v13536_v35 = vld [vmem:[#allocation3 + $0x370] ss:$36 sps:$4 sm:$0xff]   ;;  %3498 = vst.msk [vmem:[#allocation3 + $0x37c] sm:$0xf] %vm1157_vm2, %v3359_v33  ;;  %3499 = vst.msk [vmem:[#allocation3 + $0x3a0] sm:$0xf] %vm1157_vm2, %v3369_v16  ;;  %v2863_v45 = vsel %vm14682_vm12, %v11599_v12, %v2862_v14  ;;  %v12269_v50 = vadd.f32 %v15723_v59, %v15709_v52  ;;  %12676 = vmatpush3.bf16.msra.mxu1 %v13579_v58  ;;  %v15898_v37 = vpop.f32.mrf.mxu1  ;;  %v15902_v59 = vpop.f32.mrf.mxu0 }
 0x2a4   : > { %18466 = vst [vmem:[#allocation28_spill] sm:$0xff] %v15882_v40  ;;  %v13538_v44 = vld [vmem:[#allocation3 + $0x374] ss:$36 sps:$4 sm:$0xff]   ;;  %v2545_v43 = vrot.slane %v2544_v47, 4  ;;  %3005 = vst.msk [vmem:[#allocation3 + $0x3e4] sm:$0xf] %vm1157_vm2, %v2973_v22 }
 0x2a5   : > { %18467 = vst [vmem:[#allocation29_spill] sm:$0xff] %v15891_v41  ;;  %v2555_v32 = vrot.slane %v2554_v20, 4  ;;  %v2864_v34 = vrot.slane %v2862_v14, 4  ;;  %2939 = vst.msk [vmem:[#allocation3 + $0x3bc] sm:$0xf] %vm1157_vm2, %v2863_v45  ;;  %v3371_v24 = vshrl.u32 %v3049_v13, 16  ;;  %5707 = vmatprep.mubr.bf16.mxu0 %v13538_v44  ;;  %v15913_v44 = vpop.f32.mrf.mxu0  ;;  %v5356_v40 = vadd.f32 %v12269_v50, %v15634_v39 }
 0x2a6   : > { %v3051_v31 = vld [vmem:[#allocation2 + $0xbc] sm:$0x1]  ;;  %v3374_v51 = vshll.u32 %v3049_v13, 16  ;;  %v2550_v12 = vsel %vm14676_vm9, %v2545_v43, %v2549_v4  ;;  %v3380_v56 = vshll.u32 %v3050_v23, 16  ;;  %v3384_v5 = vshrl.u32 %v3050_v23, 16  ;;  %5708 = vmatmul.mubr.bf16.gmra.mxu0 %v13536_v35  ;;  %v15909_v4 = vpop.f32.mrf.mxu1 }
 0x2a7   : > { %v3390_v47 = vshll.u32 %v3051_v31, 16  ;;  %v2219_v52 = vld [vmem:[#allocation2 + $0xb4] sm:$0xf]  ;;  %v2560_v14 = vsel %vm14676_vm9, %v2555_v32, %v2559_v15  ;;  %2667 = vst.msk [vmem:[#allocation3 + $0x3b8] sm:$0xf] %vm1157_vm2, %v2550_v12  ;;  %v2866_v58 = vsel %vm14682_vm12, %v2864_v34, %v2865_v25  ;;  %v3373_v48 = vrot.slane %v3371_v24, 4 }
 0x2a8   : > { %v3376_v33 = vrot.slane %v3374_v51, 5  ;;  %v2220_v16 = vld [vmem:[#allocation2 + $0xb8] sm:$0xf]  ;;  %v2221_v20 = vld [vmem:[#allocation2 + $0xbc] sm:$0x1]  ;;  %v3382_v22 = vrot.slane %v3380_v56, 5 }
 0x2a9   : > { %2668 = vst.msk [vmem:[#allocation3 + $0x3dc] sm:$0xf] %vm1157_vm2, %v2560_v14  ;;  %2940 = vst.msk [vmem:[#allocation3 + $0x3e0] sm:$0xf] %vm1157_vm2, %v2866_v58  ;;  %v3386_v13 = vrot.slane %v3384_v5, 4  ;;  %v3392_v23 = vrot.slane %v3390_v47, 5  ;;  %v15915_v14 = vpop.f32.mrf.mxu0  ;;  %v15917_v58 = vpop.f32.mrf.mxu1 }
 0x2aa   : > { %v2562_v35 = vshrl.u32 %v2219_v52, 16  ;;  %v2715_v15 = vld [vmem:[#allocation2 + $0xb4] sm:$0xe]  ;;  %v3377_v43 = vor.u32 %v3376_v33, %v3373_v48  ;;  %v2565_v45 = vshll.u32 %v2219_v52, 16  ;;  %v2571_v25 = vshll.u32 %v2220_v16, 16 }
 0x2ab   : > { %v2575_v32 = vshrl.u32 %v2220_v16, 16  ;;  %v2716_v34 = vld [vmem:[#allocation2 + $0xb8] sm:$0xf]  ;;  %v3387_v31 = vor.u32 %v3386_v13, %v3382_v22  ;;  %v2581_v51 = vshll.u32 %v2221_v20, 16  ;;  %v2717_v12 = vld [vmem:[#allocation2 + $0xbc] sm:$0x1]  ;;  %v12381_v52 = vadd.f32 %v15725_v9, %v15711_v30  ;;  %v15924_v17 = vpop.f32.mrf.mxu0 }
 0x2ac   : > { %v2564_v24 = vrot.slane %v2562_v35, 4  ;;  %v11600_v41 = vrot.slane %v2715_v15, 9  ;;  %v13540_v56 = vld [vmem:[#allocation3 + $0x378] ss:$36 sps:$4 sm:$0xff]   ;;  %v3378_v5 = vrot.slane %v3377_v43, 4  ;;  %v2567_v47 = vrot.slane %v2565_v45, 5 }
 0x2ad   : > { %v13542_v48 = vld [vmem:[#allocation3 + $0x37c] ss:$36 sps:$4 sm:$0xff]   ;;  %v3388_v33 = vrot.slane %v3387_v31, 4  ;;  %v2573_v16 = vrot.slane %v2571_v25, 5  ;;  %v2577_v13 = vrot.slane %v2575_v32, 4  ;;  %v2583_v35 = vrot.slane %v2581_v51, 5 }
 0x2ae   : > { %v3383_v20 = vsel %vm14676_vm9, %v3378_v5, %v3382_v22  ;;  %v2568_v15 = vor.u32 %v2567_v47, %v2564_v24  ;;  %v2869_v6 = vrot.slane %v2716_v34, 5  ;;  %v2872_v10 = vrot.slane %v2717_v12, 5  ;;  %5868 = vmatprep.mubr.bf16.mxu1 %v13542_v48  ;;  %v1272_v9 = vld [vmem:[#allocation2 + $0xc8] sm:$0x1]  ;;  %v2974_v43 = vld [vmem:[#allocation2 + $0xc0] sm:$0xf]  ;;  %v15933_v22 = vpop.f32.mrf.mxu1 }
 0x2af   : > { %v3393_v50 = vsel %vm14676_vm9, %v3388_v33, %v3392_v23  ;;  %3500 = vst.msk [vmem:[#allocation3 + $0x3c4] sm:$0xf] %vm1157_vm2, %v3383_v20  ;;  %v2578_v30 = vor.u32 %v2577_v13, %v2573_v16  ;;  %v15929_v45 = vadd.f32 %v12381_v52, %v5356_v40  ;;  %v12272_v25 = vadd.f32 %v15759_v49, %v15747_v2  ;;  %v15945_v49 = vpop.f32.mrf.mxu0  ;;  %v3052_v5 = vld [vmem:[#allocation2 + $0xc0] sm:$0xf]  ;;  %v2223_v13 = vld [vmem:[#allocation2 + $0xc4] sm:$0xf] }
 0x2b0   : > { %5869 = vmatmul.mubr.bf16.gmra.mxu1 %v13540_v56  ;;  %v13543_v32 = vld [vmem:[#allocation3 + $0x3b8] ss:$36 sps:$4 sm:$0xff]   ;;  %3501 = vst.msk [vmem:[#allocation3 + $0x3e8] sm:$0xf] %vm1157_vm2, %v3393_v50  ;;  %v2569_v31 = vrot.slane %v2568_v15, 4  ;;  %v2870_v23 = vsel %vm14682_vm12, %v11600_v41, %v2869_v6  ;;  %v18468_v24 = vrot.slane %v15289_v19, 4  ;;  %v12384_v2 = vadd.f32 %v15771_v27, %v15761_v60 }
 0x2b1   : > { %v13545_v34 = vld [vmem:[#allocation3 + $0x3bc] ss:$36 sps:$4 sm:$0xff]   ;;  %3006 = vst.msk [vmem:[#allocation3 + $0x408] sm:$0xf] %vm1157_vm2, %v2974_v43  ;;  %v2579_v51 = vrot.slane %v2578_v30, 4  ;;  %v2871_v12 = vrot.slane %v2869_v6, 4  ;;  %v5359_v41 = vadd.f32 %v12272_v25, %v15634_v39  ;;  %v15956_v52 = vadd.f32 %v15803_v8, %v15784_v18  ;;  %v15958_v48 = vpop.f32.mrf.mxu0  ;;  %v15960_v39 = vpop.f32.mrf.mxu1 }
 0x2b2   : > { %v1273_v40 = vsel %vm14690_vm13, %v18468_v24, %v1272_v9  ;;  %2941 = vst.msk [vmem:[#allocation3 + $0x404] sm:$0xf] %vm1157_vm2, %v2870_v23  ;;  %v2975_v56 = vld [vmem:[#allocation2 + $0xc4] sm:$0xf]  ;;  %5715 = vmatprep.mubr.bf16.mxu0 %v13545_v34  ;;  %v2574_v19 = vsel %vm14676_vm9, %v2569_v31, %v2573_v16  ;;  %v3395_v27 = vshrl.u32 %v3052_v5, 16  ;;  %v3398_v47 = vshll.u32 %v3052_v5, 16 }
 0x2b3   : > { %1274 = vst [vmem:[#allocation2 + $0xc8] sm:$0x1] %v1273_v40  ;;  %3007 = vst.msk [vmem:[#allocation3 + $0x42c] sm:$0xf] %vm1157_vm2, %v2975_v56  ;;  %v3053_v60 = vld [vmem:[#allocation2 + $0xc4] sm:$0xf]  ;;  %5716 = vmatmul.mubr.bf16.gmra.mxu0 %v13543_v32  ;;  %v2584_v36 = vsel %vm14676_vm9, %v2579_v51, %v2583_v35  ;;  %v2873_v1 = vsel %vm14682_vm12, %v2871_v12, %v2872_v10  ;;  %v15969_v9 = vpop.f32.mrf.mxu0  ;;  %v15972_v51 = vpop.f32.mrf.mxu1 }
 0x2b4   : > { %v2222_v6 = vld [vmem:[#allocation2 + $0xc0] sm:$0xf]  ;;  %2669 = vst.msk [vmem:[#allocation3 + $0x400] sm:$0xf] %vm1157_vm2, %v2574_v19  ;;  %v3404_v33 = vshll.u32 %v3053_v60, 16  ;;  %v3408_v16 = vshrl.u32 %v3053_v60, 16  ;;  %v15975_v60 = vadd.f32 %v12384_v2, %v5359_v41 }
 0x2b5   : > { %v2718_v20 = vld [vmem:[#allocation2 + $0xc0] sm:$0xe]  ;;  %2670 = vst.msk [vmem:[#allocation3 + $0x424] sm:$0xf] %vm1157_vm2, %v2584_v36  ;;  %2942 = vst.msk [vmem:[#allocation3 + $0x428] sm:$0xf] %vm1157_vm2, %v2873_v1 }
 0x2b6   : > { %v3397_v18 = vrot.slane %v3395_v27, 4  ;;  %v3400_v8 = vrot.slane %v3398_v47, 5  ;;  %v2586_v15 = vshrl.u32 %v2222_v6, 16  ;;  %v2589_v50 = vshll.u32 %v2222_v6, 16  ;;  %v2719_v30 = vld [vmem:[#allocation2 + $0xc4] sm:$0xf] }
 0x2b7   : > { %v3406_v35 = vrot.slane %v3404_v33, 5  ;;  %v3410_v43 = vrot.slane %v3408_v16, 4  ;;  %v2595_v25 = vshll.u32 %v2223_v13, 16  ;;  %v2599_v32 = vshrl.u32 %v2223_v13, 16  ;;  %v2976_v10 = vld [vmem:[#allocation2 + $0xcc] sm:$0xf] }
 0x2b8   : > { %v3401_v34 = vor.u32 %v3400_v8, %v3397_v18  ;;  %v2588_v31 = vrot.slane %v2586_v15, 4  ;;  %v2591_v23 = vrot.slane %v2589_v50, 5  ;;  %v11601_v24 = vrot.slane %v2718_v20, 9  ;;  %v2977_v40 = vld [vmem:[#allocation2 + $0xd0] sm:$0xf]  ;;  %v15985_v20 = vpop.f32.mrf.mxu0 }
 0x2b9   : > { %3008 = vst.msk [vmem:[#allocation3 + $0x450] sm:$0xf] %vm1157_vm2, %v2976_v10  ;;  %v13546_v12 = vld [vmem:[#allocation3 + $0x3c0] ss:$36 sps:$4 sm:$0xff]   ;;  %v3411_v5 = vor.u32 %v3410_v43, %v3406_v35  ;;  %v2597_v19 = vrot.slane %v2595_v25, 5  ;;  %v2601_v16 = vrot.slane %v2599_v32, 4  ;;  %v12278_v13 = vadd.f32 %v15812_v26, %v15801_v3  ;;  %v15989_v32 = vpop.f32.mrf.mxu1 }
 0x2ba   : > { %v13548_v56 = vld [vmem:[#allocation3 + $0x3c4] ss:$36 sps:$4 sm:$0xff]   ;;  %3009 = vst.msk [vmem:[#allocation3 + $0x474] sm:$0xf] %vm1157_vm2, %v2977_v40  ;;  %v3054_v6 = vld [vmem:[#allocation2 + $0xc8] sm:$0x1]  ;;  %v2592_v33 = vor.u32 %v2591_v23, %v2588_v31 }
 0x2bb   : > { %v15980_v27 = vld [vmem:[%s18381_s2] ss:$0 sm:$0xff]  ;;  %v3402_v36 = vrot.slane %v3401_v34, 4  ;;  %v2224_v1 = vld [vmem:[#allocation2 + $0xc8] sm:$0x1]  ;;  %5876 = vmatprep.mubr.bf16.mxu1 %v13548_v56  ;;  %v3412_v2 = vrot.slane %v3411_v5, 4  ;;  %v2602_v43 = vor.u32 %v2601_v16, %v2597_v19 }
 0x2bc   : > { %v5364_v47 = vadd.f32 %v15980_v27, %v12275_v7  ;;  %v3414_v41 = vshll.u32 %v3054_v6, 16  ;;  %v2605_v18 = vshll.u32 %v2224_v1, 16  ;;  %v2720_v8 = vld [vmem:[#allocation2 + $0xc8] sm:$0x1]  ;;  %v2876_v15 = vrot.slane %v2719_v30, 5  ;;  %5877 = vmatmul.mubr.bf16.gmra.mxu1 %v13546_v12  ;;  %v13580_v34 = vld [vmem:[#allocation6 + $0x70] sm:$0xff]  }
 0x2bd   : > { %v3407_v7 = vsel %vm14676_vm9, %v3402_v36, %v3406_v35  ;;  %v2593_v50 = vrot.slane %v2592_v33, 4  ;;  %v2879_v25 = vrot.slane %v2720_v8, 5  ;;  %v3055_v10 = vld [vmem:[#allocation2 + $0xcc] sm:$0xf]  ;;  %v13549_v3 = vld [vmem:[#allocation3 + $0x400] ss:$36 sps:$4 sm:$0xff]   ;;  %v5367_v35 = vadd.f32 %v15980_v27, %v12278_v13  ;;  %v16001_v36 = vpop.f32.mrf.mxu0  ;;  %12677 = vmatprep.subr.bf16.mxu1 %v13580_v34 }
 0x2be   : > { %v13551_v26 = vld [vmem:[#allocation3 + $0x404] ss:$36 sps:$4 sm:$0xff]   ;;  %v3416_v31 = vrot.slane %v3414_v41, 5  ;;  %3502 = vst.msk [vmem:[#allocation3 + $0x40c] sm:$0xf] %vm1157_vm2, %v3407_v7  ;;  %v2877_v23 = vsel %vm14682_vm12, %v11601_v24, %v2876_v15  ;;  %v15995_v30 = vadd.f32 %v15956_v52, %v5364_v47  ;;  %v2603_v12 = vrot.slane %v2602_v43, 4 }
 0x2bf   : > { %v2598_v40 = vsel %vm14676_vm9, %v2593_v50, %v2597_v19  ;;  %v2607_v56 = vrot.slane %v2605_v18, 5  ;;  %v2878_v5 = vrot.slane %v2876_v15, 4  ;;  %2943 = vst.msk [vmem:[#allocation3 + $0x44c] sm:$0xf] %vm1157_vm2, %v2877_v23  ;;  %v3056_v6 = vld [vmem:[#allocation2 + $0xd0] sm:$0xf]  ;;  %5723 = vmatprep.mubr.bf16.mxu0 %v13551_v26 }
 0x2c0   : > { %v13581_v1 = vld [vmem:[#allocation6 + $0x30] sm:$0xff]   ;;  %v3417_v52 = vsel %vm14676_vm9, %v3412_v2, %v3416_v31  ;;  %2671 = vst.msk [vmem:[#allocation3 + $0x448] sm:$0xf] %vm1157_vm2, %v2598_v40  ;;  %v3057_v24 = vld [vmem:[#allocation2 + $0xd4] sm:$0x1]  ;;  %v3419_v47 = vshrl.u32 %v3055_v10, 16  ;;  %5724 = vmatmul.mubr.bf16.gmra.mxu0 %v13549_v3  ;;  %v16011_v2 = vpop.f32.mrf.mxu1  ;;  %v16015_v40 = vpop.f32.mrf.mxu0 }
 0x2c1   : > { %v3422_v33 = vshll.u32 %v3055_v10, 16  ;;  %v3428_v19 = vshll.u32 %v3056_v6, 16  ;;  %3503 = vst.msk [vmem:[#allocation3 + $0x430] sm:$0xf] %vm1157_vm2, %v3417_v52  ;;  %v2608_v16 = vsel %vm14676_vm9, %v2603_v12, %v2607_v56  ;;  %v2880_v13 = vsel %vm14682_vm12, %v2878_v5, %v2879_v25  ;;  %v3506_v8 = vld [vmem:[#allocation2 + $0x18] sm:$0xe]  ;;  %12678 = vmatpush3.bf16.msra.mxu1 %v13581_v1 }
 0x2c2   : > { %v3432_v41 = vshrl.u32 %v3056_v6, 16  ;;  %v3438_v18 = vshll.u32 %v3057_v24, 16  ;;  %v3507_v15 = vld [vmem:[#allocation2 + $0x1c] sm:$0xf]  ;;  %2672 = vst.msk [vmem:[#allocation3 + $0x46c] sm:$0xf] %vm1157_vm2, %v2608_v16  ;;  %v16017_v12 = vpop.f32.mrf.mxu1  ;;  %v12390_v52 = vadd.f32 %v15818_v53, %v15810_v29  ;;  %v12281_v24 = vadd.f32 %v15842_v61, %v15823_v57 }
 0x2c3   : > { %2944 = vst.msk [vmem:[#allocation3 + $0x470] sm:$0xf] %vm1157_vm2, %v2880_v13  ;;  %v3421_v7 = vrot.slane %v3419_v47, 4  ;;  %v3424_v50 = vrot.slane %v3422_v33, 5  ;;  %v3430_v43 = vrot.slane %v3428_v19, 5  ;;  %v11602_v34 = vrot.slane %v3506_v8, 9 }
 0x2c4   : > { %v3508_v10 = vld [vmem:[#allocation2 + $0x20] sm:$0x1]  ;;  %v3434_v3 = vrot.slane %v3432_v41, 4  ;;  %v3440_v26 = vrot.slane %v3438_v18, 5  ;;  %v3604_v31 = vrot.slane %v3507_v15, 5  ;;  %v5372_v53 = vadd.f32 %v15980_v27, %v12281_v24 }
 0x2c5   : > { %v3607_v25 = vrot.slane %v3508_v10, 5  ;;  %v3509_v23 = vld [vmem:[#allocation2 + $0x24] sm:$0xe]  ;;  %v3425_v56 = vor.u32 %v3424_v50, %v3421_v7  ;;  %v3510_v5 = vld [vmem:[#allocation2 + $0x28] sm:$0xf]  ;;  %v16026_v7 = vadd.f32 %v12390_v52, %v5367_v35 }
 0x2c6   : > { %v3511_v6 = vld [vmem:[#allocation2 + $0x2c] sm:$0x1]  ;;  %v11603_v1 = vrot.slane %v3509_v23, 9  ;;  %v3435_v47 = vor.u32 %v3434_v3, %v3430_v43  ;;  %v3605_v33 = vsel %vm14682_vm12, %v11602_v34, %v3604_v31  ;;  %v3606_v19 = vrot.slane %v3604_v31, 4  ;;  %v3512_v13 = vld [vmem:[#allocation2 + $0x30] sm:$0xe]  ;;  %v16033_v34 = vpop.f32.mrf.mxu0  ;;  %v16035_v3 = vpop.f32.mrf.mxu1 }
 0x2c7   : > { %v3611_v16 = vrot.slane %v3510_v5, 5  ;;  %v3426_v41 = vrot.slane %v3425_v56, 4  ;;  %3746 = vst.msk [vmem:[#allocation3 + $0x20] sm:$0xf] %vm1157_vm2, %v3605_v33  ;;  %v3614_v18 = vrot.slane %v3511_v6, 5  ;;  %v11604_v56 = vrot.slane %v3512_v13, 9 }
 0x2c8   : > { %v3513_v8 = vld [vmem:[#allocation2 + $0x34] sm:$0xf]  ;;  %v3514_v15 = vld [vmem:[#allocation2 + $0x38] sm:$0x1]  ;;  %v3436_v29 = vrot.slane %v3435_v47, 4  ;;  %v3608_v57 = vsel %vm14682_vm12, %v3606_v19, %v3607_v25  ;;  %v12393_v25 = vadd.f32 %v15860_v46, %v15851_v38  ;;  %v12284_v5 = vadd.f32 %v15871_v28, %v15858_v55 }
 0x2c9   : > { %v3612_v61 = vsel %vm14682_vm12, %v11603_v1, %v3611_v16  ;;  %v3613_v50 = vrot.slane %v3611_v16, 4  ;;  %v3515_v10 = vld [vmem:[#allocation2 + $0x3c] sm:$0xe]  ;;  %v13553_v31 = vld [vmem:[#allocation3 + $0x408] ss:$36 sps:$4 sm:$0xff]   ;;  %v3431_v35 = vsel %vm14676_vm9, %v3426_v41, %v3430_v43  ;;  %v3618_v24 = vrot.slane %v3513_v8, 5  ;;  %v16059_v41 = vpop.f32.mrf.mxu0 }
 0x2ca   : > { %v13555_v23 = vld [vmem:[#allocation3 + $0x40c] ss:$36 sps:$4 sm:$0xff]   ;;  %3747 = vst.msk [vmem:[#allocation3 + $0x44] sm:$0xf] %vm1157_vm2, %v3608_v57  ;;  %3748 = vst.msk [vmem:[#allocation3 + $0x68] sm:$0xf] %vm1157_vm2, %v3612_v61  ;;  %v3441_v52 = vsel %vm14676_vm9, %v3436_v29, %v3440_v26  ;;  %v12396_v47 = vadd.f32 %v15873_v21, %v15863_v0  ;;  %v16054_v33 = vadd.f32 %v12393_v25, %v5372_v53 }
 0x2cb   : > { %v13556_v6 = vld [vmem:[#allocation3 + $0x448] ss:$36 sps:$4 sm:$0xff]   ;;  %3504 = vst.msk [vmem:[#allocation3 + $0x454] sm:$0xf] %vm1157_vm2, %v3431_v35  ;;  %v3615_v43 = vsel %vm14682_vm12, %v3613_v50, %v3614_v18  ;;  %5884 = vmatprep.mubr.bf16.mxu1 %v13555_v23  ;;  %3505 = vst.msk [vmem:[#allocation3 + $0x478] sm:$0xf] %vm1157_vm2, %v3441_v52  ;;  %v5375_v26 = vadd.f32 %v15980_v27, %v12284_v5  ;;  %v3619_v19 = vsel %vm14682_vm12, %v11604_v56, %v3618_v24  ;;  %v16061_v18 = vpop.f32.mrf.mxu1  ;;  %v16074_v5 = vpop.f32.mrf.mxu0 }
 0x2cc   : > { %v13558_v1 = vld [vmem:[#allocation3 + $0x44c] ss:$36 sps:$4 sm:$0xff]   ;;  %3749 = vst.msk [vmem:[#allocation3 + $0x8c] sm:$0xf] %vm1157_vm2, %v3615_v43  ;;  %v3621_v38 = vrot.slane %v3514_v15, 5  ;;  %v11605_v28 = vrot.slane %v3515_v10, 9  ;;  %5885 = vmatmul.mubr.bf16.gmra.mxu1 %v13553_v31  ;;  %v12287_v61 = vadd.f32 %v15902_v59, %v15895_v63  ;;  %v12399_v50 = vadd.f32 %v15898_v37, %v15884_v42 }
 0x2cd   : > { %v3516_v55 = vld [vmem:[#allocation2 + $0x40] sm:$0xf]  ;;  %v3517_v46 = vld [vmem:[#allocation2 + $0x44] sm:$0x1]  ;;  %5731 = vmatprep.mubr.bf16.mxu0 %v13558_v1  ;;  %v3620_v16 = vrot.slane %v3618_v24, 4  ;;  %v13582_v8 = vld [vmem:[#allocation6 + $0x68] sm:$0xff]   ;;  %v16064_v57 = vadd.f32 %v12396_v47, %v5375_v26  ;;  %v12290_v1 = vadd.f32 %v15915_v14, %v15913_v44  ;;  %v12402_v47 = vadd.f32 %v15917_v58, %v15909_v4 }
 0x2ce   : > { %v3625_v0 = vrot.slane %v3516_v55, 5  ;;  %v3628_v21 = vrot.slane %v3517_v46, 5  ;;  %v3518_v13 = vld [vmem:[#allocation2 + $0x48] sm:$0xe]  ;;  %5732 = vmatmul.mubr.bf16.gmra.mxu0 %v13556_v6  ;;  %3750 = vst.msk [vmem:[#allocation3 + $0xb0] sm:$0xf] %vm1157_vm2, %v3619_v19  ;;  %12679 = vmatprep.subr.bf16.mxu1 %v13582_v8  ;;  %v5380_v6 = vadd.f32 %v15980_v27, %v12287_v61  ;;  %v16089_v55 = vpop.f32.mrf.mxu1  ;;  %v16095_v19 = vpop.f32.mrf.mxu0 }
 0x2cf   : > { %v3519_v15 = vld [vmem:[#allocation2 + $0x4c] sm:$0xf]  ;;  %v3520_v53 = vld [vmem:[#allocation2 + $0x50] sm:$0x1]  ;;  %v11606_v29 = vrot.slane %v3518_v13, 9  ;;  %v13583_v10 = vld [vmem:[#allocation6 + $0x28] sm:$0xff]   ;;  %v3622_v31 = vsel %vm14682_vm12, %v3620_v16, %v3621_v38  ;;  %v12293_v38 = vadd.f32 %v15945_v49, %v15924_v17  ;;  %v5383_v17 = vadd.f32 %v15980_v27, %v12290_v1 }
 0x2d0   : > { %v3626_v23 = vsel %vm14682_vm12, %v11605_v28, %v3625_v0  ;;  %v3627_v35 = vrot.slane %v3625_v0, 4  ;;  %v3632_v56 = vrot.slane %v3519_v15, 5  ;;  %v3521_v25 = vld [vmem:[#allocation2 + $0x54] sm:$0xe]  ;;  %3751 = vst.msk [vmem:[#allocation3 + $0xd4] sm:$0xf] %vm1157_vm2, %v3622_v31  ;;  %12680 = vmatpush3.bf16.msra.mxu1 %v13583_v10  ;;  %v16093_v26 = vadd.f32 %v12399_v50, %v5380_v6 }
 0x2d1   : > { %3752 = vst.msk [vmem:[#allocation3 + $0xf8] sm:$0xf] %vm1157_vm2, %v3626_v23  ;;  %v3635_v63 = vrot.slane %v3520_v53, 5  ;;  %v3522_v59 = vld [vmem:[#allocation2 + $0x58] sm:$0xf]  ;;  %v11607_v37 = vrot.slane %v3521_v25, 9  ;;  %v5388_v58 = vadd.f32 %v15980_v27, %v12293_v38  ;;  %v12405_v49 = vadd.f32 %v15960_v39, %v15933_v22 }
 0x2d2   : > { %v3523_v42 = vld [vmem:[#allocation2 + $0x5c] sm:$0x1]  ;;  %v3629_v43 = vsel %vm14682_vm12, %v3627_v35, %v3628_v21  ;;  %v3633_v24 = vsel %vm14682_vm12, %v11606_v29, %v3632_v56  ;;  %v3634_v46 = vrot.slane %v3632_v56, 4  ;;  %v3639_v44 = vrot.slane %v3522_v59, 5  ;;  %v3524_v28 = vld [vmem:[#allocation2 + $0x60] sm:$0xe]  ;;  %v12416_v21 = vpop.f32.mrf.mxu1  ;;  %v12307_v59 = vpop.f32.mrf.mxu0 }
 0x2d3   : > { %v13562_v52 = vld [vmem:[#allocation3 + $0x20] ss:$36 sps:$4 sm:$0xff]   ;;  %3753 = vst.msk [vmem:[#allocation3 + $0x11c] sm:$0xf] %vm1157_vm2, %v3629_v43  ;;  %3754 = vst.msk [vmem:[#allocation3 + $0x140] sm:$0xf] %vm1157_vm2, %v3633_v24  ;;  %v12296_v29 = vadd.f32 %v15969_v9, %v15958_v48  ;;  %v16109_v22 = vadd.f32 %v12402_v47, %v5383_v17  ;;  %v16111_v39 = vadd.f32 %v12405_v49, %v5388_v58 }
 0x2d4   : > { %v3642_v14 = vrot.slane %v3523_v42, 5  ;;  %v13559_v16 = vld [vmem:[#allocation3 + $0x450] ss:$36 sps:$4 sm:$0xff]   ;;  %13163 = vmatprep.mubr.bf16.mxu0 %v13562_v52  ;;  %v11608_v4 = vrot.slane %v3524_v28, 9  ;;  %v13563_v13 = vld [vmem:[#allocation3 + $0x68] ss:$36 sps:$4 sm:$0xff]   ;;  %v3636_v8 = vsel %vm14682_vm12, %v3634_v46, %v3635_v63  ;;  %v3640_v15 = vsel %vm14682_vm12, %v11607_v37, %v3639_v44  ;;  %v12418_v23 = vpop.f32.mrf.mxu1  ;;  %v12309_v28 = vpop.f32.mrf.mxu0 }
 0x2d5   : > { %v13561_v0 = vld [vmem:[#allocation3 + $0x454] ss:$36 sps:$4 sm:$0xff]   ;;  %v3641_v53 = vrot.slane %v3639_v44, 4  ;;  %3755 = vst.msk [vmem:[#allocation3 + $0x164] sm:$0xf] %vm1157_vm2, %v3636_v8  ;;  %v12408_v10 = vadd.f32 %v15989_v32, %v15972_v51  ;;  %v12299_v31 = vadd.f32 %v16001_v36, %v15985_v20  ;;  %v5391_v63 = vadd.f32 %v15980_v27, %v12296_v29 }
 0x2d6   : > { %5892 = vmatprep.mubr.bf16.mxu1 %v13561_v0  ;;  %3756 = vst.msk [vmem:[#allocation3 + $0x188] sm:$0xf] %vm1157_vm2, %v3640_v15  ;;  %v3525_v61 = vld [vmem:[#allocation2 + $0x64] sm:$0xf]  ;;  %v3526_v50 = vld [vmem:[#allocation2 + $0x68] sm:$0x1]  ;;  %13164 = vmatmul.mubr.bf16.vlgmr.msra.gmra.mxu0 %v13563_v13  ;;  %v12411_v20 = vadd.f32 %v16017_v12, %v16011_v2  ;;  %v12302_v32 = vadd.f32 %v16033_v34, %v16015_v40  ;;  %v12419_v34 = vpop.f32.mrf.mxu1 }
 0x2d7   : > { %5893 = vmatmul.mubr.bf16.gmra.mxu1 %v13559_v16  ;;  %v3643_v48 = vsel %vm14682_vm12, %v3641_v53, %v3642_v14  ;;  %v3646_v9 = vrot.slane %v3525_v61, 5  ;;  %v3649_v35 = vrot.slane %v3526_v50, 5  ;;  %v3527_v56 = vld [vmem:[#allocation2 + $0x6c] sm:$0xe]  ;;  %v3528_v25 = vld [vmem:[#allocation2 + $0x70] sm:$0xf]  ;;  %v5396_v51 = vadd.f32 %v15980_v27, %v12299_v31  ;;  %v12310_v53 = vpop.f32.mrf.mxu0 }
 0x2d8   : > { %v13564_v42 = vld [vmem:[#allocation3 + $0xb0] ss:$36 sps:$4 sm:$0xff]   ;;  %3757 = vst.msk [vmem:[#allocation3 + $0x1ac] sm:$0xf] %vm1157_vm2, %v3643_v48  ;;  %v12414_v36 = vadd.f32 %v16061_v18, %v16035_v3  ;;  %v3529_v1 = vld [vmem:[#allocation2 + $0x74] sm:$0x1]  ;;  %v16131_v47 = vadd.f32 %v12408_v10, %v5391_v63  ;;  %v5399_v40 = vadd.f32 %v15980_v27, %v12302_v32  ;;  %v12305_v12 = vadd.f32 %v16074_v5, %v16059_v41 }
 0x2d9   : > { %v3647_v37 = vsel %vm14682_vm12, %v11608_v4, %v3646_v9  ;;  %v3648_v6 = vrot.slane %v3646_v9, 4  ;;  %v11609_v52 = vrot.slane %v3527_v56, 9  ;;  %v3653_v43 = vrot.slane %v3528_v25, 5  ;;  %13167 = vmatprep.mubr.bf16.mxu0 %v13564_v42  ;;  %v3530_v44 = vld [vmem:[#allocation2 + $0x78] sm:$0xe] }
 0x2da   : > { %v13565_v24 = vld [vmem:[#allocation3 + $0xf8] ss:$36 sps:$4 sm:$0xff]   ;;  %3758 = vst.msk [vmem:[#allocation3 + $0x1d0] sm:$0xf] %vm1157_vm2, %v3647_v37  ;;  %v16133_v2 = vadd.f32 %v12411_v20, %v5396_v51  ;;  %v3656_v46 = vrot.slane %v3529_v1, 5  ;;  %v11610_v0 = vrot.slane %v3530_v44, 9  ;;  %v16144_v5 = vadd.f32 %v12414_v36, %v5399_v40 }
 0x2db   : > { %v3650_v3 = vsel %vm14682_vm12, %v3648_v6, %v3649_v35  ;;  %v3654_v18 = vsel %vm14682_vm12, %v11609_v52, %v3653_v43  ;;  %v3655_v38 = vrot.slane %v3653_v43, 4  ;;  %v3531_v14 = vld [vmem:[#allocation2 + $0x7c] sm:$0xf]  ;;  %v3532_v16 = vld [vmem:[#allocation2 + $0x80] sm:$0x1]  ;;  %v5404_v17 = vadd.f32 %v15980_v27, %v12305_v12 }
 0x2dc   : > { %3759 = vst.msk [vmem:[#allocation3 + $0x1f4] sm:$0xf] %vm1157_vm2, %v3650_v3  ;;  %3760 = vst.msk [vmem:[#allocation3 + $0x218] sm:$0xf] %vm1157_vm2, %v3654_v18  ;;  %v3660_v4 = vrot.slane %v3531_v14, 5  ;;  %v12417_v13 = vadd.f32 %v12416_v21, %v16089_v55  ;;  %v12308_v8 = vadd.f32 %v12307_v59, %v16095_v19  ;;  %v12420_v15 = vadd.f32 %v12419_v34, %v12418_v23  ;;  %v12312_v21 = vpop.f32.mrf.mxu0 }
 0x2dd   : > { %v3533_v41 = vld [vmem:[#allocation2 + $0x84] sm:$0xe]  ;;  %v13566_v58 = vld [vmem:[#allocation3 + $0x140] ss:$36 sps:$4 sm:$0xff]   ;;  %v3657_v49 = vsel %vm14682_vm12, %v3655_v38, %v3656_v46  ;;  %v3663_v50 = vrot.slane %v3532_v16, 5  ;;  %v12311_v48 = vadd.f32 %v12310_v53, %v12309_v28  ;;  %v12421_v46 = vpop.f32.mrf.mxu1 }
 0x2de   : > { %3761 = vst.msk [vmem:[#allocation3 + $0x23c] sm:$0xf] %vm1157_vm2, %v3657_v49  ;;  %v3661_v29 = vsel %vm14682_vm12, %v11610_v0, %v3660_v4  ;;  %v3662_v61 = vrot.slane %v3660_v4, 4  ;;  %v3534_v10 = vld [vmem:[#allocation2 + $0x88] sm:$0xf]  ;;  %13168 = vmatmul.mubr.bf16.gmra.mxu0 %v13565_v24  ;;  %v11611_v9 = vrot.slane %v3533_v41, 9  ;;  %v16155_v55 = vadd.f32 %v12417_v13, %v5404_v17  ;;  %v12313_v37 = vpop.f32.mrf.mxu0 }
 0x2df   : > { %v3535_v31 = vld [vmem:[#allocation2 + $0x8c] sm:$0x1]  ;;  %3762 = vst.msk [vmem:[#allocation3 + $0x260] sm:$0xf] %vm1157_vm2, %v3661_v29  ;;  %v3667_v35 = vrot.slane %v3534_v10, 5  ;;  %v5407_v19 = vadd.f32 %v15980_v27, %v12308_v8  ;;  %13171 = vmatprep.mubr.bf16.mxu0 %v13566_v58  ;;  %v5412_v14 = vadd.f32 %v15980_v27, %v12311_v48  ;;  %v12314_v28 = vadd.f32 %v12313_v37, %v12312_v21  ;;  %v12422_v58 = vpop.f32.mrf.mxu1  ;;  %v13584_v49 = vld [vmem:[#allocation6 + $0x60] sm:$0xff]  }
 0x2e0   : > { %v3664_v23 = vsel %vm14682_vm12, %v3662_v61, %v3663_v50  ;;  %v3670_v56 = vrot.slane %v3535_v31, 5  ;;  %v3536_v25 = vld [vmem:[#allocation2 + $0x90] sm:$0xe]  ;;  %v3537_v63 = vld [vmem:[#allocation2 + $0x94] sm:$0xf]  ;;  %v12443_v16 = vpop.f32.mrf.mxu0  ;;  %v12423_v53 = vadd.f32 %v12422_v58, %v12421_v46  ;;  %12681 = vmatprep.subr.bf16.mxu1 %v13584_v49 }
 0x2e1   : > { %v13567_v59 = vld [vmem:[#allocation3 + $0x188] ss:$36 sps:$4 sm:$0xff]   ;;  %3763 = vst.msk [vmem:[#allocation3 + $0x284] sm:$0xf] %vm1157_vm2, %v3664_v23  ;;  %v3668_v42 = vsel %vm14682_vm12, %v11611_v9, %v3667_v35  ;;  %v3669_v51 = vrot.slane %v3667_v35, 4  ;;  %v11612_v32 = vrot.slane %v3536_v25, 9  ;;  %v16163_v36 = vadd.f32 %v12420_v15, %v5407_v19  ;;  %v12424_v48 = vpop.f32.mrf.mxu1 }
 0x2e2   : > { %v3538_v20 = vld [vmem:[#allocation2 + $0x98] sm:$0x1]  ;;  %3764 = vst.msk [vmem:[#allocation3 + $0x2a8] sm:$0xf] %vm1157_vm2, %v3668_v42  ;;  %v3674_v6 = vrot.slane %v3537_v63, 5  ;;  %v12444_v29 = vpop.f32.mrf.mxu0  ;;  %v13585_v61 = vld [vmem:[#allocation6 + $0x20] sm:$0xff]   ;;  %v16182_v23 = vadd.f32 %v12423_v53, %v5412_v14 }
 0x2e3   : > { %v3677_v1 = vrot.slane %v3538_v20, 5  ;;  %v3539_v52 = vld [vmem:[#allocation2 + $0x9c] sm:$0xe]  ;;  %v3540_v43 = vld [vmem:[#allocation2 + $0xa0] sm:$0xf]  ;;  %v3671_v40 = vsel %vm14682_vm12, %v3669_v51, %v3670_v56  ;;  %v12445_v9 = vadd.f32 %v12444_v29, %v12443_v16  ;;  %v5415_v56 = vadd.f32 %v15980_v27, %v12314_v28  ;;  %12682 = vmatpush3.bf16.msra.mxu1 %v13585_v61 }
 0x2e4   : > { %v13568_v24 = vld [vmem:[#allocation3 + $0x1d0] ss:$36 sps:$4 sm:$0xff]   ;;  %3765 = vst.msk [vmem:[#allocation3 + $0x2cc] sm:$0xf] %vm1157_vm2, %v3671_v40  ;;  %v3675_v12 = vsel %vm14682_vm12, %v11612_v32, %v3674_v6  ;;  %v3676_v34 = vrot.slane %v3674_v6, 4  ;;  %v11613_v18 = vrot.slane %v3539_v52, 9  ;;  %v12446_v25 = vpop.f32.mrf.mxu0  ;;  %v12425_v32 = vpop.f32.mrf.mxu1 }
 0x2e5   : > { %v3541_v3 = vld [vmem:[#allocation2 + $0xa4] sm:$0x1]  ;;  %v3681_v38 = vrot.slane %v3540_v43, 5  ;;  %3766 = vst.msk [vmem:[#allocation3 + $0x2f0] sm:$0xf] %vm1157_vm2, %v3675_v12  ;;  %v18469_v52 = vld [vmem:[#allocation15_spill] sm:$0xff] }
 0x2e6   : > { %v3684_v44 = vrot.slane %v3541_v3, 5  ;;  %v3678_v0 = vsel %vm14682_vm12, %v3676_v34, %v3677_v1  ;;  %v3542_v17 = vld [vmem:[#allocation2 + $0xa8] sm:$0xe]  ;;  %13172 = vmatmul.mubr.bf16.gmra.mxu0 %v13567_v59  ;;  %v3543_v13 = vld [vmem:[#allocation2 + $0xac] sm:$0xf]  ;;  %v12426_v1 = vadd.f32 %v12425_v32, %v12424_v48  ;;  %v16189_v43 = vadd.f32 %v12445_v9, %v18469_v52  ;;  %v16195_v3 = vpop.f32.mrf.mxu1 }
 0x2e7   : > { %v3682_v4 = vsel %vm14682_vm12, %v11613_v18, %v3681_v38  ;;  %v3683_v41 = vrot.slane %v3681_v38, 4  ;;  %3767 = vst.msk [vmem:[#allocation3 + $0x314] sm:$0xf] %vm1157_vm2, %v3678_v0  ;;  %v3544_v8 = vld [vmem:[#allocation2 + $0xb0] sm:$0x1]  ;;  %v11614_v15 = vrot.slane %v3542_v17, 9  ;;  %13175 = vmatprep.mubr.bf16.mxu0 %v13568_v24  ;;  %v12447_v24 = vpop.f32.mrf.mxu0 }
 0x2e8   : > { %3768 = vst.msk [vmem:[#allocation3 + $0x338] sm:$0xf] %vm1157_vm2, %v3682_v4  ;;  %v3688_v10 = vrot.slane %v3543_v13, 5  ;;  %v3691_v31 = vrot.slane %v3544_v8, 5  ;;  %v13569_v35 = vld [vmem:[#allocation3 + $0x218] ss:$36 sps:$4 sm:$0xff]   ;;  %v12448_v18 = vadd.f32 %v12447_v24, %v12446_v25  ;;  %v16199_v14 = vadd.f32 %v12426_v1, %v5415_v56  ;;  %v16203_v16 = vpop.f32.mrf.mxu1 }
 0x2e9   : > { %v3685_v50 = vsel %vm14682_vm12, %v3683_v41, %v3684_v44  ;;  %v3545_v19 = vld [vmem:[#allocation2 + $0xb4] sm:$0xe]  ;;  %v3546_v21 = vld [vmem:[#allocation2 + $0xb8] sm:$0xf]  ;;  %v3547_v42 = vld [vmem:[#allocation2 + $0xbc] sm:$0x1] }
 0x2ea   : > { %3769 = vst.msk [vmem:[#allocation3 + $0x35c] sm:$0xf] %vm1157_vm2, %v3685_v50  ;;  %v3689_v63 = vsel %vm14682_vm12, %v11614_v15, %v3688_v10  ;;  %v3690_v59 = vrot.slane %v3688_v10, 4  ;;  %v11615_v51 = vrot.slane %v3545_v19, 9  ;;  %v3695_v20 = vrot.slane %v3546_v21, 5  ;;  %v18470_v0 = vld [vmem:[#allocation16_spill] sm:$0xff]  ;;  %v16209_v8 = vpop.f32.mrf.mxu1  ;;  %v12449_v15 = vpop.f32.mrf.mxu0 }
 0x2eb   : > { %v13570_v37 = vld [vmem:[#allocation3 + $0x260] ss:$36 sps:$4 sm:$0xff]   ;;  %3770 = vst.msk [vmem:[#allocation3 + $0x380] sm:$0xf] %vm1157_vm2, %v3689_v63  ;;  %v3698_v6 = vrot.slane %v3547_v42, 5  ;;  %v16206_v4 = vadd.f32 %v12448_v18, %v18470_v0 }
 0x2ec   : > { %v3692_v27 = vsel %vm14682_vm12, %v3690_v59, %v3691_v31  ;;  %v3696_v40 = vsel %vm14682_vm12, %v11615_v51, %v3695_v20  ;;  %v3697_v12 = vrot.slane %v3695_v20, 4  ;;  %v3548_v34 = vld [vmem:[#allocation2 + $0xc0] sm:$0xe]  ;;  %v3549_v38 = vld [vmem:[#allocation2 + $0xc4] sm:$0xf]  ;;  %v12450_v48 = vpop.f32.mrf.mxu0  ;;  %v16218_v21 = vpop.f32.mrf.mxu1  ;;  %v18471_v42 = vld [vmem:[#allocation17_spill] sm:$0xff] }
 0x2ed   : > { %3771 = vst.msk [vmem:[#allocation3 + $0x3a4] sm:$0xf] %vm1157_vm2, %v3692_v27  ;;  %3772 = vst.msk [vmem:[#allocation3 + $0x3c8] sm:$0xf] %vm1157_vm2, %v3696_v40  ;;  %v3550_v46 = vld [vmem:[#allocation2 + $0xc8] sm:$0x1]  ;;  %v12451_v25 = vadd.f32 %v12450_v48, %v12449_v15 }
 0x2ee   : > { %v11616_v44 = vrot.slane %v3548_v34, 9  ;;  %v3699_v28 = vsel %vm14682_vm12, %v3697_v12, %v3698_v6  ;;  %13176 = vmatmul.mubr.bf16.gmra.mxu0 %v13569_v35  ;;  %v3702_v41 = vrot.slane %v3549_v38, 5  ;;  %v3705_v17 = vrot.slane %v3550_v46, 5  ;;  %v3551_v58 = vld [vmem:[#allocation2 + $0xcc] sm:$0xe]  ;;  %v12452_v63 = vpop.f32.mrf.mxu0  ;;  %v16228_v32 = vpop.f32.mrf.mxu1 }
 0x2ef   : > { %3773 = vst.msk [vmem:[#allocation3 + $0x3ec] sm:$0xf] %vm1157_vm2, %v3699_v28  ;;  %v3552_v49 = vld [vmem:[#allocation2 + $0xd0] sm:$0xf]  ;;  %13179 = vmatprep.mubr.bf16.mxu0 %v13570_v37  ;;  %v3553_v13 = vld [vmem:[#allocation2 + $0xd4] sm:$0x1]  ;;  %v16226_v51 = vadd.f32 %v12451_v25, %v18471_v42 }
 0x2f0   : > { %v13571_v53 = vld [vmem:[#allocation3 + $0x2a8] ss:$36 sps:$4 sm:$0xff]   ;;  %v3703_v29 = vsel %vm14682_vm12, %v11616_v44, %v3702_v41  ;;  %v3704_v61 = vrot.slane %v3702_v41, 4  ;;  %v11617_v50 = vrot.slane %v3551_v58, 9  ;;  %v3709_v10 = vrot.slane %v3552_v49, 5  ;;  %v12453_v20 = vpop.f32.mrf.mxu0  ;;  %v16230_v1 = vpop.f32.mrf.mxu1  ;;  %v13586_v34 = vld [vmem:[#allocation6 + $0x58] sm:$0xff]  }
 0x2f1   : > { %3774 = vst.msk [vmem:[#allocation3 + $0x410] sm:$0xf] %vm1157_vm2, %v3703_v29  ;;  %v3712_v31 = vrot.slane %v3553_v13, 5  ;;  %v13572_v56 = vld [vmem:[#allocation3 + $0x2f0] ss:$36 sps:$4 sm:$0xff]   ;;  %v12454_v37 = vadd.f32 %v12453_v20, %v12452_v63  ;;  %12683 = vmatprep.subr.bf16.mxu1 %v13586_v34  ;;  %v18472_v28 = vld [vmem:[#allocation18_spill] sm:$0xff] }
 0x2f2   : > { %v3706_v9 = vsel %vm14682_vm12, %v3704_v61, %v3705_v17  ;;  %v3710_v35 = vsel %vm14682_vm12, %v11617_v50, %v3709_v10  ;;  %v3711_v19 = vrot.slane %v3709_v10, 4  ;;  %v13573_v6 = vld [vmem:[#allocation3 + $0x338] ss:$36 sps:$4 sm:$0xff]   ;;  %v16235_v27 = vpop.f32.mrf.mxu1  ;;  %v12455_v40 = vpop.f32.mrf.mxu0  ;;  %v13587_v46 = vld [vmem:[#allocation6 + $0x18] sm:$0xff]   ;;  %v18475_v42 = vld [vmem:[#allocation21_spill] sm:$0xff] }
 0x2f3   : > { %3775 = vst.msk [vmem:[#allocation3 + $0x434] sm:$0xf] %vm1157_vm2, %v3706_v9  ;;  %3776 = vst.msk [vmem:[#allocation3 + $0x458] sm:$0xf] %vm1157_vm2, %v3710_v35  ;;  %v16233_v52 = vadd.f32 %v12454_v37, %v15702_v11  ;;  %12684 = vmatpush3.bf16.msra.mxu1 %v13587_v46  ;;  %v18473_v15 = vld [vmem:[#allocation19_spill] sm:$0xff]  ;;  %v18474_v35 = vld [vmem:[#allocation20_spill] sm:$0xff] }
 0x2f4   : > { %v3713_v59 = vsel %vm14682_vm12, %v3711_v19, %v3712_v31  ;;  %v13574_v24 = vld [vmem:[#allocation3 + $0x380] ss:$36 sps:$4 sm:$0xff]   ;;  %v12456_v12 = vpop.f32.mrf.mxu0  ;;  %v16237_v18 = vpop.f32.mrf.mxu1  ;;  %v13589_v34 = vld [vmem:[#allocation6 + $0x10] sm:$0xff]  }
 0x2f5   : > { %3777 = vst.msk [vmem:[#allocation3 + $0x47c] sm:$0xf] %vm1157_vm2, %v3713_v59  ;;  %v12457_v38 = vadd.f32 %v12456_v12, %v12455_v40  ;;  %v13588_v12 = vld [vmem:[#allocation6 + $0x50] sm:$0xff]   ;;  %vm6517_vm2 = vcmask 1040384  }
 0x2f6   : > { %13180 = vmatmul.mubr.bf16.gmra.mxu0 %v13571_v53  ;;  %v12458_v44 = vpop.f32.mrf.mxu0  ;;  %v13575_v11 = vld [vmem:[#allocation3 + $0x3c8] ss:$36 sps:$4 sm:$0xff]   ;;  %v16242_v58 = vpop.f32.mrf.mxu1  ;;  %12685 = vmatprep.subr.bf16.mxu1 %v13588_v12  ;;  %vm16454_vm3 = vmand %vm6517_vm2, %vm833_vm8 }
 0x2f7   : > { %13183 = vmatprep.mubr.bf16.mxu0 %v13572_v56  ;;  %v16240_v0 = vadd.f32 %v12457_v38, %v18472_v28  ;;  %12686 = vmatpush3.bf16.msra.mxu1 %v13589_v34  ;;  %v18485_v34 = vld [vmem:[#allocation25_spill] sm:$0xff] }
 0x2f8   : > { %v12459_v41 = vpop.f32.mrf.mxu0  ;;  %v16244_v13 = vpop.f32.mrf.mxu1 }
 0x2f9   : > { %v12460_v49 = vadd.f32 %v12459_v41, %v12458_v44  ;;  %v18476_v44 = vld [vmem:[#allocation22_spill] sm:$0xff] }
 0x2fa   : > { %v13576_v17 = vld [vmem:[#allocation3 + $0x410] ss:$36 sps:$4 sm:$0xff]   ;;  %v16249_v29 = vpop.f32.mrf.mxu1  ;;  %v12461_v61 = vpop.f32.mrf.mxu0 }
 0x2fb   : > { %v16247_v53 = vadd.f32 %v12460_v49, %v18473_v15  ;;  %v18478_v49 = vld [vmem:[#allocation23_spill] sm:$0xff] }
 0x2fc   : > { %v13577_v50 = vld [vmem:[#allocation3 + $0x458] ss:$36 sps:$4 sm:$0xff]   ;;  %v12462_v10 = vpop.f32.mrf.mxu0  ;;  %v16251_v31 = vpop.f32.mrf.mxu1 }
 0x2fd   : > { %v12463_v48 = vadd.f32 %v12462_v10, %v12461_v61 }
 0x2fe   : > { %13184 = vmatmul.mubr.bf16.gmra.mxu0 %v13573_v6  ;;  %v12464_v9 = vpop.f32.mrf.mxu0  ;;  %v16256_v25 = vpop.f32.mrf.mxu1 }
 0x2ff   : > { %13187 = vmatprep.mubr.bf16.mxu0 %v13574_v24  ;;  %v16254_v19 = vadd.f32 %v12463_v48, %v18474_v35  ;;  %v13590_v35 = vld [vmem:[#allocation6 + $0xf8] sm:$0xff]  }
 0x300   : > { %v12465_v56 = vpop.f32.mrf.mxu0  ;;  %v16258_v59 = vpop.f32.mrf.mxu1  ;;  %12787 = vmatprep.subr.bf16.mxu0 %v13590_v35 }
 0x301   : > { %v12466_v63 = vadd.f32 %v12465_v56, %v12464_v9 }
 0x302   : > { %v16263_v37 = vpop.f32.mrf.mxu1  ;;  %v12467_v6 = vpop.f32.mrf.mxu0 }
 0x303   : > { %v16261_v20 = vadd.f32 %v12466_v63, %v18475_v42  ;;  %v18482_v63 = vld [vmem:[#allocation24_spill] sm:$0xff] }
 0x304   : > { %v12468_v24 = vpop.f32.mrf.mxu0  ;;  %v16265_v38 = vpop.f32.mrf.mxu1 }
 0x305   : > { %v12469_v40 = vadd.f32 %v12468_v24, %v12467_v6  ;;  %v13592_v6 = vld [vmem:[#allocation6 + $0xb8] sm:$0xff]  }
 0x306   : > { %13188 = vmatmul.mubr.bf16.gmra.mxu0 %v13575_v11  ;;  %v12470_v46 = vpop.f32.mrf.mxu0 }
 0x307   : > { %13191 = vmatprep.mubr.bf16.mxu0 %v13576_v17  ;;  %v16268_v28 = vadd.f32 %v12469_v40, %v18476_v44  ;;  %v16270_v17 = vpop.f32.mrf.mxu1  ;;  %12788 = vmatpush3.bf16.msra.mxu0 %v13592_v6  ;;  %v13594_v44 = vld [vmem:[#allocation6 + $0xf0] sm:$0xff]  }
 0x308   : > { %v12471_v11 = vpop.f32.mrf.mxu0  ;;  %12789 = vmatprep.subr.bf16.mxu0 %v13594_v44 }
 0x309   : > { %18477 = vst [vmem:[#allocation15_spill] sm:$0xff] %v16268_v28  ;;  %v12472_v41 = vadd.f32 %v12471_v11, %v12470_v46  ;;  %v13593_v28 = vld [vmem:[#allocation6 + $0x8] sm:$0xff]  }
 0x30a   : > { %v12473_v61 = vpop.f32.mrf.mxu0 }
 0x30b   : > { %v16273_v15 = vadd.f32 %v12472_v41, %v18478_v49  ;;  %v13595_v41 = vld [vmem:[#allocation6 + $0xb0] sm:$0xff]  }
 0x30c   : > { %v12474_v10 = vpop.f32.mrf.mxu0  ;;  %12790 = vmatpush3.bf16.msra.mxu0 %v13595_v41 }
 0x30d   : > { %18479 = vst [vmem:[#allocation16_spill] sm:$0xff] %v16273_v15  ;;  %v12475_v48 = vadd.f32 %v12474_v10, %v12473_v61 }
 0x30e   : > { %13192 = vmatmul.mubr.bf16.gmra.mxu0 %v13577_v50  ;;  %v16275_v50 = vpop.f32.mrf.mxu1  ;;  %v12476_v9 = vpop.f32.mrf.mxu0 }
 0x30f   : > { %18480 = vst [vmem:[#allocation17_spill] sm:$0xff] %v16275_v50  ;;  %v16280_v42 = vadd.f32 %v12475_v48, %v18482_v63  ;;  %v13596_v48 = vld [vmem:[#allocation6 + $0xe8] sm:$0xff]  }
 0x310   : > { %v16277_v56 = vpop.f32.mrf.mxu1  ;;  %v12477_v24 = vpop.f32.mrf.mxu0  ;;  %12791 = vmatprep.subr.bf16.mxu0 %v13596_v48 }
 0x311   : > { %18481 = vst [vmem:[#allocation18_spill] sm:$0xff] %v16277_v56  ;;  %18483 = vst [vmem:[#allocation19_spill] sm:$0xff] %v16280_v42  ;;  %v12478_v40 = vadd.f32 %v12477_v24, %v12476_v9  ;;  %v18489_v9 = vld [vmem:[#allocation26_spill] sm:$0xff]  ;;  %v13591_v42 = vld [vmem:[#allocation6 + $0x48] sm:$0xff]  }
 0x312   : > { %v16282_v12 = vpop.f32.mrf.mxu1  ;;  %12687 = vmatprep.subr.bf16.mxu1 %v13591_v42 }
 0x313   : > { %18484 = vst [vmem:[#allocation20_spill] sm:$0xff] %v16282_v12  ;;  %v16285_v46 = vadd.f32 %v12478_v40, %v18485_v34  ;;  %v18492_v34 = vld [vmem:[#allocation27_spill] sm:$0xff]  ;;  %12688 = vmatpush3.bf16.msra.mxu1 %v13593_v28  ;;  %v6693_v12 = vld [vmem:[#allocation4 + $0x8] sm:$0x1] }
 0x314   : > { %v16287_v49 = vpop.f32.mrf.mxu1  ;;  %v13600_v28 = vld [vmem:[#allocation6 + $0xd8] sm:$0xff]  }
 0x315   : > { %18486 = vst [vmem:[#allocation21_spill] sm:$0xff] %v16285_v46  ;;  %v12479_v11 = vpop.f32.mrf.mxu0  ;;  %18487 = vst [vmem:[#allocation22_spill] sm:$0xff] %v16287_v49  ;;  %v13603_v49 = vld [vmem:[#allocation6] sm:$0xff]  }
 0x316   : > { %v16289_v15 = vpop.f32.mrf.mxu1 }
 0x317   : > { %v12480_v61 = vpop.f32.mrf.mxu0  ;;  %18488 = vst [vmem:[#allocation23_spill] sm:$0xff] %v16289_v15  ;;  %v13597_v15 = vld [vmem:[#allocation6 + $0xa8] sm:$0xff]  }
 0x318   : > { %v12481_v10 = vadd.f32 %v12480_v61, %v12479_v11  ;;  %v16294_v40 = vpop.f32.mrf.mxu1  ;;  %12792 = vmatpush3.bf16.msra.mxu0 %v13597_v15 }
 0x319   : > { %v12482_v63 = vpop.f32.mrf.mxu0  ;;  %18491 = vst [vmem:[#allocation25_spill] sm:$0xff] %v16294_v40 }
 0x31a   : > { %v16292_v35 = vadd.f32 %v12481_v10, %v18489_v9  ;;  %v16299_v41 = vpop.f32.mrf.mxu1  ;;  %v18495_v9 = vld [vmem:[#allocation28_spill] sm:$0xff] }
 0x31b   : > { %v12483_v6 = vpop.f32.mrf.mxu0  ;;  %18494 = vst [vmem:[#allocation27_spill] sm:$0xff] %v16299_v41 }
 0x31c   : > { %18490 = vst [vmem:[#allocation24_spill] sm:$0xff] %v16292_v35  ;;  %v12484_v24 = vadd.f32 %v12483_v6, %v12482_v63  ;;  %v18498_v35 = vld [vmem:[#allocation29_spill] sm:$0xff] }
 0x31e   : > { %v16297_v44 = vadd.f32 %v12484_v24, %v18492_v34  ;;  %v16304_v63 = vpop.f32.mrf.mxu1  ;;  %v13598_v24 = vld [vmem:[#allocation6 + $0xe0] sm:$0xff]  }
 0x31f   : > { %18497 = vst [vmem:[#allocation30_spill] sm:$0xff] %v16304_v63  ;;  %12793 = vmatprep.subr.bf16.mxu0 %v13598_v24 }
 0x320   : > { %18493 = vst [vmem:[#allocation26_spill] sm:$0xff] %v16297_v44  ;;  %v13599_v44 = vld [vmem:[#allocation6 + $0xa0] sm:$0xff]   ;;  %v16309_v42 = vpop.f32.mrf.mxu1 }
 0x321   : > { %12794 = vmatpush3.bf16.msra.mxu0 %v13599_v44  ;;  %18500 = vst [vmem:[#allocation31_spill] sm:$0xff] %v16309_v42 }
 0x322   : > { %v12485_v46 = vpop.f32.mrf.mxu0  ;;  %12795 = vmatprep.subr.bf16.mxu0 %v13600_v28  ;;  %v16311_v15 = vpop.f32.mrf.mxu1 }
 0x323   : > { %18501 = vst [vmem:[#allocation32_spill] sm:$0xff] %v16311_v15 }
 0x324   : > { %v12486_v11 = vpop.f32.mrf.mxu0  ;;  %v16316_v28 = vpop.f32.mrf.mxu1 }
 0x325   : > { %v12487_v61 = vadd.f32 %v12486_v11, %v12485_v46  ;;  %v13602_v11 = vld [vmem:[#allocation6 + $0x98] sm:$0xff]  }
 0x326   : > { %v12488_v10 = vpop.f32.mrf.mxu0  ;;  %12796 = vmatpush3.bf16.msra.mxu0 %v13602_v11 }
 0x327   : > { %v16302_v48 = vadd.f32 %v12487_v61, %v18495_v9 }
 0x328   : > { %v12489_v6 = vpop.f32.mrf.mxu0 }
 0x329   : > { %18496 = vst [vmem:[#allocation28_spill] sm:$0xff] %v16302_v48  ;;  %v12490_v34 = vadd.f32 %v12489_v6, %v12488_v10  ;;  %v13604_v48 = vld [vmem:[#allocation6 + $0xd0] sm:$0xff]   ;;  %v6691_v10 = vld [vmem:[#allocation4] sm:$0xf]  ;;  %v6692_v6 = vld [vmem:[#allocation4 + $0x4] sm:$0xf] }
 0x32a   : > { %12797 = vmatprep.subr.bf16.mxu0 %v13604_v48  ;;  %v6743_v44 = vshll.u32 %v6691_v10, 16  ;;  %v6749_v42 = vshll.u32 %v6692_v6, 16  ;;  %v6753_v41 = vshrl.u32 %v6692_v6, 16  ;;  %v16321_v6 = vpop.f32.mrf.mxu1 }
 0x32b   : > { %v16307_v40 = vadd.f32 %v12490_v34, %v18498_v35  ;;  %v6740_v35 = vshrl.u32 %v6691_v10, 16 }
 0x32c   : > { %v6751_v56 = vrot.slane %v6749_v42, 5  ;;  %v6755_v50 = vrot.slane %v6753_v41, 4 }
 0x32d   : > { %18499 = vst [vmem:[#allocation29_spill] sm:$0xff] %v16307_v40  ;;  %v13601_v40 = vld [vmem:[#allocation6 + $0x40] sm:$0xff]   ;;  %v6742_v15 = vrot.slane %v6740_v35, 4 }
 0x32e   : > { %12689 = vmatprep.subr.bf16.mxu1 %v13601_v40  ;;  %v6756_v10 = vor.u32 %v6755_v50, %v6751_v56  ;;  %v6628_v40 = vld [vmem:[#allocation4 + $0x4] sm:$0xf]  ;;  %v16327_v50 = vpop.f32.mrf.mxu1 }
 0x32f   : > { %v12491_v46 = vpop.f32.mrf.mxu0  ;;  %12690 = vmatpush3.bf16.msra.mxu1 %v13603_v49  ;;  %6660 = vst [vmem:[#allocation5 + $0x24] sm:$0xf] %v6628_v40  ;;  %v7188_v49 = vld [vmem:[#allocation4 + $0x4] sm:$0xf] }
 0x331   : > { %v12492_v61 = vpop.f32.mrf.mxu0 }
 0x332   : > { %v12493_v9 = vadd.f32 %v12492_v61, %v12491_v46  ;;  %v6745_v46 = vrot.slane %v6743_v44, 5  ;;  %v13605_v61 = vld [vmem:[#allocation6 + $0x90] sm:$0xff]   ;;  %v6627_v44 = vld [vmem:[#allocation4] sm:$0xf] }
 0x333   : > { %v12494_v63 = vpop.f32.mrf.mxu0  ;;  %12798 = vmatpush3.bf16.msra.mxu0 %v13605_v61  ;;  %6659 = vst [vmem:[#allocation5] sm:$0xf] %v6627_v44 }
 0x334   : > { %v16314_v24 = vadd.f32 %v12493_v9, %v15929_v45  ;;  %v6746_v48 = vor.u32 %v6745_v46, %v6742_v15  ;;  %v6759_v9 = vshll.u32 %v6693_v12, 16  ;;  %v7187_v12 = vld [vmem:[#allocation4] sm:$0xe] }
 0x335   : > { %v12495_v34 = vpop.f32.mrf.mxu0  ;;  %v11867_v15 = vrot.slane %v7187_v12, 9 }
 0x336   : > { %18502 = vst [vmem:[#allocation33_spill] sm:$0xff] %v16314_v24  ;;  %v12496_v11 = vadd.f32 %v12495_v34, %v12494_v63  ;;  %v6747_v24 = vrot.slane %v6746_v48, 4  ;;  %v6761_v63 = vrot.slane %v6759_v9, 5  ;;  %v6757_v34 = vrot.slane %v6756_v10, 4  ;;  %v16334_v9 = vpop.f32.mrf.mxu1 }
 0x338   : > { %v16319_v45 = vadd.f32 %v12496_v11, %v15975_v60  ;;  %v6752_v42 = vsel %vm14676_vm9, %v6747_v24, %v6751_v56  ;;  %v6762_v60 = vsel %vm14676_vm9, %v6757_v34, %v6761_v63  ;;  %v7285_v11 = vrot.slane %v7188_v49, 5  ;;  %v7189_v24 = vld [vmem:[#allocation4 + $0x8] sm:$0x1]  ;;  %v13606_v63 = vld [vmem:[#allocation6 + $0xc8] sm:$0xff]   ;;  %v16341_v49 = vpop.f32.mrf.mxu1 }
 0x339   : > { %7155 = vst [vmem:[#allocation5 + $0x4] sm:$0xf] %v6752_v42  ;;  %7156 = vst [vmem:[#allocation5 + $0x28] sm:$0xf] %v6762_v60  ;;  %v7288_v44 = vrot.slane %v7189_v24, 5  ;;  %v13607_v42 = vld [vmem:[#allocation6 + $0x88] sm:$0xff]   ;;  %12799 = vmatprep.subr.bf16.mxu0 %v13606_v63 }
 0x33a   : > { %v7286_v48 = vsel %vm14682_vm12, %v11867_v15, %v7285_v11  ;;  %v7287_v34 = vrot.slane %v7285_v11, 4  ;;  %12800 = vmatpush3.bf16.msra.mxu0 %v13607_v42  ;;  %v13611_v15 = vld [vmem:[#allocation6 + $0xc0] sm:$0xff]  }
 0x33b   : > { %7427 = vst [vmem:[#allocation5 + $0x8] sm:$0xf] %v7286_v48  ;;  %12801 = vmatprep.subr.bf16.mxu0 %v13611_v15  ;;  %v16343_v48 = vpop.f32.mrf.mxu1 }
 0x33d   : > { %v12497_v35 = vpop.f32.mrf.mxu0 }
 0x33f   : > { %v12498_v41 = vpop.f32.mrf.mxu0 }
 0x340   : > { %v12499_v46 = vadd.f32 %v12498_v41, %v12497_v35  ;;  %v7289_v35 = vsel %vm14682_vm12, %v7287_v34, %v7288_v44  ;;  %v13610_v12 = vld [vmem:[#allocation5 + $0x4] ss:$36 sps:$4 sm:$0xff]   ;;  %v16348_v34 = vpop.f32.mrf.mxu1 }
 0x341   : > { %v12500_v61 = vpop.f32.mrf.mxu0  ;;  %7428 = vst [vmem:[#allocation5 + $0x2c] sm:$0xf] %v7289_v35  ;;  %10635 = vmatprep.mubr.bf16.mxu1 %v13610_v12 }
 0x342   : > { %v16332_v56 = vadd.f32 %v12499_v46, %v15995_v30  ;;  %v13608_v30 = vld [vmem:[#allocation5] ss:$36 sps:$4 sm:$0xff]  }
 0x343   : > { %v12501_v10 = vpop.f32.mrf.mxu0  ;;  %10636 = vmatmul.mubr.bf16.vlgmr.msra.gmra.mxu1 %v13608_v30  ;;  %v13612_v46 = vld [vmem:[#allocation6 + $0x80] sm:$0xff]  }
 0x344   : > { %v12502_v40 = vadd.f32 %v12501_v10, %v12500_v61  ;;  %12802 = vmatpush3.bf16.msra.mxu0 %v13612_v46 }
 0x346   : > { %v16339_v60 = vadd.f32 %v12502_v40, %v16026_v7  ;;  %v16353_v40 = vpop.f32.mrf.mxu1 }
 0x348   : > { %18503 = vst [vmem:[#allocation34_spill] sm:$0xff] %v16339_v60  ;;  %v12503_v41 = vpop.f32.mrf.mxu0  ;;  %v16355_v12 = vpop.f32.mrf.mxu1  ;;  %v13637_v60 = vld [vmem:[#allocation6 + $0x130] sm:$0xff]  }
 0x34a   : > { %v12504_v11 = vpop.f32.mrf.mxu0  ;;  %v16360_v46 = vpop.f32.mrf.mxu1 }
 0x34b   : > { %v12505_v61 = vadd.f32 %v12504_v11, %v12503_v41 }
 0x34c   : > { %v12506_v24 = vpop.f32.mrf.mxu0 }
 0x34d   : > { %v16346_v7 = vadd.f32 %v12505_v61, %v16054_v33 }
 0x34e   : > { %v12507_v10 = vpop.f32.mrf.mxu0 }
 0x34f   : > { %18504 = vst [vmem:[#allocation35_spill] sm:$0xff] %v16346_v7  ;;  %v12508_v63 = vadd.f32 %v12507_v10, %v12506_v24 }
 0x351   : > { %v16351_v44 = vadd.f32 %v12508_v63, %v16064_v57  ;;  %v16365_v57 = vpop.f32.mrf.mxu1 }
 0x353   : > { %18505 = vst [vmem:[#allocation36_spill] sm:$0xff] %v16351_v44  ;;  %v16367_v54 = vpop.f32.mrf.mxu1 }
 0x355   : > { %v16372_v62 = vpop.f32.mrf.mxu1 }
 0x356   : > { %v12509_v42 = vpop.f32.mrf.mxu0 }
 0x358   : > { %v12510_v35 = vpop.f32.mrf.mxu0 }
 0x359   : > { %v12511_v30 = vadd.f32 %v12510_v35, %v12509_v42 }
 0x35a   : > { %v12512_v41 = vpop.f32.mrf.mxu0 }
 0x35b   : > { %v16358_v15 = vadd.f32 %v12511_v30, %v16093_v26 }
 0x35c   : > { %v12513_v33 = vpop.f32.mrf.mxu0 }
 0x35d   : > { %18506 = vst [vmem:[#allocation37_spill] sm:$0xff] %v16358_v15  ;;  %v12514_v11 = vadd.f32 %v12513_v33, %v12512_v41  ;;  %v13616_v41 = vld [vmem:[#allocation6 + $0x178] sm:$0xff]  }
 0x35e   : > { %v13617_v33 = vld [vmem:[#allocation6 + $0x138] sm:$0xff]   ;;  %12899 = vmatprep.subr.bf16.mxu1 %v13616_v41 }
 0x35f   : > { %v16363_v61 = vadd.f32 %v12514_v11, %v16109_v22  ;;  %12900 = vmatpush3.bf16.msra.mxu1 %v13617_v33 }
 0x361   : > { %18507 = vst [vmem:[#allocation38_spill] sm:$0xff] %v16363_v61  ;;  %v16377_v61 = vpop.f32.mrf.mxu1 }
 0x363   : > { %v16379_v44 = vpop.f32.mrf.mxu1 }
 0x366   : > { %v12515_v24 = vpop.f32.mrf.mxu0 }
 0x368   : > { %v12516_v10 = vpop.f32.mrf.mxu0 }
 0x369   : > { %v12517_v63 = vadd.f32 %v12516_v10, %v12515_v24 }
 0x36a   : > { %v12518_v42 = vpop.f32.mrf.mxu0 }
 0x36b   : > { %v16370_v35 = vadd.f32 %v12517_v63, %v16111_v39 }
 0x36c   : > { %v12519_v26 = vpop.f32.mrf.mxu0 }
 0x36d   : > { %18508 = vst [vmem:[#allocation39_spill] sm:$0xff] %v16370_v35  ;;  %v12520_v30 = vadd.f32 %v12519_v26, %v12518_v42  ;;  %v16384_v26 = vpop.f32.mrf.mxu1 }
 0x36f   : > { %v16375_v22 = vadd.f32 %v12520_v30, %v16131_v47  ;;  %v16389_v41 = vpop.f32.mrf.mxu1 }
 0x371   : > { %18509 = vst [vmem:[#allocation40_spill] sm:$0xff] %v16375_v22 }
 0x373   : > { %v12521_v11 = vpop.f32.mrf.mxu0 }
 0x375   : > { %v12522_v24 = vpop.f32.mrf.mxu0 }
 0x376   : > { %v12523_v10 = vadd.f32 %v12522_v24, %v12521_v11  ;;  %v16394_v24 = vpop.f32.mrf.mxu1 }
 0x377   : > { %v12524_v15 = vpop.f32.mrf.mxu0 }
 0x378   : > { %v16382_v39 = vadd.f32 %v12523_v10, %v16133_v2 }
 0x379   : > { %v12525_v63 = vpop.f32.mrf.mxu0 }
 0x37a   : > { %18510 = vst [vmem:[#allocation41_spill] sm:$0xff] %v16382_v39  ;;  %v12526_v42 = vadd.f32 %v12525_v63, %v12524_v15  ;;  %v16399_v63 = vpop.f32.mrf.mxu1 }
 0x37c   : > { %v16387_v47 = vadd.f32 %v12526_v42, %v16144_v5  ;;  %v16403_v39 = vpop.f32.mrf.mxu1 }
 0x37e   : > { %18511 = vst [vmem:[#allocation42_spill] sm:$0xff] %v16387_v47  ;;  %v12563_v47 = vadd.f32 %v16230_v1, %v16228_v32 }
 0x380   : > { %v12527_v30 = vpop.f32.mrf.mxu0 }
 0x382   : > { %v12528_v33 = vpop.f32.mrf.mxu0 }
 0x383   : > { %v12529_v22 = vadd.f32 %v12528_v33, %v12527_v30 }
 0x384   : > { %v12530_v35 = vpop.f32.mrf.mxu0 }
 0x385   : > { %v16392_v11 = vadd.f32 %v12529_v22, %v16155_v55  ;;  %v12557_v55 = vadd.f32 %v16203_v16, %v16195_v3  ;;  %v12575_v16 = vadd.f32 %v16258_v59, %v16256_v25 }
 0x386   : > { %v12531_v2 = vpop.f32.mrf.mxu0 }
 0x387   : > { %18512 = vst [vmem:[#allocation43_spill] sm:$0xff] %v16392_v11  ;;  %v12532_v10 = vadd.f32 %v12531_v2, %v12530_v35  ;;  %v16412_v2 = vpop.f32.mrf.mxu1 }
 0x389   : > { %v16397_v15 = vadd.f32 %v12532_v10, %v16163_v36  ;;  %v12566_v36 = vadd.f32 %v16237_v18, %v16235_v27  ;;  %v16423_v27 = vpop.f32.mrf.mxu1 }
 0x38b   : > { %18513 = vst [vmem:[#allocation44_spill] sm:$0xff] %v16397_v15  ;;  %v5783_v15 = vadd.f32 %v12563_v47, %v16226_v51  ;;  %v5786_v51 = vadd.f32 %v12566_v36, %v16233_v52  ;;  %v12572_v47 = vadd.f32 %v16251_v31, %v16249_v29 }
 0x38e   : > { %v12533_v5 = vpop.f32.mrf.mxu0 }
 0x390   : > { %v12534_v42 = vpop.f32.mrf.mxu0 }
 0x391   : > { %v12535_v30 = vadd.f32 %v12534_v42, %v12533_v5  ;;  %v5775_v42 = vadd.f32 %v12557_v55, %v16189_v43  ;;  %v16433_v55 = vpop.f32.mrf.mxu1 }
 0x392   : > { %v12536_v33 = vpop.f32.mrf.mxu0 }
 0x393   : > { %v16408_v22 = vadd.f32 %v12535_v30, %v16182_v23  ;;  %v12560_v23 = vadd.f32 %v16218_v21, %v16209_v8  ;;  %v12578_v21 = vadd.f32 %v16265_v38, %v16263_v37 }
 0x394   : > { %v12537_v35 = vpop.f32.mrf.mxu0 }
 0x395   : > { %18514 = vst [vmem:[#allocation45_spill] sm:$0xff] %v16408_v22  ;;  %v12538_v10 = vadd.f32 %v12537_v35, %v12536_v33  ;;  %v5778_v25 = vadd.f32 %v12560_v23, %v16206_v4  ;;  %v13633_v4 = vld [vmem:[#allocation6 + $0x170] sm:$0xff]   ;;  %v6522_v23 = vld [vmem:[#allocation4 + $0x18] sm:$0xf] }
 0x396   : > { %v13165_v32 = vpop.f32.mrf.mxu0  ;;  %12901 = vmatprep.subr.bf16.mxu1 %v13633_v4 }
 0x397   : > { %v16416_v1 = vadd.f32 %v12538_v10, %v16199_v14  ;;  %v5944_v5 = vadd.f32 %v13165_v32, %v5783_v15  ;;  %v12569_v14 = vadd.f32 %v16244_v13, %v16242_v58  ;;  %v5799_v58 = vadd.f32 %v12575_v16, %v16254_v19  ;;  %12902 = vmatpush3.bf16.msra.mxu1 %v13637_v60  ;;  %v6540_v60 = vld [vmem:[#allocation4 + $0x38] sm:$0x1] }
 0x398   : > { %v5935_v3 = vpop.f32.mrf.mxu0  ;;  %v5794_v10 = vadd.f32 %v12572_v47, %v16247_v53 }
 0x399   : > { %18515 = vst [vmem:[#allocation46_spill] sm:$0xff] %v16416_v1  ;;  %v6064_v18 = vmax.f32 %v5944_v5, 0.0  ;;  %v5936_v30 = vadd.f32 %v5935_v3, %v5775_v42  ;;  %v5791_v31 = vadd.f32 %v12569_v14, %v16240_v0  ;;  %v16444_v0 = vpop.f32.mrf.mxu1  ;;  %v18534_v1 = vld [vmem:[#allocation16_spill] sm:$0xff] }
 0x39a   : > { %v13166_v43 = vpop.f32.mrf.mxu0 }
 0x39b   : > { %v12172_v15 = vpack.c.bf16 %v6064_v18, %v6064_v18  ;;  %v6062_v33 = vmax.f32 %v5936_v30, 0.0  ;;  %v5947_v8 = vadd.f32 %v13166_v43, %v5786_v51  ;;  %v5802_v18 = vadd.f32 %v12578_v21, %v16261_v20  ;;  %v6513_v43 = vld [vmem:[#allocation4 + $0xc] sm:$0xf] }
 0x39c   : > { %v5938_v59 = vpop.f32.mrf.mxu0 }
 0x39d   : > { %v6208_v35 = vshrl.u32 %v12172_v15, 16  ;;  %v12170_v52 = vpack.c.bf16 %v6062_v33, %v6062_v33  ;;  %v6065_v13 = vmax.f32 %v5947_v8, 0.0  ;;  %v5939_v36 = vadd.f32 %v5938_v59, %v5778_v25 }
 0x39e   : > { %v13169_v29 = vpop.f32.mrf.mxu0  ;;  %v6211_v5 = vshll.u32 %v12172_v15, 16 }
 0x39f   : > { %v6210_v32 = vrot.slane %v6208_v35, 7  ;;  %v6191_v37 = vshrl.u32 %v12170_v52, 16  ;;  %v5960_v38 = vadd.f32 %v13169_v29, %v5799_v58  ;;  %v12173_v3 = vpack.c.bf16 %v6065_v13, %v6065_v13 }
 0x3a0   : > { %v6063_v19 = vmax.f32 %v5939_v36, 0.0  ;;  %v5951_v16 = vpop.f32.mrf.mxu0  ;;  %v6194_v51 = vshll.u32 %v12170_v52, 16 }
 0x3a1   : > { %v6213_v53 = vor.u32 %v6211_v5, %v6210_v32  ;;  %v6193_v30 = vrot.slane %v6191_v37, 7  ;;  %v6068_v14 = vmax.f32 %v5960_v38, 0.0  ;;  %v6214_v47 = vrot.slane %v6210_v32, 4  ;;  %v16448_v5 = vpop.f32.mrf.mxu1  ;;  %v6526_v37 = vld [vmem:[#allocation4 + $0x20] sm:$0x1] }
 0x3a2   : > { %v6216_v15 = vshrl.u32 %v12173_v3, 16  ;;  %v12171_v33 = vpack.c.bf16 %v6063_v19, %v6063_v19  ;;  %v5952_v8 = vadd.f32 %v5951_v16, %v5791_v31  ;;  %v13170_v25 = vpop.f32.mrf.mxu0  ;;  %v6219_v58 = vshll.u32 %v12173_v3, 16 }
 0x3a3   : > { %v6523_v59 = vsel %vm16439_vm1, %v6213_v53, %v6522_v23  ;;  %v6196_v35 = vor.u32 %v6194_v51, %v6193_v30  ;;  %v12176_v13 = vpack.c.bf16 %v6068_v14, %v6068_v14  ;;  %v6197_v20 = vrot.slane %v6193_v30, 4  ;;  %v6519_v51 = vld [vmem:[#allocation4 + $0x14] sm:$0x1] }
 0x3a4   : > { %6524 = vst [vmem:[#allocation4 + $0x18] sm:$0xf] %v6523_v59  ;;  %v6218_v21 = vrot.slane %v6216_v15, 7  ;;  %v6199_v36 = vshrl.u32 %v12171_v33, 16  ;;  %v6066_v29 = vmax.f32 %v5952_v8, 0.0  ;;  %v5954_v52 = vpop.f32.mrf.mxu0  ;;  %v6202_v38 = vshll.u32 %v12171_v33, 16 }
 0x3a5   : > { %v6514_v32 = vsel %vm16439_vm1, %v6196_v35, %v6513_v43  ;;  %v6242_v4 = vshrl.u32 %v12176_v13, 16  ;;  %v5963_v23 = vadd.f32 %v13170_v25, %v5802_v18  ;;  %v6245_v53 = vshll.u32 %v12176_v13, 16  ;;  %v16468_v13 = vpop.f32.mrf.mxu1 }
 0x3a6   : > { %6515 = vst [vmem:[#allocation4 + $0xc] sm:$0xf] %v6514_v32  ;;  %v6221_v3 = vor.u32 %v6219_v58, %v6218_v21  ;;  %v6223_v19 = vrot.slane %v6218_v21, 4  ;;  %v6201_v16 = vrot.slane %v6199_v36, 7  ;;  %v16458_v30 = vpop.f32.mrf.mxu0  ;;  %v12174_v43 = vpack.c.bf16 %v6066_v29, %v6066_v29  ;;  %v6536_v58 = vld [vmem:[#allocation4 + $0x30] sm:$0xf] }
 0x3a7   : > { %v16460_v14 = vrot.slane %v6242_v4, 7  ;;  %v6069_v15 = vmax.f32 %v5963_v23, 0.0  ;;  %v5955_v8 = vadd.f32 %v5954_v52, %v5794_v10  ;;  %v18521_v29 = vld [vmem:[#allocation17_spill] sm:$0xff] }
 0x3a8   : > { %v6222_v35 = vsel %vm14700_vm14, %v6214_v47, %v6221_v3  ;;  %v6527_v33 = vsel %vm16454_vm3, %v6223_v19, %v6526_v37  ;;  %v6204_v18 = vor.u32 %v6202_v38, %v6201_v16  ;;  %v6206_v25 = vrot.slane %v6201_v16, 4  ;;  %v16466_v21 = vpop.f32.mrf.mxu0  ;;  %v18522_v3 = vld [vmem:[#allocation18_spill] sm:$0xff]  ;;  %v18523_v19 = vld [vmem:[#allocation20_spill] sm:$0xff] }
 0x3a9   : > { %6525 = vst [vmem:[#allocation4 + $0x1c] sm:$0xf] %v6222_v35  ;;  %6528 = vst [vmem:[#allocation4 + $0x20] sm:$0x1] %v6527_v33  ;;  %v6247_v36 = vor.u32 %v6245_v53, %v16460_v14  ;;  %v12581_v10 = vadd.f32 %v18521_v29, %v16270_v17  ;;  %v6067_v32 = vmax.f32 %v5955_v8, 0.0  ;;  %v6225_v4 = vshrl.u32 %v12174_v43, 16 }
 0x3aa   : > { %v6205_v47 = vsel %vm14700_vm14, %v6197_v20, %v6204_v18  ;;  %v6520_v52 = vsel %vm16454_vm3, %v6206_v25, %v6519_v51  ;;  %v16477_v37 = vpop.f32.mrf.mxu0  ;;  %v12177_v23 = vpack.c.bf16 %v6069_v15, %v6069_v15  ;;  %v12584_v16 = vadd.f32 %v18523_v19, %v18522_v3  ;;  %v18524_v17 = vld [vmem:[#allocation22_spill] sm:$0xff]  ;;  %v18525_v53 = vld [vmem:[#allocation23_spill] sm:$0xff]  ;;  %v18526_v20 = vld [vmem:[#allocation25_spill] sm:$0xff] }
 0x3ab   : > { %6516 = vst [vmem:[#allocation4 + $0x10] sm:$0xf] %v6205_v47  ;;  %6521 = vst [vmem:[#allocation4 + $0x14] sm:$0x1] %v6520_v52  ;;  %v6537_v38 = vsel %vm16439_vm1, %v6247_v36, %v6536_v58  ;;  %v12587_v35 = vadd.f32 %v18525_v53, %v18524_v17  ;;  %v18527_v33 = vld [vmem:[#allocation27_spill] sm:$0xff]  ;;  %v18528_v51 = vld [vmem:[#allocation30_spill] sm:$0xff]  ;;  %v12599_v15 = vadd.f32 %v16327_v50, %v16321_v6  ;;  %v16495_v36 = vpop.f32.mrf.mxu1 }
 0x3ac   : > { %v12590_v18 = vadd.f32 %v18527_v33, %v18526_v20  ;;  %v18529_v8 = vld [vmem:[#allocation31_spill] sm:$0xff]  ;;  %6538 = vst [vmem:[#allocation4 + $0x30] sm:$0xf] %v6537_v38  ;;  %v7461_v29 = vld [vmem:[#allocation4 + $0x18] sm:$0xf]  ;;  %v12602_v58 = vadd.f32 %v16341_v49, %v16334_v9  ;;  %v12175_v3 = vpack.c.bf16 %v6067_v32, %v6067_v32  ;;  %v12605_v19 = vadd.f32 %v16348_v34, %v16343_v48  ;;  %v5970_v38 = vpop.f32.mrf.mxu0  ;;  %v18533_v9 = vld [vmem:[#allocation21_spill] sm:$0xff] }
 0x3ad   : > { %v12593_v25 = vadd.f32 %v18529_v8, %v18528_v51  ;;  %v18530_v47 = vld [vmem:[#allocation32_spill] sm:$0xff]  ;;  %7493 = vst [vmem:[#allocation5 + $0x54] sm:$0xf] %v7461_v29  ;;  %v18531_v17 = vld [vmem:[#allocation15_spill] sm:$0xff]  ;;  %v7459_v20 = vld [vmem:[#allocation4 + $0xc] sm:$0xf]  ;;  %v5810_v32 = vadd.f32 %v12584_v16, %v18534_v1  ;;  %v16504_v11 = vpop.f32.mrf.mxu1 }
 0x3ae   : > { %v12596_v52 = vadd.f32 %v16316_v28, %v18530_v47  ;;  %v5807_v53 = vadd.f32 %v12581_v10, %v18531_v17  ;;  %v6227_v33 = vrot.slane %v6225_v4, 7  ;;  %v6228_v51 = vshll.u32 %v12174_v43, 16  ;;  %7491 = vst [vmem:[#allocation5 + $0xc] sm:$0xf] %v7459_v20  ;;  %v6529_v6 = vld [vmem:[#allocation4 + $0x24] sm:$0xf]  ;;  %v13177_v1 = vpop.f32.mrf.mxu0 }
 0x3af   : > { %v6250_v28 = vshrl.u32 %v12177_v23, 16  ;;  %v6233_v8 = vshrl.u32 %v12175_v3, 16  ;;  %v18532_v50 = vld [vmem:[#allocation19_spill] sm:$0xff]  ;;  %v5818_v49 = vadd.f32 %v12590_v18, %v18533_v9  ;;  %v18535_v29 = vld [vmem:[#allocation24_spill] sm:$0xff]  ;;  %v18537_v17 = vld [vmem:[#allocation29_spill] sm:$0xff]  ;;  %v6236_v9 = vshll.u32 %v12175_v3, 16 }
 0x3b0   : > { %v5815_v47 = vadd.f32 %v12587_v35, %v18532_v50  ;;  %v5823_v22 = vadd.f32 %v12593_v25, %v18535_v29  ;;  %v6230_v48 = vor.u32 %v6228_v51, %v6227_v33  ;;  %v18536_v34 = vld [vmem:[#allocation28_spill] sm:$0xff]  ;;  %v16508_v4 = vadd.f32 %v12602_v58, %v18537_v17  ;;  %v18538_v43 = vld [vmem:[#allocation26_spill] sm:$0xff]  ;;  %v18539_v51 = vld [vmem:[#allocation33_spill] sm:$0xff] }
 0x3b1   : > { %v5831_v10 = vadd.f32 %v12599_v15, %v18536_v34  ;;  %v16511_v7 = vadd.f32 %v12596_v52, %v18538_v43  ;;  %v7462_v20 = vld [vmem:[#allocation4 + $0x1c] sm:$0xf]  ;;  %v6252_v35 = vrot.slane %v6250_v28, 7  ;;  %v6253_v50 = vshll.u32 %v12177_v23, 16 }
 0x3b2   : > { %v6235_v18 = vrot.slane %v6233_v8, 7  ;;  %v7460_v16 = vld [vmem:[#allocation4 + $0x10] sm:$0xf]  ;;  %7494 = vst [vmem:[#allocation5 + $0x78] sm:$0xf] %v7462_v20  ;;  %v6248_v25 = vrot.slane %v16460_v14, 4  ;;  %v6530_v15 = vsel %vm16439_vm1, %v6230_v48, %v6529_v6  ;;  %v5976_v58 = vadd.f32 %v16458_v30, %v5815_v47  ;;  %v12637_v6 = vpop.f32.mrf.mxu1 }
 0x3b3   : > { %v16518_v29 = vadd.f32 %v12605_v19, %v18539_v51  ;;  %7492 = vst [vmem:[#allocation5 + $0x30] sm:$0xf] %v7460_v16  ;;  %v6231_v52 = vrot.slane %v6227_v33, 4  ;;  %6531 = vst [vmem:[#allocation4 + $0x24] sm:$0xf] %v6530_v15  ;;  %v6255_v23 = vor.u32 %v6253_v50, %v6252_v35  ;;  %v5968_v3 = vadd.f32 %v16466_v21, %v5807_v53  ;;  %v18543_v15 = vld [vmem:[#allocation37_spill] sm:$0xff] }
 0x3b4   : > { %v6238_v28 = vor.u32 %v6236_v9, %v6235_v18  ;;  %v12608_v8 = vadd.f32 %v16355_v12, %v16353_v40  ;;  %v12611_v14 = vadd.f32 %v16365_v57, %v16360_v46  ;;  %v12614_v30 = vadd.f32 %v16372_v62, %v16367_v54  ;;  %v6533_v33 = vld [vmem:[#allocation4 + $0x2c] sm:$0x1]  ;;  %v5983_v12 = vpop.f32.mrf.mxu0  ;;  %v6630_v43 = vld [vmem:[#allocation4 + $0x10] sm:$0xf] }
 0x3b5   : > { %v12617_v19 = vadd.f32 %v16379_v44, %v16377_v61  ;;  %v6256_v47 = vsel %vm14700_vm14, %v6248_v25, %v6255_v23  ;;  %v6257_v48 = vrot.slane %v6252_v35, 4  ;;  %v6240_v40 = vrot.slane %v6235_v18, 4  ;;  %v6629_v44 = vld [vmem:[#allocation4 + $0xc] sm:$0xf]  ;;  %6662 = vst [vmem:[#allocation5 + $0x6c] sm:$0xf] %v6630_v43 }
 0x3b6   : > { %v6239_v21 = vsel %vm14700_vm14, %v6231_v52, %v6238_v28  ;;  %6539 = vst [vmem:[#allocation4 + $0x34] sm:$0xf] %v6256_v47  ;;  %v6072_v46 = vmax.f32 %v5976_v58, 0.0  ;;  %v5979_v54 = vadd.f32 %v16477_v37, %v5818_v49  ;;  %v5971_v62 = vadd.f32 %v5970_v38, %v5810_v32  ;;  %6661 = vst [vmem:[#allocation5 + $0x48] sm:$0xf] %v6629_v44  ;;  %v16544_v38 = vpop.f32.mrf.mxu1  ;;  %v18544_v58 = vld [vmem:[#allocation38_spill] sm:$0xff] }
 0x3b7   : > { %6532 = vst [vmem:[#allocation4 + $0x28] sm:$0xf] %v6239_v21  ;;  %v5992_v57 = vadd.f32 %v13177_v1, %v5831_v10  ;;  %v12620_v61 = vadd.f32 %v16389_v41, %v16384_v26  ;;  %v6541_v53 = vsel %vm16454_vm3, %v6257_v48, %v6540_v60  ;;  %v6534_v34 = vsel %vm16454_vm3, %v6240_v40, %v6533_v33  ;;  %v18545_v28 = vld [vmem:[#allocation41_spill] sm:$0xff] }
 0x3b8   : > { %v6070_v17 = vmax.f32 %v5968_v3, 0.0  ;;  %v12623_v20 = vadd.f32 %v16399_v63, %v16394_v24  ;;  %v12626_v37 = vadd.f32 %v16412_v2, %v16403_v39  ;;  %6542 = vst [vmem:[#allocation4 + $0x38] sm:$0x1] %v6541_v53  ;;  %6535 = vst [vmem:[#allocation4 + $0x2c] sm:$0x1] %v6534_v34  ;;  %v12180_v26 = vpack.c.bf16 %v6072_v46, %v6072_v46  ;;  %v13178_v24 = vpop.f32.mrf.mxu0 }
 0x3b9   : > { %v5984_v41 = vadd.f32 %v5983_v12, %v5823_v22  ;;  %v12629_v49 = vadd.f32 %v16433_v55, %v16423_v27  ;;  %v12632_v32 = vadd.f32 %v16448_v5, %v16444_v0  ;;  %v12635_v10 = vadd.f32 %v16495_v36, %v16468_v13  ;;  %v13613_v39 = vld [vmem:[#allocation5 + $0x8] ss:$36 sps:$4 sm:$0xff]   ;;  %v18540_v27 = vld [vmem:[#allocation34_spill] sm:$0xff]  ;;  %v18541_v0 = vld [vmem:[#allocation35_spill] sm:$0xff] }
 0x3ba   : > { %v16553_v63 = vadd.f32 %v12608_v8, %v16319_v45  ;;  %v13615_v2 = vld [vmem:[#allocation5 + $0xc] ss:$36 sps:$4 sm:$0xff]   ;;  %v6073_v35 = vmax.f32 %v5979_v54, 0.0  ;;  %v6071_v50 = vmax.f32 %v5971_v62, 0.0  ;;  %v6076_v18 = vmax.f32 %v5992_v57, 0.0  ;;  %v18542_v13 = vld [vmem:[#allocation36_spill] sm:$0xff]  ;;  %v16567_v45 = vpop.f32.mrf.mxu1  ;;  %v5986_v23 = vpop.f32.mrf.mxu0 }
 0x3bb   : > { %v16556_v22 = vadd.f32 %v12611_v14, %v16332_v56  ;;  %v12178_v9 = vpack.c.bf16 %v6070_v17, %v6070_v17  ;;  %v16559_v55 = vadd.f32 %v12614_v30, %v18540_v27  ;;  %10796 = vmatprep.mubr.bf16.mxu0 %v13615_v2  ;;  %v16562_v5 = vadd.f32 %v12617_v19, %v18541_v0  ;;  %v8855_v1 = vld [vmem:[#allocation4 + $0x24] sm:$0xe]  ;;  %v18546_v8 = vld [vmem:[#allocation39_spill] sm:$0xff]  ;;  %v18547_v30 = vld [vmem:[#allocation40_spill] sm:$0xff] }
 0x3bc   : > { %v16565_v36 = vadd.f32 %v12620_v61, %v18542_v13  ;;  %v6276_v16 = vshrl.u32 %v12180_v26, 16  ;;  %v6074_v25 = vmax.f32 %v5984_v41, 0.0  ;;  %10797 = vmatmul.mubr.bf16.vlgmr.msra.gmra.mxu0 %v13613_v39  ;;  %v16570_v56 = vadd.f32 %v12623_v20, %v18543_v15  ;;  %v16591_v54 = vpop.f32.mrf.mxu1  ;;  %v6550_v62 = vld [vmem:[#allocation4 + $0x48] sm:$0xf]  ;;  %v7463_v34 = vld [vmem:[#allocation4 + $0x24] sm:$0xf]  ;;  %v16604_v41 = vpop.f32.mrf.mxu0 }
 0x3bd   : > { %v16573_v51 = vadd.f32 %v12626_v37, %v18544_v58  ;;  %v16576_v52 = vadd.f32 %v12637_v6, %v16504_v11  ;;  %v16579_v3 = vadd.f32 %v12635_v10, %v18545_v28  ;;  %v16582_v14 = vadd.f32 %v12629_v49, %v18546_v8  ;;  %7495 = vst [vmem:[#allocation5 + $0x9c] sm:$0xf] %v7463_v34  ;;  %v6632_v39 = vld [vmem:[#allocation4 + $0x1c] sm:$0xf]  ;;  %v6547_v15 = vld [vmem:[#allocation4 + $0x44] sm:$0x1] }
 0x3be   : > { %v16585_v19 = vadd.f32 %v12632_v32, %v18547_v30  ;;  %v8856_v60 = vld [vmem:[#allocation4 + $0x28] sm:$0xf]  ;;  %v16587_v33 = vrot.slane %v6276_v16, 7  ;;  %v12181_v47 = vpack.c.bf16 %v6073_v35, %v6073_v35  ;;  %v12179_v48 = vpack.c.bf16 %v6071_v50, %v6071_v50  ;;  %v6631_v32 = vld [vmem:[#allocation4 + $0x18] sm:$0xf]  ;;  %v16612_v0 = vpop.f32.mrf.mxu1 }
 0x3bf   : > { %v16589_v21 = vpack.c.bf16 %v6076_v18, %v6076_v18  ;;  %v11900_v40 = vrot.slane %v8855_v1, 9  ;;  %v8857_v11 = vld [vmem:[#allocation4 + $0x2c] sm:$0x1]  ;;  %v8957_v6 = vrot.slane %v8856_v60, 5  ;;  %v6279_v12 = vshll.u32 %v12180_v26, 16 }
 0x3c0   : > { %v6259_v46 = vshrl.u32 %v12178_v9, 16  ;;  %v6262_v57 = vshll.u32 %v12178_v9, 16  ;;  %v16593_v44 = vpack.c.bf16 %v6074_v25, %v6074_v25  ;;  %v16596_v61 = vadd.f32 %v13178_v24, %v16508_v4  ;;  %v7464_v49 = vld [vmem:[#allocation4 + $0x28] sm:$0xf]  ;;  %6663 = vst [vmem:[#allocation5 + $0x90] sm:$0xf] %v6631_v32  ;;  %v12645_v32 = vpop.f32.mrf.mxu1 }
 0x3c1   : > { %v16599_v53 = vadd.f32 %v5986_v23, %v16511_v7  ;;  %v8958_v43 = vsel %vm14682_vm12, %v11900_v40, %v8957_v6  ;;  %v8959_v20 = vrot.slane %v8957_v6, 4  ;;  %v8960_v37 = vrot.slane %v8857_v11, 5  ;;  %7496 = vst [vmem:[#allocation5 + $0xc0] sm:$0xf] %v7464_v49  ;;  %v6543_v50 = vld [vmem:[#allocation4 + $0x3c] sm:$0xf]  ;;  %v5999_v40 = vpop.f32.mrf.mxu0 }
 0x3c2   : > { %v6281_v26 = vor.u32 %v6279_v12, %v16587_v33  ;;  %9094 = vst [vmem:[#allocation5 + $0x68] sm:$0xf] %v8958_v43  ;;  %v6282_v4 = vrot.slane %v16587_v33, 4  ;;  %v6261_v10 = vrot.slane %v6259_v46, 7  ;;  %v6284_v24 = vshrl.u32 %v12181_v47, 16  ;;  %v13647_v23 = vld [vmem:[#allocation6 + $0x168] sm:$0xff]  }
 0x3c3   : > { %v6267_v7 = vshrl.u32 %v12179_v48, 16  ;;  %v8961_v2 = vsel %vm14682_vm12, %v8959_v20, %v8960_v37  ;;  %v6287_v18 = vshll.u32 %v12181_v47, 16  ;;  %v6554_v9 = vld [vmem:[#allocation4 + $0x50] sm:$0x1]  ;;  %v6310_v27 = vshrl.u32 %v16589_v21, 16  ;;  %12903 = vmatprep.subr.bf16.mxu1 %v13647_v23  ;;  %v13651_v43 = vld [vmem:[#allocation6 + $0x128] sm:$0xff]  }
 0x3c4   : > { %v6551_v35 = vsel %vm16439_vm1, %v6281_v26, %v6550_v62  ;;  %6664 = vst [vmem:[#allocation5 + $0xb4] sm:$0xf] %v6632_v39  ;;  %9095 = vst [vmem:[#allocation5 + $0x8c] sm:$0xf] %v8961_v2  ;;  %v6264_v13 = vor.u32 %v6262_v57, %v6261_v10  ;;  %v6286_v1 = vrot.slane %v6284_v24, 7  ;;  %v6270_v25 = vshll.u32 %v12179_v48, 16  ;;  %12904 = vmatpush3.bf16.msra.mxu1 %v13651_v43 }
 0x3c5   : > { %6552 = vst [vmem:[#allocation4 + $0x48] sm:$0xf] %v6551_v35  ;;  %v6269_v16 = vrot.slane %v6267_v7, 7  ;;  %v6564_v58 = vld [vmem:[#allocation4 + $0x60] sm:$0xf]  ;;  %v6265_v30 = vrot.slane %v6261_v10, 4  ;;  %v6008_v43 = vadd.f32 %v16604_v41, %v16556_v22 }
 0x3c6   : > { %v16614_v28 = vld [vmem:[#allocation4 + $0x18] sm:$0xf]  ;;  %v16618_v60 = vrot.slane %v6310_v27, 7  ;;  %v6313_v33 = vshll.u32 %v16589_v21, 16  ;;  %v6293_v47 = vshrl.u32 %v16593_v44, 16  ;;  %v6544_v48 = vsel %vm16439_vm1, %v6264_v13, %v6543_v50  ;;  %v16644_v27 = vpop.f32.mrf.mxu0 }
 0x3c7   : > { %v16616_v8 = vld [vmem:[#allocation4 + $0x18] sm:$0xf]  ;;  %v16622_v11 = vld [vmem:[#allocation4 + $0x1c] sm:$0xf]  ;;  %v6289_v6 = vor.u32 %v6287_v18, %v6286_v1  ;;  %v6291_v12 = vrot.slane %v6286_v1, 4  ;;  %v6272_v46 = vor.u32 %v6270_v25, %v6269_v16  ;;  %v6274_v20 = vrot.slane %v6269_v16, 4 }
 0x3c8   : > { %v6557_v62 = vld [vmem:[#allocation4 + $0x54] sm:$0xf]  ;;  %v7465_v57 = vld [vmem:[#allocation4 + $0x30] sm:$0xf]  ;;  %6545 = vst [vmem:[#allocation4 + $0x3c] sm:$0xf] %v6544_v48  ;;  %v6315_v21 = vor.u32 %v6313_v33, %v16618_v60 }
 0x3c9   : > { %v7466_v34 = vld [vmem:[#allocation4 + $0x34] sm:$0xf]  ;;  %v16627_v37 = vrot.slane %v6293_v47, 7  ;;  %v6296_v26 = vshll.u32 %v16593_v44, 16  ;;  %7497 = vst [vmem:[#allocation5 + $0xe4] sm:$0xf] %v7465_v57  ;;  %v6290_v24 = vsel %vm14700_vm14, %v6282_v4, %v6289_v6  ;;  %v6555_v7 = vsel %vm16454_vm3, %v6291_v12, %v6554_v9  ;;  %v12646_v6 = vpop.f32.mrf.mxu1 }
 0x3ca   : > { %7498 = vst [vmem:[#allocation5 + $0x108] sm:$0xf] %v7466_v34  ;;  %v6633_v49 = vld [vmem:[#allocation4 + $0x24] sm:$0xf]  ;;  %v7527_v10 = vld [vmem:[#allocation4 + $0x1c] sm:$0xf]  ;;  %v6273_v39 = vsel %vm14700_vm14, %v6265_v30, %v6272_v46  ;;  %v6548_v4 = vsel %vm16454_vm3, %v6274_v20, %v6547_v15  ;;  %v6565_v18 = vsel %vm16439_vm1, %v6315_v21, %v6564_v58  ;;  %v12641_v58 = vadd.f32 %v16567_v45, %v16544_v38  ;;  %v6002_v21 = vpop.f32.mrf.mxu0 }
 0x3cb   : > { %v6077_v2 = vmax.f32 %v16596_v61, 0.0  ;;  %v6634_v35 = vld [vmem:[#allocation4 + $0x28] sm:$0xf]  ;;  %6665 = vst [vmem:[#allocation5 + $0xd8] sm:$0xf] %v6633_v49  ;;  %v6298_v9 = vor.u32 %v6296_v26, %v16627_v37  ;;  %v13661_v1 = vld [vmem:[#allocation6 + $0x160] sm:$0xff]   ;;  %v6000_v20 = vadd.f32 %v5999_v40, %v16518_v29 }
 0x3cc   : > { %v16637_v44 = vld [vmem:[#allocation4 + $0x18] sm:$0xf]  ;;  %v8357_v50 = vld [vmem:[#allocation4 + $0x1c] sm:$0xf]  ;;  %6553 = vst [vmem:[#allocation4 + $0x4c] sm:$0xf] %v6290_v24  ;;  %12905 = vmatprep.subr.bf16.mxu1 %v13661_v1 }
 0x3cd   : > { %6556 = vst [vmem:[#allocation4 + $0x50] sm:$0x1] %v6555_v7  ;;  %6546 = vst [vmem:[#allocation4 + $0x40] sm:$0xf] %v6273_v39  ;;  %v18549_v61 = vld [vmem:[#allocation42_spill] sm:$0xff]  ;;  %v12185_v15 = vpack.c.bf16 %v6077_v2, %v6077_v2  ;;  %v7609_v47 = vshrl.u32 %v7527_v10, 16  ;;  %v6558_v48 = vsel %vm16439_vm1, %v6298_v9, %v6557_v62 }
 0x3ce   : > { %v16648_v13 = vadd.f32 %v16576_v52, %v18549_v61  ;;  %6666 = vst [vmem:[#allocation5 + $0xfc] sm:$0xf] %v6634_v35  ;;  %6549 = vst [vmem:[#allocation4 + $0x44] sm:$0x1] %v6548_v4  ;;  %v16655_v30 = vld [vmem:[#allocation4 + $0xc] sm:$0xf] }
 0x3cf   : > { %6566 = vst [vmem:[#allocation4 + $0x60] sm:$0xf] %v6565_v18  ;;  %v16657_v33 = vld [vmem:[#allocation4 + $0xc] sm:$0xf]  ;;  %v6801_v52 = vshrl.u32 %v16622_v11, 16  ;;  %v8418_v57 = vshrl.u32 %v8357_v50, 16 }
 0x3d0   : > { %6559 = vst [vmem:[#allocation4 + $0x54] sm:$0xf] %v6558_v48  ;;  %v6075_v38 = vmax.f32 %v16599_v53, 0.0  ;;  %v6318_v34 = vshrl.u32 %v12185_v15, 16  ;;  %v16673_v24 = vld [vmem:[#allocation4 + $0x30] sm:$0xf]  ;;  %v12647_v53 = vadd.f32 %v12646_v6, %v12645_v32  ;;  %v6011_v6 = vadd.f32 %v16644_v27, %v16559_v55 }
 0x3d1   : > { %v16675_v7 = vrot.slane %v6801_v52, 4  ;;  %v16677_v39 = vrot.slane %v7609_v47, 4  ;;  %v16679_v2 = vld [vmem:[#allocation4 + $0x30] sm:$0xf]  ;;  %v16686_v40 = vrot.slane %v8418_v57, 4  ;;  %v6321_v4 = vshll.u32 %v12185_v15, 16  ;;  %v13185_v47 = vpop.f32.mrf.mxu0 }
 0x3d2   : > { %18550 = vst [vmem:[#allocation14_spill] sm:$0xff] %v16679_v2  ;;  %v16681_v22 = vld [vmem:[#allocation4 + $0x30] sm:$0xf]  ;;  %v16688_v35 = vld [vmem:[#allocation4 + $0x24] sm:$0xf]  ;;  %v6320_v50 = vrot.slane %v6318_v34, 7  ;;  %v12183_v18 = vpack.c.bf16 %v6075_v38, %v6075_v38  ;;  %v6003_v55 = vadd.f32 %v6002_v21, %v16553_v63 }
 0x3d3   : > { %v18551_v29 = vld [vmem:[#allocation43_spill] sm:$0xff]  ;;  %v6568_v61 = vld [vmem:[#allocation4 + $0x68] sm:$0x1]  ;;  %v6080_v1 = vmax.f32 %v6008_v43, 0.0  ;;  %v6078_v52 = vmax.f32 %v6000_v20, 0.0  ;;  %v6316_v12 = vrot.slane %v16618_v60, 4  ;;  %v6015_v46 = vpop.f32.mrf.mxu0 }
 0x3d4   : > { %v16684_v41 = vadd.f32 %v12641_v58, %v18551_v29  ;;  %v16695_v57 = vld [vmem:[#allocation4 + $0x24] sm:$0xf]  ;;  %v6323_v29 = vor.u32 %v6321_v4, %v6320_v50  ;;  %v6325_v43 = vrot.slane %v6320_v50, 4  ;;  %v6704_v23 = vld [vmem:[#allocation4 + $0x34] sm:$0xf]  ;;  %v6301_v58 = vshrl.u32 %v12183_v18, 16 }
 0x3d5   : > { %v16699_v34 = vld [vmem:[#allocation4 + $0x24] sm:$0xf]  ;;  %v16703_v48 = vld [vmem:[#allocation4 + $0x34] sm:$0xf]  ;;  %v12188_v50 = vpack.c.bf16 %v6080_v1, %v6080_v1  ;;  %v12186_v45 = vpack.c.bf16 %v6078_v52, %v6078_v52  ;;  %v6299_v1 = vrot.slane %v16627_v37, 4  ;;  %v13186_v63 = vpop.f32.mrf.mxu0 }
 0x3d6   : > { %v18552_v10 = vld [vmem:[#allocation45_spill] sm:$0xff]  ;;  %v8363_v15 = vld [vmem:[#allocation4 + $0x34] sm:$0xf]  ;;  %v6324_v49 = vsel %vm14700_vm14, %v6316_v12, %v6323_v29  ;;  %v6569_v60 = vsel %vm16454_vm3, %v6325_v43, %v6568_v61  ;;  %v7657_v12 = vshrl.u32 %v16703_v48, 16  ;;  %v6303_v52 = vrot.slane %v6301_v58, 7 }
 0x3d7   : > { %v16708_v4 = vadd.f32 %v12647_v53, %v18552_v10  ;;  %6567 = vst [vmem:[#allocation4 + $0x64] sm:$0xf] %v6324_v49  ;;  %6570 = vst [vmem:[#allocation4 + $0x68] sm:$0x1] %v6569_v60  ;;  %v6849_v10 = vshrl.u32 %v6704_v23, 16  ;;  %v6024_v53 = vadd.f32 %v13185_v47, %v16570_v56  ;;  %v8466_v61 = vshrl.u32 %v8363_v15, 16 }
 0x3d8   : > { %v16723_v29 = vadd.f32 %v6015_v46, %v16562_v5  ;;  %v6304_v43 = vshll.u32 %v12183_v18, 16  ;;  %v6561_v32 = vld [vmem:[#allocation4 + $0x5c] sm:$0x1]  ;;  %v6344_v49 = vshrl.u32 %v12188_v50, 16  ;;  %v6347_v60 = vshll.u32 %v12188_v50, 16 }
 0x3d9   : > { %v6327_v9 = vshrl.u32 %v12186_v45, 16  ;;  %v16725_v21 = vld [vmem:[#allocation4 + $0x48] sm:$0xf]  ;;  %v6308_v23 = vrot.slane %v6303_v52, 4  ;;  %v6578_v27 = vld [vmem:[#allocation4 + $0x78] sm:$0xf] }
 0x3da   : > { %v6330_v48 = vshll.u32 %v12186_v45, 16  ;;  %v6571_v20 = vld [vmem:[#allocation4 + $0x6c] sm:$0xf]  ;;  %v6081_v56 = vmax.f32 %v6011_v6, 0.0  ;;  %v6079_v47 = vmax.f32 %v6003_v55, 0.0  ;;  %v6306_v37 = vor.u32 %v6304_v43, %v6303_v52  ;;  %v13665_v50 = vld [vmem:[#allocation6 + $0x120] sm:$0xff]  }
 0x3db   : > { %v7467_v15 = vld [vmem:[#allocation4 + $0x3c] sm:$0xf]  ;;  %v16727_v58 = vrot.slane %v6344_v49, 7  ;;  %v16729_v5 = vrot.slane %v6327_v9, 7  ;;  %v6084_v46 = vmax.f32 %v6024_v53, 0.0  ;;  %v16731_v38 = vrot.slane %v6849_v10, 4  ;;  %12906 = vmatpush3.bf16.msra.mxu1 %v13665_v50 }
 0x3dc   : > { %v7468_v18 = vld [vmem:[#allocation4 + $0x40] sm:$0xf]  ;;  %7499 = vst [vmem:[#allocation5 + $0x12c] sm:$0xf] %v7467_v15  ;;  %v6562_v25 = vsel %vm16454_vm3, %v6308_v23, %v6561_v32  ;;  %v12189_v16 = vpack.c.bf16 %v6081_v56, %v6081_v56  ;;  %v16735_v45 = vpack.c.bf16 %v6079_v47, %v6079_v47  ;;  %v6635_v6 = vld [vmem:[#allocation4 + $0x30] sm:$0xf]  ;;  %v6307_v9 = vsel %vm14700_vm14, %v6299_v1, %v6306_v37  ;;  %v16745_v32 = vpop.f32.mrf.mxu0 }
 0x3dd   : > { %7500 = vst [vmem:[#allocation5 + $0x150] sm:$0xf] %v7468_v18  ;;  %v6636_v55 = vld [vmem:[#allocation4 + $0x34] sm:$0xf]  ;;  %v16737_v43 = vld [vmem:[#allocation4 + $0x48] sm:$0xf]  ;;  %v6349_v53 = vor.u32 %v6347_v60, %v16727_v58  ;;  %v6332_v10 = vor.u32 %v6330_v48, %v16729_v5  ;;  %v16743_v49 = vpack.c.bf16 %v6084_v46, %v6084_v46 }
 0x3de   : > { %v13672_v52 = vld [vmem:[#allocation6 + $0x1f8] sm:$0xff]   ;;  %18553 = vst [vmem:[#allocation17_spill] sm:$0xff] %v16737_v43  ;;  %6563 = vst [vmem:[#allocation4 + $0x5c] sm:$0x1] %v6562_v25  ;;  %v16747_v23 = vrot.slane %v7657_v12, 4  ;;  %v16749_v56 = vrot.slane %v8466_v61, 4  ;;  %v16753_v25 = vadd.f32 %v13186_v63, %v16573_v51 }
 0x3df   : > { %6667 = vst [vmem:[#allocation5 + $0x120] sm:$0xf] %v6635_v6  ;;  %6668 = vst [vmem:[#allocation5 + $0x144] sm:$0xf] %v6636_v55  ;;  %v6082_v47 = vmax.f32 %v16723_v29, 0.0  ;;  %13011 = vmatprep.subr.bf16.mxu0 %v13672_v52  ;;  %v6579_v15 = vsel %vm16439_vm1, %v6349_v53, %v6578_v27  ;;  %v6572_v12 = vsel %vm16439_vm1, %v6332_v10, %v6571_v20  ;;  %v6352_v61 = vshrl.u32 %v12189_v16, 16 }
 0x3e0   : > { %18554 = vst [vmem:[#allocation18_spill] sm:$0xff] %v16747_v23  ;;  %18555 = vst [vmem:[#allocation20_spill] sm:$0xff] %v16749_v56  ;;  %v7190_v1 = vld [vmem:[#allocation4 + $0xc] sm:$0xe]  ;;  %v16756_v48 = vld [vmem:[#allocation4 + $0x48] sm:$0xf] }
 0x3e1   : > { %6560 = vst [vmem:[#allocation4 + $0x58] sm:$0xf] %v6307_v9  ;;  %18556 = vst [vmem:[#allocation22_spill] sm:$0xff] %v16756_v48  ;;  %v16762_v37 = vld [vmem:[#allocation4 + $0x10] sm:$0xf]  ;;  %v6350_v18 = vrot.slane %v16727_v58, 4  ;;  %v16774_v9 = vpop.f32.mrf.mxu0  ;;  %v16777_v51 = vpack.c.bf16 %v6082_v47, %v6082_v47 }
 0x3e2   : > { %v16767_v63 = vld [vmem:[#allocation4 + $0x4c] sm:$0xf]  ;;  %6580 = vst [vmem:[#allocation4 + $0x78] sm:$0xf] %v6579_v15  ;;  %6573 = vst [vmem:[#allocation4 + $0x6c] sm:$0xf] %v6572_v12 }
 0x3e3   : > { %v6582_v50 = vld [vmem:[#allocation4 + $0x80] sm:$0x1]  ;;  %v16770_v27 = vld [vmem:[#allocation4 + $0x3c] sm:$0xf]  ;;  %v6354_v6 = vrot.slane %v6352_v61, 7  ;;  %v6355_v20 = vshll.u32 %v12189_v16, 16  ;;  %v16801_v56 = vpop.f32.mrf.mxu0 }
 0x3e4   : > { %v6335_v55 = vshrl.u32 %v16735_v45, 16  ;;  %v6378_v52 = vshrl.u32 %v16743_v49, 16  ;;  %v7469_v53 = vld [vmem:[#allocation4 + $0x48] sm:$0xf]  ;;  %v6338_v10 = vshll.u32 %v16735_v45, 16  ;;  %v11868_v46 = vrot.slane %v7190_v1, 9 }
 0x3e5   : > { %v7470_v15 = vld [vmem:[#allocation4 + $0x4c] sm:$0xf]  ;;  %7501 = vst [vmem:[#allocation5 + $0x174] sm:$0xf] %v7469_v53  ;;  %v13673_v12 = vld [vmem:[#allocation6 + $0x1b8] sm:$0xff]   ;;  %v6357_v16 = vor.u32 %v6355_v20, %v6354_v6  ;;  %v6359_v61 = vrot.slane %v6354_v6, 4 }
 0x3e6   : > { %v16780_v29 = vld [vmem:[#allocation4 + $0x3c] sm:$0xf]  ;;  %v16782_v60 = vrot.slane %v6335_v55, 7  ;;  %v16784_v26 = vrot.slane %v6378_v52, 7  ;;  %7502 = vst [vmem:[#allocation5 + $0x198] sm:$0xf] %v7470_v15  ;;  %13012 = vmatpush3.bf16.msra.mxu0 %v13673_v12 }
 0x3e7   : > { %18557 = vst [vmem:[#allocation23_spill] sm:$0xff] %v16780_v29  ;;  %v6637_v62 = vld [vmem:[#allocation4 + $0x3c] sm:$0xf]  ;;  %v13677_v43 = vld [vmem:[#allocation6 + $0x158] sm:$0xff]   ;;  %v6897_v1 = vshrl.u32 %v16767_v63, 16  ;;  %v6381_v53 = vshll.u32 %v16743_v49, 16  ;;  %v6358_v15 = vsel %vm14700_vm14, %v6350_v18, %v6357_v16  ;;  %v6583_v63 = vsel %vm16454_vm3, %v6359_v61, %v6582_v50 }
 0x3e8   : > { %v16787_v47 = vld [vmem:[#allocation4 + $0x3c] sm:$0xf]  ;;  %v7539_v58 = vld [vmem:[#allocation4 + $0x4c] sm:$0xf]  ;;  %v18559_v23 = vrot.slane %v16762_v37, 5  ;;  %v13681_v20 = vld [vmem:[#allocation6 + $0x118] sm:$0xff]   ;;  %v6340_v45 = vor.u32 %v6338_v10, %v16782_v60  ;;  %12907 = vmatprep.subr.bf16.mxu1 %v13677_v43 }
 0x3e9   : > { %18558 = vst [vmem:[#allocation25_spill] sm:$0xff] %v16787_v47  ;;  %6669 = vst [vmem:[#allocation5 + $0x168] sm:$0xf] %v6637_v62  ;;  %v8369_v55 = vld [vmem:[#allocation4 + $0x4c] sm:$0xf]  ;;  %v6333_v52 = vrot.slane %v16729_v5, 4  ;;  %v6383_v50 = vor.u32 %v6381_v53, %v16784_v26  ;;  %12908 = vmatpush3.bf16.msra.mxu1 %v13681_v20 }
 0x3ea   : > { %v7293_v6 = vsel %vm14682_vm12, %v11868_v46, %v18559_v23  ;;  %v6575_v49 = vld [vmem:[#allocation4 + $0x74] sm:$0x1]  ;;  %v6592_v2 = vld [vmem:[#allocation4 + $0x90] sm:$0xf]  ;;  %v6638_v23 = vld [vmem:[#allocation4 + $0x40] sm:$0xf] }
 0x3eb   : > { %7429 = vst [vmem:[#allocation5 + $0x50] sm:$0xf] %v7293_v6  ;;  %v13688_v62 = vld [vmem:[#allocation6 + $0x1f0] sm:$0xff]   ;;  %v16805_v12 = vld [vmem:[#allocation4 + $0x3c] sm:$0xe]  ;;  %v6342_v18 = vrot.slane %v16782_v60, 4  ;;  %v6341_v6 = vsel %vm14700_vm14, %v6333_v52, %v6340_v45  ;;  %v6593_v53 = vsel %vm16439_vm1, %v6383_v50, %v6592_v2 }
 0x3ec   : > { %18560 = vst [vmem:[#allocation27_spill] sm:$0xff] %v16805_v12  ;;  %6581 = vst [vmem:[#allocation4 + $0x7c] sm:$0xf] %v6358_v15  ;;  %v13689_v10 = vld [vmem:[#allocation6 + $0x1b0] sm:$0xff]   ;;  %v7705_v16 = vshrl.u32 %v7539_v58, 16  ;;  %v6361_v46 = vshrl.u32 %v16777_v51, 16  ;;  %v6019_v15 = vadd.f32 %v16745_v32, %v16565_v36  ;;  %13013 = vmatprep.subr.bf16.mxu0 %v13688_v62  ;;  %v13190_v32 = vpop.f32.mrf.mxu0 }
 0x3ed   : > { %6584 = vst [vmem:[#allocation4 + $0x80] sm:$0x1] %v6583_v63  ;;  %6670 = vst [vmem:[#allocation5 + $0x18c] sm:$0xf] %v6638_v23  ;;  %v16809_v61 = vld [vmem:[#allocation4 + $0x40] sm:$0xf]  ;;  %13014 = vmatpush3.bf16.msra.mxu0 %v13689_v10  ;;  %v12648_v23 = vpop.f32.mrf.mxu1  ;;  %v6576_v10 = vsel %vm16454_vm3, %v6342_v18, %v6575_v49 }
 0x3ee   : > { %18561 = vst [vmem:[#allocation30_spill] sm:$0xff] %v16809_v61  ;;  %v16811_v43 = vld [vmem:[#allocation4 + $0x44] sm:$0x1]  ;;  %v8514_v58 = vshrl.u32 %v8369_v55, 16  ;;  %6574 = vst [vmem:[#allocation4 + $0x70] sm:$0xf] %v6341_v6 }
 0x3ef   : > { %18562 = vst [vmem:[#allocation31_spill] sm:$0xff] %v16811_v43  ;;  %v7192_v63 = vld [vmem:[#allocation4 + $0x14] sm:$0x1]  ;;  %v16824_v48 = vrot.slane %v6897_v1, 4  ;;  %v16826_v36 = vld [vmem:[#allocation4 + $0x60] sm:$0xf] }
 0x3f0   : > { %v16830_v55 = vld [vmem:[#allocation4 + $0x60] sm:$0xf]  ;;  %v6585_v52 = vld [vmem:[#allocation4 + $0x84] sm:$0xf]  ;;  %v16838_v1 = vrot.slane %v7705_v16, 4  ;;  %v16842_v62 = vrot.slane %v6361_v46, 7  ;;  %v12649_v16 = vpop.f32.mrf.mxu1 }
 0x3f1   : > { %18563 = vst [vmem:[#allocation32_spill] sm:$0xff] %v16830_v55  ;;  %v16832_v6 = vld [vmem:[#allocation4 + $0x60] sm:$0xf]  ;;  %v16840_v45 = vld [vmem:[#allocation4 + $0x54] sm:$0xf]  ;;  %v6364_v20 = vshll.u32 %v16777_v51, 16  ;;  %v6034_v51 = vpop.f32.mrf.mxu0  ;;  %v16876_v55 = vadd.f32 %v16801_v56, %v16582_v14 }
 0x3f2   : > { %18564 = vst [vmem:[#allocation15_spill] sm:$0xff] %v16832_v6  ;;  %18565 = vst [vmem:[#allocation19_spill] sm:$0xff] %v16838_v1  ;;  %v18566_v5 = vrot.slane %v16762_v37, 5  ;;  %v16847_v43 = vrot.slane %v8514_v58, 4  ;;  %v6085_v2 = vmax.f32 %v16753_v25, 0.0  ;;  %v6083_v18 = vmax.f32 %v6019_v15, 0.0 }
 0x3f3   : > { %6577 = vst [vmem:[#allocation4 + $0x74] sm:$0x1] %v6576_v10  ;;  %6594 = vst [vmem:[#allocation4 + $0x90] sm:$0xf] %v6593_v53  ;;  %v13693_v50 = vld [vmem:[#allocation6 + $0x150] sm:$0xff]   ;;  %v6366_v46 = vor.u32 %v6364_v20, %v16842_v62  ;;  %v7295_v10 = vrot.slane %v7192_v63, 5 }
 0x3f4   : > { %v7294_v60 = vrot.slane %v18566_v5, 4  ;;  %18567 = vst [vmem:[#allocation21_spill] sm:$0xff] %v16847_v43  ;;  %v6716_v25 = vld [vmem:[#allocation4 + $0x64] sm:$0xf]  ;;  %12909 = vmatprep.subr.bf16.mxu1 %v13693_v50  ;;  %v16858_v15 = vld [vmem:[#allocation4 + $0x54] sm:$0xf]  ;;  %v12193_v37 = vpack.c.bf16 %v6085_v2, %v6085_v2  ;;  %v12191_v53 = vpack.c.bf16 %v6083_v18, %v6083_v18  ;;  %v16868_v5 = vadd.f32 %v12649_v16, %v12648_v23 }
 0x3f5   : > { %18568 = vst [vmem:[#allocation16_spill] sm:$0xff] %v16858_v15  ;;  %v16860_v12 = vld [vmem:[#allocation4 + $0x54] sm:$0xf]  ;;  %v6586_v20 = vsel %vm16439_vm1, %v6366_v46, %v6585_v52  ;;  %v7545_v58 = vld [vmem:[#allocation4 + $0x64] sm:$0xf]  ;;  %v16872_v50 = vadd.f32 %v16774_v9, %v16579_v3  ;;  %v16879_v52 = vadd.f32 %v13190_v32, %v16648_v13  ;;  %v6945_v23 = vshrl.u32 %v6716_v25, 16  ;;  %v13193_v46 = vpop.f32.mrf.mxu0 }
 0x3f6   : > { %18569 = vst [vmem:[#allocation24_spill] sm:$0xff] %v16860_v12  ;;  %v16862_v1 = vld [vmem:[#allocation4 + $0x54] sm:$0xe]  ;;  %v7296_v63 = vsel %vm14682_vm12, %v7294_v60, %v7295_v10  ;;  %v8375_v49 = vld [vmem:[#allocation4 + $0x64] sm:$0xf]  ;;  %v6386_v18 = vshrl.u32 %v12193_v37, 16  ;;  %v16894_v9 = vadd.f32 %v6034_v51, %v16585_v19  ;;  %v16897_v14 = vadd.f32 %v13193_v46, %v16708_v4 }
 0x3f7   : > { %18570 = vst [vmem:[#allocation28_spill] sm:$0xff] %v16862_v1  ;;  %6587 = vst [vmem:[#allocation4 + $0x84] sm:$0xf] %v6586_v20  ;;  %v7471_v60 = vld [vmem:[#allocation4 + $0x54] sm:$0xf]  ;;  %v6369_v16 = vshrl.u32 %v12191_v53, 16 }
 0x3f8   : > { %7430 = vst [vmem:[#allocation5 + $0x74] sm:$0xf] %v7296_v63  ;;  %v7472_v10 = vld [vmem:[#allocation4 + $0x58] sm:$0xf]  ;;  %7503 = vst [vmem:[#allocation5 + $0x1bc] sm:$0xf] %v7471_v60 }
 0x3f9   : > { %v6695_v56 = vld [vmem:[#allocation4 + $0x10] sm:$0xf]  ;;  %7504 = vst [vmem:[#allocation5 + $0x1e0] sm:$0xf] %v7472_v10  ;;  %v7753_v32 = vshrl.u32 %v7545_v58, 16  ;;  %v8562_v63 = vshrl.u32 %v8375_v49, 16 }
 0x3fa   : > { %v6696_v25 = vld [vmem:[#allocation4 + $0x14] sm:$0x1]  ;;  %v18571_v2 = vshrl.u32 %v16655_v30, 16  ;;  %v16889_v61 = vld [vmem:[#allocation4 + $0x58] sm:$0xf]  ;;  %v6388_v20 = vrot.slane %v6386_v18, 7 }
 0x3fb   : > { %v16891_v60 = vld [vmem:[#allocation4 + $0x5c] sm:$0x1]  ;;  %v6389_v3 = vshll.u32 %v12193_v37, 16  ;;  %v6639_v10 = vld [vmem:[#allocation4 + $0x48] sm:$0xf]  ;;  %v16899_v13 = vrot.slane %v6945_v23, 4 }
 0x3fc   : > { %v6766_v6 = vrot.slane %v18571_v2, 4  ;;  %18572 = vst [vmem:[#allocation29_spill] sm:$0xff] %v16891_v60  ;;  %v6371_v49 = vrot.slane %v6369_v16, 7  ;;  %v6372_v58 = vshll.u32 %v12191_v53, 16  ;;  %v18573_v15 = vshll.u32 %v16655_v30, 16  ;;  %v13697_v4 = vld [vmem:[#allocation6 + $0x110] sm:$0xff]  }
 0x3fd   : > { %v6640_v1 = vld [vmem:[#allocation4 + $0x4c] sm:$0xf]  ;;  %6671 = vst [vmem:[#allocation5 + $0x1b0] sm:$0xf] %v6639_v10  ;;  %v16903_v12 = vld [vmem:[#allocation4 + $0x78] sm:$0xf]  ;;  %v6391_v18 = vor.u32 %v6389_v3, %v6388_v20  ;;  %12910 = vmatpush3.bf16.msra.mxu1 %v13697_v4 }
 0x3fe   : > { %v6769_v2 = vrot.slane %v18573_v15, 5  ;;  %v6384_v37 = vrot.slane %v16784_v26, 4  ;;  %v6393_v19 = vrot.slane %v6388_v20, 4  ;;  %v6773_v51 = vshll.u32 %v6695_v56, 16  ;;  %6672 = vst [vmem:[#allocation5 + $0x1d4] sm:$0xf] %v6640_v1 }
 0x3ff   : > { %v6596_v46 = vld [vmem:[#allocation4 + $0x98] sm:$0x1]  ;;  %v6374_v43 = vor.u32 %v6372_v58, %v6371_v49  ;;  %v6589_v23 = vld [vmem:[#allocation4 + $0x8c] sm:$0x1]  ;;  %v6777_v16 = vshrl.u32 %v6695_v56, 16  ;;  %v6088_v53 = vmax.f32 %v16872_v50, 0.0 }
 0x400   : > { %v6770_v29 = vor.u32 %v6769_v2, %v6766_v6  ;;  %v16907_v30 = vrot.slane %v7753_v32, 4  ;;  %v16909_v15 = vrot.slane %v8562_v63, 4  ;;  %v6367_v10 = vrot.slane %v16842_v62, 4  ;;  %v7193_v26 = vld [vmem:[#allocation4 + $0x18] sm:$0xe] }
 0x401   : > { %v6783_v47 = vshll.u32 %v6696_v25, 16  ;;  %v6392_v6 = vsel %vm14700_vm14, %v6384_v37, %v6391_v18  ;;  %v7194_v56 = vld [vmem:[#allocation4 + $0x1c] sm:$0xf]  ;;  %v13620_v50 = vld [vmem:[#allocation5 + $0x54] ss:$36 sps:$4 sm:$0xff]   ;;  %v6597_v32 = vsel %vm16454_vm3, %v6393_v19, %v6596_v46  ;;  %v6376_v63 = vrot.slane %v6371_v49, 4 }
 0x402   : > { %18574 = vst [vmem:[#allocation26_spill] sm:$0xff] %v16907_v30  ;;  %6595 = vst [vmem:[#allocation4 + $0x94] sm:$0xf] %v6392_v6  ;;  %v6375_v62 = vsel %vm14700_vm14, %v6367_v10, %v6374_v43  ;;  %v6771_v25 = vrot.slane %v6770_v29, 4  ;;  %v7195_v58 = vld [vmem:[#allocation4 + $0x20] sm:$0x1]  ;;  %v12196_v37 = vpack.c.bf16 %v6088_v53, %v6088_v53  ;;  %10804 = vmatprep.mubr.bf16.mxu0 %v13620_v50 }
 0x403   : > { %v13618_v4 = vld [vmem:[#allocation5 + $0x50] ss:$36 sps:$4 sm:$0xff]   ;;  %6598 = vst [vmem:[#allocation4 + $0x98] sm:$0x1] %v6597_v32  ;;  %6588 = vst [vmem:[#allocation4 + $0x88] sm:$0xf] %v6375_v62  ;;  %v6590_v19 = vsel %vm16454_vm3, %v6376_v63, %v6589_v23 }
 0x404   : > { %v6775_v1 = vrot.slane %v6773_v51, 5  ;;  %v6779_v20 = vrot.slane %v6777_v16, 4  ;;  %v13704_v18 = vld [vmem:[#allocation6 + $0x1e8] sm:$0xff]   ;;  %v16922_v3 = vld [vmem:[#allocation4 + $0x78] sm:$0xf]  ;;  %v6785_v46 = vrot.slane %v6783_v47, 5  ;;  %10805 = vmatmul.mubr.bf16.gmra.mxu0 %v13618_v4 }
 0x405   : > { %18575 = vst [vmem:[#allocation33_spill] sm:$0xff] %v16922_v3  ;;  %v11869_v43 = vrot.slane %v7193_v26, 9  ;;  %v7299_v49 = vrot.slane %v7194_v56, 5  ;;  %v16926_v29 = vld [vmem:[#allocation4 + $0x20] sm:$0x1]  ;;  %v6412_v50 = vshrl.u32 %v12196_v37, 16  ;;  %13015 = vmatprep.subr.bf16.mxu0 %v13704_v18 }
 0x406   : > { %v13705_v10 = vld [vmem:[#allocation6 + $0x1a8] sm:$0xff]   ;;  %v16928_v6 = vld [vmem:[#allocation4 + $0x78] sm:$0xf]  ;;  %v16930_v32 = vld [vmem:[#allocation4 + $0x6c] sm:$0xf]  ;;  %v6776_v16 = vsel %vm14676_vm9, %v6771_v25, %v6775_v1  ;;  %v6780_v53 = vor.u32 %v6779_v20, %v6775_v1  ;;  %v7302_v62 = vrot.slane %v7195_v58, 5 }
 0x407   : > { %18576 = vst [vmem:[#allocation34_spill] sm:$0xff] %v16928_v6  ;;  %6591 = vst [vmem:[#allocation4 + $0x8c] sm:$0x1] %v6590_v19  ;;  %v7473_v2 = vld [vmem:[#allocation4 + $0x60] sm:$0xf]  ;;  %v7300_v26 = vsel %vm14682_vm12, %v11869_v43, %v7299_v49  ;;  %v7301_v56 = vrot.slane %v7299_v49, 4  ;;  %13016 = vmatpush3.bf16.msra.mxu0 %v13705_v10  ;;  %v6047_v49 = vpop.f32.mrf.mxu0 }
 0x408   : > { %v7474_v23 = vld [vmem:[#allocation4 + $0x64] sm:$0xf]  ;;  %7157 = vst [vmem:[#allocation5 + $0x4c] sm:$0xf] %v6776_v16  ;;  %v6606_v47 = vld [vmem:[#allocation4 + $0xa8] sm:$0xf] }
 0x409   : > { %v18578_v63 = vshrl.u32 %v16614_v28, 16  ;;  %v18579_v19 = vshll.u32 %v16614_v28, 16  ;;  %7505 = vst [vmem:[#allocation5 + $0x204] sm:$0xf] %v7473_v2  ;;  %7506 = vst [vmem:[#allocation5 + $0x228] sm:$0xf] %v7474_v23  ;;  %v7303_v10 = vsel %vm14682_vm12, %v7301_v56, %v7302_v62 }
 0x40a   : > { %v6641_v20 = vld [vmem:[#allocation4 + $0x54] sm:$0xf]  ;;  %v13709_v1 = vld [vmem:[#allocation6 + $0x148] sm:$0xff]   ;;  %v6781_v25 = vrot.slane %v6780_v53, 4  ;;  %v16940_v58 = vrot.slane %v6412_v50, 7  ;;  %v6415_v4 = vshll.u32 %v12196_v37, 16 }
 0x40b   : > { %v6790_v60 = vrot.slane %v18578_v63, 4  ;;  %v6793_v30 = vrot.slane %v18579_v19, 5  ;;  %7431 = vst [vmem:[#allocation5 + $0x98] sm:$0xf] %v7300_v26  ;;  %v6797_v18 = vshll.u32 %v16622_v11, 16  ;;  %12911 = vmatprep.subr.bf16.mxu1 %v13709_v1  ;;  %v6807_v26 = vshll.u32 %v16926_v29, 16 }
 0x40c   : > { %v6642_v43 = vld [vmem:[#allocation4 + $0x58] sm:$0xf]  ;;  %6673 = vst [vmem:[#allocation5 + $0x1f8] sm:$0xf] %v6641_v20  ;;  %v16945_v28 = vld [vmem:[#allocation4 + $0x6c] sm:$0xf]  ;;  %v6786_v11 = vsel %vm14676_vm9, %v6781_v25, %v6785_v46  ;;  %v6417_v23 = vor.u32 %v6415_v4, %v16940_v58 }
 0x40d   : > { %18580 = vst [vmem:[#allocation35_spill] sm:$0xff] %v16945_v28  ;;  %v16947_v2 = vld [vmem:[#allocation4 + $0x7c] sm:$0xf]  ;;  %v6794_v53 = vor.u32 %v6793_v30, %v6790_v60  ;;  %6674 = vst [vmem:[#allocation5 + $0x21c] sm:$0xf] %v6642_v43  ;;  %v6086_v63 = vmax.f32 %v16876_v55, 0.0 }
 0x40e   : > { %v16951_v37 = vld [vmem:[#allocation4 + $0x7c] sm:$0xf]  ;;  %7432 = vst [vmem:[#allocation5 + $0xbc] sm:$0xf] %v7303_v10  ;;  %7158 = vst [vmem:[#allocation5 + $0x70] sm:$0xf] %v6786_v11  ;;  %v6607_v46 = vsel %vm16439_vm1, %v6417_v23, %v6606_v47 }
 0x40f   : > { %v16953_v50 = vld [vmem:[#allocation4 + $0x7c] sm:$0xf]  ;;  %v6089_v62 = vmax.f32 %v16879_v52, 0.0  ;;  %v6795_v20 = vrot.slane %v6794_v53, 4  ;;  %v6799_v1 = vrot.slane %v6797_v18, 5  ;;  %v13713_v29 = vld [vmem:[#allocation6 + $0x108] sm:$0xff]   ;;  %v12194_v18 = vpack.c.bf16 %v6086_v63, %v6086_v63 }
 0x410   : > { %v7196_v25 = vld [vmem:[#allocation4 + $0x24] sm:$0xe]  ;;  %v6993_v4 = vshrl.u32 %v16947_v2, 16  ;;  %v7801_v43 = vshrl.u32 %v16951_v37, 16  ;;  %v8610_v10 = vshrl.u32 %v16953_v50, 16  ;;  %v6809_v53 = vrot.slane %v6807_v26, 5  ;;  %12912 = vmatpush3.bf16.msra.mxu1 %v13713_v29 }
 0x411   : > { %6608 = vst [vmem:[#allocation4 + $0xa8] sm:$0xf] %v6607_v46  ;;  %v16971_v11 = vld [vmem:[#allocation4 + $0x28] sm:$0xf]  ;;  %v6800_v52 = vsel %vm14676_vm9, %v6795_v20, %v6799_v1  ;;  %v6804_v47 = vor.u32 %v16675_v7, %v6799_v1  ;;  %v16976_v23 = vld [vmem:[#allocation4 + $0x6c] sm:$0xf]  ;;  %v12197_v2 = vpack.c.bf16 %v6089_v62, %v6089_v62 }
 0x412   : > { %v16978_v16 = vld [vmem:[#allocation4 + $0x6c] sm:$0xe]  ;;  %7159 = vst [vmem:[#allocation5 + $0x94] sm:$0xf] %v6800_v52  ;;  %v6087_v37 = vmax.f32 %v16894_v9, 0.0  ;;  %v6092_v50 = vmax.f32 %v16897_v14, 0.0 }
 0x413   : > { %v11870_v46 = vrot.slane %v7196_v25, 9  ;;  %v7475_v55 = vld [vmem:[#allocation4 + $0x6c] sm:$0xf]  ;;  %v6805_v60 = vrot.slane %v6804_v47, 4  ;;  %v6395_v20 = vshrl.u32 %v12194_v18, 16  ;;  %v6398_v19 = vshll.u32 %v12194_v18, 16 }
 0x414   : > { %v7306_v7 = vrot.slane %v16971_v11, 5  ;;  %v7476_v26 = vld [vmem:[#allocation4 + $0x70] sm:$0xf]  ;;  %7507 = vst [vmem:[#allocation5 + $0x24c] sm:$0xf] %v7475_v55  ;;  %v6420_v56 = vshrl.u32 %v12197_v2, 16  ;;  %v12195_v52 = vpack.c.bf16 %v6087_v37, %v6087_v37  ;;  %v16994_v11 = vadd.f32 %v6047_v49, %v16684_v41 }
 0x415   : > { %v13624_v63 = vld [vmem:[#allocation5 + $0x98] ss:$36 sps:$4 sm:$0xff]   ;;  %v6599_v29 = vld [vmem:[#allocation4 + $0x9c] sm:$0xf]  ;;  %v18581_v62 = vld [vmem:[#allocation46_spill] sm:$0xff]  ;;  %v6810_v47 = vsel %vm14676_vm9, %v6805_v60, %v6809_v53  ;;  %v16989_v18 = vrot.slane %v6395_v20, 7 }
 0x416   : > { %v13626_v1 = vld [vmem:[#allocation5 + $0x9c] ss:$36 sps:$4 sm:$0xff]   ;;  %v16985_v9 = vadd.f32 %v16868_v5, %v18581_v62  ;;  %7508 = vst [vmem:[#allocation5 + $0x270] sm:$0xf] %v7476_v26  ;;  %v13621_v14 = vld [vmem:[#allocation5 + $0x48] ss:$36 sps:$4 sm:$0xff]   ;;  %v7307_v55 = vsel %vm14682_vm12, %v11870_v46, %v7306_v7  ;;  %v16997_v26 = vpack.c.bf16 %v6092_v50, %v6092_v50 }
 0x417   : > { %v13623_v25 = vld [vmem:[#allocation5 + $0x4c] ss:$36 sps:$4 sm:$0xff]   ;;  %10812 = vmatprep.mubr.bf16.mxu0 %v13626_v1  ;;  %7160 = vst [vmem:[#allocation5 + $0xb8] sm:$0xf] %v6810_v47  ;;  %v6422_v5 = vrot.slane %v6420_v56, 7  ;;  %v6403_v62 = vshrl.u32 %v12195_v52, 16  ;;  %v6400_v41 = vor.u32 %v6398_v19, %v16989_v18 }
 0x418   : > { %7433 = vst [vmem:[#allocation5 + $0xe0] sm:$0xf] %v7307_v55  ;;  %v6643_v30 = vld [vmem:[#allocation4 + $0x60] sm:$0xf]  ;;  %10643 = vmatprep.mubr.bf16.mxu1 %v13623_v25  ;;  %v6610_v49 = vld [vmem:[#allocation4 + $0xb0] sm:$0x1]  ;;  %10813 = vmatmul.mubr.bf16.gmra.mxu0 %v13624_v63 }
 0x419   : > { %v7198_v46 = vld [vmem:[#allocation4 + $0x2c] sm:$0x1]  ;;  %6675 = vst [vmem:[#allocation5 + $0x240] sm:$0xf] %v6643_v30  ;;  %v17003_v1 = vrot.slane %v6993_v4, 4  ;;  %v17005_v56 = vrot.slane %v7801_v43, 4  ;;  %10644 = vmatmul.mubr.bf16.gmra.mxu1 %v13621_v14  ;;  %v6600_v19 = vsel %vm16439_vm1, %v6400_v41, %v6599_v29  ;;  %v13194_v14 = vpop.f32.mrf.mxu0 }
 0x41a   : > { %v17007_v50 = vrot.slane %v8610_v10, 4  ;;  %v6423_v47 = vshll.u32 %v12197_v2, 16  ;;  %v6644_v55 = vld [vmem:[#allocation4 + $0x64] sm:$0xf]  ;;  %v6418_v37 = vrot.slane %v16940_v58, 4  ;;  %v6401_v20 = vrot.slane %v16989_v18, 4 }
 0x41b   : > { %18582 = vst [vmem:[#allocation36_spill] sm:$0xff] %v17005_v56  ;;  %v6406_v25 = vshll.u32 %v12195_v52, 16  ;;  %v6603_v63 = vld [vmem:[#allocation4 + $0xa4] sm:$0x1]  ;;  %v17013_v53 = vld [vmem:[#allocation4 + $0x28] sm:$0xf] }
 0x41c   : > { %18583 = vst [vmem:[#allocation37_spill] sm:$0xff] %v17007_v50  ;;  %6676 = vst [vmem:[#allocation5 + $0x264] sm:$0xf] %v6644_v55  ;;  %v17015_v30 = vld [vmem:[#allocation4 + $0x70] sm:$0xf]  ;;  %v6425_v4 = vor.u32 %v6423_v47, %v6422_v5  ;;  %v6427_v43 = vrot.slane %v6422_v5, 4 }
 0x41d   : > { %6601 = vst [vmem:[#allocation4 + $0x9c] sm:$0xf] %v6600_v19  ;;  %v6405_v10 = vrot.slane %v6403_v62, 7  ;;  %v6446_v2 = vshrl.u32 %v16997_v26, 16  ;;  %v13720_v58 = vld [vmem:[#allocation6 + $0x1e0] sm:$0xff]   ;;  %v6449_v18 = vshll.u32 %v16997_v26, 16 }
 0x41e   : > { %v17018_v60 = vld [vmem:[#allocation4 + $0x74] sm:$0x1]  ;;  %v7308_v29 = vrot.slane %v7306_v7, 4  ;;  %v7309_v52 = vrot.slane %v7198_v46, 5  ;;  %v18585_v41 = vshrl.u32 %v16688_v35, 16  ;;  %v6426_v47 = vsel %vm14700_vm14, %v6418_v37, %v6425_v4  ;;  %13017 = vmatprep.subr.bf16.mxu0 %v13720_v58  ;;  %v13721_v28 = vld [vmem:[#allocation6 + $0x1a0] sm:$0xff]  }
 0x41f   : > { %18584 = vst [vmem:[#allocation38_spill] sm:$0xff] %v17018_v60  ;;  %v17023_v55 = vld [vmem:[#allocation4 + $0x90] sm:$0xf]  ;;  %v6611_v5 = vsel %vm16454_vm3, %v6427_v43, %v6610_v49  ;;  %v6408_v62 = vor.u32 %v6406_v25, %v6405_v10  ;;  %v6410_v19 = vrot.slane %v6405_v10, 4  ;;  %v6620_v3 = vld [vmem:[#allocation4 + $0xc0] sm:$0xf]  ;;  %v6059_v4 = vadd.f32 %v13194_v14, %v16985_v9  ;;  %13018 = vmatpush3.bf16.msra.mxu0 %v13721_v28 }
 0x420   : > { %v6814_v56 = vrot.slane %v18585_v41, 4  ;;  %v7477_v50 = vld [vmem:[#allocation4 + $0x78] sm:$0xf]  ;;  %v17029_v26 = vld [vmem:[#allocation4 + $0x90] sm:$0xf]  ;;  %v17031_v41 = vrot.slane %v6446_v2, 7  ;;  %v7310_v37 = vsel %vm14682_vm12, %v7308_v29, %v7309_v52  ;;  %v12644_v14 = vadd.f32 %v16612_v0, %v16591_v54 }
 0x421   : > { %18586 = vst [vmem:[#allocation41_spill] sm:$0xff] %v17029_v26  ;;  %v13627_v7 = vld [vmem:[#allocation5 + $0x90] ss:$36 sps:$4 sm:$0xff]   ;;  %6609 = vst [vmem:[#allocation4 + $0xac] sm:$0xf] %v6426_v47  ;;  %v6409_v49 = vsel %vm14700_vm14, %v6401_v20, %v6408_v62  ;;  %v6604_v25 = vsel %vm16454_vm3, %v6410_v19, %v6603_v63  ;;  %v18587_v43 = vshll.u32 %v16688_v35, 16 }
 0x422   : > { %v13629_v46 = vld [vmem:[#allocation5 + $0x94] ss:$36 sps:$4 sm:$0xff]   ;;  %6612 = vst [vmem:[#allocation4 + $0xb0] sm:$0x1] %v6611_v5  ;;  %7509 = vst [vmem:[#allocation5 + $0x294] sm:$0xf] %v7477_v50  ;;  %v6451_v20 = vor.u32 %v6449_v18, %v17031_v41 }
 0x423   : > { %7434 = vst [vmem:[#allocation5 + $0x104] sm:$0xf] %v7310_v37  ;;  %v6817_v10 = vrot.slane %v18587_v43, 5  ;;  %v6821_v58 = vshll.u32 %v17013_v53, 16  ;;  %v7478_v2 = vld [vmem:[#allocation4 + $0x7c] sm:$0xf]  ;;  %10651 = vmatprep.mubr.bf16.mxu1 %v13629_v46 }
 0x424   : > { %v13722_v47 = vld [vmem:[#allocation6 + $0x1d8] sm:$0xff]   ;;  %6602 = vst [vmem:[#allocation4 + $0xa0] sm:$0xf] %v6409_v49  ;;  %6605 = vst [vmem:[#allocation4 + $0xa4] sm:$0x1] %v6604_v25  ;;  %v13726_v35 = vld [vmem:[#allocation6 + $0x140] sm:$0xff]   ;;  %10652 = vmatmul.mubr.bf16.gmra.mxu1 %v13627_v7  ;;  %v6621_v18 = vsel %vm16439_vm1, %v6451_v20, %v6620_v3 }
 0x425   : > { %7510 = vst [vmem:[#allocation5 + $0x2b8] sm:$0xf] %v7478_v2  ;;  %v6645_v63 = vld [vmem:[#allocation4 + $0x6c] sm:$0xf]  ;;  %v17049_v52 = vld [vmem:[#allocation4 + $0x90] sm:$0xf]  ;;  %v6818_v28 = vor.u32 %v6817_v10, %v6814_v56  ;;  %13019 = vmatprep.subr.bf16.mxu0 %v13722_v47  ;;  %12913 = vmatprep.subr.bf16.mxu1 %v13726_v35 }
 0x426   : > { %18588 = vst [vmem:[#allocation39_spill] sm:$0xff] %v17049_v52  ;;  %v6090_v5 = vmax.f32 %v16994_v11, 0.0  ;;  %v6646_v62 = vld [vmem:[#allocation4 + $0x70] sm:$0xf]  ;;  %6677 = vst [vmem:[#allocation5 + $0x288] sm:$0xf] %v6645_v63 }
 0x427   : > { %v13727_v19 = vld [vmem:[#allocation6 + $0x198] sm:$0xff]   ;;  %v17055_v37 = vrot.slane %v6821_v58, 5  ;;  %v6093_v49 = vmax.f32 %v6059_v4, 0.0  ;;  %6678 = vst [vmem:[#allocation5 + $0x2ac] sm:$0xf] %v6646_v62  ;;  %v6819_v10 = vrot.slane %v6818_v28, 4  ;;  %v6050_v58 = vpop.f32.mrf.mxu0 }
 0x428   : > { %v17059_v56 = vld [vmem:[#allocation4 + $0x84] sm:$0xf]  ;;  %v17061_v11 = vld [vmem:[#allocation4 + $0x94] sm:$0xf]  ;;  %6622 = vst [vmem:[#allocation4 + $0xc0] sm:$0xf] %v6621_v18  ;;  %13020 = vmatpush3.bf16.msra.mxu0 %v13727_v19  ;;  %v12198_v63 = vpack.c.bf16 %v6090_v5, %v6090_v5 }
 0x429   : > { %v7557_v25 = vld [vmem:[#allocation4 + $0x94] sm:$0xf]  ;;  %v6702_v3 = vld [vmem:[#allocation4 + $0x2c] sm:$0x1]  ;;  %v17065_v2 = vld [vmem:[#allocation4 + $0x84] sm:$0xf]  ;;  %v6824_v28 = vsel %vm14676_vm9, %v6819_v10, %v17055_v37  ;;  %v12201_v0 = vpack.c.bf16 %v6093_v49, %v6093_v49 }
 0x42a   : > { %v8387_v43 = vld [vmem:[#allocation4 + $0x94] sm:$0xf]  ;;  %18589 = vst [vmem:[#allocation40_spill] sm:$0xff] %v17065_v2  ;;  %v17067_v47 = vld [vmem:[#allocation4 + $0x84] sm:$0xf]  ;;  %v6825_v20 = vshrl.u32 %v17013_v53, 16 }
 0x42b   : > { %18590 = vst [vmem:[#allocation13_spill] sm:$0xff] %v17067_v47  ;;  %v18591_v35 = vld [vmem:[#allocation44_spill] sm:$0xff]  ;;  %v17072_v18 = vld [vmem:[#allocation4 + $0x84] sm:$0xe]  ;;  %v7041_v9 = vshrl.u32 %v17061_v11, 16  ;;  %v7849_v54 = vshrl.u32 %v7557_v25, 16 }
 0x42c   : > { %v5890_v62 = vadd.f32 %v12644_v14, %v18591_v35  ;;  %18592 = vst [vmem:[#allocation42_spill] sm:$0xff] %v17072_v18  ;;  %v8658_v4 = vshrl.u32 %v8387_v43, 16  ;;  %v17078_v7 = vld [vmem:[#allocation4 + $0x88] sm:$0xf]  ;;  %v13632_v29 = vld [vmem:[#allocation5 + $0xe4] ss:$36 sps:$4 sm:$0xff]  }
 0x42d   : > { %7161 = vst [vmem:[#allocation5 + $0xdc] sm:$0xf] %v6824_v28  ;;  %v13630_v50 = vld [vmem:[#allocation5 + $0xe0] ss:$36 sps:$4 sm:$0xff]   ;;  %10820 = vmatprep.mubr.bf16.mxu0 %v13632_v29  ;;  %v6827_v49 = vrot.slane %v6825_v20, 4  ;;  %v6831_v25 = vshll.u32 %v6702_v3, 16 }
 0x42e   : > { %v6051_v53 = vadd.f32 %v6050_v58, %v5890_v62  ;;  %v6429_v43 = vshrl.u32 %v12198_v63, 16  ;;  %v7199_v10 = vld [vmem:[#allocation4 + $0x30] sm:$0xe]  ;;  %v17086_v28 = vrot.slane %v7041_v9, 4  ;;  %v6454_v62 = vshrl.u32 %v12201_v0, 16  ;;  %10821 = vmatmul.mubr.bf16.gmra.mxu0 %v13630_v50  ;;  %v13731_v58 = vld [vmem:[#allocation6 + $0x100] sm:$0xff]  }
 0x42f   : > { %v7200_v5 = vld [vmem:[#allocation4 + $0x34] sm:$0xf]  ;;  %v17089_v35 = vrot.slane %v7849_v54, 4  ;;  %v17091_v46 = vrot.slane %v8658_v4, 4  ;;  %v6452_v19 = vrot.slane %v17031_v41, 4  ;;  %v6432_v29 = vshll.u32 %v12198_v63, 16  ;;  %12914 = vmatpush3.bf16.msra.mxu1 %v13731_v58 }
 0x430   : > { %v6613_v20 = vld [vmem:[#allocation4 + $0xb4] sm:$0xf]  ;;  %v7201_v3 = vld [vmem:[#allocation4 + $0x38] sm:$0x1]  ;;  %v6828_v14 = vor.u32 %v6827_v49, %v17055_v37  ;;  %v17095_v26 = vrot.slane %v6429_v43, 7  ;;  %v6456_v9 = vrot.slane %v6454_v62, 7 }
 0x431   : > { %18593 = vst [vmem:[#allocation43_spill] sm:$0xff] %v17089_v35  ;;  %18594 = vst [vmem:[#allocation45_spill] sm:$0xff] %v17091_v46  ;;  %v6457_v60 = vshll.u32 %v12201_v0, 16  ;;  %v6624_v2 = vld [vmem:[#allocation4 + $0xc8] sm:$0x1]  ;;  %v6833_v52 = vrot.slane %v6831_v25, 5 }
 0x432   : > { %v6091_v50 = vmax.f32 %v6051_v53, 0.0  ;;  %v11871_v47 = vrot.slane %v7199_v10, 9  ;;  %v7313_v54 = vrot.slane %v7200_v5, 5  ;;  %v17097_v35 = vld [vmem:[#allocation4 + $0x38] sm:$0x1]  ;;  %v6829_v46 = vrot.slane %v6828_v14, 4 }
 0x433   : > { %v7479_v4 = vld [vmem:[#allocation4 + $0x84] sm:$0xf]  ;;  %v6434_v41 = vor.u32 %v6432_v29, %v17095_v26  ;;  %v6459_v63 = vor.u32 %v6457_v60, %v6456_v9  ;;  %v7316_v6 = vrot.slane %v7201_v3, 5  ;;  %v7202_v18 = vld [vmem:[#allocation4 + $0x3c] sm:$0xe]  ;;  %v13732_v49 = vld [vmem:[#allocation6 + $0x1d0] sm:$0xff]  }
 0x434   : > { %v7480_v37 = vld [vmem:[#allocation4 + $0x88] sm:$0xf]  ;;  %7511 = vst [vmem:[#allocation5 + $0x2dc] sm:$0xf] %v7479_v4  ;;  %v6461_v0 = vrot.slane %v6456_v9, 4  ;;  %v12199_v43 = vpack.c.bf16 %v6091_v50, %v6091_v50  ;;  %v7314_v53 = vsel %vm14682_vm12, %v11871_v47, %v7313_v54  ;;  %v7315_v25 = vrot.slane %v7313_v54, 4  ;;  %13021 = vmatprep.subr.bf16.mxu0 %v13732_v49 }
 0x435   : > { %7512 = vst [vmem:[#allocation5 + $0x300] sm:$0xf] %v7480_v37  ;;  %v6647_v5 = vld [vmem:[#allocation4 + $0x78] sm:$0xf]  ;;  %v6648_v10 = vld [vmem:[#allocation4 + $0x7c] sm:$0xf]  ;;  %v6834_v14 = vsel %vm14676_vm9, %v6829_v46, %v6833_v52  ;;  %v6614_v60 = vsel %vm16439_vm1, %v6434_v41, %v6613_v20  ;;  %v6460_v62 = vsel %vm14700_vm14, %v6452_v19, %v6459_v63 }
 0x436   : > { %7435 = vst [vmem:[#allocation5 + $0x128] sm:$0xf] %v7314_v53  ;;  %v18595_v58 = vshrl.u32 %v16673_v24, 16  ;;  %v7203_v3 = vld [vmem:[#allocation4 + $0x40] sm:$0xf]  ;;  %v13733_v47 = vld [vmem:[#allocation6 + $0x190] sm:$0xff]   ;;  %v6625_v52 = vsel %vm16454_vm3, %v6461_v0, %v6624_v2  ;;  %v7317_v19 = vsel %vm14682_vm12, %v7315_v25, %v7316_v6 }
 0x437   : > { %v7204_v9 = vld [vmem:[#allocation4 + $0x44] sm:$0x1]  ;;  %6679 = vst [vmem:[#allocation5 + $0x2d0] sm:$0xf] %v6647_v5  ;;  %6680 = vst [vmem:[#allocation5 + $0x2f4] sm:$0xf] %v6648_v10  ;;  %13022 = vmatpush3.bf16.msra.mxu0 %v13733_v47 }
 0x438   : > { %v6838_v29 = vrot.slane %v18595_v58, 4  ;;  %v17110_v50 = vld [vmem:[#allocation4 + $0x8c] sm:$0x1]  ;;  %v17112_v54 = vld [vmem:[#allocation4 + $0xa8] sm:$0xf]  ;;  %v6435_v42 = vrot.slane %v17095_v26, 4 }
 0x439   : > { %18596 = vst [vmem:[#allocation12_spill] sm:$0xff] %v17110_v50  ;;  %7162 = vst [vmem:[#allocation5 + $0x100] sm:$0xf] %v6834_v14  ;;  %v6437_v46 = vshrl.u32 %v12199_v43, 16  ;;  %v6440_v20 = vshll.u32 %v12199_v43, 16  ;;  %v18597_v41 = vshll.u32 %v16673_v24, 16 }
 0x43a   : > { %6615 = vst [vmem:[#allocation4 + $0xb4] sm:$0xf] %v6614_v60  ;;  %6623 = vst [vmem:[#allocation4 + $0xc4] sm:$0xf] %v6460_v62  ;;  %v6617_v4 = vld [vmem:[#allocation4 + $0xbc] sm:$0x1] }
 0x43b   : > { %6626 = vst [vmem:[#allocation4 + $0xc8] sm:$0x1] %v6625_v52  ;;  %7436 = vst [vmem:[#allocation5 + $0x14c] sm:$0xf] %v7317_v19  ;;  %v6841_v63 = vrot.slane %v18597_v41, 5  ;;  %v6855_v26 = vshll.u32 %v17097_v35, 16 }
 0x43c   : > { %v13859_v37 = vld [vmem:[#allocation4 + $0x34] sm:$0xf]  ;;  %v7481_v53 = vld [vmem:[#allocation4 + $0x90] sm:$0xf]  ;;  %v6439_v5 = vrot.slane %v6437_v46, 7  ;;  %v11872_v10 = vrot.slane %v7202_v18, 9 }
 0x43d   : > { %v6845_v49 = vshll.u32 %v13859_v37, 16  ;;  %v7320_v2 = vrot.slane %v7203_v3, 5  ;;  %v7323_v0 = vrot.slane %v7204_v9, 5  ;;  %v7482_v14 = vld [vmem:[#allocation4 + $0x94] sm:$0xf]  ;;  %v6842_v6 = vor.u32 %v6841_v63, %v6838_v29  ;;  %v13734_v52 = vld [vmem:[#allocation6 + $0x1c8] sm:$0xff]  }
 0x43e   : > { %7513 = vst [vmem:[#allocation5 + $0x324] sm:$0xf] %v7481_v53  ;;  %v18598_v43 = vshrl.u32 %v16770_v27, 16  ;;  %v18599_v24 = vshll.u32 %v16770_v27, 16  ;;  %7514 = vst [vmem:[#allocation5 + $0x348] sm:$0xf] %v7482_v14  ;;  %v6442_v35 = vor.u32 %v6440_v20, %v6439_v5  ;;  %13023 = vmatprep.subr.bf16.mxu0 %v13734_v52 }
 0x43f   : > { %v6847_v25 = vrot.slane %v6845_v49, 5  ;;  %v6649_v58 = vld [vmem:[#allocation4 + $0x84] sm:$0xf]  ;;  %v6444_v19 = vrot.slane %v6439_v5, 4  ;;  %v7321_v18 = vsel %vm14682_vm12, %v11872_v10, %v7320_v2  ;;  %v7322_v3 = vrot.slane %v7320_v2, 4 }
 0x440   : > { %v6862_v60 = vrot.slane %v18598_v43, 4  ;;  %v6865_v62 = vrot.slane %v18599_v24, 5  ;;  %v6707_v9 = vld [vmem:[#allocation4 + $0x40] sm:$0xf]  ;;  %v6650_v47 = vld [vmem:[#allocation4 + $0x88] sm:$0xf]  ;;  %v6443_v53 = vsel %vm14700_vm14, %v6435_v42, %v6442_v35 }
 0x441   : > { %6681 = vst [vmem:[#allocation5 + $0x318] sm:$0xf] %v6649_v58  ;;  %v17130_v41 = vld [vmem:[#allocation4 + $0xa8] sm:$0xf]  ;;  %v6843_v27 = vrot.slane %v6842_v6, 4  ;;  %v6852_v63 = vor.u32 %v16731_v38, %v6847_v25  ;;  %v6618_v5 = vsel %vm16454_vm3, %v6444_v19, %v6617_v4  ;;  %v7324_v10 = vsel %vm14682_vm12, %v7322_v3, %v7323_v0 }
 0x442   : > { %18600 = vst [vmem:[#allocation46_spill] sm:$0xff] %v17130_v41  ;;  %7437 = vst [vmem:[#allocation5 + $0x170] sm:$0xf] %v7321_v18  ;;  %v17134_v37 = vld [vmem:[#allocation4 + $0xa8] sm:$0xf]  ;;  %v6866_v43 = vor.u32 %v6865_v62, %v6862_v60  ;;  %v6857_v24 = vrot.slane %v6855_v26, 5 }
 0x443   : > { %6682 = vst [vmem:[#allocation5 + $0x33c] sm:$0xf] %v6650_v47  ;;  %v17136_v49 = vld [vmem:[#allocation4 + $0x9c] sm:$0xf]  ;;  %v13636_v38 = vld [vmem:[#allocation5 + $0xdc] ss:$36 sps:$4 sm:$0xff]   ;;  %v6848_v14 = vsel %vm14676_vm9, %v6843_v27, %v6847_v25 }
 0x444   : > { %v17144_v2 = vld [vmem:[#allocation4 + $0x9c] sm:$0xf]  ;;  %6616 = vst [vmem:[#allocation4 + $0xb8] sm:$0xf] %v6443_v53  ;;  %6619 = vst [vmem:[#allocation4 + $0xbc] sm:$0x1] %v6618_v5  ;;  %10659 = vmatprep.mubr.bf16.mxu1 %v13636_v38 }
 0x445   : > { %v6853_v6 = vrot.slane %v6852_v63, 4  ;;  %7438 = vst [vmem:[#allocation5 + $0x194] sm:$0xf] %v7324_v10  ;;  %v13634_v42 = vld [vmem:[#allocation5 + $0xd8] ss:$36 sps:$4 sm:$0xff]   ;;  %v6869_v4 = vshll.u32 %v6707_v9, 16 }
 0x446   : > { %7163 = vst [vmem:[#allocation5 + $0x124] sm:$0xf] %v6848_v14  ;;  %v6708_v31 = vld [vmem:[#allocation4 + $0x44] sm:$0x1]  ;;  %v6873_v58 = vshrl.u32 %v6707_v9, 16  ;;  %10660 = vmatmul.mubr.bf16.gmra.mxu1 %v13634_v42  ;;  %v6867_v53 = vrot.slane %v6866_v43, 4 }
 0x447   : > { %v7205_v0 = vld [vmem:[#allocation4 + $0x48] sm:$0xe]  ;;  %v7206_v52 = vld [vmem:[#allocation4 + $0x4c] sm:$0xf]  ;;  %v17153_v3 = vld [vmem:[#allocation4 + $0x9c] sm:$0xf]  ;;  %v6858_v9 = vsel %vm14676_vm9, %v6853_v6, %v6857_v24 }
 0x448   : > { %v17156_v26 = vld [vmem:[#allocation4 + $0x9c] sm:$0xe]  ;;  %v17158_v62 = vld [vmem:[#allocation4 + $0xac] sm:$0xf]  ;;  %v13638_v63 = vld [vmem:[#allocation5 + $0x128] ss:$36 sps:$4 sm:$0xff]  }
 0x449   : > { %v17163_v27 = vld [vmem:[#allocation4 + $0xac] sm:$0xf]  ;;  %7164 = vst [vmem:[#allocation5 + $0x148] sm:$0xf] %v6858_v9  ;;  %v7207_v5 = vld [vmem:[#allocation4 + $0x50] sm:$0x1] }
 0x44a   : > { %v13640_v38 = vld [vmem:[#allocation5 + $0x12c] ss:$36 sps:$4 sm:$0xff]   ;;  %v6871_v14 = vrot.slane %v6869_v4, 5  ;;  %v6875_v29 = vrot.slane %v6873_v58, 4  ;;  %v17166_v35 = vld [vmem:[#allocation4 + $0x50] sm:$0x1] }
 0x44b   : > { %v7208_v59 = vld [vmem:[#allocation4 + $0x54] sm:$0xe]  ;;  %v6879_v18 = vshll.u32 %v6708_v31, 16  ;;  %v11873_v6 = vrot.slane %v7205_v0, 9  ;;  %v7327_v24 = vrot.slane %v7206_v52, 5  ;;  %10828 = vmatprep.mubr.bf16.mxu0 %v13640_v38  ;;  %v7330_v46 = vrot.slane %v7207_v5, 5 }
 0x44c   : > { %v7209_v47 = vld [vmem:[#allocation4 + $0x58] sm:$0xf]  ;;  %v7483_v19 = vld [vmem:[#allocation4 + $0x9c] sm:$0xf]  ;;  %v6872_v9 = vsel %vm14676_vm9, %v6867_v53, %v6871_v14  ;;  %v6876_v4 = vor.u32 %v6875_v29, %v6871_v14  ;;  %v17175_v31 = vld [vmem:[#allocation4 + $0xac] sm:$0xf]  ;;  %10829 = vmatmul.mubr.bf16.gmra.mxu0 %v13638_v63 }
 0x44d   : > { %v7210_v58 = vld [vmem:[#allocation4 + $0x5c] sm:$0x1]  ;;  %7515 = vst [vmem:[#allocation5 + $0x36c] sm:$0xf] %v7483_v19  ;;  %v6881_v0 = vrot.slane %v6879_v18, 5  ;;  %v7328_v52 = vsel %vm14682_vm12, %v11873_v6, %v7327_v24  ;;  %v7329_v43 = vrot.slane %v7327_v24, 4 }
 0x44e   : > { %7165 = vst [vmem:[#allocation5 + $0x16c] sm:$0xf] %v6872_v9  ;;  %v13646_v20 = vld [vmem:[#allocation5 + $0x174] ss:$36 sps:$4 sm:$0xff]   ;;  %v6877_v38 = vrot.slane %v6876_v4, 4  ;;  %v18601_v29 = vshrl.u32 %v16725_v21, 16 }
 0x44f   : > { %7439 = vst [vmem:[#allocation5 + $0x1b8] sm:$0xf] %v7328_v52  ;;  %v6713_v53 = vld [vmem:[#allocation4 + $0x58] sm:$0xf]  ;;  %v18602_v14 = vshll.u32 %v16725_v21, 16  ;;  %v6903_v18 = vshll.u32 %v17166_v35, 16  ;;  %10836 = vmatprep.mubr.bf16.mxu0 %v13646_v20  ;;  %v7331_v24 = vsel %vm14682_vm12, %v7329_v43, %v7330_v46 }
 0x450   : > { %v6886_v19 = vrot.slane %v18601_v29, 4  ;;  %v13860_v25 = vld [vmem:[#allocation4 + $0x4c] sm:$0xf]  ;;  %v11874_v63 = vrot.slane %v7208_v59, 9  ;;  %v6714_v9 = vld [vmem:[#allocation4 + $0x5c] sm:$0x1]  ;;  %v6882_v5 = vsel %vm14676_vm9, %v6877_v38, %v6881_v0 }
 0x451   : > { %v6889_v60 = vrot.slane %v18602_v14, 5  ;;  %v6893_v42 = vshll.u32 %v13860_v25, 16  ;;  %v7484_v10 = vld [vmem:[#allocation4 + $0xa0] sm:$0xf]  ;;  %v13641_v6 = vld [vmem:[#allocation5 + $0x120] ss:$36 sps:$4 sm:$0xff]  }
 0x452   : > { %v13643_v50 = vld [vmem:[#allocation5 + $0x124] ss:$36 sps:$4 sm:$0xff]   ;;  %v7334_v4 = vrot.slane %v7209_v47, 5  ;;  %7516 = vst [vmem:[#allocation5 + $0x390] sm:$0xf] %v7484_v10  ;;  %v7337_v59 = vrot.slane %v7210_v58, 5 }
 0x453   : > { %7166 = vst [vmem:[#allocation5 + $0x190] sm:$0xf] %v6882_v5  ;;  %7440 = vst [vmem:[#allocation5 + $0x1dc] sm:$0xf] %v7331_v24  ;;  %v6890_v25 = vor.u32 %v6889_v60, %v6886_v19  ;;  %v6895_v35 = vrot.slane %v6893_v42, 5  ;;  %v13735_v41 = vld [vmem:[#allocation6 + $0x188] sm:$0xff]   ;;  %10667 = vmatprep.mubr.bf16.mxu1 %v13643_v50 }
 0x454   : > { %v7211_v52 = vld [vmem:[#allocation4 + $0x60] sm:$0xe]  ;;  %v7212_v29 = vld [vmem:[#allocation4 + $0x64] sm:$0xf]  ;;  %v6651_v14 = vld [vmem:[#allocation4 + $0x90] sm:$0xf]  ;;  %v7335_v20 = vsel %vm14682_vm12, %v11874_v63, %v7334_v4  ;;  %10668 = vmatmul.mubr.bf16.gmra.mxu1 %v13641_v6  ;;  %13024 = vmatpush3.bf16.msra.mxu0 %v13735_v41 }
 0x455   : > { %v7336_v0 = vrot.slane %v7334_v4, 4  ;;  %v18603_v46 = vshrl.u32 %v16840_v45, 16  ;;  %v18604_v10 = vshll.u32 %v16840_v45, 16  ;;  %v6652_v38 = vld [vmem:[#allocation4 + $0x94] sm:$0xf]  ;;  %v13742_v60 = vld [vmem:[#allocation6 + $0x1c0] sm:$0xff]   ;;  %v6900_v19 = vor.u32 %v16824_v48, %v6895_v35 }
 0x456   : > { %6683 = vst [vmem:[#allocation5 + $0x360] sm:$0xf] %v6651_v14  ;;  %v13644_v42 = vld [vmem:[#allocation5 + $0x170] ss:$36 sps:$4 sm:$0xff]   ;;  %v6891_v58 = vrot.slane %v6890_v25, 4  ;;  %v6917_v50 = vshll.u32 %v6713_v53, 16  ;;  %13025 = vmatprep.subr.bf16.mxu0 %v13742_v60 }
 0x457   : > { %v6910_v47 = vrot.slane %v18603_v46, 4  ;;  %v6913_v43 = vrot.slane %v18604_v10, 5  ;;  %7441 = vst [vmem:[#allocation5 + $0x200] sm:$0xf] %v7335_v20  ;;  %v6921_v5 = vshrl.u32 %v6713_v53, 16  ;;  %v13743_v63 = vld [vmem:[#allocation6 + $0x180] sm:$0xff]   ;;  %v7338_v4 = vsel %vm14682_vm12, %v7336_v0, %v7337_v59  ;;  %10837 = vmatmul.mubr.bf16.gmra.mxu0 %v13644_v42 }
 0x458   : > { %6684 = vst [vmem:[#allocation5 + $0x384] sm:$0xf] %v6652_v38  ;;  %v6905_v24 = vrot.slane %v6903_v18, 5  ;;  %v6927_v46 = vshll.u32 %v6714_v9, 16  ;;  %v13747_v14 = vld [vmem:[#allocation6 + $0x238] sm:$0xff]   ;;  %v6896_v6 = vsel %vm14676_vm9, %v6891_v58, %v6895_v35  ;;  %v6901_v25 = vrot.slane %v6900_v19, 4  ;;  %13026 = vmatpush3.bf16.msra.mxu0 %v13743_v63 }
 0x459   : > { %v6914_v45 = vor.u32 %v6913_v43, %v6910_v47  ;;  %7442 = vst [vmem:[#allocation5 + $0x224] sm:$0xf] %v7338_v4  ;;  %v6919_v48 = vrot.slane %v6917_v50, 5  ;;  %v6923_v20 = vrot.slane %v6921_v5, 4  ;;  %v7213_v53 = vld [vmem:[#allocation4 + $0x68] sm:$0x1]  ;;  %13195 = vmatprep.subr.bf16.mxu1 %v13747_v14 }
 0x45a   : > { %7167 = vst [vmem:[#allocation5 + $0x1b4] sm:$0xf] %v6896_v6  ;;  %v6929_v10 = vrot.slane %v6927_v46, 5  ;;  %v11875_v18 = vrot.slane %v7211_v52, 9  ;;  %v7341_v38 = vrot.slane %v7212_v29, 5  ;;  %v6906_v9 = vsel %vm14676_vm9, %v6901_v25, %v6905_v24 }
 0x45b   : > { %v6915_v41 = vrot.slane %v6914_v45, 4  ;;  %v7214_v21 = vld [vmem:[#allocation4 + $0x6c] sm:$0xe]  ;;  %v7215_v59 = vld [vmem:[#allocation4 + $0x70] sm:$0xf]  ;;  %v6924_v0 = vor.u32 %v6923_v20, %v6919_v48  ;;  %v18605_v35 = vshrl.u32 %v16826_v36, 16 }
 0x45c   : > { %v17202_v47 = vld [vmem:[#allocation4 + $0x68] sm:$0x1]  ;;  %v18606_v60 = vshll.u32 %v16826_v36, 16  ;;  %v7486_v19 = vld [vmem:[#allocation4 + $0xac] sm:$0xf]  ;;  %v7342_v50 = vsel %vm14682_vm12, %v11875_v18, %v7341_v38  ;;  %v7343_v5 = vrot.slane %v7341_v38, 4 }
 0x45d   : > { %v6934_v43 = vrot.slane %v18605_v35, 4  ;;  %v7485_v58 = vld [vmem:[#allocation4 + $0xa8] sm:$0xf]  ;;  %7168 = vst [vmem:[#allocation5 + $0x1d8] sm:$0xf] %v6906_v9  ;;  %v6920_v29 = vsel %vm14676_vm9, %v6915_v41, %v6919_v48  ;;  %v7344_v24 = vrot.slane %v7213_v53, 5 }
 0x45e   : > { %v6937_v42 = vrot.slane %v18606_v60, 5  ;;  %v13650_v52 = vld [vmem:[#allocation5 + $0x16c] ss:$36 sps:$4 sm:$0xff]   ;;  %v7216_v4 = vld [vmem:[#allocation4 + $0x74] sm:$0x1]  ;;  %v6925_v36 = vrot.slane %v6924_v0, 4 }
 0x45f   : > { %7517 = vst [vmem:[#allocation5 + $0x3b4] sm:$0xf] %v7485_v58  ;;  %7518 = vst [vmem:[#allocation5 + $0x3d8] sm:$0xf] %v7486_v19  ;;  %v13648_v45 = vld [vmem:[#allocation5 + $0x168] ss:$36 sps:$4 sm:$0xff]   ;;  %10675 = vmatprep.mubr.bf16.mxu1 %v13650_v52  ;;  %v7345_v25 = vsel %vm14682_vm12, %v7343_v5, %v7344_v24 }
 0x460   : > { %v13654_v46 = vld [vmem:[#allocation5 + $0x1bc] ss:$36 sps:$4 sm:$0xff]   ;;  %7169 = vst [vmem:[#allocation5 + $0x1fc] sm:$0xf] %v6920_v29  ;;  %7443 = vst [vmem:[#allocation5 + $0x248] sm:$0xf] %v7342_v50  ;;  %v6938_v14 = vor.u32 %v6937_v42, %v6934_v43  ;;  %10676 = vmatmul.mubr.bf16.gmra.mxu1 %v13648_v45  ;;  %v6930_v53 = vsel %vm14676_vm9, %v6925_v36, %v6929_v10 }
 0x461   : > { %v6719_v63 = vld [vmem:[#allocation4 + $0x70] sm:$0xf]  ;;  %v13861_v48 = vld [vmem:[#allocation4 + $0x64] sm:$0xf]  ;;  %v6653_v41 = vld [vmem:[#allocation4 + $0x9c] sm:$0xf]  ;;  %10844 = vmatprep.mubr.bf16.mxu0 %v13654_v46 }
 0x462   : > { %v13652_v6 = vld [vmem:[#allocation5 + $0x1b8] ss:$36 sps:$4 sm:$0xff]   ;;  %v6941_v20 = vshll.u32 %v13861_v48, 16  ;;  %7444 = vst [vmem:[#allocation5 + $0x26c] sm:$0xf] %v7345_v25  ;;  %v6939_v18 = vrot.slane %v6938_v14, 4 }
 0x463   : > { %v11876_v38 = vrot.slane %v7214_v21, 9  ;;  %v7348_v9 = vrot.slane %v7215_v59, 5  ;;  %v6654_v0 = vld [vmem:[#allocation4 + $0xa0] sm:$0xf]  ;;  %6685 = vst [vmem:[#allocation5 + $0x3a8] sm:$0xf] %v6653_v41  ;;  %10845 = vmatmul.mubr.bf16.gmra.mxu0 %v13652_v6 }
 0x464   : > { %v18607_v35 = vshrl.u32 %v17158_v62, 16  ;;  %v13660_v60 = vld [vmem:[#allocation5 + $0x204] ss:$36 sps:$4 sm:$0xff]   ;;  %7170 = vst [vmem:[#allocation5 + $0x220] sm:$0xf] %v6930_v53  ;;  %v6943_v42 = vrot.slane %v6941_v20, 5 }
 0x465   : > { %v6951_v58 = vshll.u32 %v17202_v47, 16  ;;  %6686 = vst [vmem:[#allocation5 + $0x3cc] sm:$0xf] %v6654_v0  ;;  %v7349_v10 = vsel %vm14682_vm12, %v11876_v38, %v7348_v9  ;;  %v7350_v19 = vrot.slane %v7348_v9, 4  ;;  %v7351_v52 = vrot.slane %v7216_v4, 5  ;;  %10852 = vmatprep.mubr.bf16.mxu0 %v13660_v60 }
 0x466   : > { %v17218_v43 = vrot.slane %v18607_v35, 4  ;;  %v6720_v21 = vld [vmem:[#allocation4 + $0x74] sm:$0x1]  ;;  %v18608_v59 = vshrl.u32 %v16930_v32, 16  ;;  %v6944_v50 = vsel %vm14676_vm9, %v6939_v18, %v6943_v42  ;;  %v6948_v5 = vor.u32 %v16899_v13, %v6943_v42  ;;  %7445 = vst [vmem:[#allocation5 + $0x290] sm:$0xf] %v7349_v10 }
 0x467   : > { %v18609_v47 = vshll.u32 %v16930_v32, 16  ;;  %v6965_v45 = vshll.u32 %v6719_v63, 16  ;;  %v7217_v46 = vld [vmem:[#allocation4 + $0x78] sm:$0xe]  ;;  %v7218_v36 = vld [vmem:[#allocation4 + $0x7c] sm:$0xf]  ;;  %v7352_v4 = vsel %vm14682_vm12, %v7350_v19, %v7351_v52 }
 0x468   : > { %v6958_v29 = vrot.slane %v18608_v59, 4  ;;  %v13657_v14 = vld [vmem:[#allocation5 + $0x1b4] ss:$36 sps:$4 sm:$0xff]   ;;  %7171 = vst [vmem:[#allocation5 + $0x244] sm:$0xf] %v6944_v50  ;;  %v6969_v6 = vshrl.u32 %v6719_v63, 16 }
 0x469   : > { %v6961_v24 = vrot.slane %v18609_v47, 5  ;;  %v7219_v25 = vld [vmem:[#allocation4 + $0x80] sm:$0x1]  ;;  %v6949_v48 = vrot.slane %v6948_v5, 4  ;;  %v6953_v20 = vrot.slane %v6951_v58, 5  ;;  %v6967_v53 = vrot.slane %v6965_v45, 5  ;;  %10683 = vmatprep.mubr.bf16.mxu1 %v13657_v14 }
 0x46a   : > { %7446 = vst [vmem:[#allocation5 + $0x2b4] sm:$0xf] %v7352_v4  ;;  %v13655_v13 = vld [vmem:[#allocation5 + $0x1b0] ss:$36 sps:$4 sm:$0xff]   ;;  %v6971_v18 = vrot.slane %v6969_v6, 4  ;;  %v6975_v32 = vshll.u32 %v6720_v21, 16 }
 0x46b   : > { %v6962_v41 = vor.u32 %v6961_v24, %v6958_v29  ;;  %v11877_v38 = vrot.slane %v7217_v46, 9  ;;  %v7355_v9 = vrot.slane %v7218_v36, 5  ;;  %v6954_v0 = vsel %vm14676_vm9, %v6949_v48, %v6953_v20  ;;  %v17234_v60 = vld [vmem:[#allocation4 + $0x80] sm:$0x1]  ;;  %v7220_v42 = vld [vmem:[#allocation4 + $0x84] sm:$0xe]  ;;  %10684 = vmatmul.mubr.bf16.gmra.mxu1 %v13655_v13 }
 0x46c   : > { %v7221_v63 = vld [vmem:[#allocation4 + $0x88] sm:$0xf]  ;;  %v13658_v10 = vld [vmem:[#allocation5 + $0x200] ss:$36 sps:$4 sm:$0xff]   ;;  %7172 = vst [vmem:[#allocation5 + $0x268] sm:$0xf] %v6954_v0  ;;  %v6972_v19 = vor.u32 %v6971_v18, %v6967_v53 }
 0x46d   : > { %v6963_v35 = vrot.slane %v6962_v41, 4  ;;  %v13664_v58 = vld [vmem:[#allocation5 + $0x1fc] ss:$36 sps:$4 sm:$0xff]   ;;  %v7356_v52 = vsel %vm14682_vm12, %v11877_v38, %v7355_v9  ;;  %v7358_v59 = vrot.slane %v7219_v25, 5  ;;  %v7222_v21 = vld [vmem:[#allocation4 + $0x8c] sm:$0x1]  ;;  %10853 = vmatmul.mubr.bf16.gmra.mxu0 %v13658_v10 }
 0x46e   : > { %v13668_v29 = vld [vmem:[#allocation5 + $0x24c] ss:$36 sps:$4 sm:$0xff]   ;;  %v7357_v5 = vrot.slane %v7355_v9, 4  ;;  %7447 = vst [vmem:[#allocation5 + $0x2d8] sm:$0xf] %v7356_v52  ;;  %v18610_v47 = vshrl.u32 %v16903_v12, 16  ;;  %10691 = vmatprep.mubr.bf16.mxu1 %v13664_v58 }
 0x46f   : > { %v6968_v50 = vsel %vm14676_vm9, %v6963_v35, %v6967_v53  ;;  %v18611_v45 = vshll.u32 %v16903_v12, 16  ;;  %v6973_v36 = vrot.slane %v6972_v19, 4  ;;  %v6977_v14 = vrot.slane %v6975_v32, 5  ;;  %v13862_v4 = vld [vmem:[#allocation4 + $0x7c] sm:$0xf]  ;;  %10860 = vmatprep.mubr.bf16.mxu0 %v13668_v29 }
 0x470   : > { %v6982_v24 = vrot.slane %v18610_v47, 4  ;;  %7173 = vst [vmem:[#allocation5 + $0x28c] sm:$0xf] %v6968_v50  ;;  %v6989_v6 = vshll.u32 %v13862_v4, 16  ;;  %v6725_v25 = vld [vmem:[#allocation4 + $0x88] sm:$0xf]  ;;  %v7359_v48 = vsel %vm14682_vm12, %v7357_v5, %v7358_v59 }
 0x471   : > { %v6985_v46 = vrot.slane %v18611_v45, 5  ;;  %v11878_v41 = vrot.slane %v7220_v42, 9  ;;  %v7362_v53 = vrot.slane %v7221_v63, 5  ;;  %v7487_v13 = vld [vmem:[#allocation4 + $0xb4] sm:$0xf]  ;;  %v18612_v18 = vshrl.u32 %v17163_v27, 16 }
 0x472   : > { %v13662_v38 = vld [vmem:[#allocation5 + $0x1f8] ss:$36 sps:$4 sm:$0xff]   ;;  %v6978_v32 = vsel %vm14676_vm9, %v6973_v36, %v6977_v14  ;;  %7448 = vst [vmem:[#allocation5 + $0x2fc] sm:$0xf] %v7359_v48  ;;  %v6991_v9 = vrot.slane %v6989_v6, 5  ;;  %v6999_v0 = vshll.u32 %v17234_v60, 16 }
 0x473   : > { %v6986_v20 = vor.u32 %v6985_v46, %v6982_v24  ;;  %v17248_v12 = vrot.slane %v18612_v18, 4  ;;  %v6726_v35 = vld [vmem:[#allocation4 + $0x8c] sm:$0x1]  ;;  %v7223_v10 = vld [vmem:[#allocation4 + $0x90] sm:$0xe]  ;;  %v7363_v63 = vsel %vm14682_vm12, %v11878_v41, %v7362_v53  ;;  %v7364_v27 = vrot.slane %v7362_v53, 4  ;;  %10692 = vmatmul.mubr.bf16.gmra.mxu1 %v13662_v38 }
 0x474   : > { %v7224_v58 = vld [vmem:[#allocation4 + $0x94] sm:$0xf]  ;;  %7519 = vst [vmem:[#allocation5 + $0x3fc] sm:$0xf] %v7487_v13  ;;  %7174 = vst [vmem:[#allocation5 + $0x2b0] sm:$0xf] %v6978_v32  ;;  %v6996_v29 = vor.u32 %v17003_v1, %v6991_v9 }
 0x475   : > { %v6987_v42 = vrot.slane %v6986_v20, 4  ;;  %v7365_v19 = vrot.slane %v7222_v21, 5  ;;  %v7488_v52 = vld [vmem:[#allocation4 + $0xb8] sm:$0xf]  ;;  %v13666_v59 = vld [vmem:[#allocation5 + $0x248] ss:$36 sps:$4 sm:$0xff]  }
 0x476   : > { %7449 = vst [vmem:[#allocation5 + $0x320] sm:$0xf] %v7363_v63  ;;  %v18613_v50 = vshrl.u32 %v17059_v56, 16  ;;  %v18614_v60 = vshll.u32 %v17059_v56, 16  ;;  %v7013_v24 = vshll.u32 %v6725_v25, 16  ;;  %v7017_v1 = vshrl.u32 %v6725_v25, 16  ;;  %10861 = vmatmul.mubr.bf16.gmra.mxu0 %v13666_v59 }
 0x477   : > { %v7225_v45 = vld [vmem:[#allocation4 + $0x98] sm:$0x1]  ;;  %7520 = vst [vmem:[#allocation5 + $0x420] sm:$0xf] %v7488_v52  ;;  %v6655_v46 = vld [vmem:[#allocation4 + $0xa8] sm:$0xf]  ;;  %v6992_v21 = vsel %vm14676_vm9, %v6987_v42, %v6991_v9  ;;  %v7366_v4 = vsel %vm14682_vm12, %v7364_v27, %v7365_v19  ;;  %v12691_v9 = vpop.f32.mrf.mxu1 }
 0x478   : > { %v7006_v5 = vrot.slane %v18613_v50, 4  ;;  %v7009_v47 = vrot.slane %v18614_v60, 5  ;;  %v13671_v36 = vld [vmem:[#allocation5 + $0x244] ss:$36 sps:$4 sm:$0xff]   ;;  %v13676_v14 = vld [vmem:[#allocation5 + $0x294] ss:$36 sps:$4 sm:$0xff]  }
 0x479   : > { %6687 = vst [vmem:[#allocation5 + $0x3f0] sm:$0xf] %v6655_v46  ;;  %v6997_v6 = vrot.slane %v6996_v29, 4  ;;  %v7001_v48 = vrot.slane %v6999_v0, 5  ;;  %7175 = vst [vmem:[#allocation5 + $0x2d4] sm:$0xf] %v6992_v21  ;;  %10699 = vmatprep.mubr.bf16.mxu1 %v13671_v36  ;;  %10868 = vmatprep.mubr.bf16.mxu0 %v13676_v14  ;;  %v12692_v29 = vpop.f32.mrf.mxu1 }
 0x47a   : > { %7450 = vst [vmem:[#allocation5 + $0x344] sm:$0xf] %v7366_v4  ;;  %v7010_v56 = vor.u32 %v7009_v47, %v7006_v5  ;;  %v7015_v20 = vrot.slane %v7013_v24, 5  ;;  %v6656_v41 = vld [vmem:[#allocation4 + $0xac] sm:$0xf]  ;;  %v7019_v53 = vrot.slane %v7017_v1, 4  ;;  %v17274_v24 = vadd.f32 %v12692_v29, %v12691_v9 }
 0x47b   : > { %v7023_v13 = vshll.u32 %v6726_v35, 16  ;;  %v11879_v18 = vrot.slane %v7223_v10, 9  ;;  %v7369_v32 = vrot.slane %v7224_v58, 5  ;;  %6688 = vst [vmem:[#allocation5 + $0x414] sm:$0xf] %v6656_v41  ;;  %v7002_v25 = vsel %vm14676_vm9, %v6997_v6, %v7001_v48 }
 0x47c   : > { %v7011_v42 = vrot.slane %v7010_v56, 4  ;;  %v6729_v38 = vld [vmem:[#allocation4 + $0x98] sm:$0x1]  ;;  %v18615_v0 = vshrl.u32 %v17023_v55, 16  ;;  %v7226_v27 = vld [vmem:[#allocation4 + $0x9c] sm:$0xe]  ;;  %v7020_v19 = vor.u32 %v7019_v53, %v7015_v20 }
 0x47d   : > { %7176 = vst [vmem:[#allocation5 + $0x2f8] sm:$0xf] %v7002_v25  ;;  %v7370_v35 = vsel %vm14682_vm12, %v11879_v18, %v7369_v32  ;;  %v7371_v10 = vrot.slane %v7369_v32, 4  ;;  %v7372_v58 = vrot.slane %v7225_v45, 5  ;;  %v7227_v52 = vld [vmem:[#allocation4 + $0xa0] sm:$0xf] }
 0x47e   : > { %v7030_v63 = vrot.slane %v18615_v0, 4  ;;  %v7016_v59 = vsel %vm14676_vm9, %v7011_v42, %v7015_v20  ;;  %7451 = vst [vmem:[#allocation5 + $0x368] sm:$0xf] %v7370_v35  ;;  %v18616_v50 = vshll.u32 %v17023_v55, 16  ;;  %v7228_v60 = vld [vmem:[#allocation4 + $0xa4] sm:$0x1] }
 0x47f   : > { %v6731_v47 = vld [vmem:[#allocation4 + $0xa0] sm:$0xf]  ;;  %v7021_v46 = vrot.slane %v7020_v19, 4  ;;  %v7025_v36 = vrot.slane %v7023_v13, 5  ;;  %7177 = vst [vmem:[#allocation5 + $0x31c] sm:$0xf] %v7016_v59  ;;  %v7373_v14 = vsel %vm14682_vm12, %v7371_v10, %v7372_v58 }
 0x480   : > { %v7033_v5 = vrot.slane %v18616_v50, 5  ;;  %v7037_v45 = vshll.u32 %v17061_v11, 16  ;;  %v17279_v21 = vld [vmem:[#allocation4 + $0xa4] sm:$0x1]  ;;  %v13669_v4 = vld [vmem:[#allocation5 + $0x240] ss:$36 sps:$4 sm:$0xff]  }
 0x481   : > { %7452 = vst [vmem:[#allocation5 + $0x38c] sm:$0xf] %v7373_v14  ;;  %v7047_v6 = vshll.u32 %v6729_v38, 16  ;;  %v11880_v55 = vrot.slane %v7226_v27, 9  ;;  %v7376_v48 = vrot.slane %v7227_v52, 5  ;;  %v7026_v41 = vsel %vm14676_vm9, %v7021_v46, %v7025_v36  ;;  %10700 = vmatmul.mubr.bf16.gmra.mxu1 %v13669_v4 }
 0x482   : > { %v7034_v1 = vor.u32 %v7033_v5, %v7030_v63  ;;  %v17281_v56 = vld [vmem:[#allocation4 + $0xb4] sm:$0xf]  ;;  %v13680_v20 = vld [vmem:[#allocation5 + $0x28c] ss:$36 sps:$4 sm:$0xff]   ;;  %v7039_v53 = vrot.slane %v7037_v45, 5  ;;  %v7379_v13 = vrot.slane %v7228_v60, 5 }
 0x483   : > { %v7229_v18 = vld [vmem:[#allocation4 + $0xa8] sm:$0xe]  ;;  %v7230_v32 = vld [vmem:[#allocation4 + $0xac] sm:$0xf]  ;;  %7178 = vst [vmem:[#allocation5 + $0x340] sm:$0xf] %v7026_v41  ;;  %v7377_v25 = vsel %vm14682_vm12, %v11880_v55, %v7376_v48  ;;  %10707 = vmatprep.mubr.bf16.mxu1 %v13680_v20 }
 0x484   : > { %v13674_v11 = vld [vmem:[#allocation5 + $0x290] ss:$36 sps:$4 sm:$0xff]   ;;  %v7035_v9 = vrot.slane %v7034_v1, 4  ;;  %v7378_v42 = vrot.slane %v7376_v48, 4  ;;  %v18617_v38 = vshrl.u32 %v17136_v49, 16  ;;  %v7044_v27 = vor.u32 %v17086_v28, %v7039_v53 }
 0x485   : > { %v13684_v63 = vld [vmem:[#allocation5 + $0x2dc] ss:$36 sps:$4 sm:$0xff]   ;;  %7453 = vst [vmem:[#allocation5 + $0x3b0] sm:$0xf] %v7377_v25  ;;  %v18618_v19 = vshll.u32 %v17136_v49, 16  ;;  %v7061_v10 = vshll.u32 %v6731_v47, 16  ;;  %10869 = vmatmul.mubr.bf16.gmra.mxu0 %v13674_v11 }
 0x486   : > { %v7054_v0 = vrot.slane %v18617_v38, 4  ;;  %v7065_v58 = vshrl.u32 %v6731_v47, 16  ;;  %v7040_v52 = vsel %vm14676_vm9, %v7035_v9, %v7039_v53  ;;  %v7049_v29 = vrot.slane %v7047_v6, 5  ;;  %v7231_v5 = vld [vmem:[#allocation4 + $0xb0] sm:$0x1]  ;;  %10876 = vmatprep.mubr.bf16.mxu0 %v13684_v63 }
 0x487   : > { %v7057_v35 = vrot.slane %v18618_v19, 5  ;;  %v7380_v59 = vsel %vm14682_vm12, %v7378_v42, %v7379_v13  ;;  %v7071_v50 = vshll.u32 %v17279_v21, 16  ;;  %v7045_v60 = vrot.slane %v7044_v27, 4  ;;  %7179 = vst [vmem:[#allocation5 + $0x364] sm:$0xf] %v7040_v52 }
 0x488   : > { %7454 = vst [vmem:[#allocation5 + $0x3d4] sm:$0xf] %v7380_v59  ;;  %v7063_v49 = vrot.slane %v7061_v10, 5  ;;  %v7067_v46 = vrot.slane %v7065_v58, 4  ;;  %v7489_v36 = vld [vmem:[#allocation4 + $0xc0] sm:$0xf] }
 0x489   : > { %v7058_v28 = vor.u32 %v7057_v35, %v7054_v0  ;;  %v7100_v47 = vshrl.u32 %v17281_v56, 16  ;;  %v13678_v14 = vld [vmem:[#allocation5 + $0x288] ss:$36 sps:$4 sm:$0xff]   ;;  %v11881_v45 = vrot.slane %v7229_v18, 9  ;;  %v7383_v4 = vrot.slane %v7230_v32, 5 }
 0x48a   : > { %v7232_v1 = vld [vmem:[#allocation4 + $0xb4] sm:$0xe]  ;;  %7521 = vst [vmem:[#allocation5 + $0x444] sm:$0xf] %v7489_v36  ;;  %v7050_v6 = vsel %vm14676_vm9, %v7045_v60, %v7049_v29  ;;  %v7068_v55 = vor.u32 %v7067_v46, %v7063_v49  ;;  %v7386_v48 = vrot.slane %v7231_v5, 5  ;;  %v18619_v18 = vshrl.u32 %v17112_v54, 16  ;;  %10708 = vmatmul.mubr.bf16.gmra.mxu1 %v13678_v14 }
 0x48b   : > { %v7059_v21 = vrot.slane %v7058_v28, 4  ;;  %v6735_v20 = vld [vmem:[#allocation4 + $0xb0] sm:$0x1]  ;;  %v7233_v41 = vld [vmem:[#allocation4 + $0xb8] sm:$0xf]  ;;  %v7384_v11 = vsel %vm14682_vm12, %v11881_v45, %v7383_v4  ;;  %v7385_v9 = vrot.slane %v7383_v4, 4 }
 0x48c   : > { %v17300_v53 = vld [vmem:[#allocation4 + $0xa0] sm:$0xf]  ;;  %v13682_v13 = vld [vmem:[#allocation5 + $0x2d8] ss:$36 sps:$4 sm:$0xff]   ;;  %7180 = vst [vmem:[#allocation5 + $0x388] sm:$0xf] %v7050_v6 }
 0x48d   : > { %v7078_v32 = vrot.slane %v18619_v18, 4  ;;  %v18620_v25 = vshll.u32 %v17112_v54, 16  ;;  %v7490_v38 = vld [vmem:[#allocation4 + $0xc4] sm:$0xf]  ;;  %v7103_v0 = vshll.u32 %v17281_v56, 16  ;;  %v7064_v27 = vsel %vm14676_vm9, %v7059_v21, %v7063_v49  ;;  %10877 = vmatmul.mubr.bf16.gmra.mxu0 %v13682_v13 }
 0x48e   : > { %v13687_v63 = vld [vmem:[#allocation5 + $0x2d4] ss:$36 sps:$4 sm:$0xff]   ;;  %v7069_v19 = vrot.slane %v7068_v55, 4  ;;  %v7073_v35 = vrot.slane %v7071_v50, 5  ;;  %7455 = vst [vmem:[#allocation5 + $0x3f8] sm:$0xf] %v7384_v11  ;;  %v7387_v10 = vsel %vm14682_vm12, %v7385_v9, %v7386_v48 }
 0x48f   : > { %v7081_v42 = vrot.slane %v18620_v25, 5  ;;  %7522 = vst [vmem:[#allocation5 + $0x468] sm:$0xf] %v7490_v38  ;;  %7181 = vst [vmem:[#allocation5 + $0x3ac] sm:$0xf] %v7064_v27  ;;  %v7085_v54 = vshll.u32 %v17158_v62, 16  ;;  %10715 = vmatprep.mubr.bf16.mxu1 %v13687_v63 }
 0x490   : > { %v7234_v52 = vld [vmem:[#allocation4 + $0xbc] sm:$0x1]  ;;  %v6657_v29 = vld [vmem:[#allocation4 + $0xb4] sm:$0xf]  ;;  %v7074_v59 = vsel %vm14676_vm9, %v7069_v19, %v7073_v35  ;;  %7456 = vst [vmem:[#allocation5 + $0x41c] sm:$0xf] %v7387_v10 }
 0x491   : > { %v7082_v58 = vor.u32 %v7081_v42, %v7078_v32  ;;  %v13692_v56 = vld [vmem:[#allocation5 + $0x324] ss:$36 sps:$4 sm:$0xff]   ;;  %v11882_v5 = vrot.slane %v7232_v1, 9  ;;  %v7390_v50 = vrot.slane %v7233_v41, 5  ;;  %v6658_v60 = vld [vmem:[#allocation4 + $0xb8] sm:$0xf] }
 0x492   : > { %6689 = vst [vmem:[#allocation5 + $0x438] sm:$0xf] %v6657_v29  ;;  %v18621_v28 = vshrl.u32 %v17175_v31, 16  ;;  %7182 = vst [vmem:[#allocation5 + $0x3d0] sm:$0xf] %v7074_v59  ;;  %v7087_v62 = vrot.slane %v7085_v54, 5  ;;  %10884 = vmatprep.mubr.bf16.mxu0 %v13692_v56 }
 0x493   : > { %v7083_v46 = vrot.slane %v7082_v58, 4  ;;  %v7095_v36 = vshll.u32 %v6735_v20, 16  ;;  %6690 = vst [vmem:[#allocation5 + $0x45c] sm:$0xf] %v6658_v60  ;;  %v18435_v14 = vrot.slane %v17300_v53, 5  ;;  %v7391_v45 = vsel %vm14682_vm12, %v11882_v5, %v7390_v50 }
 0x494   : > { %v17318_v49 = vrot.slane %v18621_v28, 4  ;;  %v7392_v4 = vrot.slane %v7390_v50, 4  ;;  %v7393_v1 = vrot.slane %v7234_v52, 5  ;;  %v6737_v6 = vld [vmem:[#allocation4 + $0xb8] sm:$0xf]  ;;  %v7092_v48 = vor.u32 %v17218_v43, %v7087_v62 }
 0x495   : > { %v17323_v21 = vld [vmem:[#allocation4 + $0xc0] sm:$0xf]  ;;  %v13685_v31 = vld [vmem:[#allocation5 + $0x2d0] ss:$36 sps:$4 sm:$0xff]   ;;  %v7088_v55 = vsel %vm14676_vm9, %v7083_v46, %v7087_v62  ;;  %7457 = vst [vmem:[#allocation5 + $0x440] sm:$0xf] %v7391_v45 }
 0x496   : > { %v7102_v20 = vrot.slane %v7100_v47, 4  ;;  %v7105_v41 = vrot.slane %v7103_v0, 5  ;;  %v8292_v13 = vld [vmem:[#allocation4 + $0x18] sm:$0xf]  ;;  %7183 = vst [vmem:[#allocation5 + $0x3f4] sm:$0xf] %v7088_v55  ;;  %v7394_v9 = vsel %vm14682_vm12, %v7392_v4, %v7393_v1  ;;  %10716 = vmatmul.mubr.bf16.gmra.mxu1 %v13685_v31 }
 0x497   : > { %v13696_v11 = vld [vmem:[#allocation5 + $0x31c] ss:$36 sps:$4 sm:$0xff]   ;;  %v6738_v18 = vld [vmem:[#allocation4 + $0xbc] sm:$0x1]  ;;  %v7109_v32 = vshll.u32 %v6737_v6, 16  ;;  %v7093_v25 = vrot.slane %v7092_v48, 4 }
 0x498   : > { %8324 = vst [vmem:[#allocation5 + $0x18] sm:$0xf] %v8292_v13  ;;  %v7097_v42 = vrot.slane %v7095_v36, 5  ;;  %7458 = vst [vmem:[#allocation5 + $0x464] sm:$0xf] %v7394_v9  ;;  %v7106_v38 = vor.u32 %v7105_v41, %v7102_v20  ;;  %v7113_v63 = vshrl.u32 %v6737_v6, 16  ;;  %10723 = vmatprep.mubr.bf16.mxu1 %v13696_v11 }
 0x499   : > { %v8293_v27 = vld [vmem:[#allocation4 + $0x1c] sm:$0xf]  ;;  %v7111_v19 = vrot.slane %v7109_v32, 5  ;;  %v8358_v43 = vld [vmem:[#allocation4 + $0x20] sm:$0x1]  ;;  %v18622_v47 = vshrl.u32 %v16637_v44, 16 }
 0x49a   : > { %8325 = vst [vmem:[#allocation5 + $0x3c] sm:$0xf] %v8293_v27  ;;  %v18623_v35 = vshll.u32 %v16637_v44, 16  ;;  %v17334_v58 = vld [vmem:[#allocation4 + $0xc0] sm:$0xf]  ;;  %v7098_v52 = vsel %vm14676_vm9, %v7093_v25, %v7097_v42  ;;  %v7107_v29 = vrot.slane %v7106_v38, 4 }
 0x49b   : > { %v8407_v0 = vrot.slane %v18622_v47, 4  ;;  %v13690_v54 = vld [vmem:[#allocation5 + $0x320] ss:$36 sps:$4 sm:$0xff]   ;;  %v13700_v59 = vld [vmem:[#allocation5 + $0x36c] ss:$36 sps:$4 sm:$0xff]   ;;  %v7115_v5 = vrot.slane %v7113_v63, 4 }
 0x49c   : > { %v8410_v10 = vrot.slane %v18623_v35, 5  ;;  %7184 = vst [vmem:[#allocation5 + $0x418] sm:$0xf] %v7098_v52  ;;  %v7119_v50 = vshll.u32 %v6738_v18, 16  ;;  %10885 = vmatmul.mubr.bf16.gmra.mxu0 %v13690_v54  ;;  %v7112_v44 = vsel %vm14676_vm9, %v7107_v29, %v7111_v19  ;;  %v13863_v46 = vld [vmem:[#allocation4 + $0x1c] sm:$0xf] }
 0x49d   : > { %v8414_v62 = vshll.u32 %v13863_v46, 16  ;;  %v8424_v36 = vshll.u32 %v8358_v43, 16  ;;  %v7524_v45 = vld [vmem:[#allocation4 + $0x10] sm:$0xf]  ;;  %10892 = vmatprep.mubr.bf16.mxu0 %v13700_v59  ;;  %v7116_v4 = vor.u32 %v7115_v5, %v7111_v19  ;;  %7185 = vst [vmem:[#allocation5 + $0x43c] sm:$0xf] %v7112_v44 }
 0x49e   : > { %v8411_v60 = vor.u32 %v8410_v10, %v8407_v0  ;;  %v18624_v6 = vshrl.u32 %v16657_v33, 16  ;;  %v18625_v55 = vshll.u32 %v16657_v33, 16  ;;  %v7525_v41 = vld [vmem:[#allocation4 + $0x14] sm:$0x1]  ;;  %v7581_v13 = vshll.u32 %v7524_v45, 16 }
 0x49f   : > { %v8416_v20 = vrot.slane %v8414_v62, 5  ;;  %v7585_v11 = vshrl.u32 %v7524_v45, 16  ;;  %v8741_v9 = vshrl.u32 %v17334_v58, 16  ;;  %v13694_v18 = vld [vmem:[#allocation5 + $0x318] ss:$36 sps:$4 sm:$0xff]   ;;  %v7117_v32 = vrot.slane %v7116_v4, 4 }
 0x4a0   : > { %v8412_v1 = vrot.slane %v8411_v60, 4  ;;  %v7574_v31 = vrot.slane %v18624_v6, 4  ;;  %v7577_v48 = vrot.slane %v18625_v55, 5  ;;  %v7121_v25 = vrot.slane %v7119_v50, 5  ;;  %v13698_v38 = vld [vmem:[#allocation5 + $0x368] ss:$36 sps:$4 sm:$0xff]   ;;  %10724 = vmatmul.mubr.bf16.gmra.mxu1 %v13694_v18 }
 0x4a1   : > { %v8421_v27 = vor.u32 %v16686_v40, %v8416_v20  ;;  %v7583_v19 = vrot.slane %v7581_v13, 5  ;;  %v7587_v43 = vrot.slane %v7585_v11, 4  ;;  %v8019_v33 = vld [vmem:[#allocation4 + $0xc] sm:$0xe]  ;;  %v8020_v47 = vld [vmem:[#allocation4 + $0x10] sm:$0xf] }
 0x4a2   : > { %v7578_v42 = vor.u32 %v7577_v48, %v7574_v31  ;;  %v8417_v63 = vsel %vm14676_vm9, %v8412_v1, %v8416_v20  ;;  %v13703_v0 = vld [vmem:[#allocation5 + $0x364] ss:$36 sps:$4 sm:$0xff]   ;;  %v7122_v35 = vsel %vm14676_vm9, %v7117_v32, %v7121_v25  ;;  %v7591_v54 = vshll.u32 %v7525_v41, 16  ;;  %v8021_v52 = vld [vmem:[#allocation4 + $0x14] sm:$0x1] }
 0x4a3   : > { %8820 = vst [vmem:[#allocation5 + $0x1c] sm:$0xf] %v8417_v63  ;;  %v13708_v29 = vld [vmem:[#allocation5 + $0x3b4] ss:$36 sps:$4 sm:$0xff]   ;;  %7186 = vst [vmem:[#allocation5 + $0x460] sm:$0xf] %v7122_v35  ;;  %v7588_v50 = vor.u32 %v7587_v43, %v7583_v19  ;;  %10731 = vmatprep.mubr.bf16.mxu1 %v13703_v0 }
 0x4a4   : > { %v7579_v10 = vrot.slane %v7578_v42, 4  ;;  %v8422_v59 = vrot.slane %v8421_v27, 4  ;;  %v8426_v5 = vrot.slane %v8424_v36, 5  ;;  %v11883_v60 = vrot.slane %v8019_v33, 9  ;;  %v8294_v45 = vld [vmem:[#allocation4 + $0x24] sm:$0xf]  ;;  %10893 = vmatmul.mubr.bf16.gmra.mxu0 %v13698_v38 }
 0x4a5   : > { %v7593_v44 = vrot.slane %v7591_v54, 5  ;;  %v8117_v46 = vrot.slane %v8020_v47, 5  ;;  %v8120_v62 = vrot.slane %v8021_v52, 5  ;;  %v7589_v1 = vrot.slane %v7588_v50, 4  ;;  %v8295_v6 = vld [vmem:[#allocation4 + $0x28] sm:$0xf]  ;;  %10900 = vmatprep.mubr.bf16.mxu0 %v13708_v29 }
 0x4a6   : > { %v7584_v40 = vsel %vm14676_vm9, %v7579_v10, %v7583_v19  ;;  %v8427_v4 = vsel %vm14676_vm9, %v8422_v59, %v8426_v5  ;;  %8326 = vst [vmem:[#allocation5 + $0x60] sm:$0xf] %v8294_v45  ;;  %v8360_v31 = vld [vmem:[#allocation4 + $0x28] sm:$0xf]  ;;  %8327 = vst [vmem:[#allocation5 + $0x84] sm:$0xf] %v8295_v6 }
 0x4a7   : > { %7987 = vst [vmem:[#allocation5 + $0x10] sm:$0xf] %v7584_v40  ;;  %8821 = vst [vmem:[#allocation5 + $0x40] sm:$0xf] %v8427_v4  ;;  %v8118_v36 = vsel %vm14682_vm12, %v11883_v60, %v8117_v46  ;;  %v8119_v55 = vrot.slane %v8117_v46, 4  ;;  %v18626_v20 = vshrl.u32 %v16699_v34, 16  ;;  %v7594_v32 = vsel %vm14676_vm9, %v7589_v1, %v7593_v44 }
 0x4a8   : > { %v8361_v48 = vld [vmem:[#allocation4 + $0x2c] sm:$0x1]  ;;  %v18627_v13 = vshll.u32 %v16699_v34, 16  ;;  %v13701_v18 = vld [vmem:[#allocation5 + $0x360] ss:$36 sps:$4 sm:$0xff]   ;;  %v8438_v25 = vshll.u32 %v8360_v31, 16 }
 0x4a9   : > { %v8431_v41 = vrot.slane %v18626_v20, 4  ;;  %8259 = vst [vmem:[#allocation5 + $0x14] sm:$0xf] %v8118_v36  ;;  %v8442_v42 = vshrl.u32 %v8360_v31, 16  ;;  %v8448_v38 = vshll.u32 %v8361_v48, 16  ;;  %v8121_v63 = vsel %vm14682_vm12, %v8119_v55, %v8120_v62  ;;  %10732 = vmatmul.mubr.bf16.gmra.mxu1 %v13701_v18 }
 0x4aa   : > { %v8434_v11 = vrot.slane %v18627_v13, 5  ;;  %7988 = vst [vmem:[#allocation5 + $0x34] sm:$0xf] %v7594_v32  ;;  %v7528_v19 = vld [vmem:[#allocation4 + $0x20] sm:$0x1]  ;;  %v18628_v43 = vshrl.u32 %v16616_v8, 16 }
 0x4ab   : > { %v18629_v34 = vshll.u32 %v16616_v8, 16  ;;  %v8022_v0 = vld [vmem:[#allocation4 + $0x18] sm:$0xe]  ;;  %8260 = vst [vmem:[#allocation5 + $0x38] sm:$0xf] %v8121_v63  ;;  %v8440_v35 = vrot.slane %v8438_v25, 5 }
 0x4ac   : > { %v8435_v27 = vor.u32 %v8434_v11, %v8431_v41  ;;  %v7598_v33 = vrot.slane %v18628_v43, 4  ;;  %v8444_v10 = vrot.slane %v8442_v42, 4  ;;  %v13864_v54 = vld [vmem:[#allocation4 + $0x1c] sm:$0xf]  ;;  %v13706_v59 = vld [vmem:[#allocation5 + $0x3b0] ss:$36 sps:$4 sm:$0xff]  }
 0x4ad   : > { %v7601_v47 = vrot.slane %v18629_v34, 5  ;;  %v7605_v52 = vshll.u32 %v13864_v54, 16  ;;  %v8023_v29 = vld [vmem:[#allocation4 + $0x1c] sm:$0xf]  ;;  %v13712_v5 = vld [vmem:[#allocation5 + $0x3ac] ss:$36 sps:$4 sm:$0xff]   ;;  %10901 = vmatmul.mubr.bf16.gmra.mxu0 %v13706_v59 }
 0x4ae   : > { %v8436_v50 = vrot.slane %v8435_v27, 4  ;;  %v13716_v40 = vld [vmem:[#allocation5 + $0x3fc] ss:$36 sps:$4 sm:$0xff]   ;;  %v8445_v44 = vor.u32 %v8444_v10, %v8440_v35  ;;  %v7615_v62 = vshll.u32 %v7528_v19, 16  ;;  %v8024_v45 = vld [vmem:[#allocation4 + $0x20] sm:$0x1]  ;;  %10739 = vmatprep.mubr.bf16.mxu1 %v13712_v5 }
 0x4af   : > { %v7602_v60 = vor.u32 %v7601_v47, %v7598_v33  ;;  %v7607_v46 = vrot.slane %v7605_v52, 5  ;;  %v11884_v1 = vrot.slane %v8022_v0, 9  ;;  %v8124_v6 = vrot.slane %v8023_v29, 5  ;;  %v8296_v31 = vld [vmem:[#allocation4 + $0x30] sm:$0xf]  ;;  %10908 = vmatprep.mubr.bf16.mxu0 %v13716_v40 }
 0x4b0   : > { %v8441_v8 = vsel %vm14676_vm9, %v8436_v50, %v8440_v35  ;;  %v8446_v36 = vrot.slane %v8445_v44, 4  ;;  %v8450_v55 = vrot.slane %v8448_v38, 5  ;;  %v8127_v20 = vrot.slane %v8024_v45, 5  ;;  %8328 = vst [vmem:[#allocation5 + $0xa8] sm:$0xf] %v8296_v31  ;;  %v12803_v35 = vpop.f32.mrf.mxu0 }
 0x4b1   : > { %v7603_v4 = vrot.slane %v7602_v60, 4  ;;  %8822 = vst [vmem:[#allocation5 + $0x64] sm:$0xf] %v8441_v8  ;;  %v7612_v48 = vor.u32 %v16677_v39, %v7607_v46  ;;  %v7617_v13 = vrot.slane %v7615_v62, 5  ;;  %v8125_v11 = vsel %vm14682_vm12, %v11884_v1, %v8124_v6  ;;  %v8297_v32 = vld [vmem:[#allocation4 + $0x34] sm:$0xf] }
 0x4b2   : > { %v8126_v18 = vrot.slane %v8124_v6, 4  ;;  %v8451_v25 = vsel %vm14676_vm9, %v8446_v36, %v8450_v55  ;;  %8261 = vst [vmem:[#allocation5 + $0x5c] sm:$0xf] %v8125_v11  ;;  %8329 = vst [vmem:[#allocation5 + $0xcc] sm:$0xf] %v8297_v32  ;;  %v18630_v38 = vshrl.u32 %v16681_v22, 16 }
 0x4b3   : > { %v7608_v41 = vsel %vm14676_vm9, %v7603_v4, %v7607_v46  ;;  %v7613_v42 = vrot.slane %v7612_v48, 4  ;;  %v8364_v39 = vld [vmem:[#allocation4 + $0x38] sm:$0x1]  ;;  %v18631_v27 = vshll.u32 %v16681_v22, 16  ;;  %v13710_v43 = vld [vmem:[#allocation5 + $0x3a8] ss:$36 sps:$4 sm:$0xff]  }
 0x4b4   : > { %7989 = vst [vmem:[#allocation5 + $0x58] sm:$0xf] %v7608_v41  ;;  %v8455_v63 = vrot.slane %v18630_v38, 4  ;;  %v13719_v33 = vld [vmem:[#allocation5 + $0x3f4] ss:$36 sps:$4 sm:$0xff]   ;;  %v8128_v34 = vsel %vm14682_vm12, %v8126_v18, %v8127_v20  ;;  %v8472_v29 = vshll.u32 %v8364_v39, 16  ;;  %10740 = vmatmul.mubr.bf16.gmra.mxu1 %v13710_v43  ;;  %v12804_v18 = vpop.f32.mrf.mxu0 }
 0x4b5   : > { %v8458_v19 = vrot.slane %v18631_v27, 5  ;;  %8823 = vst [vmem:[#allocation5 + $0x88] sm:$0xf] %v8451_v25  ;;  %v13865_v47 = vld [vmem:[#allocation4 + $0x34] sm:$0xf]  ;;  %v7618_v54 = vsel %vm14676_vm9, %v7613_v42, %v7617_v13  ;;  %v18632_v22 = vshrl.u32 %v16695_v57, 16  ;;  %10747 = vmatprep.mubr.bf16.mxu1 %v13719_v33 }
 0x4b6   : > { %v8462_v0 = vshll.u32 %v13865_v47, 16  ;;  %v13714_v10 = vld [vmem:[#allocation5 + $0x3f8] ss:$36 sps:$4 sm:$0xff]   ;;  %8262 = vst [vmem:[#allocation5 + $0x80] sm:$0xf] %v8128_v34  ;;  %v18633_v44 = vshll.u32 %v16695_v57, 16 }
 0x4b7   : > { %v8459_v52 = vor.u32 %v8458_v19, %v8455_v63  ;;  %v7530_v59 = vld [vmem:[#allocation4 + $0x28] sm:$0xf]  ;;  %v7531_v5 = vld [vmem:[#allocation4 + $0x2c] sm:$0x1]  ;;  %v7622_v50 = vrot.slane %v18632_v22, 4  ;;  %v8744_v4 = vshll.u32 %v17334_v58, 16  ;;  %10909 = vmatmul.mubr.bf16.gmra.mxu0 %v13714_v10 }
 0x4b8   : > { %v13725_v60 = vld [vmem:[#allocation5 + $0x444] ss:$36 sps:$4 sm:$0xff]   ;;  %7990 = vst [vmem:[#allocation5 + $0x7c] sm:$0xf] %v7618_v54  ;;  %v8464_v40 = vrot.slane %v8462_v0, 5  ;;  %v7625_v46 = vrot.slane %v18633_v44, 5 }
 0x4b9   : > { %v7629_v62 = vshll.u32 %v7530_v59, 16  ;;  %v7633_v45 = vshrl.u32 %v7530_v59, 16  ;;  %v8025_v8 = vld [vmem:[#allocation4 + $0x24] sm:$0xe]  ;;  %v8460_v1 = vrot.slane %v8459_v52, 4  ;;  %v8474_v6 = vrot.slane %v8472_v29, 5  ;;  %10916 = vmatprep.mubr.bf16.mxu0 %v13725_v60 }
 0x4ba   : > { %v7639_v31 = vshll.u32 %v7531_v5, 16  ;;  %v8026_v36 = vld [vmem:[#allocation4 + $0x28] sm:$0xf]  ;;  %v18634_v55 = vld [vmem:[#allocation20_spill] sm:$0xff]  ;;  %v7626_v20 = vor.u32 %v7625_v46, %v7622_v50  ;;  %v8027_v11 = vld [vmem:[#allocation4 + $0x2c] sm:$0x1]  ;;  %v17401_v52 = vadd.f32 %v12804_v18, %v12803_v35 }
 0x4bb   : > { %v8469_v48 = vor.u32 %v18634_v55, %v8464_v40  ;;  %v7631_v41 = vrot.slane %v7629_v62, 5  ;;  %v7635_v13 = vrot.slane %v7633_v45, 4  ;;  %v8465_v57 = vsel %vm14676_vm9, %v8460_v1, %v8464_v40  ;;  %v8298_v39 = vld [vmem:[#allocation4 + $0x3c] sm:$0xf]  ;;  %v8299_v19 = vld [vmem:[#allocation4 + $0x40] sm:$0xf] }
 0x4bc   : > { %v7641_v32 = vrot.slane %v7639_v31, 5  ;;  %v11885_v25 = vrot.slane %v8025_v8, 9  ;;  %v8131_v42 = vrot.slane %v8026_v36, 5  ;;  %8824 = vst [vmem:[#allocation5 + $0xac] sm:$0xf] %v8465_v57  ;;  %v7627_v63 = vrot.slane %v7626_v20, 4 }
 0x4bd   : > { %v8470_v38 = vrot.slane %v8469_v48, 4  ;;  %v7636_v27 = vor.u32 %v7635_v13, %v7631_v41  ;;  %8330 = vst [vmem:[#allocation5 + $0xf0] sm:$0xf] %v8298_v39  ;;  %v18635_v43 = vld [vmem:[#allocation25_spill] sm:$0xff]  ;;  %v17397_v47 = vld [vmem:[#allocation4 + $0xb4] sm:$0xf] }
 0x4be   : > { %v18636_v33 = vshrl.u32 %v18635_v43, 16  ;;  %v8132_v0 = vsel %vm14682_vm12, %v11885_v25, %v8131_v42  ;;  %v8133_v10 = vrot.slane %v8131_v42, 4  ;;  %v8134_v54 = vrot.slane %v8027_v11, 5  ;;  %8331 = vst [vmem:[#allocation5 + $0x114] sm:$0xf] %v8299_v19 }
 0x4bf   : > { %v13717_v29 = vld [vmem:[#allocation5 + $0x3f0] ss:$36 sps:$4 sm:$0xff]   ;;  %v8475_v59 = vsel %vm14676_vm9, %v8470_v38, %v8474_v6  ;;  %v7632_v5 = vsel %vm14676_vm9, %v7627_v63, %v7631_v41  ;;  %v7637_v22 = vrot.slane %v7636_v27, 4  ;;  %8263 = vst [vmem:[#allocation5 + $0xa4] sm:$0xf] %v8132_v0  ;;  %v18637_v60 = vshll.u32 %v18635_v43, 16 }
 0x4c0   : > { %v8479_v34 = vrot.slane %v18636_v33, 4  ;;  %v8366_v50 = vld [vmem:[#allocation4 + $0x40] sm:$0xf]  ;;  %v13723_v44 = vld [vmem:[#allocation5 + $0x440] ss:$36 sps:$4 sm:$0xff]   ;;  %v8135_v35 = vsel %vm14682_vm12, %v8133_v10, %v8134_v54  ;;  %v7908_v8 = vshrl.u32 %v17397_v47, 16  ;;  %10748 = vmatmul.mubr.bf16.gmra.mxu1 %v13717_v29 }
 0x4c1   : > { %v8482_v40 = vrot.slane %v18637_v60, 5  ;;  %v13730_v46 = vld [vmem:[#allocation5 + $0x43c] ss:$36 sps:$4 sm:$0xff]   ;;  %8825 = vst [vmem:[#allocation5 + $0xd0] sm:$0xf] %v8475_v59  ;;  %v8486_v45 = vshll.u32 %v8366_v50, 16  ;;  %v7642_v6 = vsel %vm14676_vm9, %v7637_v22, %v7641_v32  ;;  %10917 = vmatmul.mubr.bf16.gmra.mxu0 %v13723_v44 }
 0x4c2   : > { %7991 = vst [vmem:[#allocation5 + $0xa0] sm:$0xf] %v7632_v5  ;;  %v8367_v62 = vld [vmem:[#allocation4 + $0x44] sm:$0x1]  ;;  %v13738_v1 = vld [vmem:[#allocation5 + $0x1c] ss:$36 sps:$4 sm:$0xff]   ;;  %10755 = vmatprep.mubr.bf16.mxu1 %v13730_v46 }
 0x4c3   : > { %8264 = vst [vmem:[#allocation5 + $0xc8] sm:$0xf] %v8135_v35  ;;  %v8483_v31 = vor.u32 %v8482_v40, %v8479_v34  ;;  %v8490_v36 = vshrl.u32 %v8366_v50, 16  ;;  %v7534_v55 = vld [vmem:[#allocation4 + $0x38] sm:$0x1]  ;;  %v8488_v20 = vrot.slane %v8486_v45, 5  ;;  %11118 = vmatprep.mubr.bf16.mxu0 %v13738_v1 }
 0x4c4   : > { %v8028_v48 = vld [vmem:[#allocation4 + $0x30] sm:$0xe]  ;;  %7992 = vst [vmem:[#allocation5 + $0xc4] sm:$0xf] %v7642_v6  ;;  %v18638_v41 = vld [vmem:[#allocation14_spill] sm:$0xff]  ;;  %v8496_v63 = vshll.u32 %v8367_v62, 16 }
 0x4c5   : > { %v18639_v13 = vshrl.u32 %v18638_v41, 16  ;;  %v18640_v18 = vshll.u32 %v18638_v41, 16  ;;  %v13866_v25 = vld [vmem:[#allocation4 + $0x34] sm:$0xf]  ;;  %v8484_v38 = vrot.slane %v8483_v31, 4  ;;  %v8492_v32 = vrot.slane %v8490_v36, 4 }
 0x4c6   : > { %v7653_v42 = vshll.u32 %v13866_v25, 16  ;;  %v8029_v39 = vld [vmem:[#allocation4 + $0x34] sm:$0xf]  ;;  %v7663_v27 = vshll.u32 %v7534_v55, 16  ;;  %v8030_v19 = vld [vmem:[#allocation4 + $0x38] sm:$0x1] }
 0x4c7   : > { %v7646_v11 = vrot.slane %v18639_v13, 4  ;;  %v7649_v57 = vrot.slane %v18640_v18, 5  ;;  %v11886_v34 = vrot.slane %v8028_v48, 9  ;;  %v8138_v0 = vrot.slane %v8029_v39, 5  ;;  %v8300_v10 = vld [vmem:[#allocation4 + $0x48] sm:$0xf] }
 0x4c8   : > { %v7655_v33 = vrot.slane %v7653_v42, 5  ;;  %v7911_v54 = vshll.u32 %v17397_v47, 16  ;;  %v8489_v29 = vsel %vm14676_vm9, %v8484_v38, %v8488_v20  ;;  %v8493_v59 = vor.u32 %v8492_v32, %v8488_v20  ;;  %v8301_v22 = vld [vmem:[#allocation4 + $0x4c] sm:$0xf]  ;;  %8332 = vst [vmem:[#allocation5 + $0x138] sm:$0xf] %v8300_v10 }
 0x4c9   : > { %v7650_v43 = vor.u32 %v7649_v57, %v7646_v11  ;;  %v8141_v5 = vrot.slane %v8030_v19, 5  ;;  %v13728_v50 = vld [vmem:[#allocation5 + $0x438] ss:$36 sps:$4 sm:$0xff]   ;;  %8826 = vst [vmem:[#allocation5 + $0xf4] sm:$0xf] %v8489_v29  ;;  %v18641_v40 = vld [vmem:[#allocation18_spill] sm:$0xff]  ;;  %v8139_v46 = vsel %vm14682_vm12, %v11886_v34, %v8138_v0 }
 0x4ca   : > { %v7660_v44 = vor.u32 %v18641_v40, %v7655_v33  ;;  %v8140_v35 = vrot.slane %v8138_v0, 4  ;;  %8333 = vst [vmem:[#allocation5 + $0x15c] sm:$0xf] %v8301_v22  ;;  %v17424_v62 = vld [vmem:[#allocation4 + $0xb4] sm:$0xe]  ;;  %v8494_v1 = vrot.slane %v8493_v59, 4  ;;  %10756 = vmatmul.mubr.bf16.gmra.mxu1 %v13728_v50 }
 0x4cb   : > { %v7651_v60 = vrot.slane %v7650_v43, 4  ;;  %v13741_v45 = vld [vmem:[#allocation5 + $0x14] ss:$36 sps:$4 sm:$0xff]   ;;  %v8498_v6 = vrot.slane %v8496_v63, 5  ;;  %v7665_v31 = vrot.slane %v7663_v27, 5 }
 0x4cc   : > { %8265 = vst [vmem:[#allocation5 + $0xec] sm:$0xf] %v8139_v46  ;;  %v8370_v36 = vld [vmem:[#allocation4 + $0x50] sm:$0x1]  ;;  %v7661_v20 = vrot.slane %v7660_v44, 4  ;;  %v8142_v41 = vsel %vm14682_vm12, %v8140_v35, %v8141_v5  ;;  %v18642_v13 = vld [vmem:[#allocation22_spill] sm:$0xff]  ;;  %10957 = vmatprep.mubr.bf16.mxu1 %v13741_v45 }
 0x4cd   : > { %v13736_v55 = vld [vmem:[#allocation5 + $0x18] ss:$36 sps:$4 sm:$0xff]   ;;  %v7656_v48 = vsel %vm14676_vm9, %v7651_v60, %v7655_v33  ;;  %v18643_v11 = vshrl.u32 %v18642_v13, 16  ;;  %v7536_v57 = vld [vmem:[#allocation4 + $0x40] sm:$0xf]  ;;  %v8499_v42 = vsel %vm14676_vm9, %v8494_v1, %v8498_v6  ;;  %v18644_v39 = vshll.u32 %v18642_v13, 16 }
 0x4ce   : > { %v13746_v25 = vld [vmem:[#allocation5 + $0x64] ss:$36 sps:$4 sm:$0xff]   ;;  %7993 = vst [vmem:[#allocation5 + $0xe8] sm:$0xf] %v7656_v48  ;;  %8266 = vst [vmem:[#allocation5 + $0x110] sm:$0xf] %v8142_v41  ;;  %v7666_v27 = vsel %vm14676_vm9, %v7661_v20, %v7665_v31  ;;  %11119 = vmatmul.mubr.bf16.vlgmr.msra.gmra.mxu0 %v13736_v55 }
 0x4cf   : > { %v8503_v18 = vrot.slane %v18643_v11, 4  ;;  %v8506_v38 = vrot.slane %v18644_v39, 5  ;;  %v7537_v32 = vld [vmem:[#allocation4 + $0x44] sm:$0x1]  ;;  %v8031_v63 = vld [vmem:[#allocation4 + $0x3c] sm:$0xe]  ;;  %11126 = vmatprep.mubr.bf16.mxu0 %v13746_v25 }
 0x4d0   : > { %8827 = vst [vmem:[#allocation5 + $0x118] sm:$0xf] %v8499_v42  ;;  %v13867_v19 = vld [vmem:[#allocation4 + $0x4c] sm:$0xf]  ;;  %v8520_v33 = vshll.u32 %v8370_v36, 16  ;;  %v18645_v34 = vld [vmem:[#allocation23_spill] sm:$0xff] }
 0x4d1   : > { %v8510_v43 = vshll.u32 %v13867_v19, 16  ;;  %v18646_v0 = vshrl.u32 %v18645_v34, 16  ;;  %v8032_v29 = vld [vmem:[#allocation4 + $0x40] sm:$0xf]  ;;  %7994 = vst [vmem:[#allocation5 + $0x10c] sm:$0xf] %v7666_v27  ;;  %v8507_v59 = vor.u32 %v8506_v38, %v8503_v18 }
 0x4d2   : > { %v18647_v5 = vshll.u32 %v18645_v34, 16  ;;  %v7677_v60 = vshll.u32 %v7536_v57, 16  ;;  %v7681_v40 = vshrl.u32 %v7536_v57, 16  ;;  %v8033_v50 = vld [vmem:[#allocation4 + $0x44] sm:$0x1]  ;;  %v11912_v44 = vrot.slane %v17424_v62, 9 }
 0x4d3   : > { %v7670_v10 = vrot.slane %v18646_v0, 4  ;;  %v8512_v46 = vrot.slane %v8510_v43, 5  ;;  %v8522_v35 = vrot.slane %v8520_v33, 5  ;;  %v7687_v1 = vshll.u32 %v7537_v32, 16  ;;  %v8302_v6 = vld [vmem:[#allocation4 + $0x54] sm:$0xf] }
 0x4d4   : > { %v7673_v22 = vrot.slane %v18647_v5, 5  ;;  %v8508_v31 = vrot.slane %v8507_v59, 4  ;;  %v7679_v48 = vrot.slane %v7677_v60, 5  ;;  %v7683_v45 = vrot.slane %v7681_v40, 4  ;;  %v8303_v20 = vld [vmem:[#allocation4 + $0x58] sm:$0xf] }
 0x4d5   : > { %8334 = vst [vmem:[#allocation5 + $0x180] sm:$0xf] %v8302_v6  ;;  %v13739_v41 = vld [vmem:[#allocation5 + $0x10] ss:$36 sps:$4 sm:$0xff]   ;;  %v18648_v11 = vld [vmem:[#allocation21_spill] sm:$0xff]  ;;  %v11887_v57 = vrot.slane %v8031_v63, 9 }
 0x4d6   : > { %v7674_v36 = vor.u32 %v7673_v22, %v7670_v10  ;;  %v17443_v13 = vld [vmem:[#allocation6 + $0x230] sm:$0xff]   ;;  %v8517_v18 = vor.u32 %v18648_v11, %v8512_v46  ;;  %v8145_v42 = vrot.slane %v8032_v29, 5  ;;  %v8148_v39 = vrot.slane %v8033_v50, 5  ;;  %8335 = vst [vmem:[#allocation5 + $0x1a4] sm:$0xf] %v8303_v20  ;;  %v18649_v19 = vld [vmem:[#allocation24_spill] sm:$0xff]  ;;  %10958 = vmatmul.mubr.bf16.vlgmr.msra.gmra.mxu1 %v13739_v41 }
 0x4d7   : > { %v13750_v55 = vld [vmem:[#allocation5 + $0x5c] ss:$36 sps:$4 sm:$0xff]   ;;  %v8513_v38 = vsel %vm14676_vm9, %v8508_v31, %v8512_v46  ;;  %v7684_v32 = vor.u32 %v7683_v45, %v7679_v48  ;;  %v18650_v43 = vshrl.u32 %v18649_v19, 16  ;;  %v8373_v29 = vld [vmem:[#allocation4 + $0x5c] sm:$0x1]  ;;  %v18651_v59 = vshll.u32 %v18649_v19, 16 }
 0x4d8   : > { %v7675_v25 = vrot.slane %v7674_v36, 4  ;;  %v8372_v27 = vld [vmem:[#allocation4 + $0x58] sm:$0xf]  ;;  %v8518_v0 = vrot.slane %v8517_v18, 4  ;;  %8828 = vst [vmem:[#allocation5 + $0x13c] sm:$0xf] %v8513_v38  ;;  %v8146_v10 = vsel %vm14682_vm12, %v11887_v57, %v8145_v42  ;;  %10965 = vmatprep.mubr.bf16.mxu1 %v13750_v55 }
 0x4d9   : > { %v8527_v33 = vrot.slane %v18650_v43, 4  ;;  %v13744_v34 = vld [vmem:[#allocation5 + $0x60] ss:$36 sps:$4 sm:$0xff]   ;;  %v8147_v63 = vrot.slane %v8145_v42, 4  ;;  %v8530_v5 = vrot.slane %v18651_v59, 5  ;;  %v7685_v40 = vrot.slane %v7684_v32, 4 }
 0x4da   : > { %v13753_v22 = vld [vmem:[#allocation5 + $0xac] ss:$36 sps:$4 sm:$0xff]   ;;  %v7680_v60 = vsel %vm14676_vm9, %v7675_v25, %v7679_v48  ;;  %v7689_v50 = vrot.slane %v7687_v1, 5  ;;  %8267 = vst [vmem:[#allocation5 + $0x134] sm:$0xf] %v8146_v10  ;;  %v18654_v31 = vld [vmem:[#allocation27_spill] sm:$0xff]  ;;  %v8523_v20 = vsel %vm14676_vm9, %v8518_v0, %v8522_v35  ;;  %11127 = vmatmul.mubr.bf16.gmra.mxu0 %v13744_v34 }
 0x4db   : > { %v18652_v46 = vld [vmem:[#allocation30_spill] sm:$0xff]  ;;  %v18655_v36 = vrot.slane %v18654_v31, 9  ;;  %7995 = vst [vmem:[#allocation5 + $0x130] sm:$0xf] %v7680_v60  ;;  %v8149_v11 = vsel %vm14682_vm12, %v8147_v63, %v8148_v39  ;;  %v8531_v18 = vor.u32 %v8530_v5, %v8527_v33  ;;  %v8534_v48 = vshll.u32 %v8372_v27, 16  ;;  %v13868_v42 = vld [vmem:[#allocation6 + $0x238] sm:$0xff]   ;;  %11134 = vmatprep.mubr.bf16.mxu0 %v13753_v22 }
 0x4dc   : > { %v18653_v6 = vrot.slane %v18652_v46, 5  ;;  %v7540_v57 = vld [vmem:[#allocation4 + $0x50] sm:$0x1]  ;;  %v8034_v1 = vld [vmem:[#allocation4 + $0x48] sm:$0xe]  ;;  %13196 = vmatpush3.bf16.msra.mxu1 %v13868_v42  ;;  %v7690_v38 = vsel %vm14676_vm9, %v7685_v40, %v7689_v50  ;;  %v8538_v41 = vshrl.u32 %v8372_v27, 16 }
 0x4dd   : > { %8829 = vst [vmem:[#allocation5 + $0x160] sm:$0xf] %v8523_v20  ;;  %8268 = vst [vmem:[#allocation5 + $0x158] sm:$0xf] %v8149_v11  ;;  %v8544_v25 = vshll.u32 %v8373_v29, 16  ;;  %v13773_v35 = vld [vmem:[#allocation6 + $0x228] sm:$0xff]   ;;  %13197 = vmatprep.subr.bf16.mxu1 %v17443_v13 }
 0x4de   : > { %v8972_v45 = vsel %vm14682_vm12, %v18655_v36, %v18653_v6  ;;  %v18656_v32 = vld [vmem:[#allocation17_spill] sm:$0xff]  ;;  %v8035_v39 = vld [vmem:[#allocation4 + $0x4c] sm:$0xf]  ;;  %7996 = vst [vmem:[#allocation5 + $0x154] sm:$0xf] %v7690_v38  ;;  %v8532_v33 = vrot.slane %v8531_v18, 4 }
 0x4df   : > { %9098 = vst [vmem:[#allocation5 + $0xf8] sm:$0xf] %v8972_v45  ;;  %v18657_v19 = vshrl.u32 %v18656_v32, 16  ;;  %v8536_v55 = vrot.slane %v8534_v48, 5  ;;  %v18658_v0 = vshll.u32 %v18656_v32, 16  ;;  %v8540_v27 = vrot.slane %v8538_v41, 4 }
 0x4e0   : > { %v13869_v63 = vld [vmem:[#allocation4 + $0x4c] sm:$0xf]  ;;  %v8036_v5 = vld [vmem:[#allocation4 + $0x50] sm:$0x1]  ;;  %v8546_v29 = vrot.slane %v8544_v25, 5  ;;  %v7711_v60 = vshll.u32 %v7540_v57, 16  ;;  %13198 = vmatpush3.bf16.msra.mxu1 %v17443_v13 }
 0x4e1   : > { %v7694_v43 = vrot.slane %v18657_v19, 4  ;;  %v7697_v10 = vrot.slane %v18658_v0, 5  ;;  %v7701_v59 = vshll.u32 %v13869_v63, 16  ;;  %v11888_v40 = vrot.slane %v8034_v1, 9  ;;  %v8304_v50 = vld [vmem:[#allocation4 + $0x60] sm:$0xf]  ;;  %13199 = vmatprep.subr.bf16.mxu1 %v13773_v35 }
 0x4e2   : > { %v8537_v34 = vsel %vm14676_vm9, %v8532_v33, %v8536_v55  ;;  %v8152_v36 = vrot.slane %v8035_v39, 5  ;;  %v8305_v45 = vld [vmem:[#allocation4 + $0x64] sm:$0xf]  ;;  %8336 = vst [vmem:[#allocation5 + $0x1c8] sm:$0xf] %v8304_v50  ;;  %v17475_v11 = vld [vmem:[#allocation6 + $0x220] sm:$0xff]   ;;  %v8541_v22 = vor.u32 %v8540_v27, %v8536_v55 }
 0x4e3   : > { %v7698_v6 = vor.u32 %v7697_v10, %v7694_v43  ;;  %v7703_v31 = vrot.slane %v7701_v59, 5  ;;  %v8376_v20 = vld [vmem:[#allocation4 + $0x68] sm:$0x1]  ;;  %v13748_v18 = vld [vmem:[#allocation5 + $0x58] ss:$36 sps:$4 sm:$0xff]   ;;  %v7713_v48 = vrot.slane %v7711_v60, 5 }
 0x4e4   : > { %8830 = vst [vmem:[#allocation5 + $0x184] sm:$0xf] %v8537_v34  ;;  %v8155_v57 = vrot.slane %v8036_v5, 5  ;;  %8337 = vst [vmem:[#allocation5 + $0x1ec] sm:$0xf] %v8305_v45  ;;  %v18659_v1 = vld [vmem:[#allocation15_spill] sm:$0xff]  ;;  %v8153_v39 = vsel %vm14682_vm12, %v11888_v40, %v8152_v36  ;;  %10966 = vmatmul.mubr.bf16.gmra.mxu1 %v13748_v18 }
 0x4e5   : > { %v18660_v42 = vshrl.u32 %v18659_v1, 16  ;;  %v13751_v41 = vld [vmem:[#allocation5 + $0xa8] ss:$36 sps:$4 sm:$0xff]   ;;  %v7699_v32 = vrot.slane %v7698_v6, 4  ;;  %v18661_v19 = vld [vmem:[#allocation19_spill] sm:$0xff]  ;;  %v8154_v33 = vrot.slane %v8152_v36, 4  ;;  %13200 = vmatpush3.bf16.msra.mxu1 %v13773_v35 }
 0x4e6   : > { %v13756_v25 = vld [vmem:[#allocation5 + $0xa4] ss:$36 sps:$4 sm:$0xff]   ;;  %v7708_v43 = vor.u32 %v18661_v19, %v7703_v31  ;;  %v8542_v0 = vrot.slane %v8541_v22, 4  ;;  %8269 = vst [vmem:[#allocation5 + $0x17c] sm:$0xf] %v8153_v39  ;;  %v18662_v13 = vshll.u32 %v18659_v1, 16  ;;  %11135 = vmatmul.mubr.bf16.gmra.mxu0 %v13751_v41  ;;  %13201 = vmatprep.subr.bf16.mxu1 %v17475_v11 }
 0x4e7   : > { %v8551_v38 = vrot.slane %v18660_v42, 4  ;;  %v13870_v10 = vld [vmem:[#allocation4 + $0x64] sm:$0xf]  ;;  %v8568_v59 = vshll.u32 %v8376_v20, 16  ;;  %v13759_v5 = vld [vmem:[#allocation5 + $0xf4] ss:$36 sps:$4 sm:$0xff]   ;;  %v7704_v27 = vsel %vm14676_vm9, %v7699_v32, %v7703_v31  ;;  %v8156_v50 = vsel %vm14682_vm12, %v8154_v33, %v8155_v57  ;;  %10973 = vmatprep.mubr.bf16.mxu1 %v13756_v25 }
 0x4e8   : > { %v8554_v55 = vrot.slane %v18662_v13, 5  ;;  %v8558_v63 = vshll.u32 %v13870_v10, 16  ;;  %v7709_v60 = vrot.slane %v7708_v43, 4  ;;  %v7542_v34 = vld [vmem:[#allocation4 + $0x58] sm:$0xf]  ;;  %v18663_v40 = vrot.slane %v16889_v61, 5  ;;  %11142 = vmatprep.mubr.bf16.mxu0 %v13759_v5 }
 0x4e9   : > { %v18664_v6 = vld [vmem:[#allocation28_spill] sm:$0xff]  ;;  %v8547_v20 = vsel %vm14676_vm9, %v8542_v0, %v8546_v29  ;;  %7997 = vst [vmem:[#allocation5 + $0x178] sm:$0xf] %v7704_v27  ;;  %8270 = vst [vmem:[#allocation5 + $0x1a0] sm:$0xf] %v8156_v50  ;;  %v8570_v42 = vrot.slane %v8568_v59, 5  ;;  %13202 = vmatpush3.bf16.msra.mxu1 %v17475_v11 }
 0x4ea   : > { %v18665_v36 = vrot.slane %v18664_v6, 9  ;;  %v8555_v31 = vor.u32 %v8554_v55, %v8551_v38  ;;  %v8560_v18 = vrot.slane %v8558_v63, 5  ;;  %v7543_v22 = vld [vmem:[#allocation4 + $0x5c] sm:$0x1]  ;;  %v8037_v1 = vld [vmem:[#allocation4 + $0x54] sm:$0xe]  ;;  %v7714_v57 = vsel %vm14676_vm9, %v7709_v60, %v7713_v48 }
 0x4eb   : > { %8831 = vst [vmem:[#allocation5 + $0x1a8] sm:$0xf] %v8547_v20  ;;  %v18666_v32 = vld [vmem:[#allocation16_spill] sm:$0xff]  ;;  %v13799_v35 = vld [vmem:[#allocation6 + $0x218] sm:$0xff]   ;;  %7998 = vst [vmem:[#allocation5 + $0x19c] sm:$0xf] %v7714_v57 }
 0x4ec   : > { %v8986_v45 = vsel %vm14682_vm12, %v18665_v36, %v18663_v40  ;;  %v18667_v19 = vshrl.u32 %v18666_v32, 16  ;;  %v18668_v43 = vshll.u32 %v18666_v32, 16  ;;  %v8038_v39 = vld [vmem:[#allocation4 + $0x58] sm:$0xf]  ;;  %v8556_v38 = vrot.slane %v8555_v31, 4  ;;  %13203 = vmatprep.subr.bf16.mxu1 %v13799_v35  ;;  %v18701_v62 = vld [vmem:[#allocation45_spill] sm:$0xff] }
 0x4ed   : > { %9102 = vst [vmem:[#allocation5 + $0x188] sm:$0xf] %v8986_v45  ;;  %v8565_v41 = vor.u32 %v16909_v15, %v8560_v18  ;;  %v7725_v33 = vshll.u32 %v7542_v34, 16  ;;  %v7729_v0 = vshrl.u32 %v7542_v34, 16  ;;  %v8039_v13 = vld [vmem:[#allocation4 + $0x5c] sm:$0x1]  ;;  %13204 = vmatpush3.bf16.msra.mxu1 %v13799_v35 }
 0x4ee   : > { %v7718_v25 = vrot.slane %v18667_v19, 4  ;;  %v7721_v29 = vrot.slane %v18668_v43, 5  ;;  %v13754_v48 = vld [vmem:[#allocation5 + $0xa0] ss:$36 sps:$4 sm:$0xff]   ;;  %v7735_v10 = vshll.u32 %v7543_v22, 16  ;;  %v11889_v63 = vrot.slane %v8037_v1, 9 }
 0x4ef   : > { %v8159_v59 = vrot.slane %v8038_v39, 5  ;;  %v8306_v27 = vld [vmem:[#allocation4 + $0x6c] sm:$0xf]  ;;  %v17505_v60 = vld [vmem:[#allocation4 + $0xb8] sm:$0xf]  ;;  %v8561_v50 = vsel %vm14676_vm9, %v8556_v38, %v8560_v18  ;;  %v8566_v40 = vrot.slane %v8565_v41, 4  ;;  %10974 = vmatmul.mubr.bf16.gmra.mxu1 %v13754_v48 }
 0x4f0   : > { %v7722_v55 = vor.u32 %v7721_v29, %v7718_v25  ;;  %v7727_v5 = vrot.slane %v7725_v33, 5  ;;  %v7731_v6 = vrot.slane %v7729_v0, 4  ;;  %v8307_v36 = vld [vmem:[#allocation4 + $0x70] sm:$0xf]  ;;  %8338 = vst [vmem:[#allocation5 + $0x210] sm:$0xf] %v8306_v27 }
 0x4f1   : > { %v13812_v15 = vld [vmem:[#allocation6 + $0x210] sm:$0xff]   ;;  %8832 = vst [vmem:[#allocation5 + $0x1cc] sm:$0xf] %v8561_v50  ;;  %v8160_v20 = vsel %vm14682_vm12, %v11889_v63, %v8159_v59  ;;  %v8161_v31 = vrot.slane %v8159_v59, 4  ;;  %8339 = vst [vmem:[#allocation5 + $0x234] sm:$0xf] %v8307_v36  ;;  %v8571_v57 = vsel %vm14676_vm9, %v8566_v40, %v8570_v42 }
 0x4f2   : > { %v13757_v34 = vld [vmem:[#allocation5 + $0xf0] ss:$36 sps:$4 sm:$0xff]   ;;  %v7723_v45 = vrot.slane %v7722_v55, 4  ;;  %v8378_v22 = vld [vmem:[#allocation4 + $0x70] sm:$0xf]  ;;  %v7732_v32 = vor.u32 %v7731_v6, %v7727_v5  ;;  %v8162_v19 = vrot.slane %v8039_v13, 5  ;;  %13205 = vmatprep.subr.bf16.mxu1 %v13812_v15 }
 0x4f3   : > { %v13763_v1 = vld [vmem:[#allocation5 + $0xec] ss:$36 sps:$4 sm:$0xff]   ;;  %v13766_v18 = vld [vmem:[#allocation5 + $0x13c] ss:$36 sps:$4 sm:$0xff]   ;;  %8271 = vst [vmem:[#allocation5 + $0x1c4] sm:$0xf] %v8160_v20  ;;  %11143 = vmatmul.mubr.bf16.gmra.mxu0 %v13757_v34  ;;  %13206 = vmatpush3.bf16.msra.mxu1 %v13812_v15 }
 0x4f4   : > { %v18669_v11 = vshrl.u32 %v16976_v23, 16  ;;  %8833 = vst [vmem:[#allocation5 + $0x1f0] sm:$0xf] %v8571_v57  ;;  %v7728_v43 = vsel %vm14676_vm9, %v7723_v45, %v7727_v5  ;;  %v8379_v29 = vld [vmem:[#allocation4 + $0x74] sm:$0x1]  ;;  %v18670_v39 = vshll.u32 %v16976_v23, 16  ;;  %10981 = vmatprep.mubr.bf16.mxu1 %v13763_v1  ;;  %v8163_v13 = vsel %vm14682_vm12, %v8161_v31, %v8162_v19  ;;  %11150 = vmatprep.mubr.bf16.mxu0 %v13766_v18  ;;  %v12694_v18 = vpop.f32.mrf.mxu1 }
 0x4f5   : > { %v8582_v41 = vshll.u32 %v8378_v22, 16  ;;  %v8586_v33 = vshrl.u32 %v8378_v22, 16  ;;  %v7733_v0 = vrot.slane %v7732_v32, 4  ;;  %v7737_v42 = vrot.slane %v7735_v10, 5  ;;  %7999 = vst [vmem:[#allocation5 + $0x1c0] sm:$0xf] %v7728_v43 }
 0x4f6   : > { %v8575_v25 = vrot.slane %v18669_v11, 4  ;;  %v8578_v38 = vrot.slane %v18670_v39, 5  ;;  %v7546_v55 = vld [vmem:[#allocation4 + $0x68] sm:$0x1]  ;;  %v18671_v48 = vrot.slane %v17015_v30, 5  ;;  %v18672_v63 = vrot.slane %v16978_v16, 9 }
 0x4f7   : > { %v18434_v23 = vrot.slane %v17505_v60, 5  ;;  %8272 = vst [vmem:[#allocation5 + $0x1e8] sm:$0xf] %v8163_v13  ;;  %v8584_v50 = vrot.slane %v8582_v41, 5  ;;  %v8040_v10 = vld [vmem:[#allocation4 + $0x60] sm:$0xe]  ;;  %v7738_v35 = vsel %vm14676_vm9, %v7733_v0, %v7737_v42 }
 0x4f8   : > { %v9000_v59 = vsel %vm14682_vm12, %v18672_v63, %v18671_v48  ;;  %v8579_v27 = vor.u32 %v8578_v38, %v8575_v25  ;;  %v13825_v40 = vld [vmem:[#allocation6 + $0x208] sm:$0xff]   ;;  %v8588_v5 = vrot.slane %v8586_v33, 4  ;;  %v8592_v6 = vshll.u32 %v8379_v29, 16  ;;  %v18673_v16 = vld [vmem:[#allocation32_spill] sm:$0xff]  ;;  %8000 = vst [vmem:[#allocation5 + $0x1e4] sm:$0xf] %v7738_v35  ;;  %v12806_v25 = vpop.f32.mrf.mxu0 }
 0x4f9   : > { %9106 = vst [vmem:[#allocation5 + $0x218] sm:$0xf] %v9000_v59  ;;  %v18674_v36 = vshrl.u32 %v18673_v16, 16  ;;  %v8041_v20 = vld [vmem:[#allocation4 + $0x64] sm:$0xf]  ;;  %v18675_v22 = vshll.u32 %v18673_v16, 16  ;;  %13207 = vmatprep.subr.bf16.mxu1 %v13825_v40 }
 0x4fa   : > { %v13761_v31 = vld [vmem:[#allocation5 + $0xe8] ss:$36 sps:$4 sm:$0xff]   ;;  %v8580_v34 = vrot.slane %v8579_v27, 4  ;;  %v7759_v19 = vshll.u32 %v7546_v55, 16  ;;  %v8042_v11 = vld [vmem:[#allocation4 + $0x68] sm:$0x1]  ;;  %v8589_v43 = vor.u32 %v8588_v5, %v8584_v50  ;;  %13208 = vmatpush3.bf16.msra.mxu1 %v13825_v40 }
 0x4fb   : > { %v7742_v45 = vrot.slane %v18674_v36, 4  ;;  %v7745_v1 = vrot.slane %v18675_v22, 5  ;;  %v13871_v57 = vld [vmem:[#allocation4 + $0x64] sm:$0xf]  ;;  %v11890_v39 = vrot.slane %v8040_v10, 9  ;;  %v8166_v38 = vrot.slane %v8041_v20, 5  ;;  %10982 = vmatmul.mubr.bf16.gmra.mxu1 %v13761_v31  ;;  %v12695_v22 = vpop.f32.mrf.mxu1 }
 0x4fc   : > { %v7749_v32 = vshll.u32 %v13871_v57, 16  ;;  %v8308_v29 = vld [vmem:[#allocation4 + $0x78] sm:$0xf]  ;;  %v13769_v33 = vld [vmem:[#allocation5 + $0x134] ss:$36 sps:$4 sm:$0xff]   ;;  %v8585_v0 = vsel %vm14676_vm9, %v8580_v34, %v8584_v50  ;;  %v8594_v42 = vrot.slane %v8592_v6, 5 }
 0x4fd   : > { %v17535_v41 = vld [vmem:[#allocation6 + $0x200] sm:$0xff]   ;;  %v7746_v13 = vor.u32 %v7745_v1, %v7742_v45  ;;  %8340 = vst [vmem:[#allocation5 + $0x258] sm:$0xf] %v8308_v29  ;;  %v8590_v55 = vrot.slane %v8589_v43, 4  ;;  %8834 = vst [vmem:[#allocation5 + $0x214] sm:$0xf] %v8585_v0  ;;  %v8167_v27 = vsel %vm14682_vm12, %v11890_v39, %v8166_v38  ;;  %v12807_v1 = vpop.f32.mrf.mxu0  ;;  %10989 = vmatprep.mubr.bf16.mxu1 %v13769_v33 }
 0x4fe   : > { %v7751_v48 = vrot.slane %v7749_v32, 5  ;;  %v8309_v63 = vld [vmem:[#allocation4 + $0x7c] sm:$0xf]  ;;  %v7761_v59 = vrot.slane %v7759_v19, 5  ;;  %v8382_v15 = vld [vmem:[#allocation4 + $0x80] sm:$0x1]  ;;  %13209 = vmatprep.subr.bf16.mxu1 %v17535_v41 }
 0x4ff   : > { %8341 = vst [vmem:[#allocation5 + $0x27c] sm:$0xf] %v8309_v63  ;;  %v18676_v10 = vrot.slane %v17078_v7, 5  ;;  %v18677_v35 = vld [vmem:[#allocation42_spill] sm:$0xff]  ;;  %v13764_v6 = vld [vmem:[#allocation5 + $0x138] ss:$36 sps:$4 sm:$0xff]   ;;  %v8595_v32 = vsel %vm14676_vm9, %v8590_v55, %v8594_v42  ;;  %13210 = vmatpush3.bf16.msra.mxu1 %v17535_v41 }
 0x500   : > { %v18678_v5 = vrot.slane %v18677_v35, 9  ;;  %v7747_v16 = vrot.slane %v7746_v13, 4  ;;  %v18679_v36 = vld [vmem:[#allocation26_spill] sm:$0xff]  ;;  %v8168_v20 = vrot.slane %v8166_v38, 4  ;;  %v8169_v34 = vrot.slane %v8042_v11, 5  ;;  %11151 = vmatmul.mubr.bf16.gmra.mxu0 %v13764_v6 }
 0x501   : > { %v7756_v45 = vor.u32 %v18679_v36, %v7751_v48  ;;  %8273 = vst [vmem:[#allocation5 + $0x20c] sm:$0xf] %v8167_v27  ;;  %v13772_v57 = vld [vmem:[#allocation5 + $0x184] ss:$36 sps:$4 sm:$0xff]   ;;  %v18680_v19 = vld [vmem:[#allocation34_spill] sm:$0xff]  ;;  %v8616_v63 = vshll.u32 %v8382_v15, 16 }
 0x502   : > { %v9014_v50 = vsel %vm14682_vm12, %v18678_v5, %v18676_v10  ;;  %v18681_v43 = vshrl.u32 %v18680_v19, 16  ;;  %v18682_v31 = vshll.u32 %v18680_v19, 16  ;;  %v13872_v0 = vld [vmem:[#allocation4 + $0x7c] sm:$0xf]  ;;  %8835 = vst [vmem:[#allocation5 + $0x238] sm:$0xf] %v8595_v32  ;;  %v7752_v11 = vsel %vm14676_vm9, %v7747_v16, %v7751_v48  ;;  %11158 = vmatprep.mubr.bf16.mxu0 %v13772_v57 }
 0x503   : > { %9110 = vst [vmem:[#allocation5 + $0x2a8] sm:$0xf] %v9014_v50  ;;  %v8606_v13 = vshll.u32 %v13872_v0, 16  ;;  %v7757_v38 = vrot.slane %v7756_v45, 4  ;;  %v8170_v33 = vsel %vm14682_vm12, %v8168_v20, %v8169_v34  ;;  %v7548_v42 = vld [vmem:[#allocation4 + $0x70] sm:$0xf]  ;;  %v12696_v5 = vadd.f32 %v12695_v22, %v12694_v18 }
 0x504   : > { %v8599_v39 = vrot.slane %v18681_v43, 4  ;;  %v8602_v29 = vrot.slane %v18682_v31, 5  ;;  %v7549_v55 = vld [vmem:[#allocation4 + $0x74] sm:$0x1]  ;;  %8001 = vst [vmem:[#allocation5 + $0x208] sm:$0xf] %v7752_v11  ;;  %v17559_v50 = vadd.f32 %v12807_v1, %v12806_v25 }
 0x505   : > { %8274 = vst [vmem:[#allocation5 + $0x230] sm:$0xf] %v8170_v33  ;;  %v8608_v10 = vrot.slane %v8606_v13, 5  ;;  %v8043_v40 = vld [vmem:[#allocation4 + $0x6c] sm:$0xe]  ;;  %v7762_v6 = vsel %vm14676_vm9, %v7757_v38, %v7761_v59  ;;  %v8618_v16 = vrot.slane %v8616_v63, 5 }
 0x506   : > { %v8603_v27 = vor.u32 %v8602_v29, %v8599_v39  ;;  %v8044_v35 = vld [vmem:[#allocation4 + $0x70] sm:$0xf]  ;;  %v13767_v48 = vld [vmem:[#allocation5 + $0x130] ss:$36 sps:$4 sm:$0xff]   ;;  %v8045_v57 = vld [vmem:[#allocation4 + $0x74] sm:$0x1] }
 0x507   : > { %v18683_v15 = vld [vmem:[#allocation35_spill] sm:$0xff]  ;;  %8002 = vst [vmem:[#allocation5 + $0x22c] sm:$0xf] %v7762_v6  ;;  %v18686_v43 = vld [vmem:[#allocation37_spill] sm:$0xff]  ;;  %v7773_v18 = vshll.u32 %v7548_v42, 16  ;;  %v7777_v25 = vshrl.u32 %v7548_v42, 16  ;;  %10990 = vmatmul.mubr.bf16.gmra.mxu1 %v13767_v48 }
 0x508   : > { %v18684_v36 = vshrl.u32 %v18683_v15, 16  ;;  %v18685_v20 = vshll.u32 %v18683_v15, 16  ;;  %v13776_v32 = vld [vmem:[#allocation5 + $0x17c] ss:$36 sps:$4 sm:$0xff]   ;;  %v8604_v19 = vrot.slane %v8603_v27, 4  ;;  %v8613_v39 = vor.u32 %v18686_v43, %v8608_v10 }
 0x509   : > { %v17571_v22 = vld [vmem:[%s18383_s4] ss:$0 sm:$0xff]  ;;  %v13770_v59 = vld [vmem:[#allocation5 + $0x180] ss:$36 sps:$4 sm:$0xff]   ;;  %v7783_v31 = vshll.u32 %v7549_v55, 16  ;;  %v11891_v29 = vrot.slane %v8043_v40, 9  ;;  %10997 = vmatprep.mubr.bf16.mxu1 %v13776_v32 }
 0x50a   : > { %v7766_v45 = vrot.slane %v18684_v36, 4  ;;  %v7769_v34 = vrot.slane %v18685_v20, 5  ;;  %v8173_v0 = vrot.slane %v8044_v35, 5  ;;  %v8310_v13 = vld [vmem:[#allocation4 + $0x84] sm:$0xf]  ;;  %v8609_v11 = vsel %vm14676_vm9, %v8604_v19, %v8608_v10  ;;  %11159 = vmatmul.mubr.bf16.gmra.mxu0 %v13770_v59 }
 0x50b   : > { %v8614_v38 = vrot.slane %v8613_v39, 4  ;;  %v7775_v33 = vrot.slane %v7773_v18, 5  ;;  %v7779_v63 = vrot.slane %v7777_v25, 4  ;;  %v8311_v42 = vld [vmem:[#allocation4 + $0x88] sm:$0xf]  ;;  %v7785_v6 = vrot.slane %v7783_v31, 5 }
 0x50c   : > { %v7770_v1 = vor.u32 %v7769_v34, %v7766_v45  ;;  %8342 = vst [vmem:[#allocation5 + $0x2a0] sm:$0xf] %v8310_v13  ;;  %8836 = vst [vmem:[#allocation5 + $0x25c] sm:$0xf] %v8609_v11  ;;  %v8174_v41 = vsel %vm14682_vm12, %v11891_v29, %v8173_v0  ;;  %v8175_v15 = vrot.slane %v8173_v0, 4  ;;  %v8176_v36 = vrot.slane %v8045_v57, 5  ;;  %v12809_v11 = vpop.f32.mrf.mxu0 }
 0x50d   : > { %8343 = vst [vmem:[#allocation5 + $0x2c4] sm:$0xf] %v8311_v42  ;;  %v8384_v55 = vld [vmem:[#allocation4 + $0x88] sm:$0xf]  ;;  %v8619_v10 = vsel %vm14676_vm9, %v8614_v38, %v8618_v16  ;;  %v7780_v35 = vor.u32 %v7779_v63, %v7775_v33  ;;  %8275 = vst [vmem:[#allocation5 + $0x254] sm:$0xf] %v8174_v41  ;;  %v10638_v48 = vadd.f32 %v17274_v24, %v17571_v22 }
 0x50e   : > { %v7771_v27 = vrot.slane %v7770_v1, 4  ;;  %v13779_v40 = vld [vmem:[#allocation5 + $0x1cc] ss:$36 sps:$4 sm:$0xff]   ;;  %8837 = vst [vmem:[#allocation5 + $0x280] sm:$0xf] %v8619_v10  ;;  %v8630_v18 = vshll.u32 %v8384_v55, 16  ;;  %v8177_v57 = vsel %vm14682_vm12, %v8175_v15, %v8176_v36  ;;  %v10641_v0 = vadd.f32 %v12696_v5, %v17571_v22 }
 0x50f   : > { %v8385_v20 = vld [vmem:[#allocation4 + $0x8c] sm:$0x1]  ;;  %v18687_v34 = vld [vmem:[#allocation13_spill] sm:$0xff]  ;;  %11166 = vmatprep.mubr.bf16.mxu0 %v13779_v40  ;;  %v7781_v16 = vrot.slane %v7780_v35, 4  ;;  %v8634_v24 = vshrl.u32 %v8384_v55, 16  ;;  %v17592_v13 = vadd.f32 %v17401_v52, %v10638_v48 }
 0x510   : > { %v7776_v45 = vsel %vm14676_vm9, %v7771_v27, %v7775_v33  ;;  %v18688_v19 = vshrl.u32 %v18687_v34, 16  ;;  %v18689_v32 = vshll.u32 %v18687_v34, 16  ;;  %v8640_v25 = vshll.u32 %v8385_v20, 16  ;;  %v7552_v59 = vld [vmem:[#allocation4 + $0x80] sm:$0x1]  ;;  %v12810_v20 = vpop.f32.mrf.mxu0 }
 0x511   : > { %8003 = vst [vmem:[#allocation5 + $0x250] sm:$0xf] %v7776_v45  ;;  %v13774_v1 = vld [vmem:[#allocation5 + $0x178] ss:$36 sps:$4 sm:$0xff]   ;;  %8276 = vst [vmem:[#allocation5 + $0x278] sm:$0xf] %v8177_v57  ;;  %v7786_v33 = vsel %vm14676_vm9, %v7781_v16, %v7785_v6 }
 0x512   : > { %v8623_v43 = vrot.slane %v18688_v19, 4  ;;  %v8626_v39 = vrot.slane %v18689_v32, 5  ;;  %v8632_v29 = vrot.slane %v8630_v18, 5  ;;  %v13782_v38 = vld [vmem:[#allocation5 + $0x1c4] ss:$36 sps:$4 sm:$0xff]   ;;  %v8636_v63 = vrot.slane %v8634_v24, 4  ;;  %10998 = vmatmul.mubr.bf16.gmra.mxu1 %v13774_v1 }
 0x513   : > { %v8642_v42 = vrot.slane %v8640_v25, 5  ;;  %v18690_v27 = vld [vmem:[#allocation33_spill] sm:$0xff]  ;;  %v8046_v55 = vld [vmem:[#allocation4 + $0x78] sm:$0xe]  ;;  %8004 = vst [vmem:[#allocation5 + $0x274] sm:$0xf] %v7786_v33  ;;  %v17601_v32 = vadd.f32 %v17559_v50, %v10641_v0  ;;  %11005 = vmatprep.mubr.bf16.mxu1 %v13782_v38  ;;  %v17607_v50 = vadd.f32 %v12810_v20, %v12809_v11 }
 0x514   : > { %v8627_v31 = vor.u32 %v8626_v39, %v8623_v43  ;;  %v18691_v41 = vshrl.u32 %v18690_v27, 16  ;;  %v13777_v40 = vld [vmem:[#allocation5 + $0x1c8] ss:$36 sps:$4 sm:$0xff]   ;;  %v18692_v35 = vshll.u32 %v18690_v27, 16  ;;  %v13873_v36 = vld [vmem:[#allocation4 + $0x7c] sm:$0xf]  ;;  %v8637_v34 = vor.u32 %v8636_v63, %v8632_v29 }
 0x515   : > { %v7797_v52 = vshll.u32 %v13873_v36, 16  ;;  %v7807_v48 = vshll.u32 %v7552_v59, 16  ;;  %v8047_v45 = vld [vmem:[#allocation4 + $0x7c] sm:$0xf]  ;;  %v8048_v19 = vld [vmem:[#allocation4 + $0x80] sm:$0x1]  ;;  %11167 = vmatmul.mubr.bf16.gmra.mxu0 %v13777_v40 }
 0x516   : > { %v7790_v15 = vrot.slane %v18691_v41, 4  ;;  %v8628_v10 = vrot.slane %v8627_v31, 4  ;;  %v7793_v5 = vrot.slane %v18692_v35, 5  ;;  %v11892_v6 = vrot.slane %v8046_v55, 9  ;;  %v8312_v24 = vld [vmem:[#allocation4 + $0x90] sm:$0xf]  ;;  %v12812_v31 = vpop.f32.mrf.mxu0 }
 0x517   : > { %v8180_v43 = vrot.slane %v8047_v45, 5  ;;  %v7799_v16 = vrot.slane %v7797_v52, 5  ;;  %v7809_v57 = vrot.slane %v7807_v48, 5  ;;  %v8313_v25 = vld [vmem:[#allocation4 + $0x94] sm:$0xf]  ;;  %v8638_v33 = vrot.slane %v8637_v34, 4 }
 0x518   : > { %v8633_v39 = vsel %vm14676_vm9, %v8628_v10, %v8632_v29  ;;  %v7794_v18 = vor.u32 %v7793_v5, %v7790_v15  ;;  %v13785_v59 = vld [vmem:[#allocation5 + $0x214] ss:$36 sps:$4 sm:$0xff]   ;;  %8344 = vst [vmem:[#allocation5 + $0x2e8] sm:$0xf] %v8312_v24  ;;  %8345 = vst [vmem:[#allocation5 + $0x30c] sm:$0xf] %v8313_v25  ;;  %v12813_v10 = vpop.f32.mrf.mxu0 }
 0x519   : > { %8838 = vst [vmem:[#allocation5 + $0x2a4] sm:$0xf] %v8633_v39  ;;  %v8181_v63 = vsel %vm14682_vm12, %v11892_v6, %v8180_v43  ;;  %v18693_v1 = vrot.slane %v17156_v26, 9  ;;  %v18694_v38 = vld [vmem:[#allocation36_spill] sm:$0xff]  ;;  %v8182_v41 = vrot.slane %v8180_v43, 4  ;;  %v8183_v15 = vrot.slane %v8048_v19, 5  ;;  %11174 = vmatprep.mubr.bf16.mxu0 %v13785_v59 }
 0x51a   : > { %v7795_v0 = vrot.slane %v7794_v18, 4  ;;  %v7804_v27 = vor.u32 %v18694_v38, %v7799_v16  ;;  %8277 = vst [vmem:[#allocation5 + $0x29c] sm:$0xf] %v8181_v63  ;;  %v8388_v55 = vld [vmem:[#allocation4 + $0x98] sm:$0x1]  ;;  %v8643_v11 = vsel %vm14676_vm9, %v8638_v33, %v8642_v42  ;;  %v18695_v35 = vld [vmem:[#allocation39_spill] sm:$0xff]  ;;  %v17628_v33 = vadd.f32 %v12813_v10, %v12812_v31 }
 0x51b   : > { %v9028_v29 = vsel %vm14682_vm12, %v18693_v1, %v18435_v14  ;;  %v18696_v5 = vshrl.u32 %v18695_v35, 16  ;;  %v18697_v36 = vshll.u32 %v18695_v35, 16  ;;  %v13874_v40 = vld [vmem:[#allocation4 + $0x94] sm:$0xf]  ;;  %v13780_v45 = vld [vmem:[#allocation5 + $0x1c0] ss:$36 sps:$4 sm:$0xff]   ;;  %v8184_v19 = vsel %vm14682_vm12, %v8182_v41, %v8183_v15 }
 0x51c   : > { %9114 = vst [vmem:[#allocation5 + $0x338] sm:$0xf] %v9028_v29  ;;  %v8654_v48 = vshll.u32 %v13874_v40, 16  ;;  %8839 = vst [vmem:[#allocation5 + $0x2c8] sm:$0xf] %v8643_v11  ;;  %v7800_v20 = vsel %vm14676_vm9, %v7795_v0, %v7799_v16  ;;  %v7805_v34 = vrot.slane %v7804_v27, 4  ;;  %v9042_v16 = vsel %vm14682_vm12, %v11912_v44, %v18434_v23  ;;  %11006 = vmatmul.mubr.bf16.gmra.mxu1 %v13780_v45 }
 0x51d   : > { %v8647_v26 = vrot.slane %v18696_v5, 4  ;;  %v8650_v52 = vrot.slane %v18697_v36, 5  ;;  %v8664_v6 = vshll.u32 %v8388_v55, 16  ;;  %v7554_v43 = vld [vmem:[#allocation4 + $0x88] sm:$0xf]  ;;  %v18698_v0 = vld [vmem:[#allocation40_spill] sm:$0xff] }
 0x51e   : > { %v17626_v42 = vld [vmem:[#allocation4 + $0xb4] sm:$0xf]  ;;  %v13789_v39 = vld [vmem:[#allocation5 + $0x20c] ss:$36 sps:$4 sm:$0xff]   ;;  %8005 = vst [vmem:[#allocation5 + $0x298] sm:$0xf] %v7800_v20  ;;  %v7810_v1 = vsel %vm14676_vm9, %v7805_v34, %v7809_v57 }
 0x51f   : > { %8278 = vst [vmem:[#allocation5 + $0x2c0] sm:$0xf] %v8184_v19  ;;  %v8651_v18 = vor.u32 %v8650_v52, %v8647_v26  ;;  %v8656_v24 = vrot.slane %v8654_v48, 5  ;;  %v7555_v25 = vld [vmem:[#allocation4 + $0x8c] sm:$0x1]  ;;  %v8666_v29 = vrot.slane %v8664_v6, 5  ;;  %11013 = vmatprep.mubr.bf16.mxu1 %v13789_v39 }
 0x520   : > { %v8049_v59 = vld [vmem:[#allocation4 + $0x84] sm:$0xe]  ;;  %v13783_v63 = vld [vmem:[#allocation5 + $0x210] ss:$36 sps:$4 sm:$0xff]   ;;  %v18699_v38 = vshrl.u32 %v18698_v0, 16  ;;  %v18700_v41 = vshll.u32 %v18698_v0, 16 }
 0x521   : > { %v8050_v31 = vld [vmem:[#allocation4 + $0x88] sm:$0xf]  ;;  %9118 = vst [vmem:[#allocation5 + $0x3c8] sm:$0xf] %v9042_v16  ;;  %v13792_v55 = vld [vmem:[#allocation5 + $0x25c] ss:$36 sps:$4 sm:$0xff]   ;;  %v8661_v11 = vor.u32 %v18701_v62, %v8656_v24  ;;  %11175 = vmatmul.mubr.bf16.gmra.mxu0 %v13783_v63 }
 0x522   : > { %v7814_v27 = vrot.slane %v18699_v38, 4  ;;  %v7817_v15 = vrot.slane %v18700_v41, 5  ;;  %8006 = vst [vmem:[#allocation5 + $0x2bc] sm:$0xf] %v7810_v1  ;;  %v8652_v10 = vrot.slane %v8651_v18, 4  ;;  %v7821_v35 = vshll.u32 %v7554_v43, 16  ;;  %11182 = vmatprep.mubr.bf16.mxu0 %v13792_v55  ;;  %v12697_v1 = vpop.f32.mrf.mxu1 }
 0x523   : > { %v7825_v44 = vshrl.u32 %v7554_v43, 16  ;;  %v8051_v5 = vld [vmem:[#allocation4 + $0x8c] sm:$0x1]  ;;  %v7831_v57 = vshll.u32 %v7555_v25, 16  ;;  %v11893_v36 = vrot.slane %v8049_v59, 9  ;;  %v8187_v52 = vrot.slane %v8050_v31, 5  ;;  %v12815_v59 = vpop.f32.mrf.mxu0 }
 0x524   : > { %v7818_v26 = vor.u32 %v7817_v15, %v7814_v27  ;;  %v8314_v40 = vld [vmem:[#allocation4 + $0x9c] sm:$0xf]  ;;  %v8657_v48 = vsel %vm14676_vm9, %v8652_v10, %v8656_v24  ;;  %v8662_v20 = vrot.slane %v8661_v11, 4  ;;  %v7823_v34 = vrot.slane %v7821_v35, 5  ;;  %v8315_v6 = vld [vmem:[#allocation4 + $0xa0] sm:$0xf] }
 0x525   : > { %v7827_v19 = vrot.slane %v7825_v44, 4  ;;  %8346 = vst [vmem:[#allocation5 + $0x330] sm:$0xf] %v8314_v40  ;;  %v8717_v18 = vshrl.u32 %v17626_v42, 16  ;;  %8840 = vst [vmem:[#allocation5 + $0x2ec] sm:$0xf] %v8657_v48  ;;  %v8188_v45 = vsel %vm14682_vm12, %v11893_v36, %v8187_v52  ;;  %v12816_v55 = vpop.f32.mrf.mxu0 }
 0x526   : > { %v7819_v43 = vrot.slane %v7818_v26, 4  ;;  %v8189_v25 = vrot.slane %v8187_v52, 4  ;;  %8347 = vst [vmem:[#allocation5 + $0x354] sm:$0xf] %v8315_v6  ;;  %v8390_v39 = vld [vmem:[#allocation4 + $0xa0] sm:$0xf]  ;;  %v8667_v0 = vsel %vm14676_vm9, %v8662_v20, %v8666_v29 }
 0x527   : > { %v8720_v16 = vshll.u32 %v17626_v42, 16  ;;  %v17649_v24 = vld [vmem:[#allocation4 + $0xc4] sm:$0xf]  ;;  %v7828_v38 = vor.u32 %v7827_v19, %v7823_v34  ;;  %v8190_v63 = vrot.slane %v8051_v5, 5  ;;  %8279 = vst [vmem:[#allocation5 + $0x2e4] sm:$0xf] %v8188_v45  ;;  %v12698_v5 = vpop.f32.mrf.mxu1  ;;  %v12818_v6 = vpop.f32.mrf.mxu0 }
 0x528   : > { %8841 = vst [vmem:[#allocation5 + $0x310] sm:$0xf] %v8667_v0  ;;  %v7824_v27 = vsel %vm14676_vm9, %v7819_v43, %v7823_v34  ;;  %v8391_v41 = vld [vmem:[#allocation4 + $0xa4] sm:$0x1]  ;;  %v18702_v15 = vshrl.u32 %v17153_v3, 16  ;;  %v18703_v10 = vshll.u32 %v17153_v3, 16  ;;  %v17661_v48 = vadd.f32 %v12698_v5, %v12697_v1 }
 0x529   : > { %v8678_v11 = vshll.u32 %v8390_v39, 16  ;;  %v13787_v35 = vld [vmem:[#allocation5 + $0x208] ss:$36 sps:$4 sm:$0xff]   ;;  %v7829_v44 = vrot.slane %v7828_v38, 4  ;;  %v7833_v26 = vrot.slane %v7831_v57, 5  ;;  %v8191_v29 = vsel %vm14682_vm12, %v8189_v25, %v8190_v63  ;;  %v12700_v25 = vpop.f32.mrf.mxu1 }
 0x52a   : > { %v8671_v31 = vrot.slane %v18702_v15, 4  ;;  %v8674_v62 = vrot.slane %v18703_v10, 5  ;;  %8007 = vst [vmem:[#allocation5 + $0x2e0] sm:$0xf] %v7824_v27  ;;  %v8682_v36 = vshrl.u32 %v8390_v39, 16  ;;  %v17663_v3 = vadd.f32 %v12816_v55, %v12815_v59  ;;  %v18704_v38 = vld [vmem:[#allocation41_spill] sm:$0xff]  ;;  %11014 = vmatmul.mubr.bf16.gmra.mxu1 %v13787_v35 }
 0x52b   : > { %v13790_v52 = vld [vmem:[#allocation5 + $0x258] ss:$36 sps:$4 sm:$0xff]   ;;  %8280 = vst [vmem:[#allocation5 + $0x308] sm:$0xf] %v8191_v29  ;;  %v8680_v34 = vrot.slane %v8678_v11, 5  ;;  %v7834_v45 = vsel %vm14676_vm9, %v7829_v44, %v7833_v26  ;;  %v8688_v39 = vshll.u32 %v8391_v41, 16  ;;  %v12819_v29 = vpop.f32.mrf.mxu0  ;;  %v12701_v44 = vpop.f32.mrf.mxu1 }
 0x52c   : > { %v13795_v40 = vld [vmem:[#allocation5 + $0x254] ss:$36 sps:$4 sm:$0xff]   ;;  %v8675_v20 = vor.u32 %v8674_v62, %v8671_v31  ;;  %v7558_v19 = vld [vmem:[#allocation4 + $0x98] sm:$0x1]  ;;  %v17665_v43 = vld [vmem:[#allocation4 + $0xc4] sm:$0xf]  ;;  %11183 = vmatmul.mubr.bf16.gmra.mxu0 %v13790_v52  ;;  %v17674_v23 = vadd.f32 %v12701_v44, %v12700_v25 }
 0x52d   : > { %v13798_v57 = vld [vmem:[#allocation5 + $0x2a4] ss:$36 sps:$4 sm:$0xff]   ;;  %v8684_v0 = vrot.slane %v8682_v36, 4  ;;  %v18705_v63 = vshrl.u32 %v18704_v38, 16  ;;  %v8052_v1 = vld [vmem:[#allocation4 + $0x90] sm:$0xe]  ;;  %11021 = vmatprep.mubr.bf16.mxu1 %v13795_v40 }
 0x52e   : > { %v7945_v15 = vshrl.u32 %v17649_v24, 16  ;;  %8008 = vst [vmem:[#allocation5 + $0x304] sm:$0xf] %v7834_v45  ;;  %v8676_v59 = vrot.slane %v8675_v20, 4  ;;  %v18706_v31 = vshll.u32 %v18704_v38, 16  ;;  %v7855_v41 = vshll.u32 %v7558_v19, 16  ;;  %11190 = vmatprep.mubr.bf16.mxu0 %v13798_v57 }
 0x52f   : > { %v7838_v27 = vrot.slane %v18705_v63, 4  ;;  %v13875_v62 = vld [vmem:[#allocation4 + $0x94] sm:$0xf]  ;;  %v8685_v26 = vor.u32 %v8684_v0, %v8680_v34  ;;  %v8054_v5 = vld [vmem:[#allocation4 + $0x98] sm:$0x1]  ;;  %v11894_v36 = vrot.slane %v8052_v1, 9  ;;  %v17680_v0 = vadd.f32 %v12819_v29, %v12818_v6 }
 0x530   : > { %v7841_v10 = vrot.slane %v18706_v31, 5  ;;  %v7845_v11 = vshll.u32 %v13875_v62, 16  ;;  %v8053_v55 = vld [vmem:[#allocation4 + $0x94] sm:$0xf]  ;;  %v8681_v35 = vsel %vm14676_vm9, %v8676_v59, %v8680_v34  ;;  %v8316_v38 = vld [vmem:[#allocation4 + $0xa8] sm:$0xf]  ;;  %v12703_v62 = vpop.f32.mrf.mxu1 }
 0x531   : > { %v8194_v63 = vrot.slane %v8053_v55, 5  ;;  %v8317_v31 = vld [vmem:[#allocation4 + $0xac] sm:$0xf]  ;;  %v8686_v14 = vrot.slane %v8685_v26, 4  ;;  %v8690_v40 = vrot.slane %v8688_v39, 5  ;;  %v8754_v52 = vshrl.u32 %v17665_v43, 16 }
 0x532   : > { %v7842_v20 = vor.u32 %v7841_v10, %v7838_v27  ;;  %v7847_v45 = vrot.slane %v7845_v11, 5  ;;  %8842 = vst [vmem:[#allocation5 + $0x334] sm:$0xf] %v8681_v35  ;;  %8348 = vst [vmem:[#allocation5 + $0x378] sm:$0xf] %v8316_v38  ;;  %v18707_v34 = vld [vmem:[#allocation43_spill] sm:$0xff]  ;;  %v12704_v10 = vpop.f32.mrf.mxu1 }
 0x533   : > { %v8195_v19 = vsel %vm14682_vm12, %v11894_v36, %v8194_v63  ;;  %8349 = vst [vmem:[#allocation5 + $0x39c] sm:$0xf] %v8317_v31  ;;  %v7857_v1 = vrot.slane %v7855_v41, 5  ;;  %v8691_v57 = vsel %vm14676_vm9, %v8686_v14, %v8690_v40  ;;  %v8196_v59 = vrot.slane %v8194_v63, 4  ;;  %v8394_v11 = vld [vmem:[#allocation4 + $0xb0] sm:$0x1] }
 0x534   : > { %v7843_v25 = vrot.slane %v7842_v20, 4  ;;  %v7852_v27 = vor.u32 %v18707_v34, %v7847_v45  ;;  %8281 = vst [vmem:[#allocation5 + $0x32c] sm:$0xf] %v8195_v19  ;;  %v8197_v39 = vrot.slane %v8054_v5, 5  ;;  %v18708_v55 = vshrl.u32 %v17134_v37, 16  ;;  %v12706_v63 = vpop.f32.mrf.mxu1 }
 0x535   : > { %v13793_v29 = vld [vmem:[#allocation5 + $0x250] ss:$36 sps:$4 sm:$0xff]   ;;  %8843 = vst [vmem:[#allocation5 + $0x358] sm:$0xf] %v8691_v57  ;;  %v12705_v36 = vadd.f32 %v12704_v10, %v12703_v62  ;;  %v18709_v41 = vshll.u32 %v17134_v37, 16  ;;  %v17694_v19 = vrot.slane %v7945_v15, 4 }
 0x536   : > { %v8695_v6 = vrot.slane %v18708_v55, 4  ;;  %v7848_v44 = vsel %vm14676_vm9, %v7843_v25, %v7847_v45  ;;  %v7853_v26 = vrot.slane %v7852_v27, 4  ;;  %v7560_v20 = vld [vmem:[#allocation4 + $0xa0] sm:$0xf]  ;;  %v13796_v38 = vld [vmem:[#allocation5 + $0x2a0] ss:$36 sps:$4 sm:$0xff]   ;;  %v8198_v5 = vsel %vm14682_vm12, %v8196_v59, %v8197_v39  ;;  %11022 = vmatmul.mubr.bf16.gmra.mxu1 %v13793_v29  ;;  %v12707_v27 = vpop.f32.mrf.mxu1 }
 0x537   : > { %v8698_v35 = vrot.slane %v18709_v41, 5  ;;  %v13802_v14 = vld [vmem:[#allocation5 + $0x29c] ss:$36 sps:$4 sm:$0xff]   ;;  %8009 = vst [vmem:[#allocation5 + $0x328] sm:$0xf] %v7848_v44  ;;  %v8712_v62 = vshll.u32 %v8394_v11, 16  ;;  %11191 = vmatmul.mubr.bf16.gmra.mxu0 %v13796_v38  ;;  %v17711_v38 = vadd.f32 %v17674_v23, %v17571_v22 }
 0x538   : > { %v13876_v31 = vld [vmem:[#allocation4 + $0xac] sm:$0xf]  ;;  %v13805_v34 = vld [vmem:[#allocation5 + $0x2ec] ss:$36 sps:$4 sm:$0xff]   ;;  %v7858_v45 = vsel %vm14676_vm9, %v7853_v26, %v7857_v1  ;;  %8282 = vst [vmem:[#allocation5 + $0x350] sm:$0xf] %v8198_v5  ;;  %11029 = vmatprep.mubr.bf16.mxu1 %v13802_v14  ;;  %v12708_v1 = vadd.f32 %v12707_v27, %v12706_v63 }
 0x539   : > { %v8702_v40 = vshll.u32 %v13876_v31, 16  ;;  %v8699_v37 = vor.u32 %v8698_v35, %v8695_v6  ;;  %v7561_v25 = vld [vmem:[#allocation4 + $0xa4] sm:$0x1]  ;;  %8010 = vst [vmem:[#allocation5 + $0x34c] sm:$0xf] %v7858_v45  ;;  %v18710_v59 = vshrl.u32 %v17144_v2, 16  ;;  %11198 = vmatprep.mubr.bf16.mxu0 %v13805_v34  ;;  %v17716_v45 = vadd.f32 %v12705_v36, %v17571_v22 }
 0x53a   : > { %v18711_v10 = vshll.u32 %v17144_v2, 16  ;;  %v7869_v55 = vshll.u32 %v7560_v20, 16  ;;  %v8318_v29 = vld [vmem:[#allocation4 + $0xb4] sm:$0xf]  ;;  %v17702_v44 = vrot.slane %v8754_v52, 4  ;;  %v7873_v6 = vshrl.u32 %v7560_v20, 16  ;;  %v12821_v20 = vpop.f32.mrf.mxu0 }
 0x53b   : > { %v8704_v57 = vrot.slane %v8702_v40, 5  ;;  %v7862_v39 = vrot.slane %v18710_v59, 4  ;;  %v8700_v26 = vrot.slane %v8699_v37, 4  ;;  %v8319_v11 = vld [vmem:[#allocation4 + $0xb8] sm:$0xf]  ;;  %v7879_v5 = vshll.u32 %v7561_v25, 16 }
 0x53c   : > { %v7865_v15 = vrot.slane %v18711_v10, 5  ;;  %8350 = vst [vmem:[#allocation5 + $0x3c0] sm:$0xf] %v8318_v29  ;;  %v7871_v14 = vrot.slane %v7869_v55, 5  ;;  %v8055_v31 = vld [vmem:[#allocation4 + $0x9c] sm:$0xe]  ;;  %v17707_v52 = vadd.f32 %v17661_v48, %v17571_v22  ;;  %v17719_v37 = vadd.f32 %v12708_v1, %v17571_v22 }
 0x53d   : > { %v8709_v41 = vor.u32 %v17318_v49, %v8704_v57  ;;  %v8056_v40 = vld [vmem:[#allocation4 + $0xa0] sm:$0xf]  ;;  %8351 = vst [vmem:[#allocation5 + $0x3e4] sm:$0xf] %v8319_v11  ;;  %v13800_v2 = vld [vmem:[#allocation5 + $0x298] ss:$36 sps:$4 sm:$0xff]   ;;  %v8705_v63 = vsel %vm14676_vm9, %v8700_v26, %v8704_v57 }
 0x53e   : > { %v7866_v35 = vor.u32 %v7865_v15, %v7862_v39  ;;  %v7875_v49 = vrot.slane %v7873_v6, 4  ;;  %v13808_v34 = vld [vmem:[#allocation5 + $0x2e4] ss:$36 sps:$4 sm:$0xff]   ;;  %v8714_v27 = vrot.slane %v8712_v62, 5  ;;  %8844 = vst [vmem:[#allocation5 + $0x37c] sm:$0xf] %v8705_v63  ;;  %v12822_v39 = vpop.f32.mrf.mxu0  ;;  %11030 = vmatmul.mubr.bf16.gmra.mxu1 %v13800_v2 }
 0x53f   : > { %v8710_v25 = vrot.slane %v8709_v41, 4  ;;  %v8057_v48 = vld [vmem:[#allocation4 + $0xa4] sm:$0x1]  ;;  %v11895_v15 = vrot.slane %v8055_v31, 9  ;;  %v8201_v55 = vrot.slane %v8056_v40, 5  ;;  %v17723_v26 = vadd.f32 %v12822_v39, %v12821_v20  ;;  %11037 = vmatprep.mubr.bf16.mxu1 %v13808_v34 }
 0x540   : > { %v13803_v59 = vld [vmem:[#allocation5 + $0x2e8] ss:$36 sps:$4 sm:$0xff]   ;;  %v7867_v23 = vrot.slane %v7866_v35, 4  ;;  %v7876_v10 = vor.u32 %v7875_v49, %v7871_v14  ;;  %v8396_v29 = vld [vmem:[#allocation4 + $0xb8] sm:$0xf]  ;;  %v7881_v36 = vrot.slane %v7879_v5, 5  ;;  %v12824_v63 = vpop.f32.mrf.mxu0 }
 0x541   : > { %v8715_v57 = vsel %vm14676_vm9, %v8710_v25, %v8714_v27  ;;  %v8397_v6 = vld [vmem:[#allocation4 + $0xbc] sm:$0x1]  ;;  %v8719_v1 = vrot.slane %v8717_v18, 4  ;;  %v8320_v62 = vld [vmem:[#allocation4 + $0xc0] sm:$0xf]  ;;  %v8202_v31 = vsel %vm14682_vm12, %v11895_v15, %v8201_v55  ;;  %v8204_v40 = vrot.slane %v8057_v48, 5  ;;  %11199 = vmatmul.mubr.bf16.gmra.mxu0 %v13803_v59 }
 0x542   : > { %v13811_v11 = vld [vmem:[#allocation5 + $0x334] ss:$36 sps:$4 sm:$0xff]   ;;  %8845 = vst [vmem:[#allocation5 + $0x3a0] sm:$0xf] %v8715_v57  ;;  %v7872_v41 = vsel %vm14676_vm9, %v7867_v23, %v7871_v14  ;;  %v7877_v35 = vrot.slane %v7876_v10, 4  ;;  %v8203_v5 = vrot.slane %v8201_v55, 4  ;;  %v12825_v39 = vpop.f32.mrf.mxu0 }
 0x543   : > { %v7564_v20 = vld [vmem:[#allocation4 + $0xb0] sm:$0x1]  ;;  %v8058_v49 = vld [vmem:[#allocation4 + $0xa8] sm:$0xe]  ;;  %8352 = vst [vmem:[#allocation5 + $0x408] sm:$0xf] %v8320_v62  ;;  %11206 = vmatprep.mubr.bf16.mxu0 %v13811_v11 }
 0x544   : > { %8011 = vst [vmem:[#allocation5 + $0x370] sm:$0xf] %v7872_v41  ;;  %8283 = vst [vmem:[#allocation5 + $0x374] sm:$0xf] %v8202_v31  ;;  %v8722_v18 = vrot.slane %v8720_v16, 5  ;;  %v8726_v2 = vshll.u32 %v8396_v29, 16  ;;  %v7882_v14 = vsel %vm14676_vm9, %v7877_v35, %v7881_v36  ;;  %v8205_v42 = vsel %vm14682_vm12, %v8203_v5, %v8204_v40 }
 0x545   : > { %v8730_v25 = vshrl.u32 %v8396_v29, 16  ;;  %v8321_v27 = vld [vmem:[#allocation4 + $0xc4] sm:$0xf]  ;;  %v8736_v48 = vshll.u32 %v8397_v6, 16  ;;  %v18712_v23 = vld [vmem:[#allocation46_spill] sm:$0xff]  ;;  %v17741_v16 = vadd.f32 %v12825_v39, %v12824_v63  ;;  %v17749_v39 = vadd.f32 %v17607_v50, %v17707_v52 }
 0x546   : > { %v18713_v10 = vshrl.u32 %v18712_v23, 16  ;;  %v18714_v34 = vshll.u32 %v18712_v23, 16  ;;  %v8059_v55 = vld [vmem:[#allocation4 + $0xac] sm:$0xf]  ;;  %8353 = vst [vmem:[#allocation5 + $0x42c] sm:$0xf] %v8321_v27  ;;  %v8723_v59 = vor.u32 %v8722_v18, %v8719_v1 }
 0x547   : > { %8012 = vst [vmem:[#allocation5 + $0x394] sm:$0xf] %v7882_v14  ;;  %v8728_v29 = vrot.slane %v8726_v2, 5  ;;  %v8060_v36 = vld [vmem:[#allocation4 + $0xb0] sm:$0x1]  ;;  %v8732_v6 = vrot.slane %v8730_v25, 4 }
 0x548   : > { %v7886_v15 = vrot.slane %v18713_v10, 4  ;;  %v7889_v57 = vrot.slane %v18714_v34, 5  ;;  %8284 = vst [vmem:[#allocation5 + $0x398] sm:$0xf] %v8205_v42  ;;  %v8738_v62 = vrot.slane %v8736_v48, 5  ;;  %v8724_v10 = vrot.slane %v8723_v59, 4 }
 0x549   : > { %v13877_v35 = vld [vmem:[#allocation4 + $0xac] sm:$0xf]  ;;  %v13806_v23 = vld [vmem:[#allocation5 + $0x2e0] ss:$36 sps:$4 sm:$0xff]   ;;  %v7903_v34 = vshll.u32 %v7564_v20, 16  ;;  %v11896_v27 = vrot.slane %v8058_v49, 9  ;;  %v8733_v14 = vor.u32 %v8732_v6, %v8728_v29  ;;  %v17767_v6 = vadd.f32 %v17628_v33, %v17711_v38 }
 0x54a   : > { %v7890_v41 = vor.u32 %v7889_v57, %v7886_v15  ;;  %v7893_v31 = vshll.u32 %v13877_v35, 16  ;;  %v8208_v11 = vrot.slane %v8059_v55, 5  ;;  %v8211_v40 = vrot.slane %v8060_v36, 5  ;;  %v8400_v63 = vld [vmem:[#allocation4 + $0xc8] sm:$0x1]  ;;  %11038 = vmatmul.mubr.bf16.gmra.mxu1 %v13806_v23 }
 0x54b   : > { %v13809_v5 = vld [vmem:[#allocation5 + $0x330] ss:$36 sps:$4 sm:$0xff]   ;;  %v8729_v18 = vsel %vm14676_vm9, %v8724_v10, %v8728_v29  ;;  %v7905_v2 = vrot.slane %v7903_v34, 5  ;;  %v8734_v20 = vrot.slane %v8733_v14, 4  ;;  %v7566_v57 = vld [vmem:[#allocation4 + $0xb8] sm:$0xf] }
 0x54c   : > { %v7891_v28 = vrot.slane %v7890_v41, 4  ;;  %v7895_v56 = vrot.slane %v7893_v31, 5  ;;  %v13815_v1 = vld [vmem:[#allocation5 + $0x32c] ss:$36 sps:$4 sm:$0xff]   ;;  %v8209_v25 = vsel %vm14682_vm12, %v11896_v27, %v8208_v11  ;;  %8846 = vst [vmem:[#allocation5 + $0x3c4] sm:$0xf] %v8729_v18  ;;  %11207 = vmatmul.mubr.bf16.gmra.mxu0 %v13809_v5  ;;  %v12709_v27 = vpop.f32.mrf.mxu1 }
 0x54d   : > { %v8210_v15 = vrot.slane %v8208_v11, 4  ;;  %8285 = vst [vmem:[#allocation5 + $0x3bc] sm:$0xf] %v8209_v25  ;;  %11045 = vmatprep.mubr.bf16.mxu1 %v13815_v1  ;;  %v13818_v55 = vld [vmem:[#allocation5 + $0x37c] ss:$36 sps:$4 sm:$0xff]   ;;  %v8743_v42 = vrot.slane %v8741_v9, 4 }
 0x54e   : > { %v7896_v49 = vsel %vm14676_vm9, %v7891_v28, %v7895_v56  ;;  %v7900_v48 = vor.u32 %v17248_v12, %v7895_v56  ;;  %v8746_v50 = vrot.slane %v8744_v4, 5  ;;  %v8750_v52 = vshll.u32 %v17665_v43, 16  ;;  %v7567_v29 = vld [vmem:[#allocation4 + $0xbc] sm:$0x1]  ;;  %11214 = vmatprep.mubr.bf16.mxu0 %v13818_v55  ;;  %v8061_v4 = vld [vmem:[#allocation4 + $0xb4] sm:$0xe] }
 0x54f   : > { %8013 = vst [vmem:[#allocation5 + $0x3b8] sm:$0xf] %v7896_v49  ;;  %v8760_v59 = vshll.u32 %v8400_v63, 16  ;;  %v8739_v28 = vsel %vm14676_vm9, %v8734_v20, %v8738_v62  ;;  %v8212_v56 = vsel %vm14682_vm12, %v8210_v15, %v8211_v40  ;;  %v7910_v36 = vrot.slane %v7908_v8, 4  ;;  %v8062_v43 = vld [vmem:[#allocation4 + $0xb8] sm:$0xf] }
 0x550   : > { %v7901_v12 = vrot.slane %v7900_v48, 4  ;;  %8847 = vst [vmem:[#allocation5 + $0x3e8] sm:$0xf] %v8739_v28  ;;  %8286 = vst [vmem:[#allocation5 + $0x3e0] sm:$0xf] %v8212_v56  ;;  %v8747_v58 = vor.u32 %v8746_v50, %v8743_v42  ;;  %v8752_v9 = vrot.slane %v8750_v52, 5  ;;  %v17771_v62 = vadd.f32 %v17663_v3, %v17716_v45 }
 0x551   : > { %v13813_v41 = vld [vmem:[#allocation5 + $0x328] ss:$36 sps:$4 sm:$0xff]   ;;  %v8762_v8 = vrot.slane %v8760_v59, 5  ;;  %v7913_v31 = vrot.slane %v7911_v54, 5  ;;  %v7917_v23 = vshll.u32 %v7566_v57, 16  ;;  %v7921_v38 = vshrl.u32 %v7566_v57, 16  ;;  %v12710_v54 = vpop.f32.mrf.mxu1 }
 0x552   : > { %v7906_v35 = vsel %vm14676_vm9, %v7901_v12, %v7905_v2  ;;  %v8063_v10 = vld [vmem:[#allocation4 + $0xbc] sm:$0x1]  ;;  %v8322_v34 = vld [vmem:[#allocation4 + $0xcc] sm:$0xf]  ;;  %v8748_v11 = vrot.slane %v8747_v58, 4  ;;  %v8757_v33 = vor.u32 %v17702_v44, %v8752_v9  ;;  %v7927_v14 = vshll.u32 %v7567_v29, 16  ;;  %11046 = vmatmul.mubr.bf16.gmra.mxu1 %v13813_v41  ;;  %v12827_v29 = vpop.f32.mrf.mxu0 }
 0x553   : > { %8014 = vst [vmem:[#allocation5 + $0x3dc] sm:$0xf] %v7906_v35  ;;  %v8323_v3 = vld [vmem:[#allocation4 + $0xd0] sm:$0xf]  ;;  %8354 = vst [vmem:[#allocation5 + $0x450] sm:$0xf] %v8322_v34  ;;  %v7914_v40 = vor.u32 %v7913_v31, %v7910_v36  ;;  %v12711_v44 = vadd.f32 %v12710_v54, %v12709_v27  ;;  %v12712_v55 = vpop.f32.mrf.mxu1  ;;  %v17793_v41 = vadd.f32 %v17680_v0, %v17719_v37 }
 0x554   : > { %v13816_v45 = vld [vmem:[#allocation5 + $0x378] ss:$36 sps:$4 sm:$0xff]   ;;  %v7919_v63 = vrot.slane %v7917_v23, 5  ;;  %v11897_v5 = vrot.slane %v8061_v4, 9  ;;  %v8215_v1 = vrot.slane %v8062_v43, 5  ;;  %v8753_v18 = vsel %vm14676_vm9, %v8748_v11, %v8752_v9 }
 0x555   : > { %8355 = vst [vmem:[#allocation5 + $0x474] sm:$0xf] %v8323_v3  ;;  %v13821_v47 = vld [vmem:[#allocation5 + $0x374] ss:$36 sps:$4 sm:$0xff]   ;;  %v8758_v2 = vrot.slane %v8757_v33, 4  ;;  %v7923_v25 = vrot.slane %v7921_v38, 4  ;;  %v10662_v56 = vadd.f32 %v12711_v44, %v17571_v22  ;;  %11215 = vmatmul.mubr.bf16.gmra.mxu0 %v13816_v45  ;;  %v12713_v35 = vpop.f32.mrf.mxu1 }
 0x556   : > { %v7929_v20 = vrot.slane %v7927_v14, 5  ;;  %8848 = vst [vmem:[#allocation5 + $0x40c] sm:$0xf] %v8753_v18  ;;  %v7915_v49 = vrot.slane %v7914_v40, 4  ;;  %v8216_v48 = vsel %vm14682_vm12, %v11897_v5, %v8215_v1  ;;  %v8217_v15 = vrot.slane %v8215_v1, 4  ;;  %11053 = vmatprep.mubr.bf16.mxu1 %v13821_v47 }
 0x557   : > { %v7570_v57 = vld [vmem:[#allocation4 + $0xc8] sm:$0x1]  ;;  %v8763_v42 = vsel %vm14676_vm9, %v8758_v2, %v8762_v8  ;;  %v7924_v50 = vor.u32 %v7923_v25, %v7919_v63  ;;  %v8218_v52 = vrot.slane %v8063_v10, 5  ;;  %8287 = vst [vmem:[#allocation5 + $0x404] sm:$0xf] %v8216_v48  ;;  %v18715_v59 = vshrl.u32 %v17323_v21, 16 }
 0x558   : > { %v8064_v12 = vld [vmem:[#allocation4 + $0xc0] sm:$0xe]  ;;  %8849 = vst [vmem:[#allocation5 + $0x430] sm:$0xf] %v8763_v42  ;;  %v7920_v58 = vsel %vm14676_vm9, %v7915_v49, %v7919_v63  ;;  %v18716_v9 = vshll.u32 %v17323_v21, 16  ;;  %v7941_v23 = vshll.u32 %v17649_v24, 16  ;;  %v12714_v11 = vadd.f32 %v12713_v35, %v12712_v55  ;;  %v12828_v21 = vpop.f32.mrf.mxu0 }
 0x559   : > { %v7934_v28 = vrot.slane %v18715_v59, 4  ;;  %v13824_v36 = vld [vmem:[#allocation5 + $0x3c4] ss:$36 sps:$4 sm:$0xff]   ;;  %v8065_v43 = vld [vmem:[#allocation4 + $0xc4] sm:$0xf]  ;;  %v7925_v8 = vrot.slane %v7924_v50, 4  ;;  %v8219_v31 = vsel %vm14682_vm12, %v8217_v15, %v8218_v52  ;;  %v17799_v37 = vadd.f32 %v17723_v26, %v10662_v56 }
 0x55a   : > { %v7937_v4 = vrot.slane %v18716_v9, 5  ;;  %8015 = vst [vmem:[#allocation5 + $0x400] sm:$0xf] %v7920_v58  ;;  %v7951_v10 = vshll.u32 %v7570_v57, 16  ;;  %v8066_v34 = vld [vmem:[#allocation4 + $0xc8] sm:$0x1]  ;;  %11222 = vmatprep.mubr.bf16.mxu0 %v13824_v36  ;;  %v17801_v3 = vadd.f32 %v12828_v21, %v12827_v29  ;;  %v10665_v63 = vadd.f32 %v12714_v11, %v17571_v22  ;;  %v12830_v5 = vpop.f32.mrf.mxu0  ;;  %v12715_v57 = vpop.f32.mrf.mxu1 }
 0x55b   : > { %v13819_v27 = vld [vmem:[#allocation5 + $0x370] ss:$36 sps:$4 sm:$0xff]   ;;  %8288 = vst [vmem:[#allocation5 + $0x428] sm:$0xf] %v8219_v31  ;;  %v11898_v38 = vrot.slane %v8064_v12, 9  ;;  %v7930_v45 = vsel %vm14676_vm9, %v7925_v8, %v7929_v20  ;;  %v7943_v24 = vrot.slane %v7941_v23, 5 }
 0x55c   : > { %v7938_v33 = vor.u32 %v7937_v4, %v7934_v28  ;;  %v8401_v14 = vld [vmem:[#allocation4 + $0xcc] sm:$0xf]  ;;  %v8402_v0 = vld [vmem:[#allocation4 + $0xd0] sm:$0xf]  ;;  %v7953_v40 = vrot.slane %v7951_v10, 5  ;;  %v8222_v47 = vrot.slane %v8065_v43, 5  ;;  %11054 = vmatmul.mubr.bf16.gmra.mxu1 %v13819_v27  ;;  %v12831_v55 = vpop.f32.mrf.mxu0  ;;  %v17814_v29 = vadd.f32 %v17741_v16, %v10665_v63  ;;  %v12716_v36 = vpop.f32.mrf.mxu1 }
 0x55d   : > { %8016 = vst [vmem:[#allocation5 + $0x424] sm:$0xf] %v7930_v45  ;;  %v8225_v54 = vrot.slane %v8066_v34, 5  ;;  %v8403_v18 = vld [vmem:[#allocation4 + $0xd4] sm:$0x1]  ;;  %v7948_v25 = vor.u32 %v17694_v19, %v7943_v24  ;;  %v8765_v26 = vshrl.u32 %v8401_v14, 16  ;;  %v17811_v19 = vadd.f32 %v12831_v55, %v12830_v5 }
 0x55e   : > { %v7939_v1 = vrot.slane %v7938_v33, 4  ;;  %v13828_v2 = vld [vmem:[#allocation5 + $0x3bc] ss:$36 sps:$4 sm:$0xff]   ;;  %v8768_v44 = vshll.u32 %v8401_v14, 16  ;;  %v8774_v49 = vshll.u32 %v8402_v0, 16  ;;  %v8223_v42 = vsel %vm14682_vm12, %v11898_v38, %v8222_v47  ;;  %v12833_v58 = vpop.f32.mrf.mxu0  ;;  %v12718_v11 = vpop.f32.mrf.mxu1 }
 0x55f   : > { %v8852_v48 = vld [vmem:[#allocation4 + $0x18] sm:$0xe]  ;;  %v8853_v15 = vld [vmem:[#allocation4 + $0x1c] sm:$0xf]  ;;  %v8224_v50 = vrot.slane %v8222_v47, 4  ;;  %v8778_v52 = vshrl.u32 %v8402_v0, 16  ;;  %11061 = vmatprep.mubr.bf16.mxu1 %v13828_v2  ;;  %v12717_v8 = vadd.f32 %v12716_v36, %v12715_v57 }
 0x560   : > { %v13822_v20 = vld [vmem:[#allocation5 + $0x3c0] ss:$36 sps:$4 sm:$0xff]   ;;  %v7944_v22 = vsel %vm14676_vm9, %v7939_v1, %v7943_v24  ;;  %v8854_v59 = vld [vmem:[#allocation4 + $0x20] sm:$0x1]  ;;  %v13831_v28 = vld [vmem:[#allocation5 + $0x40c] ss:$36 sps:$4 sm:$0xff]   ;;  %v12834_v21 = vpop.f32.mrf.mxu0 }
 0x561   : > { %v7949_v12 = vrot.slane %v7948_v25, 4  ;;  %8017 = vst [vmem:[#allocation5 + $0x448] sm:$0xf] %v7944_v22  ;;  %8289 = vst [vmem:[#allocation5 + $0x44c] sm:$0xf] %v8223_v42  ;;  %11223 = vmatmul.mubr.bf16.gmra.mxu0 %v13822_v20  ;;  %v8226_v9 = vsel %vm14682_vm12, %v8224_v50, %v8225_v54  ;;  %v8767_v4 = vrot.slane %v8765_v26, 4  ;;  %v17828_v63 = vadd.f32 %v12834_v21, %v12833_v58 }
 0x562   : > { %v8858_v56 = vld [vmem:[#allocation4 + $0x30] sm:$0xe]  ;;  %v8770_v43 = vrot.slane %v8768_v44, 5  ;;  %v8776_v35 = vrot.slane %v8774_v49, 5  ;;  %11230 = vmatprep.mubr.bf16.mxu0 %v13831_v28  ;;  %8290 = vst [vmem:[#allocation5 + $0x470] sm:$0xf] %v8226_v9  ;;  %v12836_v2 = vpop.f32.mrf.mxu0 }
 0x563   : > { %v7954_v31 = vsel %vm14676_vm9, %v7949_v12, %v7953_v40  ;;  %v8780_v23 = vrot.slane %v8778_v52, 4  ;;  %v8784_v10 = vshll.u32 %v8403_v18, 16  ;;  %v8859_v34 = vld [vmem:[#allocation4 + $0x34] sm:$0xf]  ;;  %v17820_v16 = vld [vmem:[#allocation4 + $0x38] sm:$0x1]  ;;  %v12719_v18 = vpop.f32.mrf.mxu1 }
 0x564   : > { %v13826_v27 = vld [vmem:[#allocation5 + $0x3b8] ss:$36 sps:$4 sm:$0xff]   ;;  %8018 = vst [vmem:[#allocation5 + $0x46c] sm:$0xf] %v7954_v31  ;;  %v8771_v33 = vor.u32 %v8770_v43, %v8767_v4  ;;  %v11899_v38 = vrot.slane %v8852_v48, 9  ;;  %v8950_v14 = vrot.slane %v8853_v15, 5  ;;  %v12720_v48 = vadd.f32 %v12719_v18, %v12718_v11  ;;  %v12837_v50 = vpop.f32.mrf.mxu0 }
 0x565   : > { %v8953_v0 = vrot.slane %v8854_v59, 5  ;;  %v8864_v45 = vld [vmem:[#allocation4 + $0x48] sm:$0xe]  ;;  %v17825_v24 = vld [vmem:[%s18383_s4] ss:$0 sm:$0xff]  ;;  %v8781_v5 = vor.u32 %v8780_v23, %v8776_v35  ;;  %v8786_v1 = vrot.slane %v8784_v10, 5  ;;  %v12721_v22 = vpop.f32.mrf.mxu1  ;;  %11062 = vmatmul.mubr.bf16.gmra.mxu1 %v13826_v27  ;;  %v17842_v58 = vadd.f32 %v12837_v50, %v12836_v2 }
 0x566   : > { %v10670_v40 = vadd.f32 %v17825_v24, %v12717_v8  ;;  %v8865_v47 = vld [vmem:[#allocation4 + $0x4c] sm:$0xf]  ;;  %v17830_v54 = vld [vmem:[#allocation4 + $0x50] sm:$0x1]  ;;  %v8772_v25 = vrot.slane %v8771_v33, 4  ;;  %v8951_v26 = vsel %vm14682_vm12, %v11899_v38, %v8950_v14  ;;  %v8952_v44 = vrot.slane %v8950_v14, 4  ;;  %v12839_v8 = vpop.f32.mrf.mxu0 }
 0x567   : > { %v11901_v49 = vrot.slane %v8858_v56, 9  ;;  %v13834_v15 = vld [vmem:[#allocation5 + $0x404] ss:$36 sps:$4 sm:$0xff]   ;;  %v8782_v57 = vrot.slane %v8781_v5, 4  ;;  %9092 = vst [vmem:[#allocation5 + $0x20] sm:$0xf] %v8951_v26  ;;  %v10673_v36 = vadd.f32 %v17825_v24, %v12720_v48 }
 0x568   : > { %v8964_v20 = vrot.slane %v8859_v34, 5  ;;  %v8967_v55 = vrot.slane %v17820_v16, 5  ;;  %v13829_v42 = vld [vmem:[#allocation5 + $0x408] ss:$36 sps:$4 sm:$0xff]   ;;  %v8777_v52 = vsel %vm14676_vm9, %v8772_v25, %v8776_v35  ;;  %v8954_v59 = vsel %vm14682_vm12, %v8952_v44, %v8953_v0  ;;  %11069 = vmatprep.mubr.bf16.mxu1 %v13834_v15  ;;  %v12722_v35 = vpop.f32.mrf.mxu1  ;;  %v18718_v31 = vld [vmem:[#allocation31_spill] sm:$0xff]  ;;  %v12840_v5 = vpop.f32.mrf.mxu0 }
 0x569   : > { %v18717_v28 = vrot.slane %v18652_v46, 5  ;;  %v11903_v56 = vrot.slane %v8864_v45, 9  ;;  %v8787_v9 = vsel %vm14676_vm9, %v8782_v57, %v8786_v1  ;;  %8850 = vst [vmem:[#allocation5 + $0x454] sm:$0xf] %v8777_v52  ;;  %9093 = vst [vmem:[#allocation5 + $0x44] sm:$0xf] %v8954_v59  ;;  %11231 = vmatmul.mubr.bf16.gmra.mxu0 %v13829_v42  ;;  %v12723_v27 = vadd.f32 %v12722_v35, %v12721_v22 }
 0x56a   : > { %v8965_v4 = vsel %vm14682_vm12, %v11901_v49, %v8964_v20  ;;  %v8870_v43 = vld [vmem:[#allocation4 + $0x60] sm:$0xe]  ;;  %8851 = vst [vmem:[#allocation5 + $0x478] sm:$0xf] %v8787_v9  ;;  %v8966_v46 = vrot.slane %v8964_v20, 4  ;;  %v18719_v23 = vrot.slane %v18718_v31, 5  ;;  %v17856_v14 = vadd.f32 %v17801_v3, %v10670_v40  ;;  %v12724_v45 = vpop.f32.mrf.mxu1  ;;  %v12842_v15 = vpop.f32.mrf.mxu0 }
 0x56b   : > { %v8973_v12 = vrot.slane %v18717_v28, 4  ;;  %9096 = vst [vmem:[#allocation5 + $0xb0] sm:$0xf] %v8965_v4  ;;  %v8978_v34 = vrot.slane %v8865_v47, 5  ;;  %v8981_v51 = vrot.slane %v17830_v54, 5  ;;  %v18720_v11 = vrot.slane %v16889_v61, 5 }
 0x56c   : > { %v8871_v16 = vld [vmem:[#allocation4 + $0x64] sm:$0xf]  ;;  %v8872_v33 = vld [vmem:[#allocation4 + $0x68] sm:$0x1]  ;;  %v8876_v38 = vld [vmem:[#allocation4 + $0x78] sm:$0xe]  ;;  %v17859_v0 = vadd.f32 %v17811_v19, %v10673_v36  ;;  %v8968_v1 = vsel %vm14682_vm12, %v8966_v46, %v8967_v55  ;;  %v10678_v3 = vadd.f32 %v17825_v24, %v12723_v27  ;;  %v17868_v40 = vadd.f32 %v12840_v5, %v12839_v8  ;;  %v12725_v48 = vpop.f32.mrf.mxu1  ;;  %v12843_v9 = vpop.f32.mrf.mxu0 }
 0x56d   : > { %v8975_v10 = vsel %vm14682_vm12, %v8973_v12, %v18719_v23  ;;  %v8987_v21 = vrot.slane %v18720_v11, 4  ;;  %v8979_v47 = vsel %vm14682_vm12, %v11903_v56, %v8978_v34  ;;  %v8980_v54 = vrot.slane %v8978_v34, 4  ;;  %v8877_v61 = vld [vmem:[#allocation4 + $0x7c] sm:$0xf]  ;;  %v17865_v2 = vld [vmem:[#allocation4 + $0xa4] sm:$0x1] }
 0x56e   : > { %9099 = vst [vmem:[#allocation5 + $0x11c] sm:$0xf] %v8975_v10  ;;  %v11905_v18 = vrot.slane %v8870_v43, 9  ;;  %v13832_v25 = vld [vmem:[#allocation5 + $0x400] ss:$36 sps:$4 sm:$0xff]   ;;  %v18721_v19 = vld [vmem:[#allocation29_spill] sm:$0xff]  ;;  %v12726_v50 = vadd.f32 %v12725_v48, %v12724_v45  ;;  %v12727_v36 = vpop.f32.mrf.mxu1  ;;  %v17886_v8 = vadd.f32 %v17828_v63, %v10678_v3  ;;  %v17889_v31 = vadd.f32 %v12843_v9, %v12842_v15  ;;  %v12845_v27 = vpop.f32.mrf.mxu0 }
 0x56f   : > { %9097 = vst [vmem:[#allocation5 + $0xd4] sm:$0xf] %v8968_v1  ;;  %9100 = vst [vmem:[#allocation5 + $0x140] sm:$0xf] %v8979_v47  ;;  %v18722_v26 = vrot.slane %v18721_v19, 5  ;;  %v8992_v49 = vrot.slane %v8871_v16, 5  ;;  %v8982_v57 = vsel %vm14682_vm12, %v8980_v54, %v8981_v51  ;;  %11070 = vmatmul.mubr.bf16.gmra.mxu1 %v13832_v25 }
 0x570   : > { %v8995_v20 = vrot.slane %v8872_v33, 5  ;;  %v18723_v55 = vrot.slane %v17015_v30, 5  ;;  %v11907_v42 = vrot.slane %v8876_v38, 9  ;;  %v13838_v52 = vld [vmem:[#allocation5 + $0x44c] ss:$36 sps:$4 sm:$0xff]   ;;  %v9006_v12 = vrot.slane %v8877_v61, 5  ;;  %v12728_v16 = vpop.f32.mrf.mxu1  ;;  %v12846_v54 = vpop.f32.mrf.mxu0 }
 0x571   : > { %v8989_v44 = vsel %vm14682_vm12, %v8987_v21, %v18722_v26  ;;  %9101 = vst [vmem:[#allocation5 + $0x164] sm:$0xf] %v8982_v57  ;;  %v8993_v59 = vsel %vm14682_vm12, %v11905_v18, %v8992_v49  ;;  %v8994_v28 = vrot.slane %v8992_v49, 4  ;;  %v9030_v56 = vrot.slane %v17865_v2, 5  ;;  %v18724_v4 = vld [vmem:[#allocation38_spill] sm:$0xff]  ;;  %11077 = vmatprep.mubr.bf16.mxu1 %v13838_v52  ;;  %v18727_v26 = vld [vmem:[#allocation12_spill] sm:$0xff] }
 0x572   : > { %9103 = vst [vmem:[#allocation5 + $0x1ac] sm:$0xf] %v8989_v44  ;;  %v9001_v22 = vrot.slane %v18723_v55, 4  ;;  %9104 = vst [vmem:[#allocation5 + $0x1d0] sm:$0xf] %v8993_v59  ;;  %v18725_v43 = vrot.slane %v18724_v4, 5  ;;  %v10681_v46 = vadd.f32 %v17825_v24, %v12726_v50  ;;  %v9007_v51 = vsel %vm14682_vm12, %v11907_v42, %v9006_v12  ;;  %v12730_v47 = vpop.f32.mrf.mxu1  ;;  %v12848_v55 = vpop.f32.mrf.mxu0 }
 0x573   : > { %v8878_v35 = vld [vmem:[#allocation4 + $0x80] sm:$0x1]  ;;  %v13839_v23 = vld [vmem:[#allocation5 + $0x450] ss:$36 sps:$4 sm:$0xff]   ;;  %v8996_v34 = vsel %vm14682_vm12, %v8994_v28, %v8995_v20  ;;  %9108 = vst [vmem:[#allocation5 + $0x260] sm:$0xf] %v9007_v51  ;;  %v12729_v11 = vadd.f32 %v12728_v16, %v12727_v36  ;;  %v17901_v3 = vadd.f32 %v12846_v54, %v12845_v27 }
 0x574   : > { %v9003_v30 = vsel %vm14682_vm12, %v9001_v22, %v18725_v43  ;;  %v13841_v10 = vld [vmem:[#allocation5 + $0x454] ss:$36 sps:$4 sm:$0xff]   ;;  %9105 = vst [vmem:[#allocation5 + $0x1f4] sm:$0xf] %v8996_v34  ;;  %v9008_v21 = vrot.slane %v9006_v12, 4  ;;  %v9009_v33 = vrot.slane %v8878_v35, 5  ;;  %v17898_v61 = vadd.f32 %v17842_v58, %v10681_v46  ;;  %v12731_v57 = vpop.f32.mrf.mxu1  ;;  %v12849_v9 = vpop.f32.mrf.mxu0 }
 0x575   : > { %9107 = vst [vmem:[#allocation5 + $0x23c] sm:$0xf] %v9003_v30  ;;  %v8882_v63 = vld [vmem:[#allocation4 + $0x90] sm:$0xe]  ;;  %11238 = vmatprep.mubr.bf16.mxu0 %v13841_v10  ;;  %v18726_v38 = vrot.slane %v17078_v7, 5  ;;  %v10686_v25 = vadd.f32 %v17825_v24, %v12729_v11  ;;  %v18728_v44 = vrot.slane %v18727_v26, 5  ;;  %v12732_v42 = vadd.f32 %v12731_v57, %v12730_v47 }
 0x576   : > { %v8883_v5 = vld [vmem:[#allocation4 + $0x94] sm:$0xf]  ;;  %v13836_v1 = vld [vmem:[#allocation5 + $0x448] ss:$36 sps:$4 sm:$0xff]   ;;  %11239 = vmatmul.mubr.bf16.gmra.mxu0 %v13839_v23  ;;  %v8884_v18 = vld [vmem:[#allocation4 + $0x98] sm:$0x1]  ;;  %v9010_v19 = vsel %vm14682_vm12, %v9008_v21, %v9009_v33  ;;  %v12733_v36 = vpop.f32.mrf.mxu1  ;;  %v12850_v23 = vadd.f32 %v12849_v9, %v12848_v55  ;;  %v12851_v10 = vpop.f32.mrf.mxu0 }
 0x577   : > { %v9015_v45 = vrot.slane %v18726_v38, 4  ;;  %v8888_v49 = vld [vmem:[#allocation4 + $0xa8] sm:$0xe]  ;;  %v8889_v48 = vld [vmem:[#allocation4 + $0xac] sm:$0xf]  ;;  %v11909_v58 = vrot.slane %v8882_v63, 9  ;;  %v17912_v12 = vadd.f32 %v17868_v40, %v10686_v25  ;;  %11078 = vmatmul.mubr.bf16.gmra.mxu1 %v13836_v1  ;;  %v10689_v46 = vadd.f32 %v17825_v24, %v12732_v42 }
 0x578   : > { %v8893_v15 = vld [vmem:[#allocation4 + $0xbc] sm:$0x1]  ;;  %9109 = vst [vmem:[#allocation5 + $0x284] sm:$0xf] %v9010_v19  ;;  %v9020_v22 = vrot.slane %v8883_v5, 5  ;;  %v9023_v50 = vrot.slane %v8884_v18, 5  ;;  %v12734_v40 = vpop.f32.mrf.mxu1  ;;  %v12852_v1 = vpop.f32.mrf.mxu0 }
 0x579   : > { %v9017_v7 = vsel %vm14682_vm12, %v9015_v45, %v18728_v44  ;;  %v13842_v20 = vld [vmem:[#allocation5 + $0x20] ss:$36 sps:$4 sm:$0xff]   ;;  %v18729_v52 = vrot.slane %v17300_v53, 5  ;;  %v8890_v28 = vld [vmem:[#allocation4 + $0xb0] sm:$0x1]  ;;  %v11911_v30 = vrot.slane %v8888_v49, 9  ;;  %v12735_v21 = vadd.f32 %v12734_v40, %v12733_v36 }
 0x57a   : > { %9111 = vst [vmem:[#allocation5 + $0x2cc] sm:$0xf] %v9017_v7  ;;  %v9021_v4 = vsel %vm14682_vm12, %v11909_v58, %v9020_v22  ;;  %v9022_v43 = vrot.slane %v9020_v22, 4  ;;  %v9034_v35 = vrot.slane %v8889_v48, 5  ;;  %13211 = vmatprep.mubr.bf16.mxu1 %v13842_v20  ;;  %v9037_v27 = vrot.slane %v8890_v28, 5  ;;  %v12736_v5 = vpop.f32.mrf.mxu1 }
 0x57b   : > { %v9029_v59 = vrot.slane %v18729_v52, 4  ;;  %9112 = vst [vmem:[#allocation5 + $0x2f0] sm:$0xf] %v9021_v4  ;;  %v8894_v63 = vld [vmem:[#allocation4 + $0xc0] sm:$0xe]  ;;  %v9044_v11 = vrot.slane %v8893_v15, 5  ;;  %v17928_v45 = vadd.f32 %v17889_v31, %v10689_v46  ;;  %v10694_v26 = vadd.f32 %v17825_v24, %v12735_v21  ;;  %v12854_v31 = vpop.f32.mrf.mxu0 }
 0x57c   : > { %v9024_v34 = vsel %vm14682_vm12, %v9022_v43, %v9023_v50  ;;  %v9035_v51 = vsel %vm14682_vm12, %v11911_v30, %v9034_v35  ;;  %v9036_v16 = vrot.slane %v9034_v35, 4  ;;  %v18730_v2 = vrot.slane %v17505_v60, 5  ;;  %v8896_v38 = vld [vmem:[#allocation4 + $0xc8] sm:$0x1]  ;;  %v8897_v25 = vld [vmem:[#allocation4 + $0xcc] sm:$0xe]  ;;  %v12737_v49 = vpop.f32.mrf.mxu1 }
 0x57d   : > { %v9031_v53 = vsel %vm14682_vm12, %v9029_v59, %v9030_v56  ;;  %9113 = vst [vmem:[#allocation5 + $0x314] sm:$0xf] %v9024_v34  ;;  %9116 = vst [vmem:[#allocation5 + $0x380] sm:$0xf] %v9035_v51  ;;  %v8895_v56 = vld [vmem:[#allocation4 + $0xc4] sm:$0xf]  ;;  %v12853_v7 = vadd.f32 %v12852_v1, %v12851_v10  ;;  %v12738_v58 = vadd.f32 %v12737_v49, %v12736_v5  ;;  %v12855_v28 = vpop.f32.mrf.mxu0 }
 0x57e   : > { %9115 = vst [vmem:[#allocation5 + $0x35c] sm:$0xf] %v9031_v53  ;;  %v9043_v33 = vrot.slane %v18730_v2, 4  ;;  %v9038_v47 = vsel %vm14682_vm12, %v9036_v16, %v9037_v27  ;;  %v11913_v54 = vrot.slane %v8894_v63, 9  ;;  %v9048_v18 = vrot.slane %v8895_v56, 5  ;;  %v12739_v59 = vpop.f32.mrf.mxu1 }
 0x57f   : > { %v8898_v19 = vld [vmem:[#allocation4 + $0xd0] sm:$0xf]  ;;  %v13843_v44 = vld [vmem:[#allocation5 + $0x68] ss:$36 sps:$4 sm:$0xff]   ;;  %9117 = vst [vmem:[#allocation5 + $0x3a4] sm:$0xf] %v9038_v47  ;;  %v17938_v52 = vadd.f32 %v17901_v3, %v10694_v26  ;;  %v10697_v9 = vadd.f32 %v17825_v24, %v12738_v58  ;;  %v12856_v4 = vadd.f32 %v12855_v28, %v12854_v31  ;;  %v12857_v46 = vpop.f32.mrf.mxu0 }
 0x580   : > { %v9045_v60 = vsel %vm14682_vm12, %v9043_v33, %v9044_v11  ;;  %v9049_v48 = vsel %vm14682_vm12, %v11913_v54, %v9048_v18  ;;  %v9050_v15 = vrot.slane %v9048_v18, 4  ;;  %v9051_v57 = vrot.slane %v8896_v38, 5  ;;  %v8899_v20 = vld [vmem:[#allocation4 + $0xd4] sm:$0x1]  ;;  %v13844_v22 = vld [vmem:[#allocation5 + $0xb0] ss:$36 sps:$4 sm:$0xff]   ;;  %13212 = vmatmul.mubr.bf16.vlgmr.msra.gmra.mxu1 %v13843_v44  ;;  %v12740_v35 = vpop.f32.mrf.mxu1 }
 0x581   : > { %9119 = vst [vmem:[#allocation5 + $0x3ec] sm:$0xf] %v9045_v60  ;;  %v11914_v55 = vrot.slane %v8897_v25, 9  ;;  %9120 = vst [vmem:[#allocation5 + $0x410] sm:$0xf] %v9049_v48  ;;  %v9055_v42 = vrot.slane %v8898_v19, 5  ;;  %13215 = vmatprep.mubr.bf16.mxu1 %v13844_v22  ;;  %v12741_v3 = vadd.f32 %v12740_v35, %v12739_v59  ;;  %v17947_v40 = vadd.f32 %v12850_v23, %v10697_v9  ;;  %v12858_v34 = vpop.f32.mrf.mxu0 }
 0x582   : > { %v9058_v50 = vrot.slane %v8899_v20, 5  ;;  %v9052_v36 = vsel %vm14682_vm12, %v9050_v15, %v9051_v57  ;;  %v12742_v10 = vpop.f32.mrf.mxu1  ;;  %v12859_v16 = vadd.f32 %v12858_v34, %v12857_v46  ;;  %v13845_v63 = vld [vmem:[#allocation5 + $0xf8] ss:$36 sps:$4 sm:$0xff]   ;;  %v13846_v2 = vld [vmem:[#allocation5 + $0x140] ss:$36 sps:$4 sm:$0xff]  }
 0x583   : > { %9121 = vst [vmem:[#allocation5 + $0x434] sm:$0xf] %v9052_v36  ;;  %v9056_v43 = vsel %vm14682_vm12, %v11914_v55, %v9055_v42  ;;  %v9057_v30 = vrot.slane %v9055_v42, 4  ;;  %v10702_v51 = vadd.f32 %v17825_v24, %v12741_v3  ;;  %v12860_v11 = vpop.f32.mrf.mxu0  ;;  %v13848_v31 = vld [vmem:[#allocation5 + $0x1d0] ss:$36 sps:$4 sm:$0xff]  }
 0x584   : > { %9122 = vst [vmem:[#allocation5 + $0x458] sm:$0xf] %v9056_v43  ;;  %v12743_v27 = vpop.f32.mrf.mxu1  ;;  %v13849_v43 = vld [vmem:[#allocation5 + $0x218] ss:$36 sps:$4 sm:$0xff]   ;;  %v13850_v46 = vld [vmem:[#allocation5 + $0x260] ss:$36 sps:$4 sm:$0xff]  }
 0x585   : > { %v9059_v53 = vsel %vm14682_vm12, %v9057_v30, %v9058_v50  ;;  %v12744_v21 = vadd.f32 %v12743_v27, %v12742_v10  ;;  %v17950_v33 = vadd.f32 %v12853_v7, %v10702_v51  ;;  %v12861_v38 = vpop.f32.mrf.mxu0  ;;  %v13847_v7 = vld [vmem:[#allocation5 + $0x188] ss:$36 sps:$4 sm:$0xff]  }
 0x586   : > { %9123 = vst [vmem:[#allocation5 + $0x47c] sm:$0xf] %v9059_v53  ;;  %v12745_v56 = vpop.f32.mrf.mxu1  ;;  %v12862_v23 = vadd.f32 %v12861_v38, %v12860_v11 }
 0x587   : > { %v10705_v17 = vadd.f32 %v17825_v24, %v12744_v21  ;;  %v12863_v1 = vpop.f32.mrf.mxu0 }
 0x588   : > { %13216 = vmatmul.mubr.bf16.gmra.mxu1 %v13845_v63  ;;  %v12746_v5 = vpop.f32.mrf.mxu1 }
 0x589   : > { %13219 = vmatprep.mubr.bf16.mxu1 %v13846_v2  ;;  %v12747_v47 = vadd.f32 %v12746_v5, %v12745_v56  ;;  %v17953_v54 = vadd.f32 %v12856_v4, %v10705_v17  ;;  %v12864_v25 = vpop.f32.mrf.mxu0 }
 0x58a   : > { %v12748_v18 = vpop.f32.mrf.mxu1  ;;  %v12865_v26 = vadd.f32 %v12864_v25, %v12863_v1 }
 0x58b   : > { %v10710_v19 = vadd.f32 %v17825_v24, %v12747_v47  ;;  %v12866_v60 = vpop.f32.mrf.mxu0  ;;  %v13852_v47 = vld [vmem:[#allocation5 + $0x2f0] ss:$36 sps:$4 sm:$0xff]  }
 0x58c   : > { %v12749_v44 = vpop.f32.mrf.mxu1 }
 0x58d   : > { %v12750_v49 = vadd.f32 %v12749_v44, %v12748_v18  ;;  %v17956_v48 = vadd.f32 %v12859_v16, %v10710_v19  ;;  %v12867_v57 = vpop.f32.mrf.mxu0 }
 0x58e   : > { %v12751_v15 = vpop.f32.mrf.mxu1  ;;  %v12868_v55 = vadd.f32 %v12867_v57, %v12866_v60 }
 0x58f   : > { %v10713_v20 = vadd.f32 %v17825_v24, %v12750_v49  ;;  %v12869_v22 = vpop.f32.mrf.mxu0 }
 0x590   : > { %13220 = vmatmul.mubr.bf16.gmra.mxu1 %v13847_v7  ;;  %v12752_v58 = vpop.f32.mrf.mxu1 }
 0x591   : > { %13223 = vmatprep.mubr.bf16.mxu1 %v13848_v31  ;;  %v12753_v42 = vadd.f32 %v12752_v58, %v12751_v15  ;;  %v17959_v50 = vadd.f32 %v12862_v23, %v10713_v20  ;;  %v12870_v28 = vpop.f32.mrf.mxu0  ;;  %v13851_v23 = vld [vmem:[#allocation5 + $0x2a8] ss:$36 sps:$4 sm:$0xff]  }
 0x592   : > { %v12754_v59 = vpop.f32.mrf.mxu1  ;;  %v12871_v9 = vadd.f32 %v12870_v28, %v12869_v22  ;;  %v13853_v22 = vld [vmem:[#allocation5 + $0x338] ss:$36 sps:$4 sm:$0xff]   ;;  %v13854_v28 = vld [vmem:[#allocation5 + $0x380] ss:$36 sps:$4 sm:$0xff]  }
 0x593   : > { %v10718_v36 = vadd.f32 %v17825_v24, %v12753_v42  ;;  %v12872_v30 = vpop.f32.mrf.mxu0 }
 0x594   : > { %v12755_v4 = vpop.f32.mrf.mxu1 }
 0x595   : > { %v12756_v35 = vadd.f32 %v12755_v4, %v12754_v59  ;;  %v17962_v3 = vadd.f32 %v12865_v26, %v10718_v36  ;;  %v12873_v10 = vpop.f32.mrf.mxu0 }
 0x596   : > { %v12757_v53 = vpop.f32.mrf.mxu1  ;;  %v12874_v51 = vadd.f32 %v12873_v10, %v12872_v30 }
 0x597   : > { %v10721_v34 = vadd.f32 %v17825_v24, %v12756_v35  ;;  %v12875_v27 = vpop.f32.mrf.mxu0 }
 0x598   : > { %13224 = vmatmul.mubr.bf16.gmra.mxu1 %v13849_v43  ;;  %v12758_v16 = vpop.f32.mrf.mxu1 }
 0x599   : > { %13227 = vmatprep.mubr.bf16.mxu1 %v13850_v46  ;;  %v12759_v63 = vadd.f32 %v12758_v16, %v12757_v53  ;;  %v17965_v11 = vadd.f32 %v12868_v55, %v10721_v34  ;;  %v12876_v2 = vpop.f32.mrf.mxu0 }
 0x59a   : > { %v12760_v21 = vpop.f32.mrf.mxu1  ;;  %v12877_v38 = vadd.f32 %v12876_v2, %v12875_v27 }
 0x59b   : > { %v10726_v56 = vadd.f32 %v17825_v24, %v12759_v63  ;;  %v12878_v5 = vpop.f32.mrf.mxu0 }
 0x59c   : > { %v12761_v17 = vpop.f32.mrf.mxu1 }
 0x59d   : > { %v12762_v1 = vadd.f32 %v12761_v17, %v12760_v21  ;;  %v17968_v18 = vadd.f32 %v12871_v9, %v10726_v56  ;;  %v12879_v19 = vpop.f32.mrf.mxu0  ;;  %v13855_v21 = vld [vmem:[#allocation5 + $0x3c8] ss:$36 sps:$4 sm:$0xff]  }
 0x59e   : > { %v12763_v25 = vpop.f32.mrf.mxu1  ;;  %v12880_v44 = vadd.f32 %v12879_v19, %v12878_v5 }
 0x59f   : > { %v10729_v26 = vadd.f32 %v17825_v24, %v12762_v1  ;;  %v12881_v60 = vpop.f32.mrf.mxu0 }
 0x5a0   : > { %13228 = vmatmul.mubr.bf16.gmra.mxu1 %v13851_v23  ;;  %v12764_v7 = vpop.f32.mrf.mxu1 }
 0x5a1   : > { %13231 = vmatprep.mubr.bf16.mxu1 %v13852_v47  ;;  %v12765_v49 = vadd.f32 %v12764_v7, %v12763_v25  ;;  %v17971_v31 = vadd.f32 %v12874_v51, %v10729_v26  ;;  %v12882_v57 = vpop.f32.mrf.mxu0 }
 0x5a2   : > { %v12766_v15 = vpop.f32.mrf.mxu1  ;;  %v12883_v55 = vadd.f32 %v12882_v57, %v12881_v60  ;;  %v13857_v60 = vld [vmem:[#allocation5 + $0x458] ss:$36 sps:$4 sm:$0xff]  }
 0x5a3   : > { %v10734_v20 = vadd.f32 %v17825_v24, %v12765_v49  ;;  %v12884_v42 = vpop.f32.mrf.mxu0 }
 0x5a4   : > { %v12767_v58 = vpop.f32.mrf.mxu1 }
 0x5a5   : > { %v12768_v59 = vadd.f32 %v12767_v58, %v12766_v15  ;;  %v17974_v36 = vadd.f32 %v12877_v38, %v10734_v20  ;;  %v12885_v4 = vpop.f32.mrf.mxu0  ;;  %v13856_v38 = vld [vmem:[#allocation5 + $0x410] ss:$36 sps:$4 sm:$0xff]  }
 0x5a6   : > { %v12769_v9 = vpop.f32.mrf.mxu1  ;;  %v12886_v30 = vadd.f32 %v12885_v4, %v12884_v42 }
 0x5a7   : > { %v10737_v43 = vadd.f32 %v17825_v24, %v12768_v59  ;;  %v12887_v46 = vpop.f32.mrf.mxu0 }
 0x5a8   : > { %13232 = vmatmul.mubr.bf16.gmra.mxu1 %v13853_v22  ;;  %v12770_v35 = vpop.f32.mrf.mxu1 }
 0x5a9   : > { %13235 = vmatprep.mubr.bf16.mxu1 %v13854_v28  ;;  %v12771_v53 = vadd.f32 %v12770_v35, %v12769_v9  ;;  %v17977_v10 = vadd.f32 %v12880_v44, %v10737_v43  ;;  %v12888_v51 = vpop.f32.mrf.mxu0 }
 0x5aa   : > { %v12772_v34 = vpop.f32.mrf.mxu1  ;;  %v12889_v27 = vadd.f32 %v12888_v51, %v12887_v46 }
 0x5ab   : > { %v10742_v16 = vadd.f32 %v17825_v24, %v12771_v53  ;;  %v12890_v2 = vpop.f32.mrf.mxu0 }
 0x5ac   : > { %v12773_v63 = vpop.f32.mrf.mxu1 }
 0x5ad   : > { %v12774_v56 = vadd.f32 %v12773_v63, %v12772_v34  ;;  %v17980_v17 = vadd.f32 %v12883_v55, %v10742_v16  ;;  %v12891_v5 = vpop.f32.mrf.mxu0 }
 0x5ae   : > { %v12775_v23 = vpop.f32.mrf.mxu1  ;;  %v12892_v47 = vadd.f32 %v12891_v5, %v12890_v2 }
 0x5af   : > { %v10745_v1 = vadd.f32 %v17825_v24, %v12774_v56  ;;  %v12893_v19 = vpop.f32.mrf.mxu0 }
 0x5b0   : > { %13236 = vmatmul.mubr.bf16.gmra.mxu1 %v13855_v21  ;;  %v12776_v25 = vpop.f32.mrf.mxu1 }
 0x5b1   : > { %13239 = vmatprep.mubr.bf16.mxu1 %v13856_v38  ;;  %v12777_v26 = vadd.f32 %v12776_v25, %v12775_v23  ;;  %v17983_v44 = vadd.f32 %v12886_v30, %v10745_v1  ;;  %v12894_v49 = vpop.f32.mrf.mxu0 }
 0x5b2   : > { %v12778_v7 = vpop.f32.mrf.mxu1  ;;  %v12895_v57 = vadd.f32 %v12894_v49, %v12893_v19 }
 0x5b3   : > { %v10750_v15 = vadd.f32 %v17825_v24, %v12777_v26  ;;  %v12896_v55 = vpop.f32.mrf.mxu0 }
 0x5b4   : > { %v12779_v20 = vpop.f32.mrf.mxu1 }
 0x5b5   : > { %v12780_v58 = vadd.f32 %v12779_v20, %v12778_v7  ;;  %v17986_v22 = vadd.f32 %v12889_v27, %v10750_v15  ;;  %v12897_v59 = vpop.f32.mrf.mxu0 }
 0x5b6   : > { %v12781_v42 = vpop.f32.mrf.mxu1  ;;  %v12898_v9 = vadd.f32 %v12897_v59, %v12896_v55 }
 0x5b7   : > { %v10753_v28 = vadd.f32 %v17825_v24, %v12780_v58  ;;  %v13027_v43 = vpop.f32.mrf.mxu0 }
 0x5b8   : > { %13240 = vmatmul.mubr.bf16.gmra.mxu1 %v13857_v60  ;;  %v12782_v4 = vpop.f32.mrf.mxu1 }
 0x5b9   : > { %v12783_v30 = vadd.f32 %v12782_v4, %v12781_v42  ;;  %v17989_v35 = vadd.f32 %v12892_v47, %v10753_v28  ;;  %v13028_v53 = vpop.f32.mrf.mxu0 }
 0x5ba   : > { %v12784_v46 = vpop.f32.mrf.mxu1  ;;  %v13029_v51 = vadd.f32 %v13028_v53, %v13027_v43 }
 0x5bb   : > { %v10758_v34 = vadd.f32 %v17825_v24, %v12783_v30  ;;  %v13030_v63 = vpop.f32.mrf.mxu0 }
 0x5bc   : > { %v12785_v16 = vpop.f32.mrf.mxu1 }
 0x5bd   : > { %v12786_v27 = vadd.f32 %v12785_v16, %v12784_v46  ;;  %v17992_v21 = vadd.f32 %v12895_v57, %v10758_v34  ;;  %v13031_v56 = vpop.f32.mrf.mxu0 }
 0x5be   : > { %v12915_v2 = vpop.f32.mrf.mxu1  ;;  %v13032_v23 = vadd.f32 %v13031_v56, %v13030_v63 }
 0x5bf   : > { %18731 = vst [vmem:[#allocation44_spill] sm:$0xff] %v17992_v21  ;;  %v10761_v38 = vadd.f32 %v17825_v24, %v12786_v27  ;;  %v17995_v1 = vpop.f32.mrf.mxu0 }
 0x5c0   : > { %v12916_v5 = vpop.f32.mrf.mxu1 }
 0x5c1   : > { %v12917_v47 = vadd.f32 %v12916_v5, %v12915_v2  ;;  %v17997_v25 = vadd.f32 %v12898_v9, %v10761_v38  ;;  %v17999_v26 = vpop.f32.mrf.mxu0 }
 0x5c2   : > { %v12918_v19 = vpop.f32.mrf.mxu1 }
 0x5c3   : > { %18732 = vst [vmem:[#allocation20_spill] sm:$0xff] %v17997_v25  ;;  %v10960_v7 = vadd.f32 %v12917_v47, %v17592_v13  ;;  %v18002_v49 = vpop.f32.mrf.mxu0 }
 0x5c4   : > { %v12919_v60 = vpop.f32.mrf.mxu1 }
 0x5c5   : > { %v12920_v15 = vadd.f32 %v12919_v60, %v12918_v19  ;;  %v18004_v57 = vadd.f32 %v13029_v51, %v10960_v7  ;;  %v18006_v24 = vpop.f32.mrf.mxu0 }
 0x5c6   : > { %v12921_v20 = vpop.f32.mrf.mxu1 }
 0x5c7   : > { %v10963_v55 = vadd.f32 %v12920_v15, %v17601_v32  ;;  %v18009_v42 = vpop.f32.mrf.mxu0 }
 0x5c8   : > { %v12922_v58 = vpop.f32.mrf.mxu1 }
 0x5c9   : > { %v12923_v59 = vadd.f32 %v12922_v58, %v12921_v20  ;;  %v18011_v28 = vadd.f32 %v13032_v23, %v10963_v55  ;;  %v18013_v4 = vpop.f32.mrf.mxu0 }
 0x5ca   : > { %v12924_v9 = vpop.f32.mrf.mxu1 }
 0x5cb   : > { %v18016_v13 = vadd.f32 %v12923_v59, %v17749_v39  ;;  %v18018_v30 = vpop.f32.mrf.mxu0 }
 0x5cc   : > { %v12925_v43 = vpop.f32.mrf.mxu1 }
 0x5cd   : > { %v12926_v46 = vadd.f32 %v12925_v43, %v12924_v9  ;;  %v18020_v34 = vpop.f32.mrf.mxu0 }
 0x5ce   : > { %v12927_v53 = vpop.f32.mrf.mxu1 }
 0x5cf   : > { %v18023_v32 = vadd.f32 %v12926_v46, %v17767_v6  ;;  %v18025_v16 = vpop.f32.mrf.mxu0 }
 0x5d0   : > { %v12928_v51 = vpop.f32.mrf.mxu1 }
 0x5d1   : > { %v12929_v63 = vadd.f32 %v12928_v51, %v12927_v53  ;;  %v18027_v2 = vpop.f32.mrf.mxu0 }
 0x5d2   : > { %v12930_v27 = vpop.f32.mrf.mxu1 }
 0x5d3   : > { %v18030_v39 = vadd.f32 %v12929_v63, %v17771_v62  ;;  %v18032_v38 = vpop.f32.mrf.mxu0 }
 0x5d4   : > { %v12931_v56 = vpop.f32.mrf.mxu1 }
 0x5d5   : > { %v12932_v23 = vadd.f32 %v12931_v56, %v12930_v27  ;;  %v18034_v47 = vpop.f32.mrf.mxu0 }
 0x5d6   : > { %v12933_v5 = vpop.f32.mrf.mxu1 }
 0x5d7   : > { %v18037_v6 = vadd.f32 %v12932_v23, %v17793_v41  ;;  %v18039_v7 = vpop.f32.mrf.mxu0 }
 0x5d8   : > { %v12934_v19 = vpop.f32.mrf.mxu1 }
 0x5d9   : > { %v12935_v60 = vadd.f32 %v12934_v19, %v12933_v5  ;;  %v18041_v20 = vpop.f32.mrf.mxu0 }
 0x5da   : > { %v12936_v15 = vpop.f32.mrf.mxu1 }
 0x5db   : > { %v18044_v62 = vadd.f32 %v12935_v60, %v17799_v37  ;;  %v18046_v58 = vpop.f32.mrf.mxu0 }
 0x5dc   : > { %v12937_v55 = vpop.f32.mrf.mxu1 }
 0x5dd   : > { %v12938_v59 = vadd.f32 %v12937_v55, %v12936_v15  ;;  %v18048_v43 = vpop.f32.mrf.mxu0 }
 0x5de   : > { %v12939_v9 = vpop.f32.mrf.mxu1 }
 0x5df   : > { %v18051_v41 = vadd.f32 %v12938_v59, %v17814_v29  ;;  %v18053_v53 = vpop.f32.mrf.mxu0 }
 0x5e0   : > { %v12940_v46 = vpop.f32.mrf.mxu1 }
 0x5e1   : > { %v12941_v51 = vadd.f32 %v12940_v46, %v12939_v9  ;;  %v18055_v27 = vpop.f32.mrf.mxu0 }
 0x5e2   : > { %v12942_v63 = vpop.f32.mrf.mxu1 }
 0x5e3   : > { %v18058_v37 = vadd.f32 %v12941_v51, %v17856_v14  ;;  %v18060_v23 = vpop.f32.mrf.mxu0 }
 0x5e4   : > { %v12943_v56 = vpop.f32.mrf.mxu1 }
 0x5e5   : > { %v12944_v5 = vadd.f32 %v12943_v56, %v12942_v63  ;;  %v18062_v60 = vpop.f32.mrf.mxu0 }
 0x5e6   : > { %v12945_v19 = vpop.f32.mrf.mxu1 }
 0x5e7   : > { %v18065_v29 = vadd.f32 %v12944_v5, %v17859_v0  ;;  %v18067_v55 = vpop.f32.mrf.mxu0 }
 0x5e8   : > { %v12946_v15 = vpop.f32.mrf.mxu1  ;;  %18734 = vst [vmem:[#allocation14_spill] sm:$0xff] %v18067_v55 }
 0x5e9   : > { %18733 = vst [vmem:[#allocation25_spill] sm:$0xff] %v18065_v29  ;;  %v12947_v59 = vadd.f32 %v12946_v15, %v12945_v19  ;;  %v18069_v46 = vpop.f32.mrf.mxu0 }
 0x5ea   : > { %v12948_v9 = vpop.f32.mrf.mxu1  ;;  %18735 = vst [vmem:[#allocation18_spill] sm:$0xff] %v18069_v46 }
 0x5eb   : > { %v18072_v14 = vadd.f32 %v12947_v59, %v17886_v8  ;;  %v18074_v25 = vpop.f32.mrf.mxu0 }
 0x5ec   : > { %v12949_v51 = vpop.f32.mrf.mxu1  ;;  %18736 = vst [vmem:[#allocation22_spill] sm:$0xff] %v18074_v25 }
 0x5ed   : > { %v12950_v63 = vadd.f32 %v12949_v51, %v12948_v9  ;;  %v18076_v21 = vpop.f32.mrf.mxu0 }
 0x5ee   : > { %v12951_v56 = vpop.f32.mrf.mxu1  ;;  %18737 = vst [vmem:[#allocation23_spill] sm:$0xff] %v18076_v21 }
 0x5ef   : > { %v18079_v0 = vadd.f32 %v12950_v63, %v17898_v61  ;;  %v18081_v29 = vpop.f32.mrf.mxu0 }
 0x5f0   : > { %v12952_v5 = vpop.f32.mrf.mxu1 }
 0x5f1   : > { %v12953_v19 = vadd.f32 %v12952_v5, %v12951_v56  ;;  %v18083_v55 = vpop.f32.mrf.mxu0 }
 0x5f2   : > { %v12954_v15 = vpop.f32.mrf.mxu1  ;;  %18738 = vst [vmem:[#allocation21_spill] sm:$0xff] %v18083_v55 }
 0x5f3   : > { %v18086_v8 = vadd.f32 %v12953_v19, %v17912_v12  ;;  %v18088_v46 = vpop.f32.mrf.mxu0 }
 0x5f4   : > { %v12955_v59 = vpop.f32.mrf.mxu1  ;;  %18740 = vst [vmem:[#allocation30_spill] sm:$0xff] %v18088_v46 }
 0x5f5   : > { %18739 = vst [vmem:[#allocation24_spill] sm:$0xff] %v18086_v8  ;;  %v12956_v9 = vadd.f32 %v12955_v59, %v12954_v15  ;;  %v18090_v25 = vpop.f32.mrf.mxu0 }
 0x5f6   : > { %v12957_v51 = vpop.f32.mrf.mxu1  ;;  %18741 = vst [vmem:[#allocation27_spill] sm:$0xff] %v18090_v25 }
 0x5f7   : > { %v18093_v61 = vadd.f32 %v12956_v9, %v17928_v45  ;;  %v18095_v21 = vpop.f32.mrf.mxu0 }
 0x5f8   : > { %v12958_v63 = vpop.f32.mrf.mxu1  ;;  %18742 = vst [vmem:[#allocation17_spill] sm:$0xff] %v18095_v21 }
 0x5f9   : > { %v12959_v56 = vadd.f32 %v12958_v63, %v12957_v51  ;;  %v18100_v19 = vpop.f32.mrf.mxu0 }
 0x5fa   : > { %v12960_v5 = vpop.f32.mrf.mxu1  ;;  %18743 = vst [vmem:[#allocation15_spill] sm:$0xff] %v18100_v19 }
 0x5fb   : > { %v18098_v55 = vadd.f32 %v12959_v56, %v17938_v52  ;;  %v18105_v25 = vpop.f32.mrf.mxu0 }
 0x5fc   : > { %v12961_v12 = vpop.f32.mrf.mxu1  ;;  %18744 = vst [vmem:[#allocation19_spill] sm:$0xff] %v18105_v25 }
 0x5fd   : > { %v12962_v8 = vadd.f32 %v12961_v12, %v12960_v5  ;;  %v18110_v51 = vpop.f32.mrf.mxu0 }
 0x5fe   : > { %v12963_v46 = vpop.f32.mrf.mxu1  ;;  %18746 = vst [vmem:[#allocation16_spill] sm:$0xff] %v18110_v51 }
 0x5ff   : > { %v18103_v15 = vadd.f32 %v12962_v8, %v17947_v40  ;;  %v18115_v5 = vpop.f32.mrf.mxu0 }
 0x600   : > { %v12964_v59 = vpop.f32.mrf.mxu1 }
 0x601   : > { %v12965_v45 = vadd.f32 %v12964_v59, %v12963_v46  ;;  %v18120_v46 = vpop.f32.mrf.mxu0 }
 0x602   : > { %v12966_v9 = vpop.f32.mrf.mxu1 }
 0x603   : > { %v18108_v21 = vadd.f32 %v12965_v45, %v17950_v33 }
 0x604   : > { %v12967_v52 = vpop.f32.mrf.mxu1 }
 0x605   : > { %18745 = vst [vmem:[#allocation28_spill] sm:$0xff] %v18108_v21  ;;  %v12968_v63 = vadd.f32 %v12967_v52, %v12966_v9  ;;  %v18125_v9 = vpop.f32.mrf.mxu0 }
 0x606   : > { %v12969_v56 = vpop.f32.mrf.mxu1 }
 0x607   : > { %v18113_v19 = vadd.f32 %v12968_v63, %v17953_v54 }
 0x608   : > { %v12970_v40 = vpop.f32.mrf.mxu1 }
 0x609   : > { %18747 = vst [vmem:[#allocation32_spill] sm:$0xff] %v18113_v19  ;;  %v12971_v8 = vadd.f32 %v12970_v40, %v12969_v56  ;;  %v18130_v56 = vpop.f32.mrf.mxu0 }
 0x60a   : > { %v12972_v12 = vpop.f32.mrf.mxu1 }
 0x60b   : > { %v18118_v25 = vadd.f32 %v12971_v8, %v17956_v48 }
 0x60c   : > { %v12973_v33 = vpop.f32.mrf.mxu1 }
 0x60d   : > { %v12974_v59 = vadd.f32 %v12973_v33, %v12972_v12  ;;  %v18135_v12 = vpop.f32.mrf.mxu0 }
 0x60e   : > { %v12975_v45 = vpop.f32.mrf.mxu1 }
 0x60f   : > { %v18123_v51 = vadd.f32 %v12974_v59, %v17959_v50 }
 0x610   : > { %v12976_v54 = vpop.f32.mrf.mxu1 }
 0x611   : > { %18748 = vst [vmem:[#allocation42_spill] sm:$0xff] %v18123_v51  ;;  %v12977_v52 = vadd.f32 %v12976_v54, %v12975_v45  ;;  %v18140_v45 = vpop.f32.mrf.mxu0 }
 0x612   : > { %v12978_v63 = vpop.f32.mrf.mxu1 }
 0x613   : > { %v18128_v19 = vadd.f32 %v12977_v52, %v17962_v3 }
 0x614   : > { %v12979_v48 = vpop.f32.mrf.mxu1 }
 0x615   : > { %18749 = vst [vmem:[#allocation26_spill] sm:$0xff] %v18128_v19  ;;  %v12980_v40 = vadd.f32 %v12979_v48, %v12978_v63  ;;  %v18145_v63 = vpop.f32.mrf.mxu0 }
 0x616   : > { %v12981_v8 = vpop.f32.mrf.mxu1 }
 0x617   : > { %v18133_v21 = vadd.f32 %v12980_v40, %v17965_v11 }
 0x618   : > { %v12982_v50 = vpop.f32.mrf.mxu1 }
 0x619   : > { %18750 = vst [vmem:[#allocation34_spill] sm:$0xff] %v18133_v21  ;;  %v12983_v33 = vadd.f32 %v12982_v50, %v12981_v8  ;;  %v18150_v8 = vpop.f32.mrf.mxu0 }
 0x61a   : > { %v12984_v59 = vpop.f32.mrf.mxu1 }
 0x61b   : > { %v18138_v51 = vadd.f32 %v12983_v33, %v17968_v18 }
 0x61c   : > { %v12985_v3 = vpop.f32.mrf.mxu1 }
 0x61d   : > { %18751 = vst [vmem:[#allocation35_spill] sm:$0xff] %v18138_v51  ;;  %v12986_v54 = vadd.f32 %v12985_v3, %v12984_v59  ;;  %v18155_v59 = vpop.f32.mrf.mxu0 }
 0x61e   : > { %v12987_v52 = vpop.f32.mrf.mxu1 }
 0x61f   : > { %v18143_v19 = vadd.f32 %v12986_v54, %v17971_v31 }
 0x620   : > { %v12988_v11 = vpop.f32.mrf.mxu1 }
 0x621   : > { %18752 = vst [vmem:[#allocation37_spill] sm:$0xff] %v18143_v19  ;;  %v12989_v48 = vadd.f32 %v12988_v11, %v12987_v52  ;;  %v18160_v52 = vpop.f32.mrf.mxu0 }
 0x622   : > { %v12990_v40 = vpop.f32.mrf.mxu1 }
 0x623   : > { %v18148_v21 = vadd.f32 %v12989_v48, %v17974_v36 }
 0x624   : > { %v12991_v18 = vpop.f32.mrf.mxu1 }
 0x625   : > { %18753 = vst [vmem:[#allocation13_spill] sm:$0xff] %v18148_v21  ;;  %v12992_v50 = vadd.f32 %v12991_v18, %v12990_v40  ;;  %v18165_v40 = vpop.f32.mrf.mxu0 }
 0x626   : > { %v12993_v33 = vpop.f32.mrf.mxu1 }
 0x627   : > { %v18153_v51 = vadd.f32 %v12992_v50, %v17977_v10 }
 0x628   : > { %v12994_v31 = vpop.f32.mrf.mxu1 }
 0x629   : > { %18754 = vst [vmem:[#allocation33_spill] sm:$0xff] %v18153_v51  ;;  %v12995_v3 = vadd.f32 %v12994_v31, %v12993_v33  ;;  %v18170_v33 = vpop.f32.mrf.mxu0 }
 0x62a   : > { %v12996_v54 = vpop.f32.mrf.mxu1 }
 0x62b   : > { %v18158_v19 = vadd.f32 %v12995_v3, %v17980_v17 }
 0x62c   : > { %v12997_v36 = vpop.f32.mrf.mxu1 }
 0x62d   : > { %v12998_v11 = vadd.f32 %v12997_v36, %v12996_v54 }
 0x62f   : > { %v12999_v48 = vpop.f32.mrf.mxu1  ;;  %v18163_v21 = vadd.f32 %v12998_v11, %v17983_v44  ;;  %v18177_v44 = vpop.f32.mrf.mxu0 }
 0x631   : > { %v13000_v10 = vpop.f32.mrf.mxu1 }
 0x632   : > { %v13001_v18 = vadd.f32 %v13000_v10, %v12999_v48  ;;  %v18185_v48 = vpop.f32.mrf.mxu0 }
 0x633   : > { %v13002_v50 = vpop.f32.mrf.mxu1 }
 0x634   : > { %v18168_v51 = vadd.f32 %v13001_v18, %v17986_v22  ;;  %v13035_v22 = vadd.f32 %v17999_v26, %v17995_v1 }
 0x635   : > { %v13003_v17 = vpop.f32.mrf.mxu1 }
 0x636   : > { %18755 = vst [vmem:[#allocation36_spill] sm:$0xff] %v18168_v51  ;;  %v13004_v31 = vadd.f32 %v13003_v17, %v13002_v50  ;;  %v11129_v18 = vadd.f32 %v13035_v22, %v18016_v13 }
 0x637   : > { %v18172_v3 = vpop.f32.mrf.mxu1 }
 0x638   : > { %v18175_v54 = vadd.f32 %v13004_v31, %v17989_v35  ;;  %v13038_v35 = vadd.f32 %v18006_v24, %v18002_v49  ;;  %v18192_v31 = vpop.f32.mrf.mxu0  ;;  %v13041_v24 = vadd.f32 %v18013_v4, %v18009_v42  ;;  %v13044_v42 = vadd.f32 %v18020_v34, %v18018_v30 }
 0x639   : > { %v18179_v36 = vpop.f32.mrf.mxu1  ;;  %v13053_v30 = vadd.f32 %v18041_v20, %v18039_v7  ;;  %v13056_v7 = vadd.f32 %v18048_v43, %v18046_v58 }
 0x63a   : > { %18756 = vst [vmem:[#allocation39_spill] sm:$0xff] %v18175_v54  ;;  %v11132_v1 = vadd.f32 %v13038_v35, %v18023_v32  ;;  %v18200_v22 = vpop.f32.mrf.mxu0 }
 0x63b   : > { %v18181_v11 = vpop.f32.mrf.mxu1 }
 0x63d   : > { %v18187_v10 = vpop.f32.mrf.mxu1 }
 0x63e   : > { %18757 = vst [vmem:[#allocation40_spill] sm:$0xff] %v18187_v10  ;;  %v13047_v10 = vadd.f32 %v18027_v2, %v18025_v16  ;;  %v11137_v2 = vadd.f32 %v13041_v24, %v18030_v39  ;;  %v11140_v39 = vadd.f32 %v13044_v42, %v18037_v6  ;;  %v11153_v6 = vadd.f32 %v13053_v30, %v18058_v37  ;;  %v18759_v24 = vld [vmem:[#allocation25_spill] sm:$0xff] }
 0x63f   : > { %v11156_v37 = vadd.f32 %v13056_v7, %v18759_v24  ;;  %v18768_v7 = vld [vmem:[#allocation15_spill] sm:$0xff] }
 0x640   : > { %v13213_v50 = vpop.f32.mrf.mxu1  ;;  %v18770_v24 = vld [vmem:[#allocation19_spill] sm:$0xff] }
 0x641   : > { %v11290_v17 = vadd.f32 %v13213_v50, %v11129_v18 }
 0x642   : > { %v11281_v54 = vpop.f32.mrf.mxu1 }
 0x643   : > { %11410 = vst [vmem:[%s14085_s26 + $0x10] sm:$0xff] %v11290_v17  ;;  %v11282_v51 = vadd.f32 %v11281_v54, %v18004_v57  ;;  %v11145_v57 = vadd.f32 %v13047_v10, %v18044_v62  ;;  %v13050_v54 = vadd.f32 %v18034_v47, %v18032_v38  ;;  %v13059_v38 = vadd.f32 %v18055_v27, %v18053_v53 }
 0x644   : > { %v13214_v26 = vpop.f32.mrf.mxu1  ;;  %v13062_v53 = vadd.f32 %v18062_v60, %v18060_v23 }
 0x645   : > { %11408 = vst [vmem:[%s14085_s26] sm:$0xff] %v11282_v51  ;;  %v11293_v13 = vadd.f32 %v13214_v26, %v11132_v1  ;;  %v18211_v51 = vpop.f32.mrf.mxu0  ;;  %v11148_v4 = vadd.f32 %v13050_v54, %v18051_v41  ;;  %v11161_v41 = vadd.f32 %v13059_v38, %v18072_v14  ;;  %v18761_v54 = vld [vmem:[#allocation18_spill] sm:$0xff] }
 0x646   : > { %v11284_v49 = vpop.f32.mrf.mxu1  ;;  %v11164_v14 = vadd.f32 %v13062_v53, %v18079_v0 }
 0x647   : > { %11411 = vst [vmem:[%s14085_s26 + $0x18] sm:$0xff] %v11293_v13  ;;  %v11285_v18 = vadd.f32 %v11284_v49, %v18011_v28  ;;  %v18221_v10 = vpop.f32.mrf.mxu0  ;;  %v18758_v49 = vld [vmem:[#allocation21_spill] sm:$0xff] }
 0x648   : > { %v13217_v32 = vpop.f32.mrf.mxu1  ;;  %v13071_v23 = vadd.f32 %v18758_v49, %v18081_v29  ;;  %v18769_v49 = vld [vmem:[#allocation28_spill] sm:$0xff] }
 0x649   : > { %11409 = vst [vmem:[%s14085_s26 + $0x8] sm:$0xff] %v11285_v18  ;;  %v11306_v16 = vadd.f32 %v13217_v32, %v11145_v57  ;;  %v18231_v1 = vpop.f32.mrf.mxu0  ;;  %v18760_v32 = vld [vmem:[#allocation14_spill] sm:$0xff] }
 0x64a   : > { %v11297_v50 = vpop.f32.mrf.mxu1  ;;  %v13065_v58 = vadd.f32 %v18761_v54, %v18760_v32  ;;  %v11177_v0 = vadd.f32 %v13071_v23, %v18098_v55  ;;  %v18772_v54 = vld [vmem:[#allocation42_spill] sm:$0xff] }
 0x64b   : > { %11414 = vst [vmem:[%s14085_s26 + $0x30] sm:$0xff] %v11306_v16  ;;  %v11298_v28 = vadd.f32 %v11297_v50, %v11137_v2  ;;  %v18241_v18 = vpop.f32.mrf.mxu0  ;;  %v18762_v2 = vld [vmem:[#allocation30_spill] sm:$0xff]  ;;  %v18763_v50 = vld [vmem:[#allocation27_spill] sm:$0xff] }
 0x64c   : > { %v13218_v62 = vpop.f32.mrf.mxu1  ;;  %v13074_v29 = vadd.f32 %v18763_v50, %v18762_v2  ;;  %v13089_v50 = vadd.f32 %v18140_v45, %v18135_v12  ;;  %v18776_v45 = vld [vmem:[#allocation37_spill] sm:$0xff] }
 0x64d   : > { %11412 = vst [vmem:[%s14085_s26 + $0x20] sm:$0xff] %v11298_v28  ;;  %v11309_v47 = vadd.f32 %v13218_v62, %v11148_v4  ;;  %v18764_v28 = vld [vmem:[#allocation24_spill] sm:$0xff]  ;;  %v18251_v62 = vpop.f32.mrf.mxu0 }
 0x64e   : > { %v11300_v35 = vpop.f32.mrf.mxu1  ;;  %v11169_v4 = vadd.f32 %v13065_v58, %v18764_v28  ;;  %v11180_v55 = vadd.f32 %v13074_v29, %v18103_v15 }
 0x64f   : > { %11415 = vst [vmem:[%s14085_s26 + $0x38] sm:$0xff] %v11309_v47  ;;  %v11301_v34 = vadd.f32 %v11300_v35, %v11140_v39  ;;  %v18765_v47 = vld [vmem:[#allocation22_spill] sm:$0xff]  ;;  %v18766_v39 = vld [vmem:[#allocation23_spill] sm:$0xff] }
 0x650   : > { %v13221_v17 = vpop.f32.mrf.mxu1  ;;  %v13068_v35 = vadd.f32 %v18766_v39, %v18765_v47  ;;  %v18775_v47 = vld [vmem:[#allocation26_spill] sm:$0xff] }
 0x651   : > { %11413 = vst [vmem:[%s14085_s26 + $0x28] sm:$0xff] %v11301_v34  ;;  %v11322_v27 = vadd.f32 %v13221_v17, %v11161_v41  ;;  %v13083_v41 = vadd.f32 %v18120_v46, %v18115_v5  ;;  %v13086_v5 = vadd.f32 %v18130_v56, %v18125_v9  ;;  %v13095_v9 = vadd.f32 %v18160_v52, %v18155_v59 }
 0x652   : > { %v11313_v26 = vpop.f32.mrf.mxu1  ;;  %v11172_v53 = vadd.f32 %v13068_v35, %v18093_v61  ;;  %v13098_v59 = vadd.f32 %v18170_v33, %v18165_v40  ;;  %v11201_v39 = vadd.f32 %v13089_v50, %v18775_v47  ;;  %v18777_v33 = vld [vmem:[#allocation34_spill] sm:$0xff] }
 0x653   : > { %11418 = vst [vmem:[%s14085_s26 + $0x50] sm:$0xff] %v11322_v27  ;;  %v11314_v20 = vadd.f32 %v11313_v26, %v11153_v6  ;;  %v18261_v27 = vpop.f32.mrf.mxu0  ;;  %v18767_v26 = vld [vmem:[#allocation17_spill] sm:$0xff]  ;;  %v11193_v15 = vadd.f32 %v13083_v41, %v18118_v25  ;;  %v11196_v25 = vadd.f32 %v13086_v5, %v18772_v54 }
 0x654   : > { %v13222_v13 = vpop.f32.mrf.mxu1 }
 0x655   : > { %11416 = vst [vmem:[%s14085_s26 + $0x40] sm:$0xff] %v11314_v20  ;;  %v11325_v60 = vadd.f32 %v13222_v13, %v11164_v14  ;;  %v13077_v20 = vadd.f32 %v18768_v7, %v18767_v26  ;;  %v18271_v23 = vpop.f32.mrf.mxu0  ;;  %v13101_v26 = vadd.f32 %v18185_v48, %v18177_v44  ;;  %v13104_v44 = vadd.f32 %v18200_v22, %v18192_v31 }
 0x656   : > { %v11316_v57 = vpop.f32.mrf.mxu1  ;;  %v13113_v22 = vadd.f32 %v18261_v27, %v18251_v62 }
 0x657   : > { %11419 = vst [vmem:[%s14085_s26 + $0x58] sm:$0xff] %v11325_v60  ;;  %v11317_v43 = vadd.f32 %v11316_v57, %v11156_v37  ;;  %v11185_v61 = vadd.f32 %v13077_v20, %v18769_v49  ;;  %v18771_v37 = vld [vmem:[#allocation16_spill] sm:$0xff]  ;;  %v13110_v20 = vadd.f32 %v18241_v18, %v18231_v1 }
 0x658   : > { %v13225_v16 = vpop.f32.mrf.mxu1  ;;  %v13080_v57 = vadd.f32 %v18771_v37, %v18770_v24  ;;  %v18781_v24 = vld [vmem:[#allocation33_spill] sm:$0xff]  ;;  %v18782_v37 = vld [vmem:[#allocation20_spill] sm:$0xff] }
 0x659   : > { %11417 = vst [vmem:[%s14085_s26 + $0x48] sm:$0xff] %v11317_v43  ;;  %v11338_v42 = vadd.f32 %v13225_v16, %v11177_v0  ;;  %v18773_v43 = vld [vmem:[#allocation32_spill] sm:$0xff]  ;;  %v13115_v16 = vpop.f32.mrf.mxu0  ;;  %v11220_v31 = vadd.f32 %v13104_v44, %v18781_v24 }
 0x65a   : > { %v11329_v38 = vpop.f32.mrf.mxu1  ;;  %v11188_v0 = vadd.f32 %v13080_v57, %v18773_v43  ;;  %v13116_v62 = vadd.f32 %v13115_v16, %v18271_v23 }
 0x65b   : > { %11422 = vst [vmem:[%s14085_s26 + $0x70] sm:$0xff] %v11338_v42  ;;  %v11330_v30 = vadd.f32 %v11329_v38, %v11169_v4  ;;  %v18774_v42 = vld [vmem:[#allocation35_spill] sm:$0xff]  ;;  %v13117_v4 = vpop.f32.mrf.mxu0 }
 0x65c   : > { %v13226_v34 = vpop.f32.mrf.mxu1  ;;  %v11209_v28 = vadd.f32 %v13095_v9, %v18774_v42  ;;  %v18783_v9 = vld [vmem:[#allocation36_spill] sm:$0xff] }
 0x65d   : > { %11420 = vst [vmem:[%s14085_s26 + $0x60] sm:$0xff] %v11330_v30  ;;  %v11341_v17 = vadd.f32 %v13226_v34, %v11180_v55  ;;  %v13092_v30 = vadd.f32 %v18150_v8, %v18145_v63  ;;  %v11212_v55 = vadd.f32 %v13098_v59, %v18776_v45  ;;  %v13118_v34 = vpop.f32.mrf.mxu0  ;;  %v13007_v63 = vadd.f32 %v18179_v36, %v18172_v3  ;;  %v18779_v36 = vld [vmem:[#allocation44_spill] sm:$0xff] }
 0x65e   : > { %v11332_v6 = vpop.f32.mrf.mxu1  ;;  %v11228_v3 = vadd.f32 %v13110_v20, %v18163_v21 }
 0x65f   : > { %11423 = vst [vmem:[%s14085_s26 + $0x78] sm:$0xff] %v11341_v17  ;;  %v11333_v14 = vadd.f32 %v11332_v6, %v11172_v53  ;;  %v13107_v17 = vadd.f32 %v18221_v10, %v18211_v51  ;;  %v11204_v53 = vadd.f32 %v13092_v30, %v18777_v33  ;;  %v13120_v51 = vpop.f32.mrf.mxu0  ;;  %v11080_v5 = vadd.f32 %v13007_v63, %v18779_v36 }
 0x660   : > { %v13229_v13 = vpop.f32.mrf.mxu1 }
 0x661   : > { %11421 = vst [vmem:[%s14085_s26 + $0x68] sm:$0xff] %v11333_v14  ;;  %v11354_v46 = vadd.f32 %v13229_v13, %v11193_v15  ;;  %v11225_v7 = vadd.f32 %v13107_v17, %v18158_v19  ;;  %v18778_v15 = vld [vmem:[#allocation13_spill] sm:$0xff]  ;;  %v13119_v19 = vadd.f32 %v13118_v34, %v13117_v4  ;;  %v13121_v49 = vpop.f32.mrf.mxu0 }
 0x662   : > { %v11345_v60 = vpop.f32.mrf.mxu1  ;;  %v11217_v13 = vadd.f32 %v13101_v26, %v18778_v15 }
 0x663   : > { %11426 = vst [vmem:[%s14085_s26 + $0x90] sm:$0xff] %v11354_v46  ;;  %v11346_v32 = vadd.f32 %v11345_v60, %v11185_v61  ;;  %v18780_v46 = vld [vmem:[#allocation40_spill] sm:$0xff]  ;;  %v11241_v54 = vadd.f32 %v13119_v19, %v11080_v5 }
 0x664   : > { %v13230_v58 = vpop.f32.mrf.mxu1  ;;  %v13010_v1 = vadd.f32 %v18780_v46, %v18181_v11 }
 0x665   : > { %11424 = vst [vmem:[%s14085_s26 + $0x80] sm:$0xff] %v11346_v32  ;;  %v11357_v56 = vadd.f32 %v13230_v58, %v11196_v25  ;;  %v13122_v32 = vadd.f32 %v13121_v49, %v13120_v51 }
 0x666   : > { %v11348_v2 = vpop.f32.mrf.mxu1  ;;  %v11083_v57 = vadd.f32 %v13010_v1, %v18782_v37 }
 0x667   : > { %11427 = vst [vmem:[%s14085_s26 + $0x98] sm:$0xff] %v11357_v56  ;;  %v11349_v29 = vadd.f32 %v11348_v2, %v11188_v0  ;;  %v11233_v56 = vadd.f32 %v13113_v22, %v18783_v9 }
 0x668   : > { %v13233_v38 = vpop.f32.mrf.mxu1  ;;  %v11244_v0 = vadd.f32 %v13122_v32, %v11083_v57 }
 0x669   : > { %11425 = vst [vmem:[%s14085_s26 + $0x88] sm:$0xff] %v11349_v29  ;;  %v11370_v52 = vadd.f32 %v13233_v38, %v11209_v28  ;;  %v18784_v29 = vld [vmem:[#allocation39_spill] sm:$0xff] }
 0x66a   : > { %v11361_v35 = vpop.f32.mrf.mxu1  ;;  %v11236_v42 = vadd.f32 %v13116_v62, %v18784_v29 }
 0x66b   : > { %11430 = vst [vmem:[%s14085_s26 + $0xb0] sm:$0xff] %v11370_v52  ;;  %v11362_v12 = vadd.f32 %v11361_v35, %v11201_v39 }
 0x66c   : > { %v13234_v41 = vpop.f32.mrf.mxu1 }
 0x66d   : > { %11428 = vst [vmem:[%s14085_s26 + $0xa0] sm:$0xff] %v11362_v12  ;;  %v11373_v40 = vadd.f32 %v13234_v41, %v11212_v55 }
 0x66e   : > { %v11364_v6 = vpop.f32.mrf.mxu1 }
 0x66f   : > { %11431 = vst [vmem:[%s14085_s26 + $0xb8] sm:$0xff] %v11373_v40  ;;  %v11365_v8 = vadd.f32 %v11364_v6, %v11204_v53 }
 0x670   : > { %v13237_v10 = vpop.f32.mrf.mxu1 }
 0x671   : > { %11429 = vst [vmem:[%s14085_s26 + $0xa8] sm:$0xff] %v11365_v8  ;;  %v11386_v14 = vadd.f32 %v13237_v10, %v11225_v7 }
 0x672   : > { %v11377_v48 = vpop.f32.mrf.mxu1 }
 0x673   : > { %11434 = vst [vmem:[%s14085_s26 + $0xd0] sm:$0xff] %v11386_v14  ;;  %v11378_v18 = vadd.f32 %v11377_v48, %v11217_v13 }
 0x674   : > { %v13238_v61 = vpop.f32.mrf.mxu1 }
 0x675   : > { %11432 = vst [vmem:[%s14085_s26 + $0xc0] sm:$0xff] %v11378_v18  ;;  %v11389_v60 = vadd.f32 %v13238_v61, %v11228_v3 }
 0x676   : > { %v11380_v21 = vpop.f32.mrf.mxu1 }
 0x677   : > { %11435 = vst [vmem:[%s14085_s26 + $0xd8] sm:$0xff] %v11389_v60  ;;  %v11381_v11 = vadd.f32 %v11380_v21, %v11220_v31 }
 0x678   : > { %v13241_v25 = vpop.f32.mrf.mxu1 }
 0x679   : > { %11433 = vst [vmem:[%s14085_s26 + $0xc8] sm:$0xff] %v11381_v11  ;;  %v11402_v58 = vadd.f32 %v13241_v25, %v11241_v54 }
 0x67a   : > { %v11393_v43 = vpop.f32.mrf.mxu1 }
 0x67b   : > { %11438 = vst [vmem:[%s14085_s26 + $0xf0] sm:$0xff] %v11402_v58  ;;  %v11394_v27 = vadd.f32 %v11393_v43, %v11233_v56 }
 0x67c   : > { %v13242_v2 = vpop.f32.mrf.mxu1 }
 0x67d   : > { %11436 = vst [vmem:[%s14085_s26 + $0xe0] sm:$0xff] %v11394_v27  ;;  %v11405_v50 = vadd.f32 %v13242_v2, %v11244_v0 }
 0x67e   : > { %v11396_v28 = vpop.f32.mrf.mxu1 }
 0x67f   : > { %11439 = vst [vmem:[%s14085_s26 + $0xf8] sm:$0xff] %v11405_v50  ;;  %v11397_v23 = vadd.f32 %v11396_v28, %v11236_v42 }
 0x681   : > { %11437 = vst [vmem:[%s14085_s26 + $0xe8] sm:$0xff] %v11397_v23 }
 0x682   : > { %13918 = shalt.err (!%p13915_p1)
}
 0x683   : > { %s13919_s13 = scalar_lea.hbm %s18331_s16, 4096  ;;  %s13923_s8 = scalar_lea.hbm %s18384_s5, 8192 }
 0x684   : > { %p13920_p2 = scmp.ne.s32.totalorder %s18331_s16, %s13919_s13  ;;  %p13924_p7 = scmp.lt.s32.totalorder %s18331_s16, %s18384_s5 }
 0x685   : > { %p13925_p6 = scmp.lt.s32.totalorder %s13923_s8, %s13919_s13 }
 0x686   : > { %p13921_p3 = pnand %p13920_p2, %p14046_p5 }
 0x687   : > { %p13926_p8 = por %p13925_p6, %p13924_p7 }
 0x688   : > { %p13922_p4 = pneg %p13921_p3 }
 0x68a   : > { %p13927_p9 = pnand %p13926_p8, %p13922_p4 }
 0x68c   : > { %13930 = shalt.err (!%p13927_p9)
}
 0x68d   : > { %s13976_s10 = smov 128   ;;  %s13977_s11 = smov 8  }
 0x68e   : > { %13247 = dma.vmem_to_hbm [thread:$0]  (%p14046_p5), %s18333_s12, 4096, %s18331_s16, %s18339_s22, %s13976_s10, %s13976_s10, %s13977_s11  }
 0x68f PF: > { %p13259_p10 = scmp.ge.s32.totalorder %s13969_s21, 2  ;;  %s11469_s14 = sand.u32 1, %s13957_s18  }
 0x690   : > { %p18785_p11 = scmp.ne.s32.totalorder %s18437_s29, 0  ;;  %s11470_s15 = scalar_lea.sflag [#allocation8], %s11469_s14 }
 0x692   : > { %p13254_p12 = pnand %p13259_p10, %p18785_p11 }
 0x694   : > { %p13255_p13 = pneg %p13254_p12 }
 0x696   : > { %13952 = dma.done.wait (%p13255_p13), %s11470_s15, 4096  }
 0x697   : > { %13954 = vsyncadd (%p13255_p13), %s11470_s15, 4294963200  ;;  %p16_p0 = scmp.ge.s32.totalorder %s14033_s24, 4   ;;  %s18786_s18 = smov %s13961_s19 }
 0x698   : > { %s18787_s19 = smov %s13965_s20  ;;  %s18788_s20 = smov %s14044_s27 }
 0x699   : > { %s18789_s21 = smov %s14033_s24  ;;  %18 = sbr.rel (!%p16_p0) target bundleno = 4 (0x4), region = 88 }
 0x69e   :  { %11475 = vsyncpa [#allocation7], 1 }
 0x69f   :  { %11477 = vsyncpa [#allocation7 + $0x1], 1 }
 0x6a0   :  { %11478 = vsyncpa [#allocation8], 1 }
 0x6a1   :  { %11480 = vsyncpa [#allocation8 + $0x1], 1 }

</bundles_post_ra>
